<compile_context>
chip_gen: v7x
topology: tpu7x:2x2x1
jax: 0.10.0
libtpu: 0.0.40
codegen_flags: <defaults>
</compile_context>

<pallas_src>
import functools

import jax
import jax.numpy as jnp
import numpy as np
from jax import lax
from jax.experimental import pallas as pl
from jax.experimental.pallas import tpu as pltpu

EPS = 1e-5
LEAKY_SLOPE = 0.2
MXU_DTYPE = jnp.bfloat16   # matmul operand dtype (f32 accumulation on the MXU)


# --------------------------------------------------------------------------
# in-kernel helpers
# --------------------------------------------------------------------------
def _instance_norm(xf):
    """Param-free InstanceNorm2d (biased variance, eps=1e-5), two-pass."""
    inv_n = 1.0 / xf.shape[0]
    mu = jnp.sum(xf, axis=0, keepdims=True) * inv_n
    d = xf - mu
    var = jnp.sum(d * d, axis=0, keepdims=True) * inv_n
    return d * lax.rsqrt(var + EPS)


def _leaky_relu(x):
    return jnp.where(x > 0.0, x, LEAKY_SLOPE * x)


def _conv3x3_same(pad_ref, x_hwc, w_ref, b_ref):
    """'same' 3x3 conv as 9 shifted K=C matmuls over a once-padded activation.

    pad_ref : VMEM scratch (H+2, W+2, C) f32.  Border strips zeroed here
              (implicit conv padding); centre overwritten every call.
    x_hwc   : (H, W, C) value (f32 or bf16).
    w_ref   : (9, C, Cout) bf16 weights, tap-major (tap = ky*3+kx,
              i.e. PyTorch OIHW -> (ky, kx, I, O)).
    b_ref   : (1, Cout) f32 bias.
    returns : (H*W, Cout) f32.
    """
    Hp, Wp, C = pad_ref.shape
    H, W = Hp - 2, Wp - 2
    # zero ONLY the 1-px border (4 thin strips), not the whole buffer
    pad_ref[0:1, :, :] = jnp.zeros((1, Wp, C), jnp.float32)
    pad_ref[H + 1:H + 2, :, :] = jnp.zeros((1, Wp, C), jnp.float32)
    pad_ref[:, 0:1, :] = jnp.zeros((Hp, 1, C), jnp.float32)
    pad_ref[:, W + 1:W + 2, :] = jnp.zeros((Hp, 1, C), jnp.float32)
    # write activation into the centre
    pad_ref[1:H + 1, 1:W + 1, :] = x_hwc.astype(jnp.float32)

    acc = None
    for ky in range(3):
        for kx in range(3):
            win = pad_ref[ky:ky + H, kx:kx + W, :]
            win = win.astype(MXU_DTYPE).reshape(H * W, C)
            part = jnp.dot(win, w_ref[ky * 3 + kx],
                           preferred_element_type=jnp.float32)
            acc = part if acc is None else acc + part
    return acc + b_ref[...]


# --------------------------------------------------------------------------
# fused SPADEResnetBlock kernel (one grid step == one batch element)
# --------------------------------------------------------------------------
def _make_resblock_kernel(H, W, fin, fmid, fout, nh, learned_shortcut,
                          lane_dense_out):
    HW = H * W

    def kernel(*refs):
        if learned_shortcut:
            (x_ref, a0_ref, a1_ref, as_ref,
             wgb0, bgb0, wgb1, bgb1, wgbs, bgbs,
             w0, b0, w1, b1, ws,
             o_ref, pad_nh0, pad_nh1, pad_nhs, pad_f0, pad_f1) = refs
        else:
            (x_ref, a0_ref, a1_ref,
             wgb0, bgb0, wgb1, bgb1,
             w0, b0, w1, b1,
             o_ref, pad_nh0, pad_nh1, pad_f0, pad_f1) = refs

        x = x_ref[0].astype(jnp.float32)            # (H, W, fin)
        xf = x.reshape(HW, fin)
        norm_x = _instance_norm(xf)                 # shared by norm_0 / norm_s

        # --- SPADE_0 (gamma bias already has +1 folded) -> lrelu -> conv_0 ---
        gb0 = _conv3x3_same(pad_nh0, a0_ref[0], wgb0, bgb0)          # (HW, 2*fin)
        h0 = _leaky_relu(norm_x * gb0[:, :fin] + gb0[:, fin:])
        dx = _conv3x3_same(pad_f0, h0.reshape(H, W, fin), w0, b0)    # (HW, fmid)

        # --- SPADE_1 -> lrelu -> conv_1 ---
        gb1 = _conv3x3_same(pad_nh1, a1_ref[0], wgb1, bgb1)          # (HW, 2*fmid)
        h1 = _leaky_relu(_instance_norm(dx) * gb1[:, :fmid] + gb1[:, fmid:])
        main = _conv3x3_same(pad_f1, h1.reshape(H, W, fmid), w1, b1)  # (HW, fout)

        # --- shortcut branch (no activation) ---
        if learned_shortcut:
            gbs = _conv3x3_same(pad_nhs, as_ref[0], wgbs, bgbs)      # (HW, 2*fin)
            hs = norm_x * gbs[:, :fin] + gbs[:, fin:]
            x_s = jnp.dot(hs.astype(MXU_DTYPE), ws[...],
                          preferred_element_type=jnp.float32)        # (HW, fout)
        else:
            x_s = xf                                                 # fin == fout

        out = x_s + main                                             # (HW, fout)
        if lane_dense_out:
            o_ref[0] = out.astype(o_ref.dtype)       # (HW, fout), fout % 128 == 0
        else:
            o_ref[0] = out.T.astype(o_ref.dtype)     # (fout, HW), HW lane-dense

    return kernel


# --------------------------------------------------------------------------
# pallas_call wrapper (plain-JAX glue)
# --------------------------------------------------------------------------
def _full_spec(shape):
    nd = len(shape)
    return pl.BlockSpec(shape, lambda n, _nd=nd: (0,) * _nd)


def _batch_spec(shape):
    nd = len(shape)
    return pl.BlockSpec(shape, lambda n, _nd=nd: (n,) + (0,) * (_nd - 1))


def _nbytes(shape, dtype):
    return int(np.prod(shape)) * jnp.dtype(dtype).itemsize


def spade_resnet_block_forward(x_nchw, texture_information_nchw, params):
    """Exact forward semantics of SPADEResnetBlock (NCHW in / NCHW out)."""
    N, fin, H, W = x_nchw.shape
    fmid = params["w_0"].shape[-1]
    fout = params["w_1"].shape[-1]
    nh = params["spade_0"]["w_shared"].shape[-1]
    ls = params["learned_shortcut"]
    n_spade = 3 if ls else 2

    x = jnp.transpose(x_nchw, (0, 2, 3, 1))                      # NHWC f32
    seg = jnp.transpose(texture_information_nchw, (0, 2, 3, 1))  # NHWC
    if seg.shape[1:3] != (H, W):
        # TODO(synk): jax.image.resize 'nearest' index convention can differ from
        # PyTorch F.interpolate(mode='nearest') for non-integer scale factors.
        seg = jax.image.resize(seg, (N, H, W, seg.shape[-1]), method="nearest")
    n_seg = seg.shape[-1]

    spades = [params["spade_0"], params["spade_1"]]
    if ls:
        spades.append(params["spade_s"])

    # --- shared MLP of all SPADEs: ONE fused XLA conv in the wrapper (the
    #     tiny label_nc channel count has terrible in-kernel layout). ---
    w_sh = jnp.concatenate([p["w_shared"] for p in spades], axis=-1)  # (9*n_seg, k*nh)
    b_sh = jnp.concatenate([p["b_shared"] for p in spades], axis=-1)  # (1, k*nh)
    actv_all = lax.conv_general_dilated(
        seg, w_sh.reshape(3, 3, n_seg, n_spade * nh),
        window_strides=(1, 1), padding=((1, 1), (1, 1)),
        dimension_numbers=("NHWC", "HWIO", "NHWC"))
    actv_all = jax.nn.relu(actv_all + b_sh.reshape(1, 1, 1, -1)).astype(MXU_DTYPE)
    actvs = [actv_all[..., i * nh:(i + 1) * nh] for i in range(n_spade)]

    # --- fused gamma/beta weights (bf16, tap-major (9, nh, 2*C)); '+1' of the
    #     modulation folded into the gamma bias. ---
    def _gb(p, c):
        w = jnp.concatenate([p["w_gamma"], p["w_beta"]], axis=-1)        # (9*nh, 2c)
        b = jnp.concatenate([p["b_gamma"] + 1.0, p["b_beta"]], axis=-1)  # (1, 2c)
        return w.reshape(9, nh, 2 * c).astype(MXU_DTYPE), b

    w_gb0, b_gb0 = _gb(params["spade_0"], fin)
    w_gb1, b_gb1 = _gb(params["spade_1"], fmid)
    w0 = params["w_0"].reshape(9, fin, fmid).astype(MXU_DTYPE)
    b0 = params["b_0"]
    w1 = params["w_1"].reshape(9, fmid, fout).astype(MXU_DTYPE)
    b1 = params["b_1"]

    flat = [(x, _batch_spec((1, H, W, fin)))]
    flat += [(a, _batch_spec((1, H, W, nh))) for a in actvs]
    flat += [(w_gb0, None), (b_gb0, None), (w_gb1, None), (b_gb1, None)]
    if ls:
        w_gbs, b_gbs = _gb(params["spade_s"], fin)
        flat += [(w_gbs, None), (b_gbs, None)]
    flat += [(w0, None), (b0, None), (w1, None), (b1, None)]
    if ls:
        w_s = params["w_s"].astype(MXU_DTYPE)                        # (fin, fout)
        flat += [(w_s, None)]
    args = [a for a, _ in flat]
    in_specs = [s if s is not None else _full_spec(a.shape) for a, s in flat]

    # --- scratch: one padded activation buffer per conv (no RAW/WAR reuse) ---
    scratch = [pltpu.VMEM((H + 2, W + 2, nh), jnp.float32) for _ in range(n_spade)]
    scratch += [pltpu.VMEM((H + 2, W + 2, fin), jnp.float32),
                pltpu.VMEM((H + 2, W + 2, fmid), jnp.float32)]

    lane_dense_out = (fout % 128 == 0)
    out_block = (1, H * W, fout) if lane_dense_out else (1, fout, H * W)
    out_shape = jax.ShapeDtypeStruct((N,) + out_block[1:], x_nchw.dtype)

    # --- explicit VMEM budget (double-buffered blocks + weights + scratch) ---
    need = 2 * _nbytes((1, H, W, fin), x.dtype)
    need += 2 * n_spade * _nbytes((1, H, W, nh), MXU_DTYPE)
    need += 2 * _nbytes(out_block, x_nchw.dtype)
    for a, _ in flat[1 + n_spade:]:
        need += 2 * a.size * a.dtype.itemsize
    need += n_spade * _nbytes((H + 2, W + 2, nh), jnp.float32)
    need += _nbytes((H + 2, W + 2, fin), jnp.float32)
    need += _nbytes((H + 2, W + 2, fmid), jnp.float32)
    # allowance for live f32 intermediates (norm_x, gb*, dx, h*, acc, out)
    need += 16 * H * W * max(2 * fin, 2 * fmid, fout, nh) * 4
    try:
        vmem_cap = int(pltpu.get_tpu_info().vmem_capacity_bytes)
    except Exception:
        vmem_cap = 64 << 20
    vmem_limit = int(min(max(2 * need, 16 << 20), int(vmem_cap * 0.9)))

    kernel = _make_resblock_kernel(H, W, fin, fmid, fout, nh, ls, lane_dense_out)

    out = pl.pallas_call(
        kernel,
        out_shape=out_shape,
        grid=(N,),
        in_specs=in_specs,
        out_specs=_batch_spec(out_block),
        scratch_shapes=scratch,
        compiler_params=pltpu.CompilerParams(
            dimension_semantics=("parallel",),      # v7x: 2 TCs share the batch
            vmem_limit_bytes=vmem_limit),
    )(*args)

    if lane_dense_out:
        return jnp.transpose(out, (0, 2, 1)).reshape(N, fout, H, W)
    return out.reshape(N, fout, H, W)


# --------------------------------------------------------------------------
# deterministic parameter setup (plain JAX glue)
# --------------------------------------------------------------------------
def _conv_w(key, cout, cin, k):
    fan_in = cin * k * k
    return jax.random.normal(key, (cout, cin, k, k), jnp.float32) / jnp.sqrt(fan_in)


def _spectral_normalize(w, key, n_iter=1):
    # TODO(synk): PyTorch's spectral_norm keeps a persistent `u` buffer; here the
    # same power iteration is run once at setup with a deterministic u.
    cout = w.shape[0]
    wm = w.reshape(cout, -1)
    u = jax.random.normal(key, (cout,), jnp.float32)
    u = u / (jnp.linalg.norm(u) + 1e-12)
    v = jnp.zeros((wm.shape[1],), jnp.float32)
    for _ in range(n_iter):
        v = wm.T @ u
        v = v / (jnp.linalg.norm(v) + 1e-12)
        u = wm @ v
        u = u / (jnp.linalg.norm(u) + 1e-12)
    sigma = jnp.dot(u, wm @ v)
    return w / sigma


def _to_k3(w_oihw):
    """(O, I, 3, 3) -> (9*I, O), tap-major / channel-minor."""
    o, i = w_oihw.shape[0], w_oihw.shape[1]
    return jnp.transpose(w_oihw, (2, 3, 1, 0)).reshape(9 * i, o)


def _init_spade_params(key, c, label_nc, nhidden):
    ks = jax.random.split(key, 6)
    return dict(
        w_shared=_to_k3(_conv_w(ks[0], nhidden, label_nc, 3)),
        b_shared=0.01 * jax.random.normal(ks[3], (1, nhidden), jnp.float32),
        w_gamma=_to_k3(_conv_w(ks[1], c, nhidden, 3)),
        b_gamma=0.01 * jax.random.normal(ks[4], (1, c), jnp.float32),
        w_beta=_to_k3(_conv_w(ks[2], c, nhidden, 3)),
        b_beta=0.01 * jax.random.normal(ks[5], (1, c), jnp.float32),
    )


def init_spade_resnet_block(key, fin, fout, norm_nc, nhidden=32):
    fmiddle = min(fin, fout)
    learned_shortcut = fin != fout
    ks = jax.random.split(key, 12)
    w0 = _spectral_normalize(_conv_w(ks[0], fmiddle, fin, 3), ks[1])
    w1 = _spectral_normalize(_conv_w(ks[2], fout, fmiddle, 3), ks[3])
    params = dict(
        learned_shortcut=learned_shortcut,
        w_0=_to_k3(w0),
        b_0=0.01 * jax.random.normal(ks[4], (1, fmiddle), jnp.float32),
        w_1=_to_k3(w1),
        b_1=0.01 * jax.random.normal(ks[5], (1, fout), jnp.float32),
        spade_0=_init_spade_params(ks[6], fin, norm_nc, nhidden),
        spade_1=_init_spade_params(ks[7], fmiddle, norm_nc, nhidden),
    )
    if learned_shortcut:
        ws = _spectral_normalize(_conv_w(ks[8], fout, fin, 1), ks[9])
        params["w_s"] = jnp.transpose(ws[:, :, 0, 0], (1, 0))   # (fin, fout), no bias
        params["spade_s"] = _init_spade_params(ks[10], fin, norm_nc, nhidden)
    return params


# --------------------------------------------------------------------------
# pure-JAX reference (correctness check only)
# --------------------------------------------------------------------------
def _reference_forward(x_nchw, seg_nchw, params):
    x = jnp.transpose(x_nchw, (0, 2, 3, 1))
    seg = jnp.transpose(seg_nchw, (0, 2, 3, 1))
    N, H, W, _ = x.shape
    if seg.shape[1:3] != (H, W):
        seg = jax.image.resize(seg, (N, H, W, seg.shape[-1]), method="nearest")

    def conv3(xx, wflat, b=None):
        cin, cout = wflat.shape[0] // 9, wflat.shape[1]
        w = wflat.reshape(3, 3, cin, cout)  # HWIO
        out = lax.conv_general_dilated(
            xx, w, (1, 1), ((1, 1), (1, 1)),
            dimension_numbers=("NHWC", "HWIO", "NHWC"))
        return out if b is None else out + b.reshape(1, 1, 1, -1)

    def spade(xx, p, act):
        actv = jax.nn.relu(conv3(seg, p["w_shared"], p["b_shared"]))
        gamma = conv3(actv, p["w_gamma"], p["b_gamma"])
        beta = conv3(actv, p["w_beta"], p["b_beta"])
        mu = xx.mean(axis=(1, 2), keepdims=True)
        var = ((xx - mu) ** 2).mean(axis=(1, 2), keepdims=True)
        nrm = (xx - mu) / jnp.sqrt(var + EPS)
        out = nrm * (1.0 + gamma) + beta
        return jnp.where(out > 0, out, LEAKY_SLOPE * out) if act else out

    if params["learned_shortcut"]:
        x_s = jnp.einsum("nhwc,cd->nhwd",
                         spade(x, params["spade_s"], False), params["w_s"])
    else:
        x_s = x
    dx = conv3(spade(x, params["spade_0"], True), params["w_0"], params["b_0"])
    dx = conv3(spade(dx, params["spade_1"], True), params["w_1"], params["b_1"])
    return jnp.transpose(x_s + dx, (0, 3, 1, 2))


# --------------------------------------------------------------------------
if __name__ == "__main__":
    key = jax.random.PRNGKey(0)
    k_param, k_x, k_seg, k_param2 = jax.random.split(key, 4)

    N, fin, fout, H, W, norm_nc = 2, 4, 8, 16, 16, 3

    x = jax.random.normal(k_x, (N, fin, H, W), jnp.float32)
    texture_information = jax.random.normal(k_seg, (N, norm_nc, H, W), jnp.float32)

    # tolerance: kernel uses bf16 MXU operands (f32 accumulate) vs. f32 reference
    TOL = dict(rtol=2e-2, atol=2e-2)

    # --- config 1: learned shortcut (fin != fout) ---
    params = init_spade_resnet_block(k_param, fin, fout, norm_nc, nhidden=32)
    fwd = jax.jit(functools.partial(spade_resnet_block_forward, params=params))
    out = jax.block_until_ready(fwd(x, texture_information))
    assert out.shape == (N, fout, H, W), out.shape
    ref = jax.block_until_ready(_reference_forward(x, texture_information, params))
    np.testing.assert_allclose(np.asarray(out), np.asarray(ref), **TOL)

    # --- config 2: identity shortcut (fin == fout) ---
    params2 = init_spade_resnet_block(k_param2, fout, fout, norm_nc, nhidden=32)
    x2 = jax.random.normal(k_x, (N, fout, H, W), jnp.float32)
    fwd2 = jax.jit(functools.partial(spade_resnet_block_forward, params=params2))
    out2 = jax.block_until_ready(fwd2(x2, texture_information))
    assert out2.shape == (N, fout, H, W), out2.shape
    ref2 = jax.block_until_ready(_reference_forward(x2, texture_information, params2))
    np.testing.assert_allclose(np.asarray(out2), np.asarray(ref2), **TOL)

    print("KERNEL_OK")
</pallas_src>

<mosaic_0001>
module attributes {stable_mosaic.version = 11 : i64} {
  func.func @kernel(%arg0: i32, %arg1: memref<1x16x16x4xf32, #tpu.memory_space<vmem>>, %arg2: memref<1x16x16x32xbf16, #tpu.memory_space<vmem>>, %arg3: memref<1x16x16x32xbf16, #tpu.memory_space<vmem>>, %arg4: memref<1x16x16x32xbf16, #tpu.memory_space<vmem>>, %arg5: memref<9x32x8xbf16, #tpu.memory_space<vmem>>, %arg6: memref<1x8xf32, #tpu.memory_space<vmem>>, %arg7: memref<9x32x8xbf16, #tpu.memory_space<vmem>>, %arg8: memref<1x8xf32, #tpu.memory_space<vmem>>, %arg9: memref<9x32x8xbf16, #tpu.memory_space<vmem>>, %arg10: memref<1x8xf32, #tpu.memory_space<vmem>>, %arg11: memref<9x4x4xbf16, #tpu.memory_space<vmem>>, %arg12: memref<1x4xf32, #tpu.memory_space<vmem>>, %arg13: memref<9x4x8xbf16, #tpu.memory_space<vmem>>, %arg14: memref<1x8xf32, #tpu.memory_space<vmem>>, %arg15: memref<4x8xbf16, #tpu.memory_space<vmem>>, %arg16: memref<1x8x256xf32, #tpu.memory_space<vmem>>, %arg17: memref<18x18x32xf32, #tpu.memory_space<vmem>>, %arg18: memref<18x18x32xf32, #tpu.memory_space<vmem>>, %arg19: memref<18x18x32xf32, #tpu.memory_space<vmem>>, %arg20: memref<18x18x4xf32, #tpu.memory_space<vmem>>, %arg21: memref<18x18x4xf32, #tpu.memory_space<vmem>>) attributes {dimension_semantics = [#tpu.dimension_semantics<parallel>], iteration_bounds = array<i64: 2>, scalar_prefetch = 0 : i64, scratch_operands = 5 : i64, tpu.core_type = #tpu.core_type<tc>, window_params = [{transform_indices = @transform_0, window_bounds = array<i64: 1, 16, 16, 4>}, {transform_indices = @transform_1, window_bounds = array<i64: 1, 16, 16, 32>}, {transform_indices = @transform_2, window_bounds = array<i64: 1, 16, 16, 32>}, {transform_indices = @transform_3, window_bounds = array<i64: 1, 16, 16, 32>}, {pipeline_mode = #tpu.pipeline_mode<synchronous>, transform_indices = @transform_4, window_bounds = array<i64: 9, 32, 8>}, {pipeline_mode = #tpu.pipeline_mode<synchronous>, transform_indices = @transform_5, window_bounds = array<i64: 1, 8>}, {pipeline_mode = #tpu.pipeline_mode<synchronous>, transform_indices = @transform_6, window_bounds = array<i64: 9, 32, 8>}, {pipeline_mode = #tpu.pipeline_mode<synchronous>, transform_indices = @transform_7, window_bounds = array<i64: 1, 8>}, {pipeline_mode = #tpu.pipeline_mode<synchronous>, transform_indices = @transform_8, window_bounds = array<i64: 9, 32, 8>}, {pipeline_mode = #tpu.pipeline_mode<synchronous>, transform_indices = @transform_9, window_bounds = array<i64: 1, 8>}, {pipeline_mode = #tpu.pipeline_mode<synchronous>, transform_indices = @transform_10, window_bounds = array<i64: 9, 4, 4>}, {pipeline_mode = #tpu.pipeline_mode<synchronous>, transform_indices = @transform_11, window_bounds = array<i64: 1, 4>}, {pipeline_mode = #tpu.pipeline_mode<synchronous>, transform_indices = @transform_12, window_bounds = array<i64: 9, 4, 8>}, {pipeline_mode = #tpu.pipeline_mode<synchronous>, transform_indices = @transform_13, window_bounds = array<i64: 1, 8>}, {pipeline_mode = #tpu.pipeline_mode<synchronous>, transform_indices = @transform_14, window_bounds = array<i64: 4, 8>}, {transform_indices = @transform_15, window_bounds = array<i64: 1, 8, 256>}]} {
    %c0 = arith.constant 0 : index
    %c0_0 = arith.constant 0 : index
    %c0_1 = arith.constant 0 : index
    %c0_2 = arith.constant 0 : index
    %0 = vector.load %arg1[%c0, %c0_0, %c0_1, %c0_2] : memref<1x16x16x4xf32, #tpu.memory_space<vmem>>, vector<1x16x16x4xf32>
    %1 = vector.shape_cast %0 : vector<1x16x16x4xf32> to vector<16x16x4xf32>
    %2 = vector.shape_cast %1 : vector<16x16x4xf32> to vector<256x4xf32>
    %cst = arith.constant dense<0.000000e+00> : vector<4xf32>
    %3 = vector.multi_reduction <add>, %2, %cst [0] : vector<256x4xf32> to vector<4xf32>
    %4 = vector.shape_cast %3 : vector<4xf32> to vector<1x4xf32>
    %cst_3 = arith.constant 3.906250e-03 : f32
    %5 = vector.broadcast %cst_3 : f32 to vector<1x4xf32>
    %6 = arith.mulf %4, %5 : vector<1x4xf32>
    %7 = vector.broadcast %6 : vector<1x4xf32> to vector<256x4xf32>
    %8 = arith.subf %2, %7 : vector<256x4xf32>
    %9 = arith.mulf %8, %8 : vector<256x4xf32>
    %cst_4 = arith.constant dense<0.000000e+00> : vector<4xf32>
    %10 = vector.multi_reduction <add>, %9, %cst_4 [0] : vector<256x4xf32> to vector<4xf32>
    %11 = vector.shape_cast %10 : vector<4xf32> to vector<1x4xf32>
    %cst_5 = arith.constant 3.906250e-03 : f32
    %12 = vector.broadcast %cst_5 : f32 to vector<1x4xf32>
    %13 = arith.mulf %11, %12 : vector<1x4xf32>
    %cst_6 = arith.constant 9.99999974E-6 : f32
    %14 = vector.broadcast %cst_6 : f32 to vector<1x4xf32>
    %15 = arith.addf %13, %14 : vector<1x4xf32>
    %16 = math.rsqrt %15 : vector<1x4xf32>
    %17 = vector.broadcast %16 : vector<1x4xf32> to vector<256x4xf32>
    %18 = arith.mulf %8, %17 : vector<256x4xf32>
    %c0_7 = arith.constant 0 : index
    %c0_8 = arith.constant 0 : index
    %c0_9 = arith.constant 0 : index
    %c0_10 = arith.constant 0 : index
    %19 = vector.load %arg2[%c0_7, %c0_8, %c0_9, %c0_10] : memref<1x16x16x32xbf16, #tpu.memory_space<vmem>>, vector<1x16x16x32xbf16>
    %20 = vector.shape_cast %19 : vector<1x16x16x32xbf16> to vector<16x16x32xbf16>
    %cst_11 = arith.constant 0.000000e+00 : f32
    %21 = vector.broadcast %cst_11 : f32 to vector<1x18x32xf32>
    %c0_12 = arith.constant 0 : index
    %c0_13 = arith.constant 0 : index
    %c0_14 = arith.constant 0 : index
    %22 = vector.load %arg17[%c0_12, %c0_13, %c0_14] : memref<18x18x32xf32, #tpu.memory_space<vmem>>, vector<1x18x32xf32>
    tpu.vector_store %arg17[%c0_12, %c0_13, %c0_14], %21 {strides = array<i32>} : memref<18x18x32xf32, #tpu.memory_space<vmem>>, vector<1x18x32xf32>,
    %cst_15 = arith.constant 0.000000e+00 : f32
    %23 = vector.broadcast %cst_15 : f32 to vector<1x18x32xf32>
    %c17 = arith.constant 17 : index
    %c0_16 = arith.constant 0 : index
    %c0_17 = arith.constant 0 : index
    %24 = vector.load %arg17[%c17, %c0_16, %c0_17] : memref<18x18x32xf32, #tpu.memory_space<vmem>>, vector<1x18x32xf32>
    tpu.vector_store %arg17[%c17, %c0_16, %c0_17], %23 {strides = array<i32>} : memref<18x18x32xf32, #tpu.memory_space<vmem>>, vector<1x18x32xf32>,
    %cst_18 = arith.constant 0.000000e+00 : f32
    %25 = vector.broadcast %cst_18 : f32 to vector<18x1x32xf32>
    %c0_19 = arith.constant 0 : index
    %c0_20 = arith.constant 0 : index
    %c0_21 = arith.constant 0 : index
    %26 = vector.load %arg17[%c0_19, %c0_20, %c0_21] : memref<18x18x32xf32, #tpu.memory_space<vmem>>, vector<18x1x32xf32>
    tpu.vector_store %arg17[%c0_19, %c0_20, %c0_21], %25 {strides = array<i32>} : memref<18x18x32xf32, #tpu.memory_space<vmem>>, vector<18x1x32xf32>,
    %cst_22 = arith.constant 0.000000e+00 : f32
    %27 = vector.broadcast %cst_22 : f32 to vector<18x1x32xf32>
    %c0_23 = arith.constant 0 : index
    %c17_24 = arith.constant 17 : index
    %c0_25 = arith.constant 0 : index
    %28 = vector.load %arg17[%c0_23, %c17_24, %c0_25] : memref<18x18x32xf32, #tpu.memory_space<vmem>>, vector<18x1x32xf32>
    tpu.vector_store %arg17[%c0_23, %c17_24, %c0_25], %27 {strides = array<i32>} : memref<18x18x32xf32, #tpu.memory_space<vmem>>, vector<18x1x32xf32>,
    %29 = arith.extf %20 : vector<16x16x32xbf16> to vector<16x16x32xf32>
    %c1 = arith.constant 1 : index
    %c1_26 = arith.constant 1 : index
    %c0_27 = arith.constant 0 : index
    %30 = vector.load %arg17[%c1, %c1_26, %c0_27] : memref<18x18x32xf32, #tpu.memory_space<vmem>>, vector<16x16x32xf32>
    tpu.vector_store %arg17[%c1, %c1_26, %c0_27], %29 {strides = array<i32>} : memref<18x18x32xf32, #tpu.memory_space<vmem>>, vector<16x16x32xf32>,
    %c0_28 = arith.constant 0 : index
    %c0_29 = arith.constant 0 : index
    %c0_30 = arith.constant 0 : index
    %31 = vector.load %arg17[%c0_28, %c0_29, %c0_30] : memref<18x18x32xf32, #tpu.memory_space<vmem>>, vector<16x16x32xf32>
    %32 = arith.truncf %31 : vector<16x16x32xf32> to vector<16x16x32xbf16>
    %33 = vector.shape_cast %32 : vector<16x16x32xbf16> to vector<256x32xbf16>
    %c0_31 = arith.constant 0 : index
    %c0_32 = arith.constant 0 : index
    %c0_33 = arith.constant 0 : index
    %34 = vector.load %arg5[%c0_31, %c0_32, %c0_33] : memref<9x32x8xbf16, #tpu.memory_space<vmem>>, vector<1x32x8xbf16>
    %35 = vector.shape_cast %34 : vector<1x32x8xbf16> to vector<32x8xbf16>
    %cst_34 = arith.constant dense<0.000000e+00> : vector<256x8xf32>
    %36 = tpu.matmul %33, %35, %cst_34 {dimension_numbers = #tpu.dot_dimension_numbers<[1], [0], [0], [1], [0, 0, 1, 1], [], []>} : vector<256x32xbf16>, vector<32x8xbf16>, vector<256x8xf32> -> vector<256x8xf32>
    %c0_35 = arith.constant 0 : index
    %c1_36 = arith.constant 1 : index
    %c0_37 = arith.constant 0 : index
    %37 = vector.load %arg17[%c0_35, %c1_36, %c0_37] : memref<18x18x32xf32, #tpu.memory_space<vmem>>, vector<16x16x32xf32>
    %38 = arith.truncf %37 : vector<16x16x32xf32> to vector<16x16x32xbf16>
    %39 = vector.shape_cast %38 : vector<16x16x32xbf16> to vector<256x32xbf16>
    %c1_38 = arith.constant 1 : index
    %c0_39 = arith.constant 0 : index
    %c0_40 = arith.constant 0 : index
    %40 = vector.load %arg5[%c1_38, %c0_39, %c0_40] : memref<9x32x8xbf16, #tpu.memory_space<vmem>>, vector<1x32x8xbf16>
    %41 = vector.shape_cast %40 : vector<1x32x8xbf16> to vector<32x8xbf16>
    %cst_41 = arith.constant dense<0.000000e+00> : vector<256x8xf32>
    %42 = tpu.matmul %39, %41, %cst_41 {dimension_numbers = #tpu.dot_dimension_numbers<[1], [0], [0], [1], [0, 0, 1, 1], [], []>} : vector<256x32xbf16>, vector<32x8xbf16>, vector<256x8xf32> -> vector<256x8xf32>
    %43 = arith.addf %36, %42 : vector<256x8xf32>
    %c0_42 = arith.constant 0 : index
    %c2 = arith.constant 2 : index
    %c0_43 = arith.constant 0 : index
    %44 = vector.load %arg17[%c0_42, %c2, %c0_43] : memref<18x18x32xf32, #tpu.memory_space<vmem>>, vector<16x16x32xf32>
    %45 = arith.truncf %44 : vector<16x16x32xf32> to vector<16x16x32xbf16>
    %46 = vector.shape_cast %45 : vector<16x16x32xbf16> to vector<256x32xbf16>
    %c2_44 = arith.constant 2 : index
    %c0_45 = arith.constant 0 : index
    %c0_46 = arith.constant 0 : index
    %47 = vector.load %arg5[%c2_44, %c0_45, %c0_46] : memref<9x32x8xbf16, #tpu.memory_space<vmem>>, vector<1x32x8xbf16>
    %48 = vector.shape_cast %47 : vector<1x32x8xbf16> to vector<32x8xbf16>
    %cst_47 = arith.constant dense<0.000000e+00> : vector<256x8xf32>
    %49 = tpu.matmul %46, %48, %cst_47 {dimension_numbers = #tpu.dot_dimension_numbers<[1], [0], [0], [1], [0, 0, 1, 1], [], []>} : vector<256x32xbf16>, vector<32x8xbf16>, vector<256x8xf32> -> vector<256x8xf32>
    %50 = arith.addf %43, %49 : vector<256x8xf32>
    %c1_48 = arith.constant 1 : index
    %c0_49 = arith.constant 0 : index
    %c0_50 = arith.constant 0 : index
    %51 = vector.load %arg17[%c1_48, %c0_49, %c0_50] : memref<18x18x32xf32, #tpu.memory_space<vmem>>, vector<16x16x32xf32>
    %52 = arith.truncf %51 : vector<16x16x32xf32> to vector<16x16x32xbf16>
    %53 = vector.shape_cast %52 : vector<16x16x32xbf16> to vector<256x32xbf16>
    %c3 = arith.constant 3 : index
    %c0_51 = arith.constant 0 : index
    %c0_52 = arith.constant 0 : index
    %54 = vector.load %arg5[%c3, %c0_51, %c0_52] : memref<9x32x8xbf16, #tpu.memory_space<vmem>>, vector<1x32x8xbf16>
    %55 = vector.shape_cast %54 : vector<1x32x8xbf16> to vector<32x8xbf16>
    %cst_53 = arith.constant dense<0.000000e+00> : vector<256x8xf32>
    %56 = tpu.matmul %53, %55, %cst_53 {dimension_numbers = #tpu.dot_dimension_numbers<[1], [0], [0], [1], [0, 0, 1, 1], [], []>} : vector<256x32xbf16>, vector<32x8xbf16>, vector<256x8xf32> -> vector<256x8xf32>
    %57 = arith.addf %50, %56 : vector<256x8xf32>
    %c1_54 = arith.constant 1 : index
    %c1_55 = arith.constant 1 : index
    %c0_56 = arith.constant 0 : index
    %58 = vector.load %arg17[%c1_54, %c1_55, %c0_56] : memref<18x18x32xf32, #tpu.memory_space<vmem>>, vector<16x16x32xf32>
    %59 = arith.truncf %58 : vector<16x16x32xf32> to vector<16x16x32xbf16>
    %60 = vector.shape_cast %59 : vector<16x16x32xbf16> to vector<256x32xbf16>
    %c4 = arith.constant 4 : index
    %c0_57 = arith.constant 0 : index
    %c0_58 = arith.constant 0 : index
    %61 = vector.load %arg5[%c4, %c0_57, %c0_58] : memref<9x32x8xbf16, #tpu.memory_space<vmem>>, vector<1x32x8xbf16>
    %62 = vector.shape_cast %61 : vector<1x32x8xbf16> to vector<32x8xbf16>
    %cst_59 = arith.constant dense<0.000000e+00> : vector<256x8xf32>
    %63 = tpu.matmul %60, %62, %cst_59 {dimension_numbers = #tpu.dot_dimension_numbers<[1], [0], [0], [1], [0, 0, 1, 1], [], []>} : vector<256x32xbf16>, vector<32x8xbf16>, vector<256x8xf32> -> vector<256x8xf32>
    %64 = arith.addf %57, %63 : vector<256x8xf32>
    %c1_60 = arith.constant 1 : index
    %c2_61 = arith.constant 2 : index
    %c0_62 = arith.constant 0 : index
    %65 = vector.load %arg17[%c1_60, %c2_61, %c0_62] : memref<18x18x32xf32, #tpu.memory_space<vmem>>, vector<16x16x32xf32>
    %66 = arith.truncf %65 : vector<16x16x32xf32> to vector<16x16x32xbf16>
    %67 = vector.shape_cast %66 : vector<16x16x32xbf16> to vector<256x32xbf16>
    %c5 = arith.constant 5 : index
    %c0_63 = arith.constant 0 : index
    %c0_64 = arith.constant 0 : index
    %68 = vector.load %arg5[%c5, %c0_63, %c0_64] : memref<9x32x8xbf16, #tpu.memory_space<vmem>>, vector<1x32x8xbf16>
    %69 = vector.shape_cast %68 : vector<1x32x8xbf16> to vector<32x8xbf16>
    %cst_65 = arith.constant dense<0.000000e+00> : vector<256x8xf32>
    %70 = tpu.matmul %67, %69, %cst_65 {dimension_numbers = #tpu.dot_dimension_numbers<[1], [0], [0], [1], [0, 0, 1, 1], [], []>} : vector<256x32xbf16>, vector<32x8xbf16>, vector<256x8xf32> -> vector<256x8xf32>
    %71 = arith.addf %64, %70 : vector<256x8xf32>
    %c2_66 = arith.constant 2 : index
    %c0_67 = arith.constant 0 : index
    %c0_68 = arith.constant 0 : index
    %72 = vector.load %arg17[%c2_66, %c0_67, %c0_68] : memref<18x18x32xf32, #tpu.memory_space<vmem>>, vector<16x16x32xf32>
    %73 = arith.truncf %72 : vector<16x16x32xf32> to vector<16x16x32xbf16>
    %74 = vector.shape_cast %73 : vector<16x16x32xbf16> to vector<256x32xbf16>
    %c6 = arith.constant 6 : index
    %c0_69 = arith.constant 0 : index
    %c0_70 = arith.constant 0 : index
    %75 = vector.load %arg5[%c6, %c0_69, %c0_70] : memref<9x32x8xbf16, #tpu.memory_space<vmem>>, vector<1x32x8xbf16>
    %76 = vector.shape_cast %75 : vector<1x32x8xbf16> to vector<32x8xbf16>
    %cst_71 = arith.constant dense<0.000000e+00> : vector<256x8xf32>
    %77 = tpu.matmul %74, %76, %cst_71 {dimension_numbers = #tpu.dot_dimension_numbers<[1], [0], [0], [1], [0, 0, 1, 1], [], []>} : vector<256x32xbf16>, vector<32x8xbf16>, vector<256x8xf32> -> vector<256x8xf32>
    %78 = arith.addf %71, %77 : vector<256x8xf32>
    %c2_72 = arith.constant 2 : index
    %c1_73 = arith.constant 1 : index
    %c0_74 = arith.constant 0 : index
    %79 = vector.load %arg17[%c2_72, %c1_73, %c0_74] : memref<18x18x32xf32, #tpu.memory_space<vmem>>, vector<16x16x32xf32>
    %80 = arith.truncf %79 : vector<16x16x32xf32> to vector<16x16x32xbf16>
    %81 = vector.shape_cast %80 : vector<16x16x32xbf16> to vector<256x32xbf16>
    %c7 = arith.constant 7 : index
    %c0_75 = arith.constant 0 : index
    %c0_76 = arith.constant 0 : index
    %82 = vector.load %arg5[%c7, %c0_75, %c0_76] : memref<9x32x8xbf16, #tpu.memory_space<vmem>>, vector<1x32x8xbf16>
    %83 = vector.shape_cast %82 : vector<1x32x8xbf16> to vector<32x8xbf16>
    %cst_77 = arith.constant dense<0.000000e+00> : vector<256x8xf32>
    %84 = tpu.matmul %81, %83, %cst_77 {dimension_numbers = #tpu.dot_dimension_numbers<[1], [0], [0], [1], [0, 0, 1, 1], [], []>} : vector<256x32xbf16>, vector<32x8xbf16>, vector<256x8xf32> -> vector<256x8xf32>
    %85 = arith.addf %78, %84 : vector<256x8xf32>
    %c2_78 = arith.constant 2 : index
    %c2_79 = arith.constant 2 : index
    %c0_80 = arith.constant 0 : index
    %86 = vector.load %arg17[%c2_78, %c2_79, %c0_80] : memref<18x18x32xf32, #tpu.memory_space<vmem>>, vector<16x16x32xf32>
    %87 = arith.truncf %86 : vector<16x16x32xf32> to vector<16x16x32xbf16>
    %88 = vector.shape_cast %87 : vector<16x16x32xbf16> to vector<256x32xbf16>
    %c8 = arith.constant 8 : index
    %c0_81 = arith.constant 0 : index
    %c0_82 = arith.constant 0 : index
    %89 = vector.load %arg5[%c8, %c0_81, %c0_82] : memref<9x32x8xbf16, #tpu.memory_space<vmem>>, vector<1x32x8xbf16>
    %90 = vector.shape_cast %89 : vector<1x32x8xbf16> to vector<32x8xbf16>
    %cst_83 = arith.constant dense<0.000000e+00> : vector<256x8xf32>
    %91 = tpu.matmul %88, %90, %cst_83 {dimension_numbers = #tpu.dot_dimension_numbers<[1], [0], [0], [1], [0, 0, 1, 1], [], []>} : vector<256x32xbf16>, vector<32x8xbf16>, vector<256x8xf32> -> vector<256x8xf32>
    %92 = arith.addf %85, %91 : vector<256x8xf32>
    %c0_84 = arith.constant 0 : index
    %c0_85 = arith.constant 0 : index
    %93 = vector.load %arg6[%c0_84, %c0_85] : memref<1x8xf32, #tpu.memory_space<vmem>>, vector<1x8xf32>
    %94 = vector.broadcast %93 : vector<1x8xf32> to vector<256x8xf32>
    %95 = arith.addf %92, %94 : vector<256x8xf32>
    %96 = vector.extract_strided_slice %95 {offsets = [0, 0], sizes = [256, 4], strides = [1, 1]} : vector<256x8xf32> to vector<256x4xf32>
    %97 = arith.mulf %18, %96 : vector<256x4xf32>
    %98 = vector.extract_strided_slice %95 {offsets = [0, 4], sizes = [256, 4], strides = [1, 1]} : vector<256x8xf32> to vector<256x4xf32>
    %99 = arith.addf %97, %98 : vector<256x4xf32>
    %cst_86 = arith.constant 0.000000e+00 : f32
    %100 = vector.broadcast %cst_86 : f32 to vector<256x4xf32>
    %101 = arith.cmpf ogt, %99, %100 : vector<256x4xf32>
    %cst_87 = arith.constant 2.000000e-01 : f32
    %102 = vector.broadcast %cst_87 : f32 to vector<256x4xf32>
    %103 = arith.mulf %102, %99 : vector<256x4xf32>
    %104 = arith.select %101, %99, %103 : vector<256x4xi1>, vector<256x4xf32>
    %105 = vector.shape_cast %104 : vector<256x4xf32> to vector<16x16x4xf32>
    %cst_88 = arith.constant 0.000000e+00 : f32
    %106 = vector.broadcast %cst_88 : f32 to vector<1x18x4xf32>
    %c0_89 = arith.constant 0 : index
    %c0_90 = arith.constant 0 : index
    %c0_91 = arith.constant 0 : index
    %107 = vector.load %arg20[%c0_89, %c0_90, %c0_91] : memref<18x18x4xf32, #tpu.memory_space<vmem>>, vector<1x18x4xf32>
    tpu.vector_store %arg20[%c0_89, %c0_90, %c0_91], %106 {strides = array<i32>} : memref<18x18x4xf32, #tpu.memory_space<vmem>>, vector<1x18x4xf32>,
    %cst_92 = arith.constant 0.000000e+00 : f32
    %108 = vector.broadcast %cst_92 : f32 to vector<1x18x4xf32>
    %c17_93 = arith.constant 17 : index
    %c0_94 = arith.constant 0 : index
    %c0_95 = arith.constant 0 : index
    %109 = vector.load %arg20[%c17_93, %c0_94, %c0_95] : memref<18x18x4xf32, #tpu.memory_space<vmem>>, vector<1x18x4xf32>
    tpu.vector_store %arg20[%c17_93, %c0_94, %c0_95], %108 {strides = array<i32>} : memref<18x18x4xf32, #tpu.memory_space<vmem>>, vector<1x18x4xf32>,
    %cst_96 = arith.constant 0.000000e+00 : f32
    %110 = vector.broadcast %cst_96 : f32 to vector<18x1x4xf32>
    %c0_97 = arith.constant 0 : index
    %c0_98 = arith.constant 0 : index
    %c0_99 = arith.constant 0 : index
    %111 = vector.load %arg20[%c0_97, %c0_98, %c0_99] : memref<18x18x4xf32, #tpu.memory_space<vmem>>, vector<18x1x4xf32>
    tpu.vector_store %arg20[%c0_97, %c0_98, %c0_99], %110 {strides = array<i32>} : memref<18x18x4xf32, #tpu.memory_space<vmem>>, vector<18x1x4xf32>,
    %cst_100 = arith.constant 0.000000e+00 : f32
    %112 = vector.broadcast %cst_100 : f32 to vector<18x1x4xf32>
    %c0_101 = arith.constant 0 : index
    %c17_102 = arith.constant 17 : index
    %c0_103 = arith.constant 0 : index
    %113 = vector.load %arg20[%c0_101, %c17_102, %c0_103] : memref<18x18x4xf32, #tpu.memory_space<vmem>>, vector<18x1x4xf32>
    tpu.vector_store %arg20[%c0_101, %c17_102, %c0_103], %112 {strides = array<i32>} : memref<18x18x4xf32, #tpu.memory_space<vmem>>, vector<18x1x4xf32>,
    %c1_104 = arith.constant 1 : index
    %c1_105 = arith.constant 1 : index
    %c0_106 = arith.constant 0 : index
    %114 = vector.load %arg20[%c1_104, %c1_105, %c0_106] : memref<18x18x4xf32, #tpu.memory_space<vmem>>, vector<16x16x4xf32>
    tpu.vector_store %arg20[%c1_104, %c1_105, %c0_106], %105 {strides = array<i32>} : memref<18x18x4xf32, #tpu.memory_space<vmem>>, vector<16x16x4xf32>,
    %c0_107 = arith.constant 0 : index
    %c0_108 = arith.constant 0 : index
    %c0_109 = arith.constant 0 : index
    %115 = vector.load %arg20[%c0_107, %c0_108, %c0_109] : memref<18x18x4xf32, #tpu.memory_space<vmem>>, vector<16x16x4xf32>
    %116 = arith.truncf %115 : vector<16x16x4xf32> to vector<16x16x4xbf16>
    %117 = vector.shape_cast %116 : vector<16x16x4xbf16> to vector<256x4xbf16>
    %c0_110 = arith.constant 0 : index
    %c0_111 = arith.constant 0 : index
    %c0_112 = arith.constant 0 : index
    %118 = vector.load %arg11[%c0_110, %c0_111, %c0_112] : memref<9x4x4xbf16, #tpu.memory_space<vmem>>, vector<1x4x4xbf16>
    %119 = vector.shape_cast %118 : vector<1x4x4xbf16> to vector<4x4xbf16>
    %cst_113 = arith.constant dense<0.000000e+00> : vector<256x4xf32>
    %120 = tpu.matmul %117, %119, %cst_113 {dimension_numbers = #tpu.dot_dimension_numbers<[1], [0], [0], [1], [0, 0, 1, 1], [], []>} : vector<256x4xbf16>, vector<4x4xbf16>, vector<256x4xf32> -> vector<256x4xf32>
    %c0_114 = arith.constant 0 : index
    %c1_115 = arith.constant 1 : index
    %c0_116 = arith.constant 0 : index
    %121 = vector.load %arg20[%c0_114, %c1_115, %c0_116] : memref<18x18x4xf32, #tpu.memory_space<vmem>>, vector<16x16x4xf32>
    %122 = arith.truncf %121 : vector<16x16x4xf32> to vector<16x16x4xbf16>
    %123 = vector.shape_cast %122 : vector<16x16x4xbf16> to vector<256x4xbf16>
    %c1_117 = arith.constant 1 : index
    %c0_118 = arith.constant 0 : index
    %c0_119 = arith.constant 0 : index
    %124 = vector.load %arg11[%c1_117, %c0_118, %c0_119] : memref<9x4x4xbf16, #tpu.memory_space<vmem>>, vector<1x4x4xbf16>
    %125 = vector.shape_cast %124 : vector<1x4x4xbf16> to vector<4x4xbf16>
    %cst_120 = arith.constant dense<0.000000e+00> : vector<256x4xf32>
    %126 = tpu.matmul %123, %125, %cst_120 {dimension_numbers = #tpu.dot_dimension_numbers<[1], [0], [0], [1], [0, 0, 1, 1], [], []>} : vector<256x4xbf16>, vector<4x4xbf16>, vector<256x4xf32> -> vector<256x4xf32>
    %127 = arith.addf %120, %126 : vector<256x4xf32>
    %c0_121 = arith.constant 0 : index
    %c2_122 = arith.constant 2 : index
    %c0_123 = arith.constant 0 : index
    %128 = vector.load %arg20[%c0_121, %c2_122, %c0_123] : memref<18x18x4xf32, #tpu.memory_space<vmem>>, vector<16x16x4xf32>
    %129 = arith.truncf %128 : vector<16x16x4xf32> to vector<16x16x4xbf16>
    %130 = vector.shape_cast %129 : vector<16x16x4xbf16> to vector<256x4xbf16>
    %c2_124 = arith.constant 2 : index
    %c0_125 = arith.constant 0 : index
    %c0_126 = arith.constant 0 : index
    %131 = vector.load %arg11[%c2_124, %c0_125, %c0_126] : memref<9x4x4xbf16, #tpu.memory_space<vmem>>, vector<1x4x4xbf16>
    %132 = vector.shape_cast %131 : vector<1x4x4xbf16> to vector<4x4xbf16>
    %cst_127 = arith.constant dense<0.000000e+00> : vector<256x4xf32>
    %133 = tpu.matmul %130, %132, %cst_127 {dimension_numbers = #tpu.dot_dimension_numbers<[1], [0], [0], [1], [0, 0, 1, 1], [], []>} : vector<256x4xbf16>, vector<4x4xbf16>, vector<256x4xf32> -> vector<256x4xf32>
    %134 = arith.addf %127, %133 : vector<256x4xf32>
    %c1_128 = arith.constant 1 : index
    %c0_129 = arith.constant 0 : index
    %c0_130 = arith.constant 0 : index
    %135 = vector.load %arg20[%c1_128, %c0_129, %c0_130] : memref<18x18x4xf32, #tpu.memory_space<vmem>>, vector<16x16x4xf32>
    %136 = arith.truncf %135 : vector<16x16x4xf32> to vector<16x16x4xbf16>
    %137 = vector.shape_cast %136 : vector<16x16x4xbf16> to vector<256x4xbf16>
    %c3_131 = arith.constant 3 : index
    %c0_132 = arith.constant 0 : index
    %c0_133 = arith.constant 0 : index
    %138 = vector.load %arg11[%c3_131, %c0_132, %c0_133] : memref<9x4x4xbf16, #tpu.memory_space<vmem>>, vector<1x4x4xbf16>
    %139 = vector.shape_cast %138 : vector<1x4x4xbf16> to vector<4x4xbf16>
    %cst_134 = arith.constant dense<0.000000e+00> : vector<256x4xf32>
    %140 = tpu.matmul %137, %139, %cst_134 {dimension_numbers = #tpu.dot_dimension_numbers<[1], [0], [0], [1], [0, 0, 1, 1], [], []>} : vector<256x4xbf16>, vector<4x4xbf16>, vector<256x4xf32> -> vector<256x4xf32>
    %141 = arith.addf %134, %140 : vector<256x4xf32>
    %c1_135 = arith.constant 1 : index
    %c1_136 = arith.constant 1 : index
    %c0_137 = arith.constant 0 : index
    %142 = vector.load %arg20[%c1_135, %c1_136, %c0_137] : memref<18x18x4xf32, #tpu.memory_space<vmem>>, vector<16x16x4xf32>
    %143 = arith.truncf %142 : vector<16x16x4xf32> to vector<16x16x4xbf16>
    %144 = vector.shape_cast %143 : vector<16x16x4xbf16> to vector<256x4xbf16>
    %c4_138 = arith.constant 4 : index
    %c0_139 = arith.constant 0 : index
    %c0_140 = arith.constant 0 : index
    %145 = vector.load %arg11[%c4_138, %c0_139, %c0_140] : memref<9x4x4xbf16, #tpu.memory_space<vmem>>, vector<1x4x4xbf16>
    %146 = vector.shape_cast %145 : vector<1x4x4xbf16> to vector<4x4xbf16>
    %cst_141 = arith.constant dense<0.000000e+00> : vector<256x4xf32>
    %147 = tpu.matmul %144, %146, %cst_141 {dimension_numbers = #tpu.dot_dimension_numbers<[1], [0], [0], [1], [0, 0, 1, 1], [], []>} : vector<256x4xbf16>, vector<4x4xbf16>, vector<256x4xf32> -> vector<256x4xf32>
    %148 = arith.addf %141, %147 : vector<256x4xf32>
    %c1_142 = arith.constant 1 : index
    %c2_143 = arith.constant 2 : index
    %c0_144 = arith.constant 0 : index
    %149 = vector.load %arg20[%c1_142, %c2_143, %c0_144] : memref<18x18x4xf32, #tpu.memory_space<vmem>>, vector<16x16x4xf32>
    %150 = arith.truncf %149 : vector<16x16x4xf32> to vector<16x16x4xbf16>
    %151 = vector.shape_cast %150 : vector<16x16x4xbf16> to vector<256x4xbf16>
    %c5_145 = arith.constant 5 : index
    %c0_146 = arith.constant 0 : index
    %c0_147 = arith.constant 0 : index
    %152 = vector.load %arg11[%c5_145, %c0_146, %c0_147] : memref<9x4x4xbf16, #tpu.memory_space<vmem>>, vector<1x4x4xbf16>
    %153 = vector.shape_cast %152 : vector<1x4x4xbf16> to vector<4x4xbf16>
    %cst_148 = arith.constant dense<0.000000e+00> : vector<256x4xf32>
    %154 = tpu.matmul %151, %153, %cst_148 {dimension_numbers = #tpu.dot_dimension_numbers<[1], [0], [0], [1], [0, 0, 1, 1], [], []>} : vector<256x4xbf16>, vector<4x4xbf16>, vector<256x4xf32> -> vector<256x4xf32>
    %155 = arith.addf %148, %154 : vector<256x4xf32>
    %c2_149 = arith.constant 2 : index
    %c0_150 = arith.constant 0 : index
    %c0_151 = arith.constant 0 : index
    %156 = vector.load %arg20[%c2_149, %c0_150, %c0_151] : memref<18x18x4xf32, #tpu.memory_space<vmem>>, vector<16x16x4xf32>
    %157 = arith.truncf %156 : vector<16x16x4xf32> to vector<16x16x4xbf16>
    %158 = vector.shape_cast %157 : vector<16x16x4xbf16> to vector<256x4xbf16>
    %c6_152 = arith.constant 6 : index
    %c0_153 = arith.constant 0 : index
    %c0_154 = arith.constant 0 : index
    %159 = vector.load %arg11[%c6_152, %c0_153, %c0_154] : memref<9x4x4xbf16, #tpu.memory_space<vmem>>, vector<1x4x4xbf16>
    %160 = vector.shape_cast %159 : vector<1x4x4xbf16> to vector<4x4xbf16>
    %cst_155 = arith.constant dense<0.000000e+00> : vector<256x4xf32>
    %161 = tpu.matmul %158, %160, %cst_155 {dimension_numbers = #tpu.dot_dimension_numbers<[1], [0], [0], [1], [0, 0, 1, 1], [], []>} : vector<256x4xbf16>, vector<4x4xbf16>, vector<256x4xf32> -> vector<256x4xf32>
    %162 = arith.addf %155, %161 : vector<256x4xf32>
    %c2_156 = arith.constant 2 : index
    %c1_157 = arith.constant 1 : index
    %c0_158 = arith.constant 0 : index
    %163 = vector.load %arg20[%c2_156, %c1_157, %c0_158] : memref<18x18x4xf32, #tpu.memory_space<vmem>>, vector<16x16x4xf32>
    %164 = arith.truncf %163 : vector<16x16x4xf32> to vector<16x16x4xbf16>
    %165 = vector.shape_cast %164 : vector<16x16x4xbf16> to vector<256x4xbf16>
    %c7_159 = arith.constant 7 : index
    %c0_160 = arith.constant 0 : index
    %c0_161 = arith.constant 0 : index
    %166 = vector.load %arg11[%c7_159, %c0_160, %c0_161] : memref<9x4x4xbf16, #tpu.memory_space<vmem>>, vector<1x4x4xbf16>
    %167 = vector.shape_cast %166 : vector<1x4x4xbf16> to vector<4x4xbf16>
    %cst_162 = arith.constant dense<0.000000e+00> : vector<256x4xf32>
    %168 = tpu.matmul %165, %167, %cst_162 {dimension_numbers = #tpu.dot_dimension_numbers<[1], [0], [0], [1], [0, 0, 1, 1], [], []>} : vector<256x4xbf16>, vector<4x4xbf16>, vector<256x4xf32> -> vector<256x4xf32>
    %169 = arith.addf %162, %168 : vector<256x4xf32>
    %c2_163 = arith.constant 2 : index
    %c2_164 = arith.constant 2 : index
    %c0_165 = arith.constant 0 : index
    %170 = vector.load %arg20[%c2_163, %c2_164, %c0_165] : memref<18x18x4xf32, #tpu.memory_space<vmem>>, vector<16x16x4xf32>
    %171 = arith.truncf %170 : vector<16x16x4xf32> to vector<16x16x4xbf16>
    %172 = vector.shape_cast %171 : vector<16x16x4xbf16> to vector<256x4xbf16>
    %c8_166 = arith.constant 8 : index
    %c0_167 = arith.constant 0 : index
    %c0_168 = arith.constant 0 : index
    %173 = vector.load %arg11[%c8_166, %c0_167, %c0_168] : memref<9x4x4xbf16, #tpu.memory_space<vmem>>, vector<1x4x4xbf16>
    %174 = vector.shape_cast %173 : vector<1x4x4xbf16> to vector<4x4xbf16>
    %cst_169 = arith.constant dense<0.000000e+00> : vector<256x4xf32>
    %175 = tpu.matmul %172, %174, %cst_169 {dimension_numbers = #tpu.dot_dimension_numbers<[1], [0], [0], [1], [0, 0, 1, 1], [], []>} : vector<256x4xbf16>, vector<4x4xbf16>, vector<256x4xf32> -> vector<256x4xf32>
    %176 = arith.addf %169, %175 : vector<256x4xf32>
    %c0_170 = arith.constant 0 : index
    %c0_171 = arith.constant 0 : index
    %177 = vector.load %arg12[%c0_170, %c0_171] : memref<1x4xf32, #tpu.memory_space<vmem>>, vector<1x4xf32>
    %178 = vector.broadcast %177 : vector<1x4xf32> to vector<256x4xf32>
    %179 = arith.addf %176, %178 : vector<256x4xf32>
    %c0_172 = arith.constant 0 : index
    %c0_173 = arith.constant 0 : index
    %c0_174 = arith.constant 0 : index
    %c0_175 = arith.constant 0 : index
    %180 = vector.load %arg3[%c0_172, %c0_173, %c0_174, %c0_175] : memref<1x16x16x32xbf16, #tpu.memory_space<vmem>>, vector<1x16x16x32xbf16>
    %181 = vector.shape_cast %180 : vector<1x16x16x32xbf16> to vector<16x16x32xbf16>
    %cst_176 = arith.constant 0.000000e+00 : f32
    %182 = vector.broadcast %cst_176 : f32 to vector<1x18x32xf32>
    %c0_177 = arith.constant 0 : index
    %c0_178 = arith.constant 0 : index
    %c0_179 = arith.constant 0 : index
    %183 = vector.load %arg18[%c0_177, %c0_178, %c0_179] : memref<18x18x32xf32, #tpu.memory_space<vmem>>, vector<1x18x32xf32>
    tpu.vector_store %arg18[%c0_177, %c0_178, %c0_179], %182 {strides = array<i32>} : memref<18x18x32xf32, #tpu.memory_space<vmem>>, vector<1x18x32xf32>,
    %cst_180 = arith.constant 0.000000e+00 : f32
    %184 = vector.broadcast %cst_180 : f32 to vector<1x18x32xf32>
    %c17_181 = arith.constant 17 : index
    %c0_182 = arith.constant 0 : index
    %c0_183 = arith.constant 0 : index
    %185 = vector.load %arg18[%c17_181, %c0_182, %c0_183] : memref<18x18x32xf32, #tpu.memory_space<vmem>>, vector<1x18x32xf32>
    tpu.vector_store %arg18[%c17_181, %c0_182, %c0_183], %184 {strides = array<i32>} : memref<18x18x32xf32, #tpu.memory_space<vmem>>, vector<1x18x32xf32>,
    %cst_184 = arith.constant 0.000000e+00 : f32
    %186 = vector.broadcast %cst_184 : f32 to vector<18x1x32xf32>
    %c0_185 = arith.constant 0 : index
    %c0_186 = arith.constant 0 : index
    %c0_187 = arith.constant 0 : index
    %187 = vector.load %arg18[%c0_185, %c0_186, %c0_187] : memref<18x18x32xf32, #tpu.memory_space<vmem>>, vector<18x1x32xf32>
    tpu.vector_store %arg18[%c0_185, %c0_186, %c0_187], %186 {strides = array<i32>} : memref<18x18x32xf32, #tpu.memory_space<vmem>>, vector<18x1x32xf32>,
    %cst_188 = arith.constant 0.000000e+00 : f32
    %188 = vector.broadcast %cst_188 : f32 to vector<18x1x32xf32>
    %c0_189 = arith.constant 0 : index
    %c17_190 = arith.constant 17 : index
    %c0_191 = arith.constant 0 : index
    %189 = vector.load %arg18[%c0_189, %c17_190, %c0_191] : memref<18x18x32xf32, #tpu.memory_space<vmem>>, vector<18x1x32xf32>
    tpu.vector_store %arg18[%c0_189, %c17_190, %c0_191], %188 {strides = array<i32>} : memref<18x18x32xf32, #tpu.memory_space<vmem>>, vector<18x1x32xf32>,
    %190 = arith.extf %181 : vector<16x16x32xbf16> to vector<16x16x32xf32>
    %c1_192 = arith.constant 1 : index
    %c1_193 = arith.constant 1 : index
    %c0_194 = arith.constant 0 : index
    %191 = vector.load %arg18[%c1_192, %c1_193, %c0_194] : memref<18x18x32xf32, #tpu.memory_space<vmem>>, vector<16x16x32xf32>
    tpu.vector_store %arg18[%c1_192, %c1_193, %c0_194], %190 {strides = array<i32>} : memref<18x18x32xf32, #tpu.memory_space<vmem>>, vector<16x16x32xf32>,
    %c0_195 = arith.constant 0 : index
    %c0_196 = arith.constant 0 : index
    %c0_197 = arith.constant 0 : index
    %192 = vector.load %arg18[%c0_195, %c0_196, %c0_197] : memref<18x18x32xf32, #tpu.memory_space<vmem>>, vector<16x16x32xf32>
    %193 = arith.truncf %192 : vector<16x16x32xf32> to vector<16x16x32xbf16>
    %194 = vector.shape_cast %193 : vector<16x16x32xbf16> to vector<256x32xbf16>
    %c0_198 = arith.constant 0 : index
    %c0_199 = arith.constant 0 : index
    %c0_200 = arith.constant 0 : index
    %195 = vector.load %arg7[%c0_198, %c0_199, %c0_200] : memref<9x32x8xbf16, #tpu.memory_space<vmem>>, vector<1x32x8xbf16>
    %196 = vector.shape_cast %195 : vector<1x32x8xbf16> to vector<32x8xbf16>
    %cst_201 = arith.constant dense<0.000000e+00> : vector<256x8xf32>
    %197 = tpu.matmul %194, %196, %cst_201 {dimension_numbers = #tpu.dot_dimension_numbers<[1], [0], [0], [1], [0, 0, 1, 1], [], []>} : vector<256x32xbf16>, vector<32x8xbf16>, vector<256x8xf32> -> vector<256x8xf32>
    %c0_202 = arith.constant 0 : index
    %c1_203 = arith.constant 1 : index
    %c0_204 = arith.constant 0 : index
    %198 = vector.load %arg18[%c0_202, %c1_203, %c0_204] : memref<18x18x32xf32, #tpu.memory_space<vmem>>, vector<16x16x32xf32>
    %199 = arith.truncf %198 : vector<16x16x32xf32> to vector<16x16x32xbf16>
    %200 = vector.shape_cast %199 : vector<16x16x32xbf16> to vector<256x32xbf16>
    %c1_205 = arith.constant 1 : index
    %c0_206 = arith.constant 0 : index
    %c0_207 = arith.constant 0 : index
    %201 = vector.load %arg7[%c1_205, %c0_206, %c0_207] : memref<9x32x8xbf16, #tpu.memory_space<vmem>>, vector<1x32x8xbf16>
    %202 = vector.shape_cast %201 : vector<1x32x8xbf16> to vector<32x8xbf16>
    %cst_208 = arith.constant dense<0.000000e+00> : vector<256x8xf32>
    %203 = tpu.matmul %200, %202, %cst_208 {dimension_numbers = #tpu.dot_dimension_numbers<[1], [0], [0], [1], [0, 0, 1, 1], [], []>} : vector<256x32xbf16>, vector<32x8xbf16>, vector<256x8xf32> -> vector<256x8xf32>
    %204 = arith.addf %197, %203 : vector<256x8xf32>
    %c0_209 = arith.constant 0 : index
    %c2_210 = arith.constant 2 : index
    %c0_211 = arith.constant 0 : index
    %205 = vector.load %arg18[%c0_209, %c2_210, %c0_211] : memref<18x18x32xf32, #tpu.memory_space<vmem>>, vector<16x16x32xf32>
    %206 = arith.truncf %205 : vector<16x16x32xf32> to vector<16x16x32xbf16>
    %207 = vector.shape_cast %206 : vector<16x16x32xbf16> to vector<256x32xbf16>
    %c2_212 = arith.constant 2 : index
    %c0_213 = arith.constant 0 : index
    %c0_214 = arith.constant 0 : index
    %208 = vector.load %arg7[%c2_212, %c0_213, %c0_214] : memref<9x32x8xbf16, #tpu.memory_space<vmem>>, vector<1x32x8xbf16>
    %209 = vector.shape_cast %208 : vector<1x32x8xbf16> to vector<32x8xbf16>
    %cst_215 = arith.constant dense<0.000000e+00> : vector<256x8xf32>
    %210 = tpu.matmul %207, %209, %cst_215 {dimension_numbers = #tpu.dot_dimension_numbers<[1], [0], [0], [1], [0, 0, 1, 1], [], []>} : vector<256x32xbf16>, vector<32x8xbf16>, vector<256x8xf32> -> vector<256x8xf32>
    %211 = arith.addf %204, %210 : vector<256x8xf32>
    %c1_216 = arith.constant 1 : index
    %c0_217 = arith.constant 0 : index
    %c0_218 = arith.constant 0 : index
    %212 = vector.load %arg18[%c1_216, %c0_217, %c0_218] : memref<18x18x32xf32, #tpu.memory_space<vmem>>, vector<16x16x32xf32>
    %213 = arith.truncf %212 : vector<16x16x32xf32> to vector<16x16x32xbf16>
    %214 = vector.shape_cast %213 : vector<16x16x32xbf16> to vector<256x32xbf16>
    %c3_219 = arith.constant 3 : index
    %c0_220 = arith.constant 0 : index
    %c0_221 = arith.constant 0 : index
    %215 = vector.load %arg7[%c3_219, %c0_220, %c0_221] : memref<9x32x8xbf16, #tpu.memory_space<vmem>>, vector<1x32x8xbf16>
    %216 = vector.shape_cast %215 : vector<1x32x8xbf16> to vector<32x8xbf16>
    %cst_222 = arith.constant dense<0.000000e+00> : vector<256x8xf32>
    %217 = tpu.matmul %214, %216, %cst_222 {dimension_numbers = #tpu.dot_dimension_numbers<[1], [0], [0], [1], [0, 0, 1, 1], [], []>} : vector<256x32xbf16>, vector<32x8xbf16>, vector<256x8xf32> -> vector<256x8xf32>
    %218 = arith.addf %211, %217 : vector<256x8xf32>
    %c1_223 = arith.constant 1 : index
    %c1_224 = arith.constant 1 : index
    %c0_225 = arith.constant 0 : index
    %219 = vector.load %arg18[%c1_223, %c1_224, %c0_225] : memref<18x18x32xf32, #tpu.memory_space<vmem>>, vector<16x16x32xf32>
    %220 = arith.truncf %219 : vector<16x16x32xf32> to vector<16x16x32xbf16>
    %221 = vector.shape_cast %220 : vector<16x16x32xbf16> to vector<256x32xbf16>
    %c4_226 = arith.constant 4 : index
    %c0_227 = arith.constant 0 : index
    %c0_228 = arith.constant 0 : index
    %222 = vector.load %arg7[%c4_226, %c0_227, %c0_228] : memref<9x32x8xbf16, #tpu.memory_space<vmem>>, vector<1x32x8xbf16>
    %223 = vector.shape_cast %222 : vector<1x32x8xbf16> to vector<32x8xbf16>
    %cst_229 = arith.constant dense<0.000000e+00> : vector<256x8xf32>
    %224 = tpu.matmul %221, %223, %cst_229 {dimension_numbers = #tpu.dot_dimension_numbers<[1], [0], [0], [1], [0, 0, 1, 1], [], []>} : vector<256x32xbf16>, vector<32x8xbf16>, vector<256x8xf32> -> vector<256x8xf32>
    %225 = arith.addf %218, %224 : vector<256x8xf32>
    %c1_230 = arith.constant 1 : index
    %c2_231 = arith.constant 2 : index
    %c0_232 = arith.constant 0 : index
    %226 = vector.load %arg18[%c1_230, %c2_231, %c0_232] : memref<18x18x32xf32, #tpu.memory_space<vmem>>, vector<16x16x32xf32>
    %227 = arith.truncf %226 : vector<16x16x32xf32> to vector<16x16x32xbf16>
    %228 = vector.shape_cast %227 : vector<16x16x32xbf16> to vector<256x32xbf16>
    %c5_233 = arith.constant 5 : index
    %c0_234 = arith.constant 0 : index
    %c0_235 = arith.constant 0 : index
    %229 = vector.load %arg7[%c5_233, %c0_234, %c0_235] : memref<9x32x8xbf16, #tpu.memory_space<vmem>>, vector<1x32x8xbf16>
    %230 = vector.shape_cast %229 : vector<1x32x8xbf16> to vector<32x8xbf16>
    %cst_236 = arith.constant dense<0.000000e+00> : vector<256x8xf32>
    %231 = tpu.matmul %228, %230, %cst_236 {dimension_numbers = #tpu.dot_dimension_numbers<[1], [0], [0], [1], [0, 0, 1, 1], [], []>} : vector<256x32xbf16>, vector<32x8xbf16>, vector<256x8xf32> -> vector<256x8xf32>
    %232 = arith.addf %225, %231 : vector<256x8xf32>
    %c2_237 = arith.constant 2 : index
    %c0_238 = arith.constant 0 : index
    %c0_239 = arith.constant 0 : index
    %233 = vector.load %arg18[%c2_237, %c0_238, %c0_239] : memref<18x18x32xf32, #tpu.memory_space<vmem>>, vector<16x16x32xf32>
    %234 = arith.truncf %233 : vector<16x16x32xf32> to vector<16x16x32xbf16>
    %235 = vector.shape_cast %234 : vector<16x16x32xbf16> to vector<256x32xbf16>
    %c6_240 = arith.constant 6 : index
    %c0_241 = arith.constant 0 : index
    %c0_242 = arith.constant 0 : index
    %236 = vector.load %arg7[%c6_240, %c0_241, %c0_242] : memref<9x32x8xbf16, #tpu.memory_space<vmem>>, vector<1x32x8xbf16>
    %237 = vector.shape_cast %236 : vector<1x32x8xbf16> to vector<32x8xbf16>
    %cst_243 = arith.constant dense<0.000000e+00> : vector<256x8xf32>
    %238 = tpu.matmul %235, %237, %cst_243 {dimension_numbers = #tpu.dot_dimension_numbers<[1], [0], [0], [1], [0, 0, 1, 1], [], []>} : vector<256x32xbf16>, vector<32x8xbf16>, vector<256x8xf32> -> vector<256x8xf32>
    %239 = arith.addf %232, %238 : vector<256x8xf32>
    %c2_244 = arith.constant 2 : index
    %c1_245 = arith.constant 1 : index
    %c0_246 = arith.constant 0 : index
    %240 = vector.load %arg18[%c2_244, %c1_245, %c0_246] : memref<18x18x32xf32, #tpu.memory_space<vmem>>, vector<16x16x32xf32>
    %241 = arith.truncf %240 : vector<16x16x32xf32> to vector<16x16x32xbf16>
    %242 = vector.shape_cast %241 : vector<16x16x32xbf16> to vector<256x32xbf16>
    %c7_247 = arith.constant 7 : index
    %c0_248 = arith.constant 0 : index
    %c0_249 = arith.constant 0 : index
    %243 = vector.load %arg7[%c7_247, %c0_248, %c0_249] : memref<9x32x8xbf16, #tpu.memory_space<vmem>>, vector<1x32x8xbf16>
    %244 = vector.shape_cast %243 : vector<1x32x8xbf16> to vector<32x8xbf16>
    %cst_250 = arith.constant dense<0.000000e+00> : vector<256x8xf32>
    %245 = tpu.matmul %242, %244, %cst_250 {dimension_numbers = #tpu.dot_dimension_numbers<[1], [0], [0], [1], [0, 0, 1, 1], [], []>} : vector<256x32xbf16>, vector<32x8xbf16>, vector<256x8xf32> -> vector<256x8xf32>
    %246 = arith.addf %239, %245 : vector<256x8xf32>
    %c2_251 = arith.constant 2 : index
    %c2_252 = arith.constant 2 : index
    %c0_253 = arith.constant 0 : index
    %247 = vector.load %arg18[%c2_251, %c2_252, %c0_253] : memref<18x18x32xf32, #tpu.memory_space<vmem>>, vector<16x16x32xf32>
    %248 = arith.truncf %247 : vector<16x16x32xf32> to vector<16x16x32xbf16>
    %249 = vector.shape_cast %248 : vector<16x16x32xbf16> to vector<256x32xbf16>
    %c8_254 = arith.constant 8 : index
    %c0_255 = arith.constant 0 : index
    %c0_256 = arith.constant 0 : index
    %250 = vector.load %arg7[%c8_254, %c0_255, %c0_256] : memref<9x32x8xbf16, #tpu.memory_space<vmem>>, vector<1x32x8xbf16>
    %251 = vector.shape_cast %250 : vector<1x32x8xbf16> to vector<32x8xbf16>
    %cst_257 = arith.constant dense<0.000000e+00> : vector<256x8xf32>
    %252 = tpu.matmul %249, %251, %cst_257 {dimension_numbers = #tpu.dot_dimension_numbers<[1], [0], [0], [1], [0, 0, 1, 1], [], []>} : vector<256x32xbf16>, vector<32x8xbf16>, vector<256x8xf32> -> vector<256x8xf32>
    %253 = arith.addf %246, %252 : vector<256x8xf32>
    %c0_258 = arith.constant 0 : index
    %c0_259 = arith.constant 0 : index
    %254 = vector.load %arg8[%c0_258, %c0_259] : memref<1x8xf32, #tpu.memory_space<vmem>>, vector<1x8xf32>
    %255 = vector.broadcast %254 : vector<1x8xf32> to vector<256x8xf32>
    %256 = arith.addf %253, %255 : vector<256x8xf32>
    %cst_260 = arith.constant dense<0.000000e+00> : vector<4xf32>
    %257 = vector.multi_reduction <add>, %179, %cst_260 [0] : vector<256x4xf32> to vector<4xf32>
    %258 = vector.shape_cast %257 : vector<4xf32> to vector<1x4xf32>
    %cst_261 = arith.constant 3.906250e-03 : f32
    %259 = vector.broadcast %cst_261 : f32 to vector<1x4xf32>
    %260 = arith.mulf %258, %259 : vector<1x4xf32>
    %261 = vector.broadcast %260 : vector<1x4xf32> to vector<256x4xf32>
    %262 = arith.subf %179, %261 : vector<256x4xf32>
    %263 = arith.mulf %262, %262 : vector<256x4xf32>
    %cst_262 = arith.constant dense<0.000000e+00> : vector<4xf32>
    %264 = vector.multi_reduction <add>, %263, %cst_262 [0] : vector<256x4xf32> to vector<4xf32>
    %265 = vector.shape_cast %264 : vector<4xf32> to vector<1x4xf32>
    %cst_263 = arith.constant 3.906250e-03 : f32
    %266 = vector.broadcast %cst_263 : f32 to vector<1x4xf32>
    %267 = arith.mulf %265, %266 : vector<1x4xf32>
    %cst_264 = arith.constant 9.99999974E-6 : f32
    %268 = vector.broadcast %cst_264 : f32 to vector<1x4xf32>
    %269 = arith.addf %267, %268 : vector<1x4xf32>
    %270 = math.rsqrt %269 : vector<1x4xf32>
    %271 = vector.broadcast %270 : vector<1x4xf32> to vector<256x4xf32>
    %272 = arith.mulf %262, %271 : vector<256x4xf32>
    %273 = vector.extract_strided_slice %256 {offsets = [0, 0], sizes = [256, 4], strides = [1, 1]} : vector<256x8xf32> to vector<256x4xf32>
    %274 = arith.mulf %272, %273 : vector<256x4xf32>
    %275 = vector.extract_strided_slice %256 {offsets = [0, 4], sizes = [256, 4], strides = [1, 1]} : vector<256x8xf32> to vector<256x4xf32>
    %276 = arith.addf %274, %275 : vector<256x4xf32>
    %cst_265 = arith.constant 0.000000e+00 : f32
    %277 = vector.broadcast %cst_265 : f32 to vector<256x4xf32>
    %278 = arith.cmpf ogt, %276, %277 : vector<256x4xf32>
    %cst_266 = arith.constant 2.000000e-01 : f32
    %279 = vector.broadcast %cst_266 : f32 to vector<256x4xf32>
    %280 = arith.mulf %279, %276 : vector<256x4xf32>
    %281 = arith.select %278, %276, %280 : vector<256x4xi1>, vector<256x4xf32>
    %282 = vector.shape_cast %281 : vector<256x4xf32> to vector<16x16x4xf32>
    %cst_267 = arith.constant 0.000000e+00 : f32
    %283 = vector.broadcast %cst_267 : f32 to vector<1x18x4xf32>
    %c0_268 = arith.constant 0 : index
    %c0_269 = arith.constant 0 : index
    %c0_270 = arith.constant 0 : index
    %284 = vector.load %arg21[%c0_268, %c0_269, %c0_270] : memref<18x18x4xf32, #tpu.memory_space<vmem>>, vector<1x18x4xf32>
    tpu.vector_store %arg21[%c0_268, %c0_269, %c0_270], %283 {strides = array<i32>} : memref<18x18x4xf32, #tpu.memory_space<vmem>>, vector<1x18x4xf32>,
    %cst_271 = arith.constant 0.000000e+00 : f32
    %285 = vector.broadcast %cst_271 : f32 to vector<1x18x4xf32>
    %c17_272 = arith.constant 17 : index
    %c0_273 = arith.constant 0 : index
    %c0_274 = arith.constant 0 : index
    %286 = vector.load %arg21[%c17_272, %c0_273, %c0_274] : memref<18x18x4xf32, #tpu.memory_space<vmem>>, vector<1x18x4xf32>
    tpu.vector_store %arg21[%c17_272, %c0_273, %c0_274], %285 {strides = array<i32>} : memref<18x18x4xf32, #tpu.memory_space<vmem>>, vector<1x18x4xf32>,
    %cst_275 = arith.constant 0.000000e+00 : f32
    %287 = vector.broadcast %cst_275 : f32 to vector<18x1x4xf32>
    %c0_276 = arith.constant 0 : index
    %c0_277 = arith.constant 0 : index
    %c0_278 = arith.constant 0 : index
    %288 = vector.load %arg21[%c0_276, %c0_277, %c0_278] : memref<18x18x4xf32, #tpu.memory_space<vmem>>, vector<18x1x4xf32>
    tpu.vector_store %arg21[%c0_276, %c0_277, %c0_278], %287 {strides = array<i32>} : memref<18x18x4xf32, #tpu.memory_space<vmem>>, vector<18x1x4xf32>,
    %cst_279 = arith.constant 0.000000e+00 : f32
    %289 = vector.broadcast %cst_279 : f32 to vector<18x1x4xf32>
    %c0_280 = arith.constant 0 : index
    %c17_281 = arith.constant 17 : index
    %c0_282 = arith.constant 0 : index
    %290 = vector.load %arg21[%c0_280, %c17_281, %c0_282] : memref<18x18x4xf32, #tpu.memory_space<vmem>>, vector<18x1x4xf32>
    tpu.vector_store %arg21[%c0_280, %c17_281, %c0_282], %289 {strides = array<i32>} : memref<18x18x4xf32, #tpu.memory_space<vmem>>, vector<18x1x4xf32>,
    %c1_283 = arith.constant 1 : index
    %c1_284 = arith.constant 1 : index
    %c0_285 = arith.constant 0 : index
    %291 = vector.load %arg21[%c1_283, %c1_284, %c0_285] : memref<18x18x4xf32, #tpu.memory_space<vmem>>, vector<16x16x4xf32>
    tpu.vector_store %arg21[%c1_283, %c1_284, %c0_285], %282 {strides = array<i32>} : memref<18x18x4xf32, #tpu.memory_space<vmem>>, vector<16x16x4xf32>,
    %c0_286 = arith.constant 0 : index
    %c0_287 = arith.constant 0 : index
    %c0_288 = arith.constant 0 : index
    %292 = vector.load %arg21[%c0_286, %c0_287, %c0_288] : memref<18x18x4xf32, #tpu.memory_space<vmem>>, vector<16x16x4xf32>
    %293 = arith.truncf %292 : vector<16x16x4xf32> to vector<16x16x4xbf16>
    %294 = vector.shape_cast %293 : vector<16x16x4xbf16> to vector<256x4xbf16>
    %c0_289 = arith.constant 0 : index
    %c0_290 = arith.constant 0 : index
    %c0_291 = arith.constant 0 : index
    %295 = vector.load %arg13[%c0_289, %c0_290, %c0_291] : memref<9x4x8xbf16, #tpu.memory_space<vmem>>, vector<1x4x8xbf16>
    %296 = vector.shape_cast %295 : vector<1x4x8xbf16> to vector<4x8xbf16>
    %cst_292 = arith.constant dense<0.000000e+00> : vector<256x8xf32>
    %297 = tpu.matmul %294, %296, %cst_292 {dimension_numbers = #tpu.dot_dimension_numbers<[1], [0], [0], [1], [0, 0, 1, 1], [], []>} : vector<256x4xbf16>, vector<4x8xbf16>, vector<256x8xf32> -> vector<256x8xf32>
    %c0_293 = arith.constant 0 : index
    %c1_294 = arith.constant 1 : index
    %c0_295 = arith.constant 0 : index
    %298 = vector.load %arg21[%c0_293, %c1_294, %c0_295] : memref<18x18x4xf32, #tpu.memory_space<vmem>>, vector<16x16x4xf32>
    %299 = arith.truncf %298 : vector<16x16x4xf32> to vector<16x16x4xbf16>
    %300 = vector.shape_cast %299 : vector<16x16x4xbf16> to vector<256x4xbf16>
    %c1_296 = arith.constant 1 : index
    %c0_297 = arith.constant 0 : index
    %c0_298 = arith.constant 0 : index
    %301 = vector.load %arg13[%c1_296, %c0_297, %c0_298] : memref<9x4x8xbf16, #tpu.memory_space<vmem>>, vector<1x4x8xbf16>
    %302 = vector.shape_cast %301 : vector<1x4x8xbf16> to vector<4x8xbf16>
    %cst_299 = arith.constant dense<0.000000e+00> : vector<256x8xf32>
    %303 = tpu.matmul %300, %302, %cst_299 {dimension_numbers = #tpu.dot_dimension_numbers<[1], [0], [0], [1], [0, 0, 1, 1], [], []>} : vector<256x4xbf16>, vector<4x8xbf16>, vector<256x8xf32> -> vector<256x8xf32>
    %304 = arith.addf %297, %303 : vector<256x8xf32>
    %c0_300 = arith.constant 0 : index
    %c2_301 = arith.constant 2 : index
    %c0_302 = arith.constant 0 : index
    %305 = vector.load %arg21[%c0_300, %c2_301, %c0_302] : memref<18x18x4xf32, #tpu.memory_space<vmem>>, vector<16x16x4xf32>
    %306 = arith.truncf %305 : vector<16x16x4xf32> to vector<16x16x4xbf16>
    %307 = vector.shape_cast %306 : vector<16x16x4xbf16> to vector<256x4xbf16>
    %c2_303 = arith.constant 2 : index
    %c0_304 = arith.constant 0 : index
    %c0_305 = arith.constant 0 : index
    %308 = vector.load %arg13[%c2_303, %c0_304, %c0_305] : memref<9x4x8xbf16, #tpu.memory_space<vmem>>, vector<1x4x8xbf16>
    %309 = vector.shape_cast %308 : vector<1x4x8xbf16> to vector<4x8xbf16>
    %cst_306 = arith.constant dense<0.000000e+00> : vector<256x8xf32>
    %310 = tpu.matmul %307, %309, %cst_306 {dimension_numbers = #tpu.dot_dimension_numbers<[1], [0], [0], [1], [0, 0, 1, 1], [], []>} : vector<256x4xbf16>, vector<4x8xbf16>, vector<256x8xf32> -> vector<256x8xf32>
    %311 = arith.addf %304, %310 : vector<256x8xf32>
    %c1_307 = arith.constant 1 : index
    %c0_308 = arith.constant 0 : index
    %c0_309 = arith.constant 0 : index
    %312 = vector.load %arg21[%c1_307, %c0_308, %c0_309] : memref<18x18x4xf32, #tpu.memory_space<vmem>>, vector<16x16x4xf32>
    %313 = arith.truncf %312 : vector<16x16x4xf32> to vector<16x16x4xbf16>
    %314 = vector.shape_cast %313 : vector<16x16x4xbf16> to vector<256x4xbf16>
    %c3_310 = arith.constant 3 : index
    %c0_311 = arith.constant 0 : index
    %c0_312 = arith.constant 0 : index
    %315 = vector.load %arg13[%c3_310, %c0_311, %c0_312] : memref<9x4x8xbf16, #tpu.memory_space<vmem>>, vector<1x4x8xbf16>
    %316 = vector.shape_cast %315 : vector<1x4x8xbf16> to vector<4x8xbf16>
    %cst_313 = arith.constant dense<0.000000e+00> : vector<256x8xf32>
    %317 = tpu.matmul %314, %316, %cst_313 {dimension_numbers = #tpu.dot_dimension_numbers<[1], [0], [0], [1], [0, 0, 1, 1], [], []>} : vector<256x4xbf16>, vector<4x8xbf16>, vector<256x8xf32> -> vector<256x8xf32>
    %318 = arith.addf %311, %317 : vector<256x8xf32>
    %c1_314 = arith.constant 1 : index
    %c1_315 = arith.constant 1 : index
    %c0_316 = arith.constant 0 : index
    %319 = vector.load %arg21[%c1_314, %c1_315, %c0_316] : memref<18x18x4xf32, #tpu.memory_space<vmem>>, vector<16x16x4xf32>
    %320 = arith.truncf %319 : vector<16x16x4xf32> to vector<16x16x4xbf16>
    %321 = vector.shape_cast %320 : vector<16x16x4xbf16> to vector<256x4xbf16>
    %c4_317 = arith.constant 4 : index
    %c0_318 = arith.constant 0 : index
    %c0_319 = arith.constant 0 : index
    %322 = vector.load %arg13[%c4_317, %c0_318, %c0_319] : memref<9x4x8xbf16, #tpu.memory_space<vmem>>, vector<1x4x8xbf16>
    %323 = vector.shape_cast %322 : vector<1x4x8xbf16> to vector<4x8xbf16>
    %cst_320 = arith.constant dense<0.000000e+00> : vector<256x8xf32>
    %324 = tpu.matmul %321, %323, %cst_320 {dimension_numbers = #tpu.dot_dimension_numbers<[1], [0], [0], [1], [0, 0, 1, 1], [], []>} : vector<256x4xbf16>, vector<4x8xbf16>, vector<256x8xf32> -> vector<256x8xf32>
    %325 = arith.addf %318, %324 : vector<256x8xf32>
    %c1_321 = arith.constant 1 : index
    %c2_322 = arith.constant 2 : index
    %c0_323 = arith.constant 0 : index
    %326 = vector.load %arg21[%c1_321, %c2_322, %c0_323] : memref<18x18x4xf32, #tpu.memory_space<vmem>>, vector<16x16x4xf32>
    %327 = arith.truncf %326 : vector<16x16x4xf32> to vector<16x16x4xbf16>
    %328 = vector.shape_cast %327 : vector<16x16x4xbf16> to vector<256x4xbf16>
    %c5_324 = arith.constant 5 : index
    %c0_325 = arith.constant 0 : index
    %c0_326 = arith.constant 0 : index
    %329 = vector.load %arg13[%c5_324, %c0_325, %c0_326] : memref<9x4x8xbf16, #tpu.memory_space<vmem>>, vector<1x4x8xbf16>
    %330 = vector.shape_cast %329 : vector<1x4x8xbf16> to vector<4x8xbf16>
    %cst_327 = arith.constant dense<0.000000e+00> : vector<256x8xf32>
    %331 = tpu.matmul %328, %330, %cst_327 {dimension_numbers = #tpu.dot_dimension_numbers<[1], [0], [0], [1], [0, 0, 1, 1], [], []>} : vector<256x4xbf16>, vector<4x8xbf16>, vector<256x8xf32> -> vector<256x8xf32>
    %332 = arith.addf %325, %331 : vector<256x8xf32>
    %c2_328 = arith.constant 2 : index
    %c0_329 = arith.constant 0 : index
    %c0_330 = arith.constant 0 : index
    %333 = vector.load %arg21[%c2_328, %c0_329, %c0_330] : memref<18x18x4xf32, #tpu.memory_space<vmem>>, vector<16x16x4xf32>
    %334 = arith.truncf %333 : vector<16x16x4xf32> to vector<16x16x4xbf16>
    %335 = vector.shape_cast %334 : vector<16x16x4xbf16> to vector<256x4xbf16>
    %c6_331 = arith.constant 6 : index
    %c0_332 = arith.constant 0 : index
    %c0_333 = arith.constant 0 : index
    %336 = vector.load %arg13[%c6_331, %c0_332, %c0_333] : memref<9x4x8xbf16, #tpu.memory_space<vmem>>, vector<1x4x8xbf16>
    %337 = vector.shape_cast %336 : vector<1x4x8xbf16> to vector<4x8xbf16>
    %cst_334 = arith.constant dense<0.000000e+00> : vector<256x8xf32>
    %338 = tpu.matmul %335, %337, %cst_334 {dimension_numbers = #tpu.dot_dimension_numbers<[1], [0], [0], [1], [0, 0, 1, 1], [], []>} : vector<256x4xbf16>, vector<4x8xbf16>, vector<256x8xf32> -> vector<256x8xf32>
    %339 = arith.addf %332, %338 : vector<256x8xf32>
    %c2_335 = arith.constant 2 : index
    %c1_336 = arith.constant 1 : index
    %c0_337 = arith.constant 0 : index
    %340 = vector.load %arg21[%c2_335, %c1_336, %c0_337] : memref<18x18x4xf32, #tpu.memory_space<vmem>>, vector<16x16x4xf32>
    %341 = arith.truncf %340 : vector<16x16x4xf32> to vector<16x16x4xbf16>
    %342 = vector.shape_cast %341 : vector<16x16x4xbf16> to vector<256x4xbf16>
    %c7_338 = arith.constant 7 : index
    %c0_339 = arith.constant 0 : index
    %c0_340 = arith.constant 0 : index
    %343 = vector.load %arg13[%c7_338, %c0_339, %c0_340] : memref<9x4x8xbf16, #tpu.memory_space<vmem>>, vector<1x4x8xbf16>
    %344 = vector.shape_cast %343 : vector<1x4x8xbf16> to vector<4x8xbf16>
    %cst_341 = arith.constant dense<0.000000e+00> : vector<256x8xf32>
    %345 = tpu.matmul %342, %344, %cst_341 {dimension_numbers = #tpu.dot_dimension_numbers<[1], [0], [0], [1], [0, 0, 1, 1], [], []>} : vector<256x4xbf16>, vector<4x8xbf16>, vector<256x8xf32> -> vector<256x8xf32>
    %346 = arith.addf %339, %345 : vector<256x8xf32>
    %c2_342 = arith.constant 2 : index
    %c2_343 = arith.constant 2 : index
    %c0_344 = arith.constant 0 : index
    %347 = vector.load %arg21[%c2_342, %c2_343, %c0_344] : memref<18x18x4xf32, #tpu.memory_space<vmem>>, vector<16x16x4xf32>
    %348 = arith.truncf %347 : vector<16x16x4xf32> to vector<16x16x4xbf16>
    %349 = vector.shape_cast %348 : vector<16x16x4xbf16> to vector<256x4xbf16>
    %c8_345 = arith.constant 8 : index
    %c0_346 = arith.constant 0 : index
    %c0_347 = arith.constant 0 : index
    %350 = vector.load %arg13[%c8_345, %c0_346, %c0_347] : memref<9x4x8xbf16, #tpu.memory_space<vmem>>, vector<1x4x8xbf16>
    %351 = vector.shape_cast %350 : vector<1x4x8xbf16> to vector<4x8xbf16>
    %cst_348 = arith.constant dense<0.000000e+00> : vector<256x8xf32>
    %352 = tpu.matmul %349, %351, %cst_348 {dimension_numbers = #tpu.dot_dimension_numbers<[1], [0], [0], [1], [0, 0, 1, 1], [], []>} : vector<256x4xbf16>, vector<4x8xbf16>, vector<256x8xf32> -> vector<256x8xf32>
    %353 = arith.addf %346, %352 : vector<256x8xf32>
    %c0_349 = arith.constant 0 : index
    %c0_350 = arith.constant 0 : index
    %354 = vector.load %arg14[%c0_349, %c0_350] : memref<1x8xf32, #tpu.memory_space<vmem>>, vector<1x8xf32>
    %355 = vector.broadcast %354 : vector<1x8xf32> to vector<256x8xf32>
    %356 = arith.addf %353, %355 : vector<256x8xf32>
    %c0_351 = arith.constant 0 : index
    %c0_352 = arith.constant 0 : index
    %c0_353 = arith.constant 0 : index
    %c0_354 = arith.constant 0 : index
    %357 = vector.load %arg4[%c0_351, %c0_352, %c0_353, %c0_354] : memref<1x16x16x32xbf16, #tpu.memory_space<vmem>>, vector<1x16x16x32xbf16>
    %358 = vector.shape_cast %357 : vector<1x16x16x32xbf16> to vector<16x16x32xbf16>
    %cst_355 = arith.constant 0.000000e+00 : f32
    %359 = vector.broadcast %cst_355 : f32 to vector<1x18x32xf32>
    %c0_356 = arith.constant 0 : index
    %c0_357 = arith.constant 0 : index
    %c0_358 = arith.constant 0 : index
    %360 = vector.load %arg19[%c0_356, %c0_357, %c0_358] : memref<18x18x32xf32, #tpu.memory_space<vmem>>, vector<1x18x32xf32>
    tpu.vector_store %arg19[%c0_356, %c0_357, %c0_358], %359 {strides = array<i32>} : memref<18x18x32xf32, #tpu.memory_space<vmem>>, vector<1x18x32xf32>,
    %cst_359 = arith.constant 0.000000e+00 : f32
    %361 = vector.broadcast %cst_359 : f32 to vector<1x18x32xf32>
    %c17_360 = arith.constant 17 : index
    %c0_361 = arith.constant 0 : index
    %c0_362 = arith.constant 0 : index
    %362 = vector.load %arg19[%c17_360, %c0_361, %c0_362] : memref<18x18x32xf32, #tpu.memory_space<vmem>>, vector<1x18x32xf32>
    tpu.vector_store %arg19[%c17_360, %c0_361, %c0_362], %361 {strides = array<i32>} : memref<18x18x32xf32, #tpu.memory_space<vmem>>, vector<1x18x32xf32>,
    %cst_363 = arith.constant 0.000000e+00 : f32
    %363 = vector.broadcast %cst_363 : f32 to vector<18x1x32xf32>
    %c0_364 = arith.constant 0 : index
    %c0_365 = arith.constant 0 : index
    %c0_366 = arith.constant 0 : index
    %364 = vector.load %arg19[%c0_364, %c0_365, %c0_366] : memref<18x18x32xf32, #tpu.memory_space<vmem>>, vector<18x1x32xf32>
    tpu.vector_store %arg19[%c0_364, %c0_365, %c0_366], %363 {strides = array<i32>} : memref<18x18x32xf32, #tpu.memory_space<vmem>>, vector<18x1x32xf32>,
    %cst_367 = arith.constant 0.000000e+00 : f32
    %365 = vector.broadcast %cst_367 : f32 to vector<18x1x32xf32>
    %c0_368 = arith.constant 0 : index
    %c17_369 = arith.constant 17 : index
    %c0_370 = arith.constant 0 : index
    %366 = vector.load %arg19[%c0_368, %c17_369, %c0_370] : memref<18x18x32xf32, #tpu.memory_space<vmem>>, vector<18x1x32xf32>
    tpu.vector_store %arg19[%c0_368, %c17_369, %c0_370], %365 {strides = array<i32>} : memref<18x18x32xf32, #tpu.memory_space<vmem>>, vector<18x1x32xf32>,
    %367 = arith.extf %358 : vector<16x16x32xbf16> to vector<16x16x32xf32>
    %c1_371 = arith.constant 1 : index
    %c1_372 = arith.constant 1 : index
    %c0_373 = arith.constant 0 : index
    %368 = vector.load %arg19[%c1_371, %c1_372, %c0_373] : memref<18x18x32xf32, #tpu.memory_space<vmem>>, vector<16x16x32xf32>
    tpu.vector_store %arg19[%c1_371, %c1_372, %c0_373], %367 {strides = array<i32>} : memref<18x18x32xf32, #tpu.memory_space<vmem>>, vector<16x16x32xf32>,
    %c0_374 = arith.constant 0 : index
    %c0_375 = arith.constant 0 : index
    %c0_376 = arith.constant 0 : index
    %369 = vector.load %arg19[%c0_374, %c0_375, %c0_376] : memref<18x18x32xf32, #tpu.memory_space<vmem>>, vector<16x16x32xf32>
    %370 = arith.truncf %369 : vector<16x16x32xf32> to vector<16x16x32xbf16>
    %371 = vector.shape_cast %370 : vector<16x16x32xbf16> to vector<256x32xbf16>
    %c0_377 = arith.constant 0 : index
    %c0_378 = arith.constant 0 : index
    %c0_379 = arith.constant 0 : index
    %372 = vector.load %arg9[%c0_377, %c0_378, %c0_379] : memref<9x32x8xbf16, #tpu.memory_space<vmem>>, vector<1x32x8xbf16>
    %373 = vector.shape_cast %372 : vector<1x32x8xbf16> to vector<32x8xbf16>
    %cst_380 = arith.constant dense<0.000000e+00> : vector<256x8xf32>
    %374 = tpu.matmul %371, %373, %cst_380 {dimension_numbers = #tpu.dot_dimension_numbers<[1], [0], [0], [1], [0, 0, 1, 1], [], []>} : vector<256x32xbf16>, vector<32x8xbf16>, vector<256x8xf32> -> vector<256x8xf32>
    %c0_381 = arith.constant 0 : index
    %c1_382 = arith.constant 1 : index
    %c0_383 = arith.constant 0 : index
    %375 = vector.load %arg19[%c0_381, %c1_382, %c0_383] : memref<18x18x32xf32, #tpu.memory_space<vmem>>, vector<16x16x32xf32>
    %376 = arith.truncf %375 : vector<16x16x32xf32> to vector<16x16x32xbf16>
    %377 = vector.shape_cast %376 : vector<16x16x32xbf16> to vector<256x32xbf16>
    %c1_384 = arith.constant 1 : index
    %c0_385 = arith.constant 0 : index
    %c0_386 = arith.constant 0 : index
    %378 = vector.load %arg9[%c1_384, %c0_385, %c0_386] : memref<9x32x8xbf16, #tpu.memory_space<vmem>>, vector<1x32x8xbf16>
    %379 = vector.shape_cast %378 : vector<1x32x8xbf16> to vector<32x8xbf16>
    %cst_387 = arith.constant dense<0.000000e+00> : vector<256x8xf32>
    %380 = tpu.matmul %377, %379, %cst_387 {dimension_numbers = #tpu.dot_dimension_numbers<[1], [0], [0], [1], [0, 0, 1, 1], [], []>} : vector<256x32xbf16>, vector<32x8xbf16>, vector<256x8xf32> -> vector<256x8xf32>
    %381 = arith.addf %374, %380 : vector<256x8xf32>
    %c0_388 = arith.constant 0 : index
    %c2_389 = arith.constant 2 : index
    %c0_390 = arith.constant 0 : index
    %382 = vector.load %arg19[%c0_388, %c2_389, %c0_390] : memref<18x18x32xf32, #tpu.memory_space<vmem>>, vector<16x16x32xf32>
    %383 = arith.truncf %382 : vector<16x16x32xf32> to vector<16x16x32xbf16>
    %384 = vector.shape_cast %383 : vector<16x16x32xbf16> to vector<256x32xbf16>
    %c2_391 = arith.constant 2 : index
    %c0_392 = arith.constant 0 : index
    %c0_393 = arith.constant 0 : index
    %385 = vector.load %arg9[%c2_391, %c0_392, %c0_393] : memref<9x32x8xbf16, #tpu.memory_space<vmem>>, vector<1x32x8xbf16>
    %386 = vector.shape_cast %385 : vector<1x32x8xbf16> to vector<32x8xbf16>
    %cst_394 = arith.constant dense<0.000000e+00> : vector<256x8xf32>
    %387 = tpu.matmul %384, %386, %cst_394 {dimension_numbers = #tpu.dot_dimension_numbers<[1], [0], [0], [1], [0, 0, 1, 1], [], []>} : vector<256x32xbf16>, vector<32x8xbf16>, vector<256x8xf32> -> vector<256x8xf32>
    %388 = arith.addf %381, %387 : vector<256x8xf32>
    %c1_395 = arith.constant 1 : index
    %c0_396 = arith.constant 0 : index
    %c0_397 = arith.constant 0 : index
    %389 = vector.load %arg19[%c1_395, %c0_396, %c0_397] : memref<18x18x32xf32, #tpu.memory_space<vmem>>, vector<16x16x32xf32>
    %390 = arith.truncf %389 : vector<16x16x32xf32> to vector<16x16x32xbf16>
    %391 = vector.shape_cast %390 : vector<16x16x32xbf16> to vector<256x32xbf16>
    %c3_398 = arith.constant 3 : index
    %c0_399 = arith.constant 0 : index
    %c0_400 = arith.constant 0 : index
    %392 = vector.load %arg9[%c3_398, %c0_399, %c0_400] : memref<9x32x8xbf16, #tpu.memory_space<vmem>>, vector<1x32x8xbf16>
    %393 = vector.shape_cast %392 : vector<1x32x8xbf16> to vector<32x8xbf16>
    %cst_401 = arith.constant dense<0.000000e+00> : vector<256x8xf32>
    %394 = tpu.matmul %391, %393, %cst_401 {dimension_numbers = #tpu.dot_dimension_numbers<[1], [0], [0], [1], [0, 0, 1, 1], [], []>} : vector<256x32xbf16>, vector<32x8xbf16>, vector<256x8xf32> -> vector<256x8xf32>
    %395 = arith.addf %388, %394 : vector<256x8xf32>
    %c1_402 = arith.constant 1 : index
    %c1_403 = arith.constant 1 : index
    %c0_404 = arith.constant 0 : index
    %396 = vector.load %arg19[%c1_402, %c1_403, %c0_404] : memref<18x18x32xf32, #tpu.memory_space<vmem>>, vector<16x16x32xf32>
    %397 = arith.truncf %396 : vector<16x16x32xf32> to vector<16x16x32xbf16>
    %398 = vector.shape_cast %397 : vector<16x16x32xbf16> to vector<256x32xbf16>
    %c4_405 = arith.constant 4 : index
    %c0_406 = arith.constant 0 : index
    %c0_407 = arith.constant 0 : index
    %399 = vector.load %arg9[%c4_405, %c0_406, %c0_407] : memref<9x32x8xbf16, #tpu.memory_space<vmem>>, vector<1x32x8xbf16>
    %400 = vector.shape_cast %399 : vector<1x32x8xbf16> to vector<32x8xbf16>
    %cst_408 = arith.constant dense<0.000000e+00> : vector<256x8xf32>
    %401 = tpu.matmul %398, %400, %cst_408 {dimension_numbers = #tpu.dot_dimension_numbers<[1], [0], [0], [1], [0, 0, 1, 1], [], []>} : vector<256x32xbf16>, vector<32x8xbf16>, vector<256x8xf32> -> vector<256x8xf32>
    %402 = arith.addf %395, %401 : vector<256x8xf32>
    %c1_409 = arith.constant 1 : index
    %c2_410 = arith.constant 2 : index
    %c0_411 = arith.constant 0 : index
    %403 = vector.load %arg19[%c1_409, %c2_410, %c0_411] : memref<18x18x32xf32, #tpu.memory_space<vmem>>, vector<16x16x32xf32>
    %404 = arith.truncf %403 : vector<16x16x32xf32> to vector<16x16x32xbf16>
    %405 = vector.shape_cast %404 : vector<16x16x32xbf16> to vector<256x32xbf16>
    %c5_412 = arith.constant 5 : index
    %c0_413 = arith.constant 0 : index
    %c0_414 = arith.constant 0 : index
    %406 = vector.load %arg9[%c5_412, %c0_413, %c0_414] : memref<9x32x8xbf16, #tpu.memory_space<vmem>>, vector<1x32x8xbf16>
    %407 = vector.shape_cast %406 : vector<1x32x8xbf16> to vector<32x8xbf16>
    %cst_415 = arith.constant dense<0.000000e+00> : vector<256x8xf32>
    %408 = tpu.matmul %405, %407, %cst_415 {dimension_numbers = #tpu.dot_dimension_numbers<[1], [0], [0], [1], [0, 0, 1, 1], [], []>} : vector<256x32xbf16>, vector<32x8xbf16>, vector<256x8xf32> -> vector<256x8xf32>
    %409 = arith.addf %402, %408 : vector<256x8xf32>
    %c2_416 = arith.constant 2 : index
    %c0_417 = arith.constant 0 : index
    %c0_418 = arith.constant 0 : index
    %410 = vector.load %arg19[%c2_416, %c0_417, %c0_418] : memref<18x18x32xf32, #tpu.memory_space<vmem>>, vector<16x16x32xf32>
    %411 = arith.truncf %410 : vector<16x16x32xf32> to vector<16x16x32xbf16>
    %412 = vector.shape_cast %411 : vector<16x16x32xbf16> to vector<256x32xbf16>
    %c6_419 = arith.constant 6 : index
    %c0_420 = arith.constant 0 : index
    %c0_421 = arith.constant 0 : index
    %413 = vector.load %arg9[%c6_419, %c0_420, %c0_421] : memref<9x32x8xbf16, #tpu.memory_space<vmem>>, vector<1x32x8xbf16>
    %414 = vector.shape_cast %413 : vector<1x32x8xbf16> to vector<32x8xbf16>
    %cst_422 = arith.constant dense<0.000000e+00> : vector<256x8xf32>
    %415 = tpu.matmul %412, %414, %cst_422 {dimension_numbers = #tpu.dot_dimension_numbers<[1], [0], [0], [1], [0, 0, 1, 1], [], []>} : vector<256x32xbf16>, vector<32x8xbf16>, vector<256x8xf32> -> vector<256x8xf32>
    %416 = arith.addf %409, %415 : vector<256x8xf32>
    %c2_423 = arith.constant 2 : index
    %c1_424 = arith.constant 1 : index
    %c0_425 = arith.constant 0 : index
    %417 = vector.load %arg19[%c2_423, %c1_424, %c0_425] : memref<18x18x32xf32, #tpu.memory_space<vmem>>, vector<16x16x32xf32>
    %418 = arith.truncf %417 : vector<16x16x32xf32> to vector<16x16x32xbf16>
    %419 = vector.shape_cast %418 : vector<16x16x32xbf16> to vector<256x32xbf16>
    %c7_426 = arith.constant 7 : index
    %c0_427 = arith.constant 0 : index
    %c0_428 = arith.constant 0 : index
    %420 = vector.load %arg9[%c7_426, %c0_427, %c0_428] : memref<9x32x8xbf16, #tpu.memory_space<vmem>>, vector<1x32x8xbf16>
    %421 = vector.shape_cast %420 : vector<1x32x8xbf16> to vector<32x8xbf16>
    %cst_429 = arith.constant dense<0.000000e+00> : vector<256x8xf32>
    %422 = tpu.matmul %419, %421, %cst_429 {dimension_numbers = #tpu.dot_dimension_numbers<[1], [0], [0], [1], [0, 0, 1, 1], [], []>} : vector<256x32xbf16>, vector<32x8xbf16>, vector<256x8xf32> -> vector<256x8xf32>
    %423 = arith.addf %416, %422 : vector<256x8xf32>
    %c2_430 = arith.constant 2 : index
    %c2_431 = arith.constant 2 : index
    %c0_432 = arith.constant 0 : index
    %424 = vector.load %arg19[%c2_430, %c2_431, %c0_432] : memref<18x18x32xf32, #tpu.memory_space<vmem>>, vector<16x16x32xf32>
    %425 = arith.truncf %424 : vector<16x16x32xf32> to vector<16x16x32xbf16>
    %426 = vector.shape_cast %425 : vector<16x16x32xbf16> to vector<256x32xbf16>
    %c8_433 = arith.constant 8 : index
    %c0_434 = arith.constant 0 : index
    %c0_435 = arith.constant 0 : index
    %427 = vector.load %arg9[%c8_433, %c0_434, %c0_435] : memref<9x32x8xbf16, #tpu.memory_space<vmem>>, vector<1x32x8xbf16>
    %428 = vector.shape_cast %427 : vector<1x32x8xbf16> to vector<32x8xbf16>
    %cst_436 = arith.constant dense<0.000000e+00> : vector<256x8xf32>
    %429 = tpu.matmul %426, %428, %cst_436 {dimension_numbers = #tpu.dot_dimension_numbers<[1], [0], [0], [1], [0, 0, 1, 1], [], []>} : vector<256x32xbf16>, vector<32x8xbf16>, vector<256x8xf32> -> vector<256x8xf32>
    %430 = arith.addf %423, %429 : vector<256x8xf32>
    %c0_437 = arith.constant 0 : index
    %c0_438 = arith.constant 0 : index
    %431 = vector.load %arg10[%c0_437, %c0_438] : memref<1x8xf32, #tpu.memory_space<vmem>>, vector<1x8xf32>
    %432 = vector.broadcast %431 : vector<1x8xf32> to vector<256x8xf32>
    %433 = arith.addf %430, %432 : vector<256x8xf32>
    %434 = vector.extract_strided_slice %433 {offsets = [0, 0], sizes = [256, 4], strides = [1, 1]} : vector<256x8xf32> to vector<256x4xf32>
    %435 = arith.mulf %18, %434 : vector<256x4xf32>
    %436 = vector.extract_strided_slice %433 {offsets = [0, 4], sizes = [256, 4], strides = [1, 1]} : vector<256x8xf32> to vector<256x4xf32>
    %437 = arith.addf %435, %436 : vector<256x4xf32>
    %438 = arith.truncf %437 : vector<256x4xf32> to vector<256x4xbf16>
    %c0_439 = arith.constant 0 : index
    %c0_440 = arith.constant 0 : index
    %439 = vector.load %arg15[%c0_439, %c0_440] : memref<4x8xbf16, #tpu.memory_space<vmem>>, vector<4x8xbf16>
    %cst_441 = arith.constant dense<0.000000e+00> : vector<256x8xf32>
    %440 = tpu.matmul %438, %439, %cst_441 {dimension_numbers = #tpu.dot_dimension_numbers<[1], [0], [0], [1], [0, 0, 1, 1], [], []>} : vector<256x4xbf16>, vector<4x8xbf16>, vector<256x8xf32> -> vector<256x8xf32>
    %441 = arith.addf %440, %356 : vector<256x8xf32>
    %442 = tpu.transpose %441, [1, 0] : vector<256x8xf32> -> vector<8x256xf32>
    %c0_442 = arith.constant 0 : index
    %c0_443 = arith.constant 0 : index
    %c0_444 = arith.constant 0 : index
    %443 = vector.load %arg16[%c0_442, %c0_443, %c0_444] : memref<1x8x256xf32, #tpu.memory_space<vmem>>, vector<1x8x256xf32>
    %444 = vector.shape_cast %443 : vector<1x8x256xf32> to vector<8x256xf32>
    %445 = vector.shape_cast %442 : vector<8x256xf32> to vector<1x8x256xf32>
    tpu.vector_store %arg16[%c0_442, %c0_443, %c0_444], %445 {strides = array<i32>} : memref<1x8x256xf32, #tpu.memory_space<vmem>>, vector<1x8x256xf32>,
    return
  }
  func.func @transform_0(%arg0: i32) -> (i32, i32, i32, i32) {
    %c0_i32 = arith.constant 0 : i32
    %c0_i32_0 = arith.constant 0 : i32
    %c0_i32_1 = arith.constant 0 : i32
    %c0_i32_2 = arith.constant 0 : i32
    return %arg0, %c0_i32, %c0_i32_0, %c0_i32_1 : i32, i32, i32, i32
  }
  func.func @transform_1(%arg0: i32) -> (i32, i32, i32, i32) {
    %c0_i32 = arith.constant 0 : i32
    %c0_i32_0 = arith.constant 0 : i32
    %c0_i32_1 = arith.constant 0 : i32
    %c0_i32_2 = arith.constant 0 : i32
    return %arg0, %c0_i32, %c0_i32_0, %c0_i32_1 : i32, i32, i32, i32
  }
  func.func @transform_2(%arg0: i32) -> (i32, i32, i32, i32) {
    %c0_i32 = arith.constant 0 : i32
    %c0_i32_0 = arith.constant 0 : i32
    %c0_i32_1 = arith.constant 0 : i32
    %c0_i32_2 = arith.constant 0 : i32
    return %arg0, %c0_i32, %c0_i32_0, %c0_i32_1 : i32, i32, i32, i32
  }
  func.func @transform_3(%arg0: i32) -> (i32, i32, i32, i32) {
    %c0_i32 = arith.constant 0 : i32
    %c0_i32_0 = arith.constant 0 : i32
    %c0_i32_1 = arith.constant 0 : i32
    %c0_i32_2 = arith.constant 0 : i32
    return %arg0, %c0_i32, %c0_i32_0, %c0_i32_1 : i32, i32, i32, i32
  }
  func.func @transform_4(%arg0: i32) -> (i32, i32, i32) {
    %c0_i32 = arith.constant 0 : i32
    %c0_i32_0 = arith.constant 0 : i32
    %c0_i32_1 = arith.constant 0 : i32
    %c0_i32_2 = arith.constant 0 : i32
    return %c0_i32, %c0_i32_0, %c0_i32_1 : i32, i32, i32
  }
  func.func @transform_5(%arg0: i32) -> (i32, i32) {
    %c0_i32 = arith.constant 0 : i32
    %c0_i32_0 = arith.constant 0 : i32
    %c0_i32_1 = arith.constant 0 : i32
    return %c0_i32, %c0_i32_0 : i32, i32
  }
  func.func @transform_6(%arg0: i32) -> (i32, i32, i32) {
    %c0_i32 = arith.constant 0 : i32
    %c0_i32_0 = arith.constant 0 : i32
    %c0_i32_1 = arith.constant 0 : i32
    %c0_i32_2 = arith.constant 0 : i32
    return %c0_i32, %c0_i32_0, %c0_i32_1 : i32, i32, i32
  }
  func.func @transform_7(%arg0: i32) -> (i32, i32) {
    %c0_i32 = arith.constant 0 : i32
    %c0_i32_0 = arith.constant 0 : i32
    %c0_i32_1 = arith.constant 0 : i32
    return %c0_i32, %c0_i32_0 : i32, i32
  }
  func.func @transform_8(%arg0: i32) -> (i32, i32, i32) {
    %c0_i32 = arith.constant 0 : i32
    %c0_i32_0 = arith.constant 0 : i32
    %c0_i32_1 = arith.constant 0 : i32
    %c0_i32_2 = arith.constant 0 : i32
    return %c0_i32, %c0_i32_0, %c0_i32_1 : i32, i32, i32
  }
  func.func @transform_9(%arg0: i32) -> (i32, i32) {
    %c0_i32 = arith.constant 0 : i32
    %c0_i32_0 = arith.constant 0 : i32
    %c0_i32_1 = arith.constant 0 : i32
    return %c0_i32, %c0_i32_0 : i32, i32
  }
  func.func @transform_10(%arg0: i32) -> (i32, i32, i32) {
    %c0_i32 = arith.constant 0 : i32
    %c0_i32_0 = arith.constant 0 : i32
    %c0_i32_1 = arith.constant 0 : i32
    %c0_i32_2 = arith.constant 0 : i32
    return %c0_i32, %c0_i32_0, %c0_i32_1 : i32, i32, i32
  }
  func.func @transform_11(%arg0: i32) -> (i32, i32) {
    %c0_i32 = arith.constant 0 : i32
    %c0_i32_0 = arith.constant 0 : i32
    %c0_i32_1 = arith.constant 0 : i32
    return %c0_i32, %c0_i32_0 : i32, i32
  }
  func.func @transform_12(%arg0: i32) -> (i32, i32, i32) {
    %c0_i32 = arith.constant 0 : i32
    %c0_i32_0 = arith.constant 0 : i32
    %c0_i32_1 = arith.constant 0 : i32
    %c0_i32_2 = arith.constant 0 : i32
    return %c0_i32, %c0_i32_0, %c0_i32_1 : i32, i32, i32
  }
  func.func @transform_13(%arg0: i32) -> (i32, i32) {
    %c0_i32 = arith.constant 0 : i32
    %c0_i32_0 = arith.constant 0 : i32
    %c0_i32_1 = arith.constant 0 : i32
    return %c0_i32, %c0_i32_0 : i32, i32
  }
  func.func @transform_14(%arg0: i32) -> (i32, i32) {
    %c0_i32 = arith.constant 0 : i32
    %c0_i32_0 = arith.constant 0 : i32
    %c0_i32_1 = arith.constant 0 : i32
    return %c0_i32, %c0_i32_0 : i32, i32
  }
  func.func @transform_15(%arg0: i32) -> (i32, i32, i32) {
    %c0_i32 = arith.constant 0 : i32
    %c0_i32_0 = arith.constant 0 : i32
    %c0_i32_1 = arith.constant 0 : i32
    return %arg0, %c0_i32, %c0_i32_0 : i32, i32, i32
  }
}

</mosaic_0001>

<bundles_post_ra>
// kernel: spade_resnet_block_forward.1
= control target key start
LH: loop header
LB: loop body
LE: loop exit
PB: predicated region body
PF: predicated region fallthrough
CT: control target
= control target key end

     0   :  { %s21340_s18 = smov 0   ;;  %s25808_s0 = inlined_call_operand.vmem [shape: f32[2,16,16,4], index: 0, kind: input, shape index: {}]   ;;  %s25809_s1 = inlined_call_operand.vmem [shape: bf16[2,16,16,32], index: 1, kind: input, shape index: {}]   ;;  %s25810_s2 = inlined_call_operand.vmem [shape: bf16[2,16,16,32], index: 2, kind: input, shape index: {}]   ;;  %s25811_s3 = inlined_call_operand.vmem [shape: bf16[2,16,16,32], index: 3, kind: input, shape index: {}]   ;;  %s25812_s4 = inlined_call_operand.vmem [shape: bf16[9,32,8], index: 4, kind: input, shape index: {}]   ;;  %s25813_s5 = inlined_call_operand.vmem [shape: f32[1,8], index: 5, kind: input, shape index: {}]   ;;  %s25814_s6 = inlined_call_operand.vmem [shape: bf16[9,32,8], index: 6, kind: input, shape index: {}]   ;;  %s25815_s7 = inlined_call_operand.vmem [shape: f32[1,8], index: 7, kind: input, shape index: {}]   ;;  %s25816_s8 = inlined_call_operand.vmem [shape: bf16[9,32,8], index: 8, kind: input, shape index: {}]   ;;  %s25817_s9 = inlined_call_operand.vmem [shape: f32[1,8], index: 9, kind: input, shape index: {}]   ;;  %s25818_s10 = inlined_call_operand.vmem [shape: bf16[9,4,4], index: 10, kind: input, shape index: {}]   ;;  %s25819_s11 = inlined_call_operand.vmem [shape: f32[1,4], index: 11, kind: input, shape index: {}]   ;;  %s25820_s12 = inlined_call_operand.vmem [shape: bf16[9,4,8], index: 12, kind: input, shape index: {}]   ;;  %s25821_s13 = inlined_call_operand.vmem [shape: f32[1,8], index: 13, kind: input, shape index: {}]   ;;  %s25822_s14 = inlined_call_operand.vmem [shape: bf16[4,8], index: 14, kind: input, shape index: {}]   ;;  %s25823_s15 = inlined_call_operand.vmem [shape: f32[2,8,256], index: 15, kind: output, shape index: {}]  }
   0x1 LB: > { %s16226_s19 = sadd.s32 4294967295, %s21256_s18   ;;  %p16230_p0 = scmp.ge.s32.totalorder %s21256_s18, 1  ;;  %s21256_s18 = sphi %s21340_s18, %s25_s18  }
   0x2   : > { %p467_p1 = scmp.lt.s32.totalorder %s21256_s18, 3 }
   0x4   : > { %p468_p2 = pnand %p16230_p0, %p467_p1 }
   0x6   : > { %471 = sbr.rel (%p468_p2) target bundleno = 3082 (0xc0a), region = 80 }
   0xd   : > { %v21192_v0 = vld [vmem:[%s25812_s4 + $0x10] sm:$0xff]   ;;  %vm859_vm0 = vcmask 261120   ;;  %v21354_v1 = vld [vmem:[%s25812_s4 + $0x18] sm:$0xff]   ;;  %v21258_v2 = vmov 0.0   ;;  %vm862_vm1 = vcmask 254976   ;;  %vm868_vm2 = vcmask 253952  }
   0xe   : > { %18201 = vmatprep.subr.bf16.mxu0 %v21192_v0  ;;  %860 = vst.msk [vmem:[#allocation2] sm:$0xff] %vm859_vm0, %v21258_v2  ;;  %861 = vst.msk [vmem:[#allocation2 + $0x8] sm:$0xff] %vm859_vm0, %v21258_v2  ;;  %p530_p3 = scmp.lt.s32.totalorder %s16226_s19, 1  ;;  %v21604_v3 = vld [vmem:[%s25812_s4] sm:$0xff]   ;;  %v21195_v57 = vld [vmem:[%s25812_s4 + $0x8] sm:$0xff]   ;;  %vm588_vm3 = vcmask 31744  }
   0xf   : > { %865 = vst.msk [vmem:[#allocation2 + $0x198] sm:$0xff] %vm859_vm0, %v21258_v2  ;;  %866 = vst.msk [vmem:[#allocation2 + $0x1a0] sm:$0xff] %vm859_vm0, %v21258_v2  ;;  %18202 = vmatpush3.bf16.msra.mxu0 %v21192_v0  ;;  %v21692_v63 = vld [vmem:[%s25812_s4 + $0x20] sm:$0xff]   ;;  %vm3995_vm4 = vcmask 24576   ;;  %vm3989_vm5 = vcmask 25600   ;;  %s21259_s30 = smov 124  }
  0x10   : > { %6719 = vst.msk [vmem:[#allocation3] sm:$0xff] %vm859_vm0, %v21258_v2  ;;  %6720 = vst.msk [vmem:[#allocation3 + $0x8] sm:$0xff] %vm859_vm0, %v21258_v2  ;;  %18203 = vmatprep.subr.bf16.mxu0 %v21354_v1  ;;  %s26085_s19 = smov (!%p530_p3, %s16226_s19), 1  ;;  %vm4212_vm6 = vcmask 1041408  }
  0x11   : > { %6723 = vst.msk [vmem:[#allocation3 + $0x198] sm:$0xff] %vm859_vm0, %v21258_v2  ;;  %6724 = vst.msk [vmem:[#allocation3 + $0x1a0] sm:$0xff] %vm859_vm0, %v21258_v2  ;;  %s21622_s26 = sshll.u32 %s26085_s19, 7  ;;  %s17150_s23 = sshll.u32 %s26085_s19, 8 }
  0x12   : > { %12811 = vst.msk [vmem:[#allocation4] sm:$0xff] %vm859_vm0, %v21258_v2  ;;  %12812 = vst.msk [vmem:[#allocation4 + $0x8] sm:$0xff] %vm859_vm0, %v21258_v2  ;;  %s21629_s29 = scalar_lea.vmem %s25809_s1, %s21622_s26  ;;  %s22082_s27 = scalar_lea.vmem %s25808_s0, %s17150_s23 }
  0x13   : > { %12815 = vst.msk [vmem:[#allocation4 + $0x198] sm:$0xff] %vm859_vm0, %v21258_v2  ;;  %12816 = vst.msk [vmem:[#allocation4 + $0x1a0] sm:$0xff] %vm859_vm0, %v21258_v2  ;;  %18204 = vmatpush3.bf16.msra.mxu0 %v21354_v1  ;;  %v17156_v5 = vld [vmem:[%s21629_s29] sm:$0xff]   ;;  %v17347_v6 = vld [vmem:[%s21629_s29 + $0x8] sm:$0xff]   ;;  %s23370_s28 = scalar_lea.vmem %s25810_s2, %s21622_s26  ;;  %s24191_s23 = scalar_lea.vmem %s25811_s3, %s21622_s26 }
  0x14   : > { %863 = vst.msk [vmem:[#allocation2 + $0x10] sm:$0x3] %vm862_vm1, %v21258_v2  ;;  %867 = vst.msk [vmem:[#allocation2 + $0x1a8] sm:$0x3] %vm862_vm1, %v21258_v2  ;;  %18237 = vmatprep.subr.bf16.mxu0 %v21604_v3  ;;  %v17157_v8 = vunpack.c.l.bf16 %v17156_v5  ;;  %v17158_v9 = vunpack.c.h.bf16 %v17156_v5  ;;  %v17161_v10 = vunpack.c.l.bf16 %v17347_v6  ;;  %v17162_v11 = vunpack.c.h.bf16 %v17347_v6  ;;  %v17348_v12 = vld [vmem:[%s21629_s29 + $0x10] sm:$0xff]   ;;  %v17349_v13 = vld [vmem:[%s21629_s29 + $0x18] sm:$0xff]  }
  0x15   : > { %869 = vst.msk [vmem:[#allocation2] sm:$0x1] %vm868_vm2, %v21258_v2  ;;  %870 = vst.msk [vmem:[#allocation2 + $0x18] sm:$0x1] %vm868_vm2, %v21258_v2  ;;  %v1022_v4 = vld [vmem:[#allocation2 + $0x1] sm:$0xff]  ;;  %v17165_v15 = vunpack.c.l.bf16 %v17348_v12  ;;  %v17166_v16 = vunpack.c.h.bf16 %v17348_v12  ;;  %v17169_v17 = vunpack.c.l.bf16 %v17349_v13  ;;  %v17352_v20 = vld [vmem:[%s21629_s29 + $0x30] sm:$0xff]   ;;  %v17170_v21 = vunpack.c.h.bf16 %v17349_v13 }
  0x16   : > { %871 = vst.msk [vmem:[#allocation2 + $0x30] sm:$0x1] %vm868_vm2, %v21258_v2  ;;  %872 = vst.msk [vmem:[#allocation2 + $0x48] sm:$0x1] %vm868_vm2, %v21258_v2  ;;  %v17350_v18 = vld [vmem:[%s21629_s29 + $0x20] sm:$0xff]   ;;  %v17351_v19 = vld [vmem:[%s21629_s29 + $0x28] sm:$0xff]   ;;  %v17181_v29 = vunpack.c.l.bf16 %v17352_v20  ;;  %v17182_v30 = vunpack.c.h.bf16 %v17352_v20 }
  0x17   : > { %873 = vst.msk [vmem:[#allocation2 + $0x60] sm:$0x1] %vm868_vm2, %v21258_v2  ;;  %874 = vst.msk [vmem:[#allocation2 + $0x78] sm:$0x1] %vm868_vm2, %v21258_v2  ;;  %v17173_v22 = vunpack.c.l.bf16 %v17350_v18  ;;  %v17174_v23 = vunpack.c.h.bf16 %v17350_v18  ;;  %v17177_v24 = vunpack.c.l.bf16 %v17351_v19  ;;  %v17353_v25 = vld [vmem:[%s21629_s29 + $0x38] sm:$0xff]   ;;  %v17354_v26 = vld [vmem:[%s21629_s29 + $0x40] sm:$0xff]   ;;  %v17178_v28 = vunpack.c.h.bf16 %v17351_v19 }
  0x18   : > { %875 = vst.msk [vmem:[#allocation2 + $0x90] sm:$0x1] %vm868_vm2, %v21258_v2  ;;  %876 = vst.msk [vmem:[#allocation2 + $0xa8] sm:$0x1] %vm868_vm2, %v21258_v2  ;;  %v17355_v27 = vld [vmem:[%s21629_s29 + $0x48] sm:$0xff]   ;;  %v17185_v31 = vunpack.c.l.bf16 %v17353_v25  ;;  %v17356_v32 = vld [vmem:[%s21629_s29 + $0x50] sm:$0xff]   ;;  %v17186_v35 = vunpack.c.h.bf16 %v17353_v25  ;;  %v17189_v36 = vunpack.c.l.bf16 %v17354_v26  ;;  %v17190_v37 = vunpack.c.h.bf16 %v17354_v26 }
  0x19   : > { %877 = vst.msk [vmem:[#allocation2 + $0xc0] sm:$0x1] %vm868_vm2, %v21258_v2  ;;  %878 = vst.msk [vmem:[#allocation2 + $0xd8] sm:$0x1] %vm868_vm2, %v21258_v2  ;;  %v17357_v33 = vld [vmem:[%s21629_s29 + $0x58] sm:$0xff]   ;;  %v17358_v34 = vld [vmem:[%s21629_s29 + $0x60] sm:$0xff]   ;;  %v17193_v38 = vunpack.c.l.bf16 %v17355_v27  ;;  %v17194_v41 = vunpack.c.h.bf16 %v17355_v27  ;;  %v17197_v42 = vunpack.c.l.bf16 %v17356_v32  ;;  %v17198_v43 = vunpack.c.h.bf16 %v17356_v32 }
  0x1a   : > { %879 = vst.msk [vmem:[#allocation2 + $0xf0] sm:$0x1] %vm868_vm2, %v21258_v2  ;;  %880 = vst.msk [vmem:[#allocation2 + $0x108] sm:$0x1] %vm868_vm2, %v21258_v2  ;;  %v17359_v39 = vld [vmem:[%s21629_s29 + $0x68] sm:$0xff]   ;;  %v17360_v40 = vld [vmem:[%s21629_s29 + $0x70] sm:$0xff]   ;;  %v17201_v44 = vunpack.c.l.bf16 %v17357_v33  ;;  %v17202_v45 = vunpack.c.h.bf16 %v17357_v33  ;;  %v17205_v46 = vunpack.c.l.bf16 %v17358_v34  ;;  %v17206_v47 = vunpack.c.h.bf16 %v17358_v34 }
  0x1b   : > { %881 = vst.msk [vmem:[#allocation2 + $0x120] sm:$0x1] %vm868_vm2, %v21258_v2  ;;  %882 = vst.msk [vmem:[#allocation2 + $0x138] sm:$0x1] %vm868_vm2, %v21258_v2  ;;  %v1023_v7 = vld [vmem:[#allocation2 + $0x9] sm:$0xff]  ;;  %v17209_v48 = vunpack.c.l.bf16 %v17359_v39  ;;  %v17210_v49 = vunpack.c.h.bf16 %v17359_v39  ;;  %v17213_v50 = vunpack.c.l.bf16 %v17360_v40  ;;  %v17214_v51 = vunpack.c.h.bf16 %v17360_v40 }
  0x1c   : > { %883 = vst.msk [vmem:[#allocation2 + $0x150] sm:$0x1] %vm868_vm2, %v21258_v2  ;;  %884 = vst.msk [vmem:[#allocation2 + $0x168] sm:$0x1] %vm868_vm2, %v21258_v2  ;;  %v1054_v14 = vpack.c.bf16 %v1023_v7, %v1022_v4  ;;  %v970_v33 = vld [vmem:[#allocation2] sm:$0xff]  ;;  %v971_v34 = vld [vmem:[#allocation2 + $0x8] sm:$0xff] }
  0x1d   : > { %885 = vst.msk [vmem:[#allocation2 + $0x180] sm:$0x1] %vm868_vm2, %v21258_v2  ;;  %888 = vst.msk [vmem:[#allocation2 + $0x29] sm:$0x1] %vm868_vm2, %v21258_v2 }
  0x1e   : > { %889 = vst.msk [vmem:[#allocation2 + $0x41] sm:$0x1] %vm868_vm2, %v21258_v2  ;;  %890 = vst.msk [vmem:[#allocation2 + $0x59] sm:$0x1] %vm868_vm2, %v21258_v2  ;;  %18205 = vmatprep.mubr.msk.bf16.mxu0 %vm859_vm0, %v1054_v14 }
  0x1f   : > { %891 = vst.msk [vmem:[#allocation2 + $0x71] sm:$0x1] %vm868_vm2, %v21258_v2  ;;  %892 = vst.msk [vmem:[#allocation2 + $0x89] sm:$0x1] %vm868_vm2, %v21258_v2 }
  0x20   : > { %893 = vst.msk [vmem:[#allocation2 + $0xa1] sm:$0x1] %vm868_vm2, %v21258_v2  ;;  %894 = vst.msk [vmem:[#allocation2 + $0xb9] sm:$0x1] %vm868_vm2, %v21258_v2 }
  0x21   : > { %895 = vst.msk [vmem:[#allocation2 + $0xd1] sm:$0x1] %vm868_vm2, %v21258_v2  ;;  %896 = vst.msk [vmem:[#allocation2 + $0xe9] sm:$0x1] %vm868_vm2, %v21258_v2 }
  0x22   : > { %897 = vst.msk [vmem:[#allocation2 + $0x101] sm:$0x1] %vm868_vm2, %v21258_v2  ;;  %898 = vst.msk [vmem:[#allocation2 + $0x119] sm:$0x1] %vm868_vm2, %v21258_v2 }
  0x23   : > { %899 = vst.msk [vmem:[#allocation2 + $0x131] sm:$0x1] %vm868_vm2, %v21258_v2  ;;  %900 = vst.msk [vmem:[#allocation2 + $0x149] sm:$0x1] %vm868_vm2, %v21258_v2 }
  0x24   : > { %901 = vst.msk [vmem:[#allocation2 + $0x161] sm:$0x1] %vm868_vm2, %v21258_v2  ;;  %902 = vst.msk [vmem:[#allocation2 + $0x179] sm:$0x1] %vm868_vm2, %v21258_v2 }
  0x25   : > { %903 = vst.msk [vmem:[#allocation2 + $0x191] sm:$0x1] %vm868_vm2, %v21258_v2  ;;  %6727 = vst.msk [vmem:[#allocation3 + $0x18] sm:$0x1] %vm868_vm2, %v21258_v2 }
  0x26   : > { %6721 = vst.msk [vmem:[#allocation3 + $0x10] sm:$0x3] %vm862_vm1, %v21258_v2  ;;  %6725 = vst.msk [vmem:[#allocation3 + $0x1a8] sm:$0x3] %vm862_vm1, %v21258_v2 }
  0x27   : > { %6728 = vst.msk [vmem:[#allocation3 + $0x30] sm:$0x1] %vm868_vm2, %v21258_v2  ;;  %6729 = vst.msk [vmem:[#allocation3 + $0x48] sm:$0x1] %vm868_vm2, %v21258_v2 }
  0x28   : > { %6730 = vst.msk [vmem:[#allocation3 + $0x60] sm:$0x1] %vm868_vm2, %v21258_v2  ;;  %6731 = vst.msk [vmem:[#allocation3 + $0x78] sm:$0x1] %vm868_vm2, %v21258_v2 }
  0x29   : > { %6732 = vst.msk [vmem:[#allocation3 + $0x90] sm:$0x1] %vm868_vm2, %v21258_v2  ;;  %6733 = vst.msk [vmem:[#allocation3 + $0xa8] sm:$0x1] %vm868_vm2, %v21258_v2 }
  0x2a   : > { %6734 = vst.msk [vmem:[#allocation3 + $0xc0] sm:$0x1] %vm868_vm2, %v21258_v2  ;;  %6735 = vst.msk [vmem:[#allocation3 + $0xd8] sm:$0x1] %vm868_vm2, %v21258_v2 }
  0x2b   : > { %6736 = vst.msk [vmem:[#allocation3 + $0xf0] sm:$0x1] %vm868_vm2, %v21258_v2  ;;  %6737 = vst.msk [vmem:[#allocation3 + $0x108] sm:$0x1] %vm868_vm2, %v21258_v2 }
  0x2c   : > { %6738 = vst.msk [vmem:[#allocation3 + $0x120] sm:$0x1] %vm868_vm2, %v21258_v2  ;;  %6739 = vst.msk [vmem:[#allocation3 + $0x138] sm:$0x1] %vm868_vm2, %v21258_v2 }
  0x2d   : > { %6740 = vst.msk [vmem:[#allocation3 + $0x150] sm:$0x1] %vm868_vm2, %v21258_v2  ;;  %6741 = vst.msk [vmem:[#allocation3 + $0x168] sm:$0x1] %vm868_vm2, %v21258_v2 }
  0x2e   : > { %6742 = vst.msk [vmem:[#allocation3 + $0x180] sm:$0x1] %vm868_vm2, %v21258_v2  ;;  %6745 = vst.msk [vmem:[#allocation3 + $0x29] sm:$0x1] %vm868_vm2, %v21258_v2 }
  0x2f   : > { %6746 = vst.msk [vmem:[#allocation3 + $0x41] sm:$0x1] %vm868_vm2, %v21258_v2  ;;  %6747 = vst.msk [vmem:[#allocation3 + $0x59] sm:$0x1] %vm868_vm2, %v21258_v2 }
  0x30   : > { %6748 = vst.msk [vmem:[#allocation3 + $0x71] sm:$0x1] %vm868_vm2, %v21258_v2  ;;  %6749 = vst.msk [vmem:[#allocation3 + $0x89] sm:$0x1] %vm868_vm2, %v21258_v2 }
  0x31   : > { %6750 = vst.msk [vmem:[#allocation3 + $0xa1] sm:$0x1] %vm868_vm2, %v21258_v2  ;;  %6751 = vst.msk [vmem:[#allocation3 + $0xb9] sm:$0x1] %vm868_vm2, %v21258_v2 }
  0x32   : > { %6752 = vst.msk [vmem:[#allocation3 + $0xd1] sm:$0x1] %vm868_vm2, %v21258_v2  ;;  %6753 = vst.msk [vmem:[#allocation3 + $0xe9] sm:$0x1] %vm868_vm2, %v21258_v2 }
  0x33   : > { %6754 = vst.msk [vmem:[#allocation3 + $0x101] sm:$0x1] %vm868_vm2, %v21258_v2  ;;  %6755 = vst.msk [vmem:[#allocation3 + $0x119] sm:$0x1] %vm868_vm2, %v21258_v2 }
  0x34   : > { %6756 = vst.msk [vmem:[#allocation3 + $0x131] sm:$0x1] %vm868_vm2, %v21258_v2  ;;  %6757 = vst.msk [vmem:[#allocation3 + $0x149] sm:$0x1] %vm868_vm2, %v21258_v2 }
  0x35   : > { %6758 = vst.msk [vmem:[#allocation3 + $0x161] sm:$0x1] %vm868_vm2, %v21258_v2  ;;  %6759 = vst.msk [vmem:[#allocation3 + $0x179] sm:$0x1] %vm868_vm2, %v21258_v2 }
  0x36   : > { %6760 = vst.msk [vmem:[#allocation3 + $0x191] sm:$0x1] %vm868_vm2, %v21258_v2  ;;  %12819 = vst.msk [vmem:[#allocation4 + $0x18] sm:$0x1] %vm868_vm2, %v21258_v2 }
  0x37   : > { %12813 = vst.msk [vmem:[#allocation4 + $0x10] sm:$0x3] %vm862_vm1, %v21258_v2  ;;  %12817 = vst.msk [vmem:[#allocation4 + $0x1a8] sm:$0x3] %vm862_vm1, %v21258_v2 }
  0x38   : > { %12820 = vst.msk [vmem:[#allocation4 + $0x30] sm:$0x1] %vm868_vm2, %v21258_v2  ;;  %12821 = vst.msk [vmem:[#allocation4 + $0x48] sm:$0x1] %vm868_vm2, %v21258_v2 }
  0x39   : > { %12822 = vst.msk [vmem:[#allocation4 + $0x60] sm:$0x1] %vm868_vm2, %v21258_v2  ;;  %12823 = vst.msk [vmem:[#allocation4 + $0x78] sm:$0x1] %vm868_vm2, %v21258_v2 }
  0x3a   : > { %12824 = vst.msk [vmem:[#allocation4 + $0x90] sm:$0x1] %vm868_vm2, %v21258_v2  ;;  %12825 = vst.msk [vmem:[#allocation4 + $0xa8] sm:$0x1] %vm868_vm2, %v21258_v2 }
  0x3b   : > { %12826 = vst.msk [vmem:[#allocation4 + $0xc0] sm:$0x1] %vm868_vm2, %v21258_v2  ;;  %12827 = vst.msk [vmem:[#allocation4 + $0xd8] sm:$0x1] %vm868_vm2, %v21258_v2 }
  0x3c   : > { %12828 = vst.msk [vmem:[#allocation4 + $0xf0] sm:$0x1] %vm868_vm2, %v21258_v2  ;;  %12829 = vst.msk [vmem:[#allocation4 + $0x108] sm:$0x1] %vm868_vm2, %v21258_v2 }
  0x3d   : > { %12830 = vst.msk [vmem:[#allocation4 + $0x120] sm:$0x1] %vm868_vm2, %v21258_v2  ;;  %12831 = vst.msk [vmem:[#allocation4 + $0x138] sm:$0x1] %vm868_vm2, %v21258_v2 }
  0x3e   : > { %12832 = vst.msk [vmem:[#allocation4 + $0x150] sm:$0x1] %vm868_vm2, %v21258_v2  ;;  %12833 = vst.msk [vmem:[#allocation4 + $0x168] sm:$0x1] %vm868_vm2, %v21258_v2 }
  0x3f   : > { %12834 = vst.msk [vmem:[#allocation4 + $0x180] sm:$0x1] %vm868_vm2, %v21258_v2  ;;  %12837 = vst.msk [vmem:[#allocation4 + $0x29] sm:$0x1] %vm868_vm2, %v21258_v2 }
  0x40   : > { %12838 = vst.msk [vmem:[#allocation4 + $0x41] sm:$0x1] %vm868_vm2, %v21258_v2  ;;  %12839 = vst.msk [vmem:[#allocation4 + $0x59] sm:$0x1] %vm868_vm2, %v21258_v2 }
  0x41   : > { %12840 = vst.msk [vmem:[#allocation4 + $0x71] sm:$0x1] %vm868_vm2, %v21258_v2  ;;  %12841 = vst.msk [vmem:[#allocation4 + $0x89] sm:$0x1] %vm868_vm2, %v21258_v2 }
  0x42   : > { %12842 = vst.msk [vmem:[#allocation4 + $0xa1] sm:$0x1] %vm868_vm2, %v21258_v2  ;;  %12843 = vst.msk [vmem:[#allocation4 + $0xb9] sm:$0x1] %vm868_vm2, %v21258_v2 }
  0x43   : > { %12844 = vst.msk [vmem:[#allocation4 + $0xd1] sm:$0x1] %vm868_vm2, %v21258_v2  ;;  %12845 = vst.msk [vmem:[#allocation4 + $0xe9] sm:$0x1] %vm868_vm2, %v21258_v2 }
  0x44   : > { %12846 = vst.msk [vmem:[#allocation4 + $0x101] sm:$0x1] %vm868_vm2, %v21258_v2  ;;  %12847 = vst.msk [vmem:[#allocation4 + $0x119] sm:$0x1] %vm868_vm2, %v21258_v2 }
  0x45   : > { %12848 = vst.msk [vmem:[#allocation4 + $0x131] sm:$0x1] %vm868_vm2, %v21258_v2  ;;  %12849 = vst.msk [vmem:[#allocation4 + $0x149] sm:$0x1] %vm868_vm2, %v21258_v2 }
  0x46   : > { %12850 = vst.msk [vmem:[#allocation4 + $0x161] sm:$0x1] %vm868_vm2, %v21258_v2  ;;  %12851 = vst.msk [vmem:[#allocation4 + $0x179] sm:$0x1] %vm868_vm2, %v21258_v2 }
  0x47   : > { %12852 = vst.msk [vmem:[#allocation4 + $0x191] sm:$0x1] %vm868_vm2, %v21258_v2  ;;  %886 = vst.msk [vmem:[#allocation2 + $0x198] sm:$0x1] %vm868_vm2, %v21258_v2 }
  0x48   : > { %6726 = vst.msk [vmem:[#allocation3] sm:$0x1] %vm868_vm2, %v21258_v2  ;;  %6743 = vst.msk [vmem:[#allocation3 + $0x198] sm:$0x1] %vm868_vm2, %v21258_v2 }
  0x49   : > { %12818 = vst.msk [vmem:[#allocation4] sm:$0x1] %vm868_vm2, %v21258_v2  ;;  %12835 = vst.msk [vmem:[#allocation4 + $0x198] sm:$0x1] %vm868_vm2, %v21258_v2 }
  0x4a   : > { %887 = vst.msk [vmem:[#allocation2 + $0x11] sm:$0x1] %vm868_vm2, %v21258_v2  ;;  %904 = vst.msk [vmem:[#allocation2 + $0x1a9] sm:$0x1] %vm868_vm2, %v21258_v2 }
  0x4b   : > { %6744 = vst.msk [vmem:[#allocation3 + $0x11] sm:$0x1] %vm868_vm2, %v21258_v2  ;;  %6761 = vst.msk [vmem:[#allocation3 + $0x1a9] sm:$0x1] %vm868_vm2, %v21258_v2 }
  0x4c   : > { %12836 = vst.msk [vmem:[#allocation4 + $0x11] sm:$0x1] %vm868_vm2, %v21258_v2  ;;  %12853 = vst.msk [vmem:[#allocation4 + $0x1a9] sm:$0x1] %vm868_vm2, %v21258_v2 }
  0x4d   : > { %938 = vst.msk [vmem:[#allocation2 + $0x19] sm:$0xff] %vm859_vm0, %v17157_v8  ;;  %939 = vst.msk [vmem:[#allocation2 + $0x21] sm:$0xff] %vm859_vm0, %v17158_v9 }
  0x4e   : > { %940 = vst.msk [vmem:[#allocation2 + $0x31] sm:$0xff] %vm859_vm0, %v17161_v10  ;;  %941 = vst.msk [vmem:[#allocation2 + $0x39] sm:$0xff] %vm859_vm0, %v17162_v11 }
  0x4f   : > { %942 = vst.msk [vmem:[#allocation2 + $0x49] sm:$0xff] %vm859_vm0, %v17165_v15  ;;  %943 = vst.msk [vmem:[#allocation2 + $0x51] sm:$0xff] %vm859_vm0, %v17166_v16 }
  0x50   : > { %944 = vst.msk [vmem:[#allocation2 + $0x61] sm:$0xff] %vm859_vm0, %v17169_v17  ;;  %945 = vst.msk [vmem:[#allocation2 + $0x69] sm:$0xff] %vm859_vm0, %v17170_v21 }
  0x51   : > { %946 = vst.msk [vmem:[#allocation2 + $0x79] sm:$0xff] %vm859_vm0, %v17173_v22  ;;  %947 = vst.msk [vmem:[#allocation2 + $0x81] sm:$0xff] %vm859_vm0, %v17174_v23 }
  0x52   : > { %948 = vst.msk [vmem:[#allocation2 + $0x91] sm:$0xff] %vm859_vm0, %v17177_v24  ;;  %949 = vst.msk [vmem:[#allocation2 + $0x99] sm:$0xff] %vm859_vm0, %v17178_v28 }
  0x53   : > { %950 = vst.msk [vmem:[#allocation2 + $0xa9] sm:$0xff] %vm859_vm0, %v17181_v29  ;;  %951 = vst.msk [vmem:[#allocation2 + $0xb1] sm:$0xff] %vm859_vm0, %v17182_v30 }
  0x54   : > { %952 = vst.msk [vmem:[#allocation2 + $0xc1] sm:$0xff] %vm859_vm0, %v17185_v31  ;;  %953 = vst.msk [vmem:[#allocation2 + $0xc9] sm:$0xff] %vm859_vm0, %v17186_v35  ;;  %v1024_v52 = vld [vmem:[#allocation2 + $0x19] sm:$0xff]  ;;  %v1025_v53 = vld [vmem:[#allocation2 + $0x21] sm:$0xff] }
  0x55   : > { %954 = vst.msk [vmem:[#allocation2 + $0xd9] sm:$0xff] %vm859_vm0, %v17189_v36  ;;  %955 = vst.msk [vmem:[#allocation2 + $0xe1] sm:$0xff] %vm859_vm0, %v17190_v37  ;;  %v1026_v54 = vld [vmem:[#allocation2 + $0x31] sm:$0xff]  ;;  %v21677_v55 = vpack.c.bf16 %v1025_v53, %v1024_v52  ;;  %v1027_v56 = vld [vmem:[#allocation2 + $0x39] sm:$0xff] }
  0x56   : > { %956 = vst.msk [vmem:[#allocation2 + $0xf1] sm:$0xff] %vm859_vm0, %v17193_v38  ;;  %957 = vst.msk [vmem:[#allocation2 + $0xf9] sm:$0xff] %vm859_vm0, %v17194_v41  ;;  %v21682_v58 = vpack.c.bf16 %v1027_v56, %v1026_v54  ;;  %v1028_v59 = vld [vmem:[#allocation2 + $0x49] sm:$0xff]  ;;  %v1029_v60 = vld [vmem:[#allocation2 + $0x51] sm:$0xff]  ;;  %v1002_v38 = vpack.c.bf16 %v971_v34, %v970_v33 }
  0x57   : > { %958 = vst.msk [vmem:[#allocation2 + $0x109] sm:$0xff] %vm859_vm0, %v17197_v42  ;;  %959 = vst.msk [vmem:[#allocation2 + $0x111] sm:$0xff] %vm859_vm0, %v17198_v43  ;;  %18206 = vmatmul.mubr.msk.bf16.vlgmr.msra.gmra.mrb[0].mxu0 %vm859_vm0, %v21677_v55  ;;  %v1030_v61 = vld [vmem:[#allocation2 + $0x61] sm:$0xff]  ;;  %v1031_v62 = vld [vmem:[#allocation2 + $0x69] sm:$0xff]  ;;  %v21694_v0 = vpack.c.bf16 %v1029_v60, %v1028_v59 }
  0x58   : > { %960 = vst.msk [vmem:[#allocation2 + $0x121] sm:$0xff] %vm859_vm0, %v17201_v44  ;;  %961 = vst.msk [vmem:[#allocation2 + $0x129] sm:$0xff] %vm859_vm0, %v17202_v45  ;;  %18238 = vmatpush3.bf16.msra.mxu0 %v21604_v3  ;;  %18209 = vmatprep.mubr.msk.bf16.mxu0 %vm859_vm0, %v21682_v58  ;;  %v21696_v1 = vpack.c.bf16 %v1031_v62, %v1030_v61  ;;  %v1032_v3 = vld [vmem:[#allocation2 + $0x79] sm:$0xff]  ;;  %v1033_v4 = vld [vmem:[#allocation2 + $0x81] sm:$0xff] }
  0x59   : > { %962 = vst.msk [vmem:[#allocation2 + $0x139] sm:$0xff] %vm859_vm0, %v17205_v46  ;;  %963 = vst.msk [vmem:[#allocation2 + $0x141] sm:$0xff] %vm859_vm0, %v17206_v47  ;;  %18239 = vmatprep.subr.bf16.mxu0 %v21195_v57  ;;  %v1034_v5 = vld [vmem:[#allocation2 + $0x91] sm:$0xff]  ;;  %v1035_v6 = vld [vmem:[#allocation2 + $0x99] sm:$0xff]  ;;  %v21703_v7 = vpack.c.bf16 %v1033_v4, %v1032_v3 }
  0x5a   : > { %964 = vst.msk [vmem:[#allocation2 + $0x151] sm:$0xff] %vm859_vm0, %v17209_v48  ;;  %965 = vst.msk [vmem:[#allocation2 + $0x159] sm:$0xff] %vm859_vm0, %v17210_v49  ;;  %v21705_v8 = vpack.c.bf16 %v1035_v6, %v1034_v5  ;;  %v1036_v9 = vld [vmem:[#allocation2 + $0xa9] sm:$0xff]  ;;  %v1037_v10 = vld [vmem:[#allocation2 + $0xb1] sm:$0xff] }
  0x5b   : > { %966 = vst.msk [vmem:[#allocation2 + $0x169] sm:$0xff] %vm859_vm0, %v17213_v50  ;;  %967 = vst.msk [vmem:[#allocation2 + $0x171] sm:$0xff] %vm859_vm0, %v17214_v51  ;;  %v1038_v11 = vld [vmem:[#allocation2 + $0xc1] sm:$0xff]  ;;  %v1039_v12 = vld [vmem:[#allocation2 + $0xc9] sm:$0xff]  ;;  %v21711_v13 = vpack.c.bf16 %v1037_v10, %v1036_v9 }
  0x5c   : > { %18240 = vmatpush3.bf16.msra.mxu0 %v21195_v57  ;;  %v21713_v14 = vpack.c.bf16 %v1039_v12, %v1038_v11  ;;  %v1040_v15 = vld [vmem:[#allocation2 + $0xd9] sm:$0xff]  ;;  %v1041_v16 = vld [vmem:[#allocation2 + $0xe1] sm:$0xff]  ;;  %v974_v41 = vld [vmem:[#allocation2 + $0x30] sm:$0xff]  ;;  %3987 = vst.msk [vmem:[#allocation5] sm:$0xff] %vm588_vm3, %v21258_v2 }
  0x5d   : > { %18273 = vmatprep.subr.bf16.mxu0 %v21692_v63  ;;  %v1042_v17 = vld [vmem:[#allocation2 + $0xf1] sm:$0xff]  ;;  %v1043_v18 = vld [vmem:[#allocation2 + $0xf9] sm:$0xff]  ;;  %v21719_v19 = vpack.c.bf16 %v1041_v16, %v1040_v15  ;;  %v21197_v45 = vld [vmem:[%s25812_s4 + $0x28] sm:$0xff]   ;;  %3988 = vst.msk [vmem:[#allocation5 + $0x8] sm:$0xff] %vm588_vm3, %v21258_v2 }
  0x5e   : > { %v21721_v20 = vpack.c.bf16 %v1043_v18, %v1042_v17  ;;  %v1044_v21 = vld [vmem:[#allocation2 + $0x109] sm:$0xff]  ;;  %v1045_v22 = vld [vmem:[#allocation2 + $0x111] sm:$0xff]  ;;  %v973_v40 = vld [vmem:[#allocation2 + $0x20] sm:$0xff]  ;;  %3992 = vst.msk [vmem:[#allocation5 + $0x198] sm:$0xff] %vm588_vm3, %v21258_v2 }
  0x5f   : > { %18210 = vmatmul.mubr.msk.bf16.gmra.mrb[4].mxu0 %vm859_vm0, %v21694_v0  ;;  %v1046_v23 = vld [vmem:[#allocation2 + $0x121] sm:$0xff]  ;;  %v1047_v24 = vld [vmem:[#allocation2 + $0x129] sm:$0xff]  ;;  %v21727_v25 = vpack.c.bf16 %v1045_v22, %v1044_v21  ;;  %v972_v39 = vld [vmem:[#allocation2 + $0x18] sm:$0xff]  ;;  %3993 = vst.msk [vmem:[#allocation5 + $0x1a0] sm:$0xff] %vm588_vm3, %v21258_v2 }
  0x60   : > { %18213 = vmatprep.mubr.msk.bf16.mxu0 %vm859_vm0, %v21696_v1  ;;  %v21729_v26 = vpack.c.bf16 %v1047_v24, %v1046_v23  ;;  %v1048_v27 = vld [vmem:[#allocation2 + $0x139] sm:$0xff]  ;;  %v1049_v28 = vld [vmem:[#allocation2 + $0x141] sm:$0xff]  ;;  %v21748_v43 = vpack.c.bf16 %v973_v40, %v972_v39  ;;  %v977_v47 = vld [vmem:[#allocation2 + $0x50] sm:$0xff]  ;;  %10082 = vst.msk [vmem:[#allocation6] sm:$0xff] %vm588_vm3, %v21258_v2 }
  0x61   : > { %v1050_v29 = vld [vmem:[#allocation2 + $0x151] sm:$0xff]  ;;  %v1051_v30 = vld [vmem:[#allocation2 + $0x159] sm:$0xff]  ;;  %v21735_v31 = vpack.c.bf16 %v1049_v28, %v1048_v27  ;;  %v976_v46 = vld [vmem:[#allocation2 + $0x48] sm:$0xff]  ;;  %10083 = vst.msk [vmem:[#allocation6 + $0x8] sm:$0xff] %vm588_vm3, %v21258_v2 }
  0x62   : > { %v21737_v32 = vpack.c.bf16 %v1051_v30, %v1050_v29  ;;  %v1052_v35 = vld [vmem:[#allocation2 + $0x169] sm:$0xff]  ;;  %v1053_v36 = vld [vmem:[#allocation2 + $0x171] sm:$0xff]  ;;  %v978_v48 = vld [vmem:[#allocation2 + $0x60] sm:$0xff]  ;;  %v21765_v51 = vpack.c.bf16 %v977_v47, %v976_v46  ;;  %10086 = vst.msk [vmem:[#allocation6 + $0x198] sm:$0xff] %vm588_vm3, %v21258_v2 }
  0x63   : > { %v21743_v37 = vpack.c.bf16 %v1053_v36, %v1052_v35  ;;  %v975_v42 = vld [vmem:[#allocation2 + $0x38] sm:$0xff]  ;;  %v979_v49 = vld [vmem:[#allocation2 + $0x68] sm:$0xff]  ;;  %v21763_v50 = vld [vmem:[%s25812_s4 + $0x30] sm:$0xff]   ;;  %10087 = vst.msk [vmem:[#allocation6 + $0x1a0] sm:$0xff] %vm588_vm3, %v21258_v2 }
  0x64   : > { %v21750_v44 = vpack.c.bf16 %v975_v42, %v974_v41  ;;  %v21767_v52 = vpack.c.bf16 %v979_v49, %v978_v48  ;;  %v980_v53 = vld [vmem:[#allocation2 + $0x78] sm:$0xff]  ;;  %v981_v54 = vld [vmem:[#allocation2 + $0x80] sm:$0xff]  ;;  %v982_v56 = vld [vmem:[#allocation2 + $0x90] sm:$0xff]  ;;  %4015 = vst.msk [vmem:[#allocation5 + $0x29] sm:$0x1] %vm3995_vm4, %v21258_v2 }
  0x65   : > { %v983_v57 = vld [vmem:[#allocation2 + $0x98] sm:$0xff]  ;;  %v21774_v59 = vpack.c.bf16 %v981_v54, %v980_v53  ;;  %v984_v61 = vld [vmem:[#allocation2 + $0xa8] sm:$0xff]  ;;  %v985_v62 = vld [vmem:[#allocation2 + $0xb0] sm:$0xff]  ;;  %3996 = vst.msk [vmem:[#allocation5] sm:$0x1] %vm3995_vm4, %v21258_v2 }
  0x66   : > { %v21776_v60 = vpack.c.bf16 %v983_v57, %v982_v56  ;;  %v987_v3 = vld [vmem:[#allocation2 + $0xc8] sm:$0xff]  ;;  %v21782_v4 = vpack.c.bf16 %v985_v62, %v984_v61  ;;  %v988_v6 = vld [vmem:[#allocation2 + $0xd8] sm:$0xff]  ;;  %v989_v9 = vld [vmem:[#allocation2 + $0xe0] sm:$0xff]  ;;  %3997 = vst.msk [vmem:[#allocation5 + $0x18] sm:$0x1] %vm3995_vm4, %v21258_v2 }
  0x67   : > { %18214 = vmatmul.mubr.msk.bf16.gmra.mrb[8].mxu0 %vm859_vm0, %v21703_v7  ;;  %v990_v10 = vld [vmem:[#allocation2 + $0xf0] sm:$0xff]  ;;  %v991_v11 = vld [vmem:[#allocation2 + $0xf8] sm:$0xff]  ;;  %v21790_v12 = vpack.c.bf16 %v989_v9, %v988_v6  ;;  %v992_v16 = vld [vmem:[#allocation2 + $0x108] sm:$0xff]  ;;  %3998 = vst.msk [vmem:[#allocation5 + $0x30] sm:$0x1] %vm3995_vm4, %v21258_v2 }
  0x68   : > { %18217 = vmatprep.mubr.msk.bf16.mxu0 %vm859_vm0, %v21705_v8  ;;  %v21792_v15 = vpack.c.bf16 %v991_v11, %v990_v10  ;;  %v993_v17 = vld [vmem:[#allocation2 + $0x110] sm:$0xff]  ;;  %v994_v18 = vld [vmem:[#allocation2 + $0x120] sm:$0xff]  ;;  %v995_v21 = vld [vmem:[#allocation2 + $0x128] sm:$0xff]  ;;  %3999 = vst.msk [vmem:[#allocation5 + $0x48] sm:$0x1] %vm3995_vm4, %v21258_v2 }
  0x69   : > { %v21798_v22 = vpack.c.bf16 %v993_v17, %v992_v16  ;;  %v21800_v23 = vpack.c.bf16 %v995_v21, %v994_v18  ;;  %v996_v24 = vld [vmem:[#allocation2 + $0x138] sm:$0xff]  ;;  %v997_v27 = vld [vmem:[#allocation2 + $0x140] sm:$0xff]  ;;  %v998_v28 = vld [vmem:[#allocation2 + $0x150] sm:$0xff]  ;;  %4000 = vst.msk [vmem:[#allocation5 + $0x60] sm:$0x1] %vm3995_vm4, %v21258_v2 }
  0x6a   : > { %v999_v29 = vld [vmem:[#allocation2 + $0x158] sm:$0xff]  ;;  %v21807_v33 = vpack.c.bf16 %v997_v27, %v996_v24  ;;  %v1001_v39 = vld [vmem:[#allocation2 + $0x170] sm:$0xff]  ;;  %v1517_v40 = vld [vmem:[#allocation2 + $0x2] sm:$0xff]  ;;  %4001 = vst.msk [vmem:[#allocation5 + $0x78] sm:$0x1] %vm3995_vm4, %v21258_v2 }
  0x6b   : > { %v17361_v30 = vld [vmem:[%s21629_s29 + $0x78] sm:$0xff]   ;;  %v21809_v36 = vpack.c.bf16 %v999_v29, %v998_v28  ;;  %v1518_v41 = vld [vmem:[#allocation2 + $0xa] sm:$0xff]  ;;  %v1520_v47 = vld [vmem:[#allocation2 + $0x22] sm:$0xff]  ;;  %4002 = vst.msk [vmem:[#allocation5 + $0x90] sm:$0x1] %vm3995_vm4, %v21258_v2 }
  0x6c   : > { %v17217_v34 = vunpack.c.l.bf16 %v17361_v30  ;;  %v17218_v35 = vunpack.c.h.bf16 %v17361_v30  ;;  %v1519_v46 = vld [vmem:[#allocation2 + $0x1a] sm:$0xff]  ;;  %v1521_v48 = vld [vmem:[#allocation2 + $0x32] sm:$0xff]  ;;  %v1523_v57 = vld [vmem:[#allocation2 + $0x4a] sm:$0xff]  ;;  %4003 = vst.msk [vmem:[#allocation5 + $0xa8] sm:$0x1] %vm3995_vm4, %v21258_v2 }
  0x6d   : > { %v1522_v49 = vld [vmem:[#allocation2 + $0x3a] sm:$0xff]  ;;  %v21822_v53 = vpack.c.bf16 %v1520_v47, %v1519_v46  ;;  %v1524_v61 = vld [vmem:[#allocation2 + $0x52] sm:$0xff]  ;;  %v1525_v62 = vld [vmem:[#allocation2 + $0x62] sm:$0xff]  ;;  %4004 = vst.msk [vmem:[#allocation5 + $0xc0] sm:$0x1] %vm3995_vm4, %v21258_v2 }
  0x6e   : > { %968 = vst.msk [vmem:[#allocation2 + $0x181] sm:$0xff] %vm859_vm0, %v17217_v34  ;;  %969 = vst.msk [vmem:[#allocation2 + $0x189] sm:$0xff] %vm859_vm0, %v17218_v35  ;;  %v21824_v54 = vpack.c.bf16 %v1522_v49, %v1521_v48  ;;  %v21199_v56 = vld [vmem:[%s25812_s4 + $0x38] sm:$0xff]   ;;  %v21837_v6 = vpack.c.bf16 %v1524_v61, %v1523_v57  ;;  %v1528_v10 = vld [vmem:[#allocation2 + $0x82] sm:$0xff] }
  0x6f   : > { %18218 = vmatmul.mubr.msk.bf16.gmra.mrb[12].mxu0 %vm859_vm0, %v21711_v13  ;;  %v1529_v11 = vld [vmem:[#allocation2 + $0x92] sm:$0xff]  ;;  %v1530_v16 = vld [vmem:[#allocation2 + $0x9a] sm:$0xff]  ;;  %v1531_v21 = vld [vmem:[#allocation2 + $0xaa] sm:$0xff]  ;;  %4005 = vst.msk [vmem:[#allocation5 + $0xd8] sm:$0x1] %vm3995_vm4, %v21258_v2 }
  0x70   : > { %18221 = vmatprep.mubr.msk.bf16.mxu0 %vm859_vm0, %v21713_v14  ;;  %v21847_v18 = vpack.c.bf16 %v1530_v16, %v1529_v11  ;;  %v1532_v24 = vld [vmem:[#allocation2 + $0xb2] sm:$0xff]  ;;  %v1533_v27 = vld [vmem:[#allocation2 + $0xc2] sm:$0xff]  ;;  %v1534_v28 = vld [vmem:[#allocation2 + $0xca] sm:$0xff]  ;;  %4006 = vst.msk [vmem:[#allocation5 + $0xf0] sm:$0x1] %vm3995_vm4, %v21258_v2 }
  0x71   : > { %v21853_v29 = vpack.c.bf16 %v1532_v24, %v1531_v21  ;;  %v21855_v30 = vpack.c.bf16 %v1534_v28, %v1533_v27  ;;  %v1535_v34 = vld [vmem:[#allocation2 + $0xda] sm:$0xff]  ;;  %v1536_v35 = vld [vmem:[#allocation2 + $0xe2] sm:$0xff]  ;;  %v1540_v46 = vld [vmem:[#allocation2 + $0x112] sm:$0xff]  ;;  %4007 = vst.msk [vmem:[#allocation5 + $0x108] sm:$0x1] %vm3995_vm4, %v21258_v2 }
  0x72   : > { %v1541_v47 = vld [vmem:[#allocation2 + $0x122] sm:$0xff]  ;;  %v1542_v48 = vld [vmem:[#allocation2 + $0x12a] sm:$0xff]  ;;  %v1543_v57 = vld [vmem:[#allocation2 + $0x13a] sm:$0xff]  ;;  %4008 = vst.msk [vmem:[#allocation5 + $0x120] sm:$0x1] %vm3995_vm4, %v21258_v2 }
  0x73   : > { %v1544_v61 = vld [vmem:[#allocation2 + $0x142] sm:$0xff]  ;;  %v1547_v11 = vld [vmem:[#allocation2 + $0x16a] sm:$0xff]  ;;  %v1548_v16 = vld [vmem:[#allocation2 + $0x172] sm:$0xff]  ;;  %4009 = vst.msk [vmem:[#allocation5 + $0x138] sm:$0x1] %vm3995_vm4, %v21258_v2 }
  0x74   : > { %v21885_v21 = vpack.c.bf16 %v1548_v16, %v1547_v11  ;;  %v21201_v24 = vld [vmem:[%s25812_s4 + $0x48] sm:$0xff]   ;;  %v21202_v27 = vld [vmem:[%s25812_s4 + $0x50] sm:$0xff]   ;;  %4010 = vst.msk [vmem:[#allocation5 + $0x150] sm:$0x1] %vm3995_vm4, %v21258_v2  ;;  %4011 = vst.msk [vmem:[#allocation5 + $0x168] sm:$0x1] %vm3995_vm4, %v21258_v2 }
  0x75   : > { %v3066_v16 = vld [vmem:[#allocation2 + $0x109] sm:$0xff]  ;;  %4012 = vst.msk [vmem:[#allocation5 + $0x180] sm:$0x1] %vm3995_vm4, %v21258_v2  ;;  %4013 = vst.msk [vmem:[#allocation5 + $0x198] sm:$0x1] %vm3995_vm4, %v21258_v2 }
  0x76   : > { %4016 = vst.msk [vmem:[#allocation5 + $0x41] sm:$0x1] %vm3995_vm4, %v21258_v2  ;;  %4017 = vst.msk [vmem:[#allocation5 + $0x59] sm:$0x1] %vm3995_vm4, %v21258_v2 }
  0x77   : > { %18222 = vmatmul.mubr.msk.bf16.gmra.mrb[16].mxu0 %vm859_vm0, %v21719_v19  ;;  %4018 = vst.msk [vmem:[#allocation5 + $0x71] sm:$0x1] %vm3995_vm4, %v21258_v2  ;;  %4019 = vst.msk [vmem:[#allocation5 + $0x89] sm:$0x1] %vm3995_vm4, %v21258_v2 }
  0x78   : > { %18225 = vmatprep.mubr.msk.bf16.mxu0 %vm859_vm0, %v21721_v20  ;;  %4020 = vst.msk [vmem:[#allocation5 + $0xa1] sm:$0x1] %vm3995_vm4, %v21258_v2  ;;  %4021 = vst.msk [vmem:[#allocation5 + $0xb9] sm:$0x1] %vm3995_vm4, %v21258_v2 }
  0x79   : > { %4022 = vst.msk [vmem:[#allocation5 + $0xd1] sm:$0x1] %vm3995_vm4, %v21258_v2  ;;  %4023 = vst.msk [vmem:[#allocation5 + $0xe9] sm:$0x1] %vm3995_vm4, %v21258_v2 }
  0x7a   : > { %4024 = vst.msk [vmem:[#allocation5 + $0x101] sm:$0x1] %vm3995_vm4, %v21258_v2  ;;  %4025 = vst.msk [vmem:[#allocation5 + $0x119] sm:$0x1] %vm3995_vm4, %v21258_v2 }
  0x7b   : > { %4026 = vst.msk [vmem:[#allocation5 + $0x131] sm:$0x1] %vm3995_vm4, %v21258_v2  ;;  %4027 = vst.msk [vmem:[#allocation5 + $0x149] sm:$0x1] %vm3995_vm4, %v21258_v2 }
  0x7c   : > { %4028 = vst.msk [vmem:[#allocation5 + $0x161] sm:$0x1] %vm3995_vm4, %v21258_v2  ;;  %4029 = vst.msk [vmem:[#allocation5 + $0x179] sm:$0x1] %vm3995_vm4, %v21258_v2 }
  0x7d   : > { %4030 = vst.msk [vmem:[#allocation5 + $0x191] sm:$0x1] %vm3995_vm4, %v21258_v2  ;;  %10089 = vst.msk [vmem:[#allocation6] sm:$0x1] %vm3995_vm4, %v21258_v2 }
  0x7e   : > { %10090 = vst.msk [vmem:[#allocation6 + $0x18] sm:$0x1] %vm3995_vm4, %v21258_v2  ;;  %10091 = vst.msk [vmem:[#allocation6 + $0x30] sm:$0x1] %vm3995_vm4, %v21258_v2 }
  0x7f   : > { %18226 = vmatmul.mubr.msk.bf16.gmra.mrb[20].mxu0 %vm859_vm0, %v21727_v25  ;;  %10092 = vst.msk [vmem:[#allocation6 + $0x48] sm:$0x1] %vm3995_vm4, %v21258_v2  ;;  %10093 = vst.msk [vmem:[#allocation6 + $0x60] sm:$0x1] %vm3995_vm4, %v21258_v2 }
  0x80   : > { %18229 = vmatprep.mubr.msk.bf16.mxu0 %vm859_vm0, %v21729_v26  ;;  %10094 = vst.msk [vmem:[#allocation6 + $0x78] sm:$0x1] %vm3995_vm4, %v21258_v2  ;;  %10095 = vst.msk [vmem:[#allocation6 + $0x90] sm:$0x1] %vm3995_vm4, %v21258_v2 }
  0x81   : > { %10096 = vst.msk [vmem:[#allocation6 + $0xa8] sm:$0x1] %vm3995_vm4, %v21258_v2  ;;  %10097 = vst.msk [vmem:[#allocation6 + $0xc0] sm:$0x1] %vm3995_vm4, %v21258_v2 }
  0x82   : > { %10098 = vst.msk [vmem:[#allocation6 + $0xd8] sm:$0x1] %vm3995_vm4, %v21258_v2  ;;  %10099 = vst.msk [vmem:[#allocation6 + $0xf0] sm:$0x1] %vm3995_vm4, %v21258_v2 }
  0x83   : > { %10100 = vst.msk [vmem:[#allocation6 + $0x108] sm:$0x1] %vm3995_vm4, %v21258_v2  ;;  %10101 = vst.msk [vmem:[#allocation6 + $0x120] sm:$0x1] %vm3995_vm4, %v21258_v2 }
  0x84   : > { %10102 = vst.msk [vmem:[#allocation6 + $0x138] sm:$0x1] %vm3995_vm4, %v21258_v2  ;;  %10103 = vst.msk [vmem:[#allocation6 + $0x150] sm:$0x1] %vm3995_vm4, %v21258_v2 }
  0x85   : > { %10104 = vst.msk [vmem:[#allocation6 + $0x168] sm:$0x1] %vm3995_vm4, %v21258_v2  ;;  %10105 = vst.msk [vmem:[#allocation6 + $0x180] sm:$0x1] %vm3995_vm4, %v21258_v2 }
  0x86   : > { %10106 = vst.msk [vmem:[#allocation6 + $0x198] sm:$0x1] %vm3995_vm4, %v21258_v2  ;;  %10108 = vst.msk [vmem:[#allocation6 + $0x29] sm:$0x1] %vm3995_vm4, %v21258_v2 }
  0x87   : > { %18230 = vmatmul.mubr.msk.bf16.gmra.mrb[24].mxu0 %vm859_vm0, %v21735_v31  ;;  %10109 = vst.msk [vmem:[#allocation6 + $0x41] sm:$0x1] %vm3995_vm4, %v21258_v2  ;;  %10110 = vst.msk [vmem:[#allocation6 + $0x59] sm:$0x1] %vm3995_vm4, %v21258_v2 }
  0x88   : > { %18233 = vmatprep.mubr.msk.bf16.mxu0 %vm859_vm0, %v21737_v32  ;;  %10111 = vst.msk [vmem:[#allocation6 + $0x71] sm:$0x1] %vm3995_vm4, %v21258_v2  ;;  %10112 = vst.msk [vmem:[#allocation6 + $0x89] sm:$0x1] %vm3995_vm4, %v21258_v2 }
  0x89   : > { %10113 = vst.msk [vmem:[#allocation6 + $0xa1] sm:$0x1] %vm3995_vm4, %v21258_v2  ;;  %10114 = vst.msk [vmem:[#allocation6 + $0xb9] sm:$0x1] %vm3995_vm4, %v21258_v2 }
  0x8a   : > { %10115 = vst.msk [vmem:[#allocation6 + $0xd1] sm:$0x1] %vm3995_vm4, %v21258_v2  ;;  %10116 = vst.msk [vmem:[#allocation6 + $0xe9] sm:$0x1] %vm3995_vm4, %v21258_v2 }
  0x8b   : > { %10117 = vst.msk [vmem:[#allocation6 + $0x101] sm:$0x1] %vm3995_vm4, %v21258_v2  ;;  %10118 = vst.msk [vmem:[#allocation6 + $0x119] sm:$0x1] %vm3995_vm4, %v21258_v2 }
  0x8c   : > { %10119 = vst.msk [vmem:[#allocation6 + $0x131] sm:$0x1] %vm3995_vm4, %v21258_v2  ;;  %10120 = vst.msk [vmem:[#allocation6 + $0x149] sm:$0x1] %vm3995_vm4, %v21258_v2 }
  0x8d   : > { %10121 = vst.msk [vmem:[#allocation6 + $0x161] sm:$0x1] %vm3995_vm4, %v21258_v2  ;;  %10122 = vst.msk [vmem:[#allocation6 + $0x179] sm:$0x1] %vm3995_vm4, %v21258_v2 }
  0x8e   : > { %10123 = vst.msk [vmem:[#allocation6 + $0x191] sm:$0x1] %vm3995_vm4, %v21258_v2 }
  0x8f   : > { %18234 = vmatmul.mubr.msk.bf16.gmra.mrb[28].mxu0 %vm859_vm0, %v21743_v37  ;;  %3990 = vst.msk [vmem:[#allocation5 + $0x10] sm:$0x3] %vm3989_vm5, %v21258_v2  ;;  %3994 = vst.msk [vmem:[#allocation5 + $0x1a8] sm:$0x3] %vm3989_vm5, %v21258_v2 }
  0x90   : > { %18241 = vmatprep.mubr.msk.bf16.mxu0 %vm859_vm0, %v1002_v38  ;;  %v1000_v38 = vld [vmem:[#allocation2 + $0x168] sm:$0xff]  ;;  %10084 = vst.msk [vmem:[#allocation6 + $0x10] sm:$0x3] %vm3989_vm5, %v21258_v2  ;;  %10088 = vst.msk [vmem:[#allocation6 + $0x1a8] sm:$0x3] %vm3989_vm5, %v21258_v2 }
  0x91   : > { %v21817_v42 = vpack.c.bf16 %v1001_v39, %v1000_v38  ;;  %v1537_v38 = vld [vmem:[#allocation2 + $0xf2] sm:$0xff]  ;;  %v1538_v39 = vld [vmem:[#allocation2 + $0xfa] sm:$0xff]  ;;  %4014 = vst.msk [vmem:[#allocation5 + $0x11] sm:$0x1] %vm3995_vm4, %v21258_v2  ;;  %4031 = vst.msk [vmem:[#allocation5 + $0x1a9] sm:$0x1] %vm3995_vm4, %v21258_v2 }
  0x92   : > { %10107 = vst.msk [vmem:[#allocation6 + $0x11] sm:$0x1] %vm3995_vm4, %v21258_v2  ;;  %10124 = vst.msk [vmem:[#allocation6 + $0x1a9] sm:$0x1] %vm3995_vm4, %v21258_v2 }
  0x97   : > { %18242 = vmatmul.mubr.msk.bf16.vlgmr.msra.gmra.mrb[0].mxu0 %vm859_vm0, %v21748_v43 }
  0x98   : > { %18274 = vmatpush3.bf16.msra.mxu0 %v21692_v63  ;;  %18245 = vmatprep.mubr.msk.bf16.mxu0 %vm859_vm0, %v21750_v44  ;;  %v986_v63 = vld [vmem:[#allocation2 + $0xc0] sm:$0xff] }
  0x99   : > { %18275 = vmatprep.subr.bf16.mxu0 %v21197_v45  ;;  %v21784_v5 = vpack.c.bf16 %v987_v3, %v986_v63  ;;  %v1526_v63 = vld [vmem:[#allocation2 + $0x6a] sm:$0xff]  ;;  %v21200_v3 = vld [vmem:[%s25812_s4 + $0x40] sm:$0xff]  }
  0x9a   : > { %v21839_v9 = vpack.c.bf16 %v1526_v63, %v1525_v62  ;;  %v1545_v62 = vld [vmem:[#allocation2 + $0x152] sm:$0xff]  ;;  %v1546_v63 = vld [vmem:[#allocation2 + $0x15a] sm:$0xff] }
  0x9c   : > { %18276 = vmatpush3.bf16.msra.mxu0 %v21197_v45  ;;  %v1549_v45 = vpack.c.bf16 %v1518_v41, %v1517_v40  ;;  %v21861_v40 = vpack.c.bf16 %v1536_v35, %v1535_v34  ;;  %v21863_v41 = vpack.c.bf16 %v1538_v39, %v1537_v38  ;;  %v21203_v34 = vld [vmem:[%s25812_s4 + $0x58] sm:$0xff]   ;;  %v21204_v35 = vld [vmem:[%s25812_s4 + $0x60] sm:$0xff]  }
  0x9d   : > { %18309 = vmatprep.subr.bf16.mxu0 %v21763_v50  ;;  %v3059_v38 = vld [vmem:[#allocation2 + $0xb1] sm:$0xff]  ;;  %v3060_v39 = vld [vmem:[#allocation2 + $0xc1] sm:$0xff] }
  0x9f   : > { %18246 = vmatmul.mubr.msk.bf16.gmra.mrb[4].mxu0 %vm859_vm0, %v21765_v51 }
  0xa0   : > { %18249 = vmatprep.mubr.msk.bf16.mxu0 %vm859_vm0, %v21767_v52 }
  0xa7   : > { %18250 = vmatmul.mubr.msk.bf16.gmra.mrb[8].mxu0 %vm859_vm0, %v21774_v59 }
  0xa8   : > { %18253 = vmatprep.mubr.msk.bf16.mxu0 %vm859_vm0, %v21776_v60 }
  0xaf   : > { %18254 = vmatmul.mubr.msk.bf16.gmra.mrb[12].mxu0 %vm859_vm0, %v21782_v4 }
  0xb0   : > { %18257 = vmatprep.mubr.msk.bf16.mxu0 %vm859_vm0, %v21784_v5 }
  0xb7   : > { %18258 = vmatmul.mubr.msk.bf16.gmra.mrb[16].mxu0 %vm859_vm0, %v21790_v12 }
  0xb8   : > { %18261 = vmatprep.mubr.msk.bf16.mxu0 %vm859_vm0, %v21792_v15 }
  0xbf   : > { %18262 = vmatmul.mubr.msk.bf16.gmra.mrb[20].mxu0 %vm859_vm0, %v21798_v22 }
  0xc0   : > { %18265 = vmatprep.mubr.msk.bf16.mxu0 %vm859_vm0, %v21800_v23 }
  0xc7   : > { %18266 = vmatmul.mubr.msk.bf16.gmra.mrb[24].mxu0 %vm859_vm0, %v21807_v33 }
  0xc8   : > { %18269 = vmatprep.mubr.msk.bf16.mxu0 %vm859_vm0, %v21809_v36 }
  0xcf   : > { %18270 = vmatmul.mubr.msk.bf16.gmra.mrb[28].mxu0 %vm859_vm0, %v21817_v42 }
  0xd0   : > { %18277 = vmatprep.mubr.msk.bf16.mxu0 %vm859_vm0, %v1549_v45  ;;  %v1539_v45 = vld [vmem:[#allocation2 + $0x10a] sm:$0xff] }
  0xd1   : > { %v21869_v49 = vpack.c.bf16 %v1540_v46, %v1539_v45  ;;  %v3061_v45 = vld [vmem:[#allocation2 + $0xc9] sm:$0xff] }
  0xd7   : > { %18278 = vmatmul.mubr.msk.bf16.vlgmr.msra.gmra.mrb[0].mxu0 %vm859_vm0, %v21822_v53 }
  0xd8   : > { %18310 = vmatpush3.bf16.msra.mxu0 %v21763_v50  ;;  %18281 = vmatprep.mubr.msk.bf16.mxu0 %vm859_vm0, %v21824_v54  ;;  %v1527_v50 = vld [vmem:[#allocation2 + $0x7a] sm:$0xff] }
  0xd9   : > { %18311 = vmatprep.subr.bf16.mxu0 %v21199_v56  ;;  %v21845_v17 = vpack.c.bf16 %v1528_v10, %v1527_v50  ;;  %v21877_v50 = vpack.c.bf16 %v1544_v61, %v1543_v57  ;;  %v21879_v10 = vpack.c.bf16 %v1546_v63, %v1545_v62  ;;  %v3063_v57 = vld [vmem:[#allocation2 + $0xe1] sm:$0xff]  ;;  %v3064_v61 = vld [vmem:[#allocation2 + $0xf1] sm:$0xff]  ;;  %v3065_v62 = vld [vmem:[#allocation2 + $0xf9] sm:$0xff] }
  0xda   : > { %v3088_v11 = vpack.c.bf16 %v3065_v62, %v3064_v61  ;;  %v22167_v62 = vld [vmem:[%s22082_s27 + $0x60] sm:$0xff] }
  0xdc   : > { %18312 = vmatpush3.bf16.msra.mxu0 %v21199_v56  ;;  %v21871_v56 = vpack.c.bf16 %v1542_v48, %v1541_v47  ;;  %v3086_v47 = vpack.c.bf16 %v3061_v45, %v3060_v39  ;;  %v3062_v48 = vld [vmem:[#allocation2 + $0xd9] sm:$0xff] }
  0xdd   : > { %18345 = vmatprep.subr.bf16.mxu0 %v21200_v3  ;;  %v3087_v63 = vpack.c.bf16 %v3063_v57, %v3062_v48 }
  0xdf   : > { %18282 = vmatmul.mubr.msk.bf16.gmra.mrb[4].mxu0 %vm859_vm0, %v21837_v6 }
  0xe0   : > { %18285 = vmatprep.mubr.msk.bf16.mxu0 %vm859_vm0, %v21839_v9 }
  0xe7   : > { %18286 = vmatmul.mubr.msk.bf16.gmra.mrb[8].mxu0 %vm859_vm0, %v21845_v17 }
  0xe8   : > { %18289 = vmatprep.mubr.msk.bf16.mxu0 %vm859_vm0, %v21847_v18 }
  0xef   : > { %18290 = vmatmul.mubr.msk.bf16.gmra.mrb[12].mxu0 %vm859_vm0, %v21853_v29 }
  0xf0   : > { %18293 = vmatprep.mubr.msk.bf16.mxu0 %vm859_vm0, %v21855_v30 }
  0xf7   : > { %18294 = vmatmul.mubr.msk.bf16.gmra.mrb[16].mxu0 %vm859_vm0, %v21861_v40 }
  0xf8   : > { %18297 = vmatprep.mubr.msk.bf16.mxu0 %vm859_vm0, %v21863_v41 }
  0xff   : > { %18298 = vmatmul.mubr.msk.bf16.gmra.mrb[20].mxu0 %vm859_vm0, %v21869_v49 }
 0x100   : > { %18301 = vmatprep.mubr.msk.bf16.mxu0 %vm859_vm0, %v21871_v56 }
 0x107   : > { %18302 = vmatmul.mubr.msk.bf16.gmra.mrb[24].mxu0 %vm859_vm0, %v21877_v50 }
 0x108   : > { %18305 = vmatprep.mubr.msk.bf16.mxu0 %vm859_vm0, %v21879_v10 }
 0x10f   : > { %18306 = vmatmul.mubr.msk.bf16.gmra.mrb[28].mxu0 %vm859_vm0, %v21885_v21 }
 0x110   : > { %18313 = vmatprep.mubr.msk.bf16.mxu0 %vm859_vm0, %v21748_v43  ;;  %v1853_v43 = vld [vmem:[#allocation2 + $0x180] sm:$0xff] }
 0x117   : > { %18314 = vmatmul.mubr.msk.bf16.vlgmr.msra.gmra.mrb[0].mxu0 %vm859_vm0, %v21750_v44 }
 0x118   : > { %18346 = vmatpush3.bf16.msra.mxu0 %v21200_v3  ;;  %18317 = vmatprep.mubr.msk.bf16.mxu0 %vm859_vm0, %v21765_v51  ;;  %v1854_v3 = vld [vmem:[#allocation2 + $0x188] sm:$0xff] }
 0x119   : > { %18347 = vmatprep.subr.bf16.mxu0 %v21201_v24  ;;  %v21925_v28 = vpack.c.bf16 %v1854_v3, %v1853_v43  ;;  %v3069_v43 = vld [vmem:[#allocation2 + $0x129] sm:$0xff] }
 0x11c   : > { %18348 = vmatpush3.bf16.msra.mxu0 %v21201_v24  ;;  %v3067_v24 = vld [vmem:[#allocation2 + $0x111] sm:$0xff] }
 0x11d   : > { %18381 = vmatprep.subr.bf16.mxu0 %v21202_v27  ;;  %v3089_v3 = vpack.c.bf16 %v3067_v24, %v3066_v16  ;;  %v22181_v24 = vld [vmem:[%s22082_s27 + $0x70] sm:$0xff] }
 0x11f   : > { %18318 = vmatmul.mubr.msk.bf16.gmra.mrb[4].mxu0 %vm859_vm0, %v21767_v52 }
 0x120   : > { %18321 = vmatprep.mubr.msk.bf16.mxu0 %vm859_vm0, %v21774_v59 }
 0x127   : > { %18322 = vmatmul.mubr.msk.bf16.gmra.mrb[8].mxu0 %vm859_vm0, %v21776_v60 }
 0x128   : > { %18325 = vmatprep.mubr.msk.bf16.mxu0 %vm859_vm0, %v21782_v4 }
 0x12f   : > { %18326 = vmatmul.mubr.msk.bf16.gmra.mrb[12].mxu0 %vm859_vm0, %v21784_v5 }
 0x130   : > { %18329 = vmatprep.mubr.msk.bf16.mxu0 %vm859_vm0, %v21790_v12 }
 0x137   : > { %18330 = vmatmul.mubr.msk.bf16.gmra.mrb[16].mxu0 %vm859_vm0, %v21792_v15 }
 0x138   : > { %18333 = vmatprep.mubr.msk.bf16.mxu0 %vm859_vm0, %v21798_v22 }
 0x13f   : > { %18334 = vmatmul.mubr.msk.bf16.gmra.mrb[20].mxu0 %vm859_vm0, %v21800_v23 }
 0x140   : > { %18337 = vmatprep.mubr.msk.bf16.mxu0 %vm859_vm0, %v21807_v33 }
 0x147   : > { %18338 = vmatmul.mubr.msk.bf16.gmra.mrb[24].mxu0 %vm859_vm0, %v21809_v36 }
 0x148   : > { %18341 = vmatprep.mubr.msk.bf16.mxu0 %vm859_vm0, %v21817_v42 }
 0x14f   : > { %18342 = vmatmul.mubr.msk.bf16.gmra.mrb[28].mxu0 %vm859_vm0, %v21925_v28 }
 0x150   : > { %18349 = vmatprep.mubr.msk.bf16.mxu0 %vm859_vm0, %v21677_v55  ;;  %v2159_v55 = vld [vmem:[#allocation2 + $0x181] sm:$0xff] }
 0x157   : > { %18350 = vmatmul.mubr.msk.bf16.vlgmr.msra.gmra.mrb[0].mxu0 %vm859_vm0, %v21682_v58  ;;  %v2160_v58 = vld [vmem:[#allocation2 + $0x189] sm:$0xff] }
 0x158   : > { %18382 = vmatpush3.bf16.msra.mxu0 %v21202_v27  ;;  %18353 = vmatprep.mubr.msk.bf16.mxu0 %vm859_vm0, %v21694_v0  ;;  %v21965_v0 = vpack.c.bf16 %v2160_v58, %v2159_v55  ;;  %v3068_v27 = vld [vmem:[#allocation2 + $0x121] sm:$0xff]  ;;  %v3072_v55 = vld [vmem:[#allocation2 + $0x151] sm:$0xff]  ;;  %v3073_v58 = vld [vmem:[#allocation2 + $0x159] sm:$0xff] }
 0x159   : > { %18383 = vmatprep.subr.bf16.mxu0 %v21203_v34 }
 0x15c   : > { %18384 = vmatpush3.bf16.msra.mxu0 %v21203_v34  ;;  %v3070_v34 = vld [vmem:[#allocation2 + $0x139] sm:$0xff] }
 0x15d   : > { %18417 = vmatprep.subr.bf16.mxu0 %v21204_v35 }
 0x15f   : > { %18354 = vmatmul.mubr.msk.bf16.gmra.mrb[4].mxu0 %vm859_vm0, %v21696_v1  ;;  %v21205_v1 = vld [vmem:[%s25812_s4 + $0x68] sm:$0xff]  }
 0x160   : > { %18357 = vmatprep.mubr.msk.bf16.mxu0 %vm859_vm0, %v21703_v7  ;;  %v21206_v7 = vld [vmem:[%s25812_s4 + $0x70] sm:$0xff]  }
 0x167   : > { %18358 = vmatmul.mubr.msk.bf16.gmra.mrb[8].mxu0 %vm859_vm0, %v21705_v8  ;;  %v2465_v8 = vld [vmem:[#allocation2 + $0x182] sm:$0xff] }
 0x168   : > { %18361 = vmatprep.mubr.msk.bf16.mxu0 %vm859_vm0, %v21711_v13  ;;  %v2466_v13 = vld [vmem:[#allocation2 + $0x18a] sm:$0xff] }
 0x16f   : > { %18362 = vmatmul.mubr.msk.bf16.gmra.mrb[12].mxu0 %vm859_vm0, %v21713_v14  ;;  %v22005_v14 = vpack.c.bf16 %v2466_v13, %v2465_v8  ;;  %v3074_v8 = vld [vmem:[#allocation2 + $0x169] sm:$0xff]  ;;  %v3075_v13 = vld [vmem:[#allocation2 + $0x171] sm:$0xff] }
 0x170   : > { %18365 = vmatprep.mubr.msk.bf16.mxu0 %vm859_vm0, %v21719_v19  ;;  %v21207_v19 = vld [vmem:[%s25812_s4 + $0x78] sm:$0xff]  }
 0x177   : > { %18366 = vmatmul.mubr.msk.bf16.gmra.mrb[16].mxu0 %vm859_vm0, %v21721_v20  ;;  %v21208_v20 = vld [vmem:[%s25812_s4 + $0x80] sm:$0xff]  }
 0x178   : > { %18369 = vmatprep.mubr.msk.bf16.mxu0 %vm859_vm0, %v21727_v25  ;;  %v2772_v25 = vld [vmem:[#allocation2 + $0x198] sm:$0xff] }
 0x17f   : > { %18370 = vmatmul.mubr.msk.bf16.gmra.mrb[20].mxu0 %vm859_vm0, %v21729_v26  ;;  %v2773_v26 = vld [vmem:[#allocation2 + $0x1a0] sm:$0xff] }
 0x180   : > { %18373 = vmatprep.mubr.msk.bf16.mxu0 %vm859_vm0, %v21735_v31  ;;  %v3048_v31 = vld [vmem:[#allocation2 + $0x31] sm:$0xff] }
 0x187   : > { %18374 = vmatmul.mubr.msk.bf16.gmra.mrb[24].mxu0 %vm859_vm0, %v21737_v32  ;;  %v3049_v32 = vld [vmem:[#allocation2 + $0x39] sm:$0xff] }
 0x188   : > { %18377 = vmatprep.mubr.msk.bf16.mxu0 %vm859_vm0, %v21743_v37  ;;  %v2789_v37 = vpack.c.bf16 %v2773_v26, %v2772_v25  ;;  %v3079_v25 = vld [vmem:[#allocation2 + $0x1a1] sm:$0xff] }
 0x189   : > { %v22088_v26 = vld [vmem:[%s22082_s27] sm:$0xff] }
 0x18f   : > { %18378 = vmatmul.mubr.msk.bf16.gmra.mrb[28].mxu0 %vm859_vm0, %v21965_v0 }
 0x190   : > { %18385 = vmatprep.mubr.msk.bf16.mxu0 %vm859_vm0, %v21822_v53  ;;  %v3058_v53 = vld [vmem:[#allocation2 + $0xa9] sm:$0xff] }
 0x191   : > { %v3085_v46 = vpack.c.bf16 %v3059_v38, %v3058_v53  ;;  %v22139_v38 = vld [vmem:[%s22082_s27 + $0x40] sm:$0xff] }
 0x197   : > { %18386 = vmatmul.mubr.msk.bf16.vlgmr.msra.gmra.mrb[0].mxu0 %vm859_vm0, %v21824_v54 }
 0x198   : > { %18418 = vmatpush3.bf16.msra.mxu0 %v21204_v35  ;;  %18389 = vmatprep.mubr.msk.bf16.mxu0 %vm859_vm0, %v21837_v6  ;;  %v3071_v35 = vld [vmem:[#allocation2 + $0x141] sm:$0xff] }
 0x199   : > { %18419 = vmatprep.subr.bf16.mxu0 %v21205_v1 }
 0x19c   : > { %18420 = vmatpush3.bf16.msra.mxu0 %v21205_v1  ;;  %v3091_v1 = vpack.c.bf16 %v3071_v35, %v3070_v34  ;;  %v3385_v35 = vld [vmem:[#allocation2 + $0x1a2] sm:$0xff] }
 0x19d   : > { %18453 = vmatprep.subr.bf16.mxu0 %v21206_v7 }
 0x19f   : > { %18390 = vmatmul.mubr.msk.bf16.gmra.mrb[4].mxu0 %vm859_vm0, %v21839_v9 }
 0x1a0   : > { %18393 = vmatprep.mubr.msk.bf16.mxu0 %vm859_vm0, %v21845_v17 }
 0x1a7   : > { %18394 = vmatmul.mubr.msk.bf16.gmra.mrb[8].mxu0 %vm859_vm0, %v21847_v18 }
 0x1a8   : > { %18397 = vmatprep.mubr.msk.bf16.mxu0 %vm859_vm0, %v21853_v29 }
 0x1af   : > { %18398 = vmatmul.mubr.msk.bf16.gmra.mrb[12].mxu0 %vm859_vm0, %v21855_v30 }
 0x1b0   : > { %18401 = vmatprep.mubr.msk.bf16.mxu0 %vm859_vm0, %v21861_v40 }
 0x1b7   : > { %18402 = vmatmul.mubr.msk.bf16.gmra.mrb[16].mxu0 %vm859_vm0, %v21863_v41 }
 0x1b8   : > { %18405 = vmatprep.mubr.msk.bf16.mxu0 %vm859_vm0, %v21869_v49 }
 0x1bf   : > { %18406 = vmatmul.mubr.msk.bf16.gmra.mrb[20].mxu0 %vm859_vm0, %v21871_v56 }
 0x1c0   : > { %18409 = vmatprep.mubr.msk.bf16.mxu0 %vm859_vm0, %v21877_v50 }
 0x1c7   : > { %18410 = vmatmul.mubr.msk.bf16.gmra.mrb[24].mxu0 %vm859_vm0, %v21879_v10 }
 0x1c8   : > { %18413 = vmatprep.mubr.msk.bf16.mxu0 %vm859_vm0, %v21885_v21 }
 0x1cf   : > { %18414 = vmatmul.mubr.msk.bf16.gmra.mrb[28].mxu0 %vm859_vm0, %v22005_v14 }
 0x1d0   : > { %18421 = vmatprep.mubr.msk.bf16.mxu0 %vm859_vm0, %v21750_v44  ;;  %v3080_v44 = vpack.c.bf16 %v3049_v32, %v3048_v31  ;;  %v22091_v31 = vld [vmem:[%s22082_s27 + $0x8] sm:$0xff] }
 0x1d7   : > { %18422 = vmatmul.mubr.msk.bf16.vlgmr.msra.gmra.mrb[0].mxu0 %vm859_vm0, %v21765_v51  ;;  %v3050_v51 = vld [vmem:[#allocation2 + $0x49] sm:$0xff] }
 0x1d8   : > { %18454 = vmatpush3.bf16.msra.mxu0 %v21206_v7  ;;  %18425 = vmatprep.mubr.msk.bf16.mxu0 %vm859_vm0, %v21767_v52  ;;  %v3051_v52 = vld [vmem:[#allocation2 + $0x51] sm:$0xff]  ;;  %v3092_v7 = vpack.c.bf16 %v3073_v58, %v3072_v55  ;;  %v22204_v55 = vld [vmem:[%s22082_s27 + $0x88] sm:$0xff] }
 0x1d9   : > { %18455 = vmatprep.subr.bf16.mxu0 %v21207_v19 }
 0x1dc   : > { %18456 = vmatpush3.bf16.msra.mxu0 %v21207_v19  ;;  %v3093_v19 = vpack.c.bf16 %v3075_v13, %v3074_v8  ;;  %v22209_v8 = vld [vmem:[%s22082_s27 + $0x90] sm:$0xff]  ;;  %v22215_v13 = vld [vmem:[%s22082_s27 + $0x98] sm:$0xff] }
 0x1dd   : > { %18489 = vmatprep.subr.bf16.mxu0 %v21208_v20 }
 0x1df   : > { %18426 = vmatmul.mubr.msk.bf16.gmra.mrb[4].mxu0 %vm859_vm0, %v21774_v59  ;;  %v3052_v59 = vld [vmem:[#allocation2 + $0x61] sm:$0xff] }
 0x1e0   : > { %18429 = vmatprep.mubr.msk.bf16.mxu0 %vm859_vm0, %v21776_v60  ;;  %v3053_v60 = vld [vmem:[#allocation2 + $0x69] sm:$0xff] }
 0x1e7   : > { %18430 = vmatmul.mubr.msk.bf16.gmra.mrb[8].mxu0 %vm859_vm0, %v21782_v4  ;;  %v3081_v4 = vpack.c.bf16 %v3051_v52, %v3050_v51  ;;  %v22098_v51 = vld [vmem:[%s22082_s27 + $0x10] sm:$0xff] }
 0x1e8   : > { %18433 = vmatprep.mubr.msk.bf16.mxu0 %vm859_vm0, %v21784_v5  ;;  %v3082_v5 = vpack.c.bf16 %v3053_v60, %v3052_v59  ;;  %v22106_v59 = vld [vmem:[%s22082_s27 + $0x18] sm:$0xff] }
 0x1ef   : > { %18434 = vmatmul.mubr.msk.bf16.gmra.mrb[12].mxu0 %vm859_vm0, %v21790_v12  ;;  %v21209_v12 = vld [vmem:[%s25812_s4 + $0x88] sm:$0xff]  }
 0x1f0   : > { %18437 = vmatprep.mubr.msk.bf16.mxu0 %vm859_vm0, %v21792_v15  ;;  %v3054_v15 = vld [vmem:[#allocation2 + $0x79] sm:$0xff] }
 0x1f7   : > { %18438 = vmatmul.mubr.msk.bf16.gmra.mrb[16].mxu0 %vm859_vm0, %v21798_v22  ;;  %v3055_v22 = vld [vmem:[#allocation2 + $0x81] sm:$0xff] }
 0x1f8   : > { %18441 = vmatprep.mubr.msk.bf16.mxu0 %vm859_vm0, %v21800_v23  ;;  %v3056_v23 = vld [vmem:[#allocation2 + $0x91] sm:$0xff] }
 0x1ff   : > { %18442 = vmatmul.mubr.msk.bf16.gmra.mrb[20].mxu0 %vm859_vm0, %v21807_v33  ;;  %v3057_v33 = vld [vmem:[#allocation2 + $0x99] sm:$0xff] }
 0x200   : > { %18445 = vmatprep.mubr.msk.bf16.mxu0 %vm859_vm0, %v21809_v36  ;;  %v3083_v36 = vpack.c.bf16 %v3055_v22, %v3054_v15 }
 0x207   : > { %18446 = vmatmul.mubr.msk.bf16.gmra.mrb[24].mxu0 %vm859_vm0, %v21817_v42  ;;  %v3084_v42 = vpack.c.bf16 %v3057_v33, %v3056_v23  ;;  %v22125_v33 = vld [vmem:[%s22082_s27 + $0x30] sm:$0xff] }
 0x208   : > { %18449 = vmatprep.mubr.msk.bf16.mxu0 %vm859_vm0, %v21925_v28  ;;  %v3090_v28 = vpack.c.bf16 %v3069_v43, %v3068_v27 }
 0x20f   : > { %18450 = vmatmul.mubr.msk.bf16.gmra.mrb[28].mxu0 %vm859_vm0, %v2789_v37  ;;  %v589_v37 = vsel %vm588_vm3, %v22088_v26, 0.0 }
 0x210   : > { %18457 = vmatprep.mubr.msk.bf16.mxu0 %vm859_vm0, %v3080_v44  ;;  %v590_v44 = vsel %vm588_vm3, %v22091_v31, 0.0 }
 0x211   : > { %v591_v52 = vadd.f32 %v590_v44, %v589_v37  ;;  %v22225_v44 = vld [vmem:[%s22082_s27 + $0xa8] sm:$0xff] }
 0x217   : > { %18458 = vmatmul.mubr.msk.bf16.vlgmr.msra.gmra.mrb[0].mxu0 %vm859_vm0, %v3081_v4  ;;  %v594_v4 = vsel %vm588_vm3, %v22106_v59, 0.0 }
 0x218   : > { %18490 = vmatpush3.bf16.msra.mxu0 %v21208_v20  ;;  %18461 = vmatprep.mubr.msk.bf16.mxu0 %vm859_vm0, %v3082_v5  ;;  %v3078_v20 = vld [vmem:[#allocation2 + $0x199] sm:$0xff] }
 0x219   : > { %18491 = vmatprep.subr.bf16.mxu0 %v21209_v12  ;;  %v3095_v32 = vpack.c.bf16 %v3079_v25, %v3078_v20  ;;  %v22111_v5 = vld [vmem:[%s22082_s27 + $0x20] sm:$0xff]  ;;  %v626_v20 = vsel %vm588_vm3, %v22215_v13, 0.0 }
 0x21a   : > { %v596_v15 = vsel %vm588_vm3, %v22111_v5, 0.0  ;;  %v22220_v25 = vld [vmem:[%s22082_s27 + $0xa0] sm:$0xff] }
 0x21b   : > { %v628_v37 = vsel %vm588_vm3, %v22220_v25, 0.0 }
 0x21c   : > { %18492 = vmatpush3.bf16.msra.mxu0 %v21209_v12 }
 0x21f   : > { %18462 = vmatmul.mubr.msk.bf16.gmra.mrb[4].mxu0 %vm859_vm0, %v3083_v36 }
 0x220   : > { %18465 = vmatprep.mubr.msk.bf16.mxu0 %vm859_vm0, %v3084_v42 }
 0x227   : > { %18466 = vmatmul.mubr.msk.bf16.gmra.mrb[8].mxu0 %vm859_vm0, %v3085_v46 }
 0x228   : > { %18469 = vmatprep.mubr.msk.bf16.mxu0 %vm859_vm0, %v3086_v47  ;;  %v22153_v47 = vld [vmem:[%s22082_s27 + $0x50] sm:$0xff] }
 0x22f   : > { %18470 = vmatmul.mubr.msk.bf16.gmra.mrb[12].mxu0 %vm859_vm0, %v3087_v63 }
 0x230   : > { %18473 = vmatprep.mubr.msk.bf16.mxu0 %vm859_vm0, %v3088_v11 }
 0x237   : > { %18474 = vmatmul.mubr.msk.bf16.gmra.mrb[16].mxu0 %vm859_vm0, %v3089_v3 }
 0x238   : > { %18477 = vmatprep.mubr.msk.bf16.mxu0 %vm859_vm0, %v3090_v28  ;;  %v22195_v28 = vld [vmem:[%s22082_s27 + $0x80] sm:$0xff] }
 0x23f   : > { %18478 = vmatmul.mubr.msk.bf16.gmra.mrb[20].mxu0 %vm859_vm0, %v3091_v1 }
 0x240   : > { %18481 = vmatprep.mubr.msk.bf16.mxu0 %vm859_vm0, %v3092_v7  ;;  %v622_v7 = vsel %vm588_vm3, %v22204_v55, 0.0 }
 0x247   : > { %18482 = vmatmul.mubr.msk.bf16.gmra.mrb[24].mxu0 %vm859_vm0, %v3093_v19 }
 0x248   : > { %18485 = vmatprep.mubr.msk.bf16.mxu0 %vm859_vm0, %v21965_v0  ;;  %v592_v0 = vsel %vm588_vm3, %v22098_v51, 0.0 }
 0x249   : > { %v593_v60 = vadd.f32 %v592_v0, %v591_v52  ;;  %v630_v0 = vsel %vm588_vm3, %v22225_v44, 0.0 }
 0x24b   : > { %v595_v12 = vadd.f32 %v594_v4, %v593_v60  ;;  %v22230_v60 = vld [vmem:[%s22082_s27 + $0xb0] sm:$0xff] }
 0x24d   : > { %v597_v22 = vadd.f32 %v596_v15, %v595_v12  ;;  %v632_v12 = vsel %vm588_vm3, %v22230_v60, 0.0  ;;  %v22235_v15 = vld [vmem:[%s22082_s27 + $0xb8] sm:$0xff] }
 0x24f   : > { %18486 = vmatmul.mubr.msk.bf16.gmra.mrb[28].mxu0 %vm859_vm0, %v3095_v32 }
 0x250   : > { %18493 = vmatprep.mubr.msk.bf16.mxu0 %vm859_vm0, %v21824_v54  ;;  %v22120_v54 = vld [vmem:[%s22082_s27 + $0x28] sm:$0xff] }
 0x251   : > { %v598_v23 = vsel %vm588_vm3, %v22120_v54, 0.0 }
 0x252   : > { %v599_v36 = vadd.f32 %v598_v23, %v597_v22  ;;  %v634_v23 = vsel %vm588_vm3, %v22235_v15, 0.0 }
 0x257   : > { %18494 = vmatmul.mubr.msk.bf16.vlgmr.msra.gmra.mrb[0].mxu0 %vm859_vm0, %v21837_v6  ;;  %v600_v6 = vsel %vm588_vm3, %v22125_v33, 0.0 }
 0x258   : > { %18497 = vmatprep.mubr.msk.bf16.mxu0 %vm859_vm0, %v21839_v9  ;;  %v22134_v9 = vld [vmem:[%s22082_s27 + $0x38] sm:$0xff]  ;;  %v601_v42 = vadd.f32 %v600_v6, %v599_v36  ;;  %v22240_v36 = vld [vmem:[%s22082_s27 + $0xc0] sm:$0xff] }
 0x259   : > { %v602_v53 = vsel %vm588_vm3, %v22134_v9, 0.0 }
 0x25a   : > { %v603_v39 = vadd.f32 %v602_v53, %v601_v42  ;;  %v636_v42 = vsel %vm588_vm3, %v22240_v36, 0.0  ;;  %v22245_v53 = vld [vmem:[%s22082_s27 + $0xc8] sm:$0xff] }
 0x25f   : > { %18498 = vmatmul.mubr.msk.bf16.gmra.mrb[4].mxu0 %vm859_vm0, %v21845_v17  ;;  %v604_v17 = vsel %vm588_vm3, %v22139_v38, 0.0 }
 0x260   : > { %18501 = vmatprep.mubr.msk.bf16.mxu0 %vm859_vm0, %v21847_v18  ;;  %v22148_v18 = vld [vmem:[%s22082_s27 + $0x48] sm:$0xff]  ;;  %v605_v45 = vadd.f32 %v604_v17, %v603_v39  ;;  %v638_v17 = vsel %vm588_vm3, %v22245_v53, 0.0 }
 0x261   : > { %v606_v46 = vsel %vm588_vm3, %v22148_v18, 0.0 }
 0x262   : > { %v607_v48 = vadd.f32 %v606_v46, %v605_v45  ;;  %v22250_v45 = vld [vmem:[%s22082_s27 + $0xd0] sm:$0xff] }
 0x267   : > { %18502 = vmatmul.mubr.msk.bf16.gmra.mrb[8].mxu0 %vm859_vm0, %v21853_v29  ;;  %v608_v29 = vsel %vm588_vm3, %v22153_v47, 0.0 }
 0x268   : > { %18505 = vmatprep.mubr.msk.bf16.mxu0 %vm859_vm0, %v21855_v30  ;;  %v22162_v30 = vld [vmem:[%s22082_s27 + $0x58] sm:$0xff]  ;;  %v609_v57 = vadd.f32 %v608_v29, %v607_v48  ;;  %v640_v48 = vsel %vm588_vm3, %v22250_v45, 0.0 }
 0x269   : > { %v610_v61 = vsel %vm588_vm3, %v22162_v30, 0.0  ;;  %v22255_v29 = vld [vmem:[%s22082_s27 + $0xd8] sm:$0xff] }
 0x26a   : > { %v611_v63 = vadd.f32 %v610_v61, %v609_v57  ;;  %v642_v61 = vsel %vm588_vm3, %v22255_v29, 0.0 }
 0x26f   : > { %18506 = vmatmul.mubr.msk.bf16.gmra.mrb[12].mxu0 %vm859_vm0, %v21861_v40  ;;  %v612_v40 = vsel %vm588_vm3, %v22167_v62, 0.0 }
 0x270   : > { %18509 = vmatprep.mubr.msk.bf16.mxu0 %vm859_vm0, %v21863_v41  ;;  %v22176_v41 = vld [vmem:[%s22082_s27 + $0x68] sm:$0xff]  ;;  %v613_v11 = vadd.f32 %v612_v40, %v611_v63  ;;  %v22260_v63 = vld [vmem:[%s22082_s27 + $0xe0] sm:$0xff] }
 0x271   : > { %v614_v16 = vsel %vm588_vm3, %v22176_v41, 0.0 }
 0x272   : > { %v615_v27 = vadd.f32 %v614_v16, %v613_v11  ;;  %v644_v11 = vsel %vm588_vm3, %v22260_v63, 0.0  ;;  %v22265_v16 = vld [vmem:[%s22082_s27 + $0xe8] sm:$0xff] }
 0x277   : > { %18510 = vmatmul.mubr.msk.bf16.gmra.mrb[16].mxu0 %vm859_vm0, %v21869_v49  ;;  %v616_v49 = vsel %vm588_vm3, %v22181_v24, 0.0 }
 0x278   : > { %18513 = vmatprep.mubr.msk.bf16.mxu0 %vm859_vm0, %v21871_v56  ;;  %v22190_v56 = vld [vmem:[%s22082_s27 + $0x78] sm:$0xff]  ;;  %v617_v43 = vadd.f32 %v616_v49, %v615_v27  ;;  %v646_v49 = vsel %vm588_vm3, %v22265_v16, 0.0 }
 0x279   : > { %v618_v3 = vsel %vm588_vm3, %v22190_v56, 0.0 }
 0x27a   : > { %v619_v34 = vadd.f32 %v618_v3, %v617_v43  ;;  %v22270_v43 = vld [vmem:[%s22082_s27 + $0xf0] sm:$0xff] }
 0x27f   : > { %18514 = vmatmul.mubr.msk.bf16.gmra.mrb[20].mxu0 %vm859_vm0, %v21877_v50  ;;  %v620_v50 = vsel %vm588_vm3, %v22195_v28, 0.0 }
 0x280   : > { %18517 = vmatprep.mubr.msk.bf16.mxu0 %vm859_vm0, %v21879_v10  ;;  %v3384_v10 = vld [vmem:[#allocation2 + $0x19a] sm:$0xff]  ;;  %v621_v58 = vadd.f32 %v620_v50, %v619_v34  ;;  %v648_v34 = vsel %vm588_vm3, %v22270_v43, 0.0 }
 0x281   : > { %v3401_v1 = vpack.c.bf16 %v3385_v35, %v3384_v10  ;;  %v22275_v50 = vld [vmem:[%s22082_s27 + $0xf8] sm:$0xff]  ;;  %s17154_s27 = sshll.u32 %s26085_s19, 4 }
 0x282   : > { %v650_v35 = vsel %vm588_vm3, %v22275_v50, 0.0 }
 0x287   : > { %18518 = vmatmul.mubr.msk.bf16.gmra.mrb[24].mxu0 %vm859_vm0, %v21885_v21  ;;  %v623_v21 = vadd.f32 %v622_v7, %v621_v58 }
 0x288   : > { %18521 = vmatprep.mubr.msk.bf16.mxu0 %vm859_vm0, %v22005_v14  ;;  %v624_v14 = vsel %vm588_vm3, %v22209_v8, 0.0 }
 0x289   : > { %v625_v19 = vadd.f32 %v624_v14, %v623_v21 }
 0x28b   : > { %v627_v32 = vadd.f32 %v626_v20, %v625_v19 }
 0x28d   : > { %v629_v52 = vadd.f32 %v628_v37, %v627_v32 }
 0x28f   : > { %18522 = vmatmul.mubr.msk.bf16.gmra.mrb[28].mxu0 %vm859_vm0, %v3401_v1  ;;  %v631_v4 = vadd.f32 %v630_v0, %v629_v52 }
 0x291   : > { %v633_v22 = vadd.f32 %v632_v12, %v631_v4 }
 0x293   : > { %v635_v6 = vadd.f32 %v634_v23, %v633_v22 }
 0x295   : > { %v637_v39 = vadd.f32 %v636_v42, %v635_v6 }
 0x297   : > { %v639_v46 = vadd.f32 %v638_v17, %v637_v39 }
 0x299   : > { %v641_v57 = vadd.f32 %v640_v48, %v639_v46 }
 0x29b   : > { %v643_v40 = vadd.f32 %v642_v61, %v641_v57 }
 0x29d   : > { %v645_v27 = vadd.f32 %v644_v11, %v643_v40 }
 0x29f   : > { %v647_v3 = vadd.f32 %v646_v49, %v645_v27 }
 0x2a1   : > { %v649_v10 = vadd.f32 %v648_v34, %v647_v3 }
 0x2a3   : > { %v651_v58 = vadd.f32 %v650_v35, %v649_v10 }
 0x2a5   : > { %v652_v1 = vrot.slane %v651_v58, 4 }
 0x2a7   : > { %v653_v7 = vadd.f32 %v652_v1, %v651_v58 }
 0x2a9   : > { %v654_v21 = vrot.slane %v653_v7, 2 }
 0x2ab   : > { %v655_v14 = vadd.f32 %v654_v21, %v653_v7 }
 0x2ad   : > { %v656_v19 = vrot.slane %v655_v14, 1 }
 0x2af   : > { %v657_v20 = vadd.f32 %v656_v19, %v655_v14 }
 0x2b1   : > { %v22279_v32 = vmul.f32 0.00390625, %v657_v20 }
 0x2b3   : > { %v22283_v37 = vsub.f32 %v22088_v26, %v22279_v32  ;;  %v22287_v52 = vsub.f32 %v22091_v31, %v22279_v32  ;;  %v22291_v0 = vsub.f32 %v22098_v51, %v22279_v32  ;;  %v22299_v22 = vsub.f32 %v22106_v59, %v22279_v32 }
 0x2b4   : > { %v22307_v51 = vsub.f32 %v22111_v5, %v22279_v32  ;;  %v22314_v59 = vsub.f32 %v22120_v54, %v22279_v32  ;;  %v22321_v5 = vsub.f32 %v22125_v33, %v22279_v32  ;;  %v22328_v54 = vsub.f32 %v22134_v9, %v22279_v32 }
 0x2b5   : > { %v691_v4 = vmul.f32 %v22283_v37, %v22283_v37  ;;  %v692_v12 = vmul.f32 %v22287_v52, %v22287_v52  ;;  %v693_v26 = vmul.f32 %v22291_v0, %v22291_v0  ;;  %v694_v42 = vmul.f32 %v22299_v22, %v22299_v22 }
 0x2b6   : > { %v695_v46 = vmul.f32 %v22307_v51, %v22307_v51  ;;  %v696_v61 = vmul.f32 %v22314_v59, %v22314_v59  ;;  %v697_v27 = vmul.f32 %v22321_v5, %v22321_v5  ;;  %v22335_v33 = vsub.f32 %v22139_v38, %v22279_v32 }
 0x2b7   : > { %v723_v31 = vsel %vm588_vm3, %v691_v4, 0.0  ;;  %v724_v23 = vsel %vm588_vm3, %v692_v12, 0.0  ;;  %v726_v39 = vsel %vm588_vm3, %v693_v26, 0.0  ;;  %v728_v48 = vsel %vm588_vm3, %v694_v42, 0.0 }
 0x2b8   : > { %v725_v6 = vadd.f32 %v724_v23, %v723_v31  ;;  %v730_v40 = vsel %vm588_vm3, %v695_v46, 0.0  ;;  %v732_v49 = vsel %vm588_vm3, %v696_v61, 0.0  ;;  %v698_v34 = vmul.f32 %v22328_v54, %v22328_v54 }
 0x2b9   : > { %v734_v10 = vsel %vm588_vm3, %v697_v27, 0.0  ;;  %v22342_v9 = vsub.f32 %v22148_v18, %v22279_v32  ;;  %v699_v58 = vmul.f32 %v22335_v33, %v22335_v33  ;;  %v22349_v38 = vsub.f32 %v22153_v47, %v22279_v32 }
 0x2ba   : > { %v727_v17 = vadd.f32 %v726_v39, %v725_v6  ;;  %v736_v1 = vsel %vm588_vm3, %v698_v34, 0.0  ;;  %v22356_v18 = vsub.f32 %v22162_v30, %v22279_v32  ;;  %v22363_v47 = vsub.f32 %v22167_v62, %v22279_v32 }
 0x2bb   : > { %v700_v21 = vmul.f32 %v22342_v9, %v22342_v9  ;;  %v738_v14 = vsel %vm588_vm3, %v699_v58, 0.0  ;;  %v701_v20 = vmul.f32 %v22349_v38, %v22349_v38  ;;  %v22370_v30 = vsub.f32 %v22176_v41, %v22279_v32 }
 0x2bc   : > { %v729_v57 = vadd.f32 %v728_v48, %v727_v17  ;;  %v702_v26 = vmul.f32 %v22356_v18, %v22356_v18  ;;  %v703_v6 = vmul.f32 %v22363_v47, %v22363_v47  ;;  %v22377_v62 = vsub.f32 %v22181_v24, %v22279_v32 }
 0x2bd   : > { %v740_v4 = vsel %vm588_vm3, %v700_v21, 0.0  ;;  %v742_v31 = vsel %vm588_vm3, %v701_v20, 0.0  ;;  %v704_v17 = vmul.f32 %v22370_v30, %v22370_v30  ;;  %v22384_v41 = vsub.f32 %v22190_v56, %v22279_v32 }
 0x2be   : > { %v731_v11 = vadd.f32 %v730_v40, %v729_v57  ;;  %v744_v42 = vsel %vm588_vm3, %v702_v26, 0.0  ;;  %v746_v46 = vsel %vm588_vm3, %v703_v6, 0.0  ;;  %v705_v57 = vmul.f32 %v22377_v62, %v22377_v62  ;;  %v16503_v6 = vld [vmem:[%s25818_s10 + $0x8] sm:$0x3] }
 0x2bf   : > { %v748_v61 = vsel %vm588_vm3, %v704_v17, 0.0  ;;  %v22391_v24 = vsub.f32 %v22195_v28, %v22279_v32  ;;  %v22400_v56 = vsub.f32 %v22204_v55, %v22279_v32  ;;  %v22548_v28 = vld [vmem:[%s25813_s5] ss:$0 sm:$0xff]  ;;  %v22584_v2 = vsub.f32 %v22215_v13, %v22279_v32  ;;  %21167 = vmatprep.subr.msk.bf16.mxu1 %vm4212_vm6, %v16503_v6 }
 0x2c0   : > { %v733_v3 = vadd.f32 %v732_v49, %v731_v11  ;;  %v706_v11 = vmul.f32 %v22384_v41, %v22384_v41  ;;  %v750_v27 = vsel %vm588_vm3, %v705_v57, 0.0 }
 0x2c1   : > { %v708_v58 = vmul.f32 %v22400_v56, %v22400_v56 }
 0x2c2   : > { %v735_v35 = vadd.f32 %v734_v10, %v733_v3  ;;  %v22404_v3 = vmul.f32 %v22391_v24, %v22391_v24  ;;  %v22407_v34 = vsel %vm588_vm3, %v706_v11, 0.0 }
 0x2c4   : > { %v737_v7 = vadd.f32 %v736_v1, %v735_v35  ;;  %v22558_v35 = vsub.f32 %v22209_v8, %v22279_v32  ;;  %v754_v1 = vsel %vm588_vm3, %v22404_v3, 0.0 }
 0x2c6   : > { %v739_v19 = vadd.f32 %v738_v14, %v737_v7 }
 0x2c8   : > { %v741_v12 = vadd.f32 %v740_v4, %v739_v19  ;;  %v709_v4 = vmul.f32 %v22558_v35, %v22558_v35 }
 0x2ca   : > { %v743_v23 = vadd.f32 %v742_v31, %v741_v12  ;;  %v756_v12 = vsel %vm588_vm3, %v708_v58, 0.0  ;;  %v16436_v31 = vld [vmem:[%s25818_s10 + $0x2] sm:$0x3]  ;;  %v758_v11 = vsel %vm588_vm3, %v709_v4, 0.0 }
 0x2cb   : > { %21163 = vmatprep.subr.msk.bf16.mxu0 %vm4212_vm6, %v16436_v31  ;;  %v4214_v13 = vsel %vm4212_vm6, %v16436_v31, 0  ;;  %v22652_v31 = vld [vmem:[%s25818_s10 + $0xa] sm:$0x3] }
 0x2cc   : > { %v745_v39 = vadd.f32 %v744_v42, %v743_v23  ;;  %v4114_v42 = vld [vmem:[#allocation5 + $0x1] sm:$0xff]  ;;  %18526 = vmatpush3.bf16.msra.mxu0 %v4214_v13 }
 0x2ce   : > { %v747_v48 = vadd.f32 %v746_v46, %v745_v39  ;;  %v4115_v39 = vld [vmem:[#allocation5 + $0x9] sm:$0xff]  ;;  %v5276_v46 = vsel %vm4212_vm6, %v16503_v6, 0 }
 0x2cf   : > { %18662 = vmatpush3.bf16.msra.mxu1 %v5276_v46  ;;  %v22668_v46 = vsub.f32 %v22235_v15, %v22279_v32 }
 0x2d0   : > { %v749_v40 = vadd.f32 %v748_v61, %v747_v48  ;;  %v4146_v48 = vpack.c.bf16 %v4115_v39, %v4114_v42  ;;  %v22610_v61 = vsub.f32 %v22220_v25, %v22279_v32  ;;  %21168 = vmatprep.subr.msk.bf16.mxu1 %vm4212_vm6, %v22652_v31 }
 0x2d1   : > { %25910 = vst [vmem:[#allocation7_spill] sm:$0xff] %v22668_v46 }
 0x2d2   : > { %v22396_v49 = vadd.f32 %v750_v27, %v749_v40  ;;  %v710_v40 = vmul.f32 %v22584_v2, %v22584_v2  ;;  %18527 = vmatprep.mubr.msk.bf16.mxu0 %vm588_vm3, %v4146_v48  ;;  %v711_v58 = vmul.f32 %v22610_v61, %v22610_v61 }
 0x2d4   : > { %v753_v55 = vadd.f32 %v22407_v34, %v22396_v49 }
 0x2d6   : > { %v755_v20 = vadd.f32 %v754_v1, %v753_v55  ;;  %v760_v1 = vsel %vm588_vm3, %v710_v40, 0.0 }
 0x2d8   : > { %v757_v17 = vadd.f32 %v756_v12, %v755_v20  ;;  %v22644_v20 = vsub.f32 %v22230_v60, %v22279_v32  ;;  %v762_v12 = vsel %vm588_vm3, %v711_v58, 0.0 }
 0x2da   : > { %v759_v55 = vadd.f32 %v758_v11, %v757_v17  ;;  %v713_v48 = vmul.f32 %v22644_v20, %v22644_v20 }
 0x32a   : > { %v18495_v10 = vpop.f32.mrb[0].mxu0 }
 0x32b   : > { %v22573_v8 = vadd.f32 %v18495_v10, %v22548_v28  ;;  %v3501_v7 = vpop.f32.mrb[1].mxu0  ;;  %v22627_v10 = vsub.f32 %v22225_v44, %v22279_v32 }
 0x32c   : > { %v22576_v21 = vadd.f32 %v22548_v28, %v3501_v7  ;;  %v18496_v14 = vpop.f32.mrb[2].mxu0 }
 0x32d   : > { %3767 = vrot.lane.b32.xlu1 %v22573_v8, %s21259_s30  ;;  %v3504_v19 = vpop.f32.mrb[3].mxu0  ;;  %v22590_v26 = vadd.f32 %v18496_v14, %v22548_v28  ;;  %v761_v14 = vadd.f32 %v760_v1, %v759_v55  ;;  %v712_v4 = vmul.f32 %v22627_v10, %v22627_v10  ;;  %v766_v55 = vsel %vm588_vm3, %v713_v48, 0.0 }
 0x32e   : > { %3763 = vrot.lane.b32.xlu0 %v22576_v21, %s21259_s30  ;;  %v22596_v23 = vadd.f32 %v22548_v28, %v3504_v19 }
 0x32f   : > { %v763_v39 = vadd.f32 %v762_v12, %v761_v14 }
 0x331   : > { %3769 = vrot.lane.b32.xlu1 %v22590_v26, %s21259_s30 }
 0x332   : > { %3765 = vrot.lane.b32.xlu0 %v22596_v23, %s21259_s30  ;;  %v18499_v57 = vpop.f32.mrb[4].mxu0 }
 0x333   : > { %v3517_v27 = vpop.f32.mrb[5].mxu0  ;;  %v22633_v7 = vadd.f32 %v18499_v57, %v22548_v28  ;;  %v764_v57 = vsel %vm588_vm3, %v712_v4, 0.0 }
 0x334   : > { %v22618_v49 = vadd.f32 %v22548_v28, %v3517_v27  ;;  %v18500_v3 = vpop.f32.mrb[6].mxu0  ;;  %v765_v11 = vadd.f32 %v764_v57, %v763_v39  ;;  %v22719_v57 = vsub.f32 %v22250_v45, %v22279_v32  ;;  %v22736_v45 = vsub.f32 %v22255_v29, %v22279_v32 }
 0x335   : > { %v3520_v34 = vpop.f32.mrb[7].mxu0  ;;  %v22638_v19 = vadd.f32 %v18500_v3, %v22548_v28  ;;  %v22685_v3 = vsub.f32 %v22240_v36, %v22279_v32  ;;  %v22702_v36 = vsub.f32 %v22245_v53, %v22279_v32 }
 0x336   : > { %v22621_v25 = vadd.f32 %v22548_v28, %v3520_v34  ;;  %3771 = vrot.lane.b32.xlu0 %v22618_v49, %s21259_s30  ;;  %v714_v34 = vmul.f32 %v22668_v46, %v22668_v46  ;;  %v767_v4 = vadd.f32 %v766_v55, %v765_v11  ;;  %25913 = vst [vmem:[#allocation10_spill] sm:$0xff] %v22719_v57  ;;  %25914 = vst [vmem:[#allocation11_spill] sm:$0xff] %v22736_v45 }
 0x337   : > { %25911 = vst [vmem:[#allocation8_spill] sm:$0xff] %v22685_v3  ;;  %25912 = vst [vmem:[#allocation9_spill] sm:$0xff] %v22702_v36  ;;  %v716_v11 = vmul.f32 %v22702_v36, %v22702_v36 }
 0x338   : > { %3773 = vrot.lane.b32.xlu1 %v22621_v25, %s21259_s30 }
 0x33a   : > { %3775 = vrot.lane.b32.xlu0 %v22633_v7, %s21259_s30  ;;  %v18503_v44 = vpop.f32.mrb[8].mxu0 }
 0x33b   : > { %v3533_v13 = vpop.f32.mrb[9].mxu0  ;;  %v22674_v40 = vadd.f32 %v18503_v44, %v22548_v28 }
 0x33c   : > { %v22657_v6 = vadd.f32 %v22548_v28, %v3533_v13  ;;  %3777 = vrot.lane.b32.xlu1 %v22638_v19, %s21259_s30  ;;  %v18504_v60 = vpop.f32.mrb[10].mxu0  ;;  %v715_v13 = vmul.f32 %v22685_v3, %v22685_v3 }
 0x33d   : > { %v3536_v42 = vpop.f32.mrb[11].mxu0  ;;  %v22679_v27 = vadd.f32 %v18504_v60, %v22548_v28  ;;  %v768_v60 = vsel %vm588_vm3, %v714_v34, 0.0 }
 0x33e   : > { %v22662_v17 = vadd.f32 %v22548_v28, %v3536_v42  ;;  %3779 = vrot.lane.b32.xlu0 %v22657_v6, %s21259_s30  ;;  %v769_v39 = vadd.f32 %v768_v60, %v767_v4  ;;  %v772_v60 = vsel %vm588_vm3, %v716_v11, 0.0  ;;  %v718_v11 = vmul.f32 %v22736_v45, %v22736_v45 }
 0x340   : > { %3781 = vrot.lane.b32.xlu1 %v22662_v17, %s21259_s30 }
 0x342   : > { %3783 = vrot.lane.b32.xlu0 %v22674_v40, %s21259_s30  ;;  %v18507_v15 = vpop.f32.mrb[12].mxu0 }
 0x343   : > { %v3549_v58 = vpop.f32.mrb[13].mxu0  ;;  %v22708_v42 = vadd.f32 %v18507_v15, %v22548_v28  ;;  %v770_v15 = vsel %vm588_vm3, %v715_v13, 0.0  ;;  %v717_v13 = vmul.f32 %v22719_v57, %v22719_v57 }
 0x344   : > { %v22691_v1 = vadd.f32 %v22548_v28, %v3549_v58  ;;  %3785 = vrot.lane.b32.xlu1 %v22679_v27, %s21259_s30  ;;  %v18508_v14 = vpop.f32.mrb[14].mxu0 }
 0x345   : > { %v3552_v44 = vpop.f32.mrb[15].mxu0  ;;  %v22713_v48 = vadd.f32 %v18508_v14, %v22548_v28 }
 0x346   : > { %v22696_v12 = vadd.f32 %v22548_v28, %v3552_v44  ;;  %3787 = vrot.lane.b32.xlu0 %v22691_v1, %s21259_s30  ;;  %v771_v44 = vadd.f32 %v770_v15, %v769_v39 }
 0x348   : > { %3789 = vrot.lane.b32.xlu1 %v22696_v12, %s21259_s30  ;;  %v773_v39 = vadd.f32 %v772_v60, %v771_v44 }
 0x34a   : > { %3791 = vrot.lane.b32.xlu0 %v22708_v42, %s21259_s30  ;;  %v18511_v53 = vpop.f32.mrb[16].mxu0 }
 0x34b   : > { %v3565_v34 = vpop.f32.mrb[17].mxu0 }
 0x34c   : > { %v22725_v55 = vadd.f32 %v22548_v28, %v3565_v34  ;;  %3793 = vrot.lane.b32.xlu1 %v22713_v48, %s21259_s30  ;;  %v18512_v58 = vpop.f32.mrb[18].mxu0  ;;  %v22742_v34 = vadd.f32 %v18511_v53, %v22548_v28  ;;  %v774_v53 = vsel %vm588_vm3, %v717_v13, 0.0  ;;  %v776_v13 = vsel %vm588_vm3, %v718_v11, 0.0 }
 0x34d   : > { %v3568_v14 = vpop.f32.mrb[19].mxu0  ;;  %v22747_v15 = vadd.f32 %v18512_v58, %v22548_v28  ;;  %v775_v60 = vadd.f32 %v774_v53, %v773_v39 }
 0x34e   : > { %v22730_v4 = vadd.f32 %v22548_v28, %v3568_v14  ;;  %3795 = vrot.lane.b32.xlu0 %v22725_v55, %s21259_s30  ;;  %v22753_v14 = vsub.f32 %v22260_v63, %v22279_v32  ;;  %v22770_v63 = vsub.f32 %v22265_v16, %v22279_v32 }
 0x34f   : > { %v777_v39 = vadd.f32 %v776_v13, %v775_v60 }
 0x350   : > { %3797 = vrot.lane.b32.xlu1 %v22730_v4, %s21259_s30  ;;  %25915 = vst [vmem:[#allocation12_spill] sm:$0xff] %v22753_v14  ;;  %25916 = vst [vmem:[#allocation13_spill] sm:$0xff] %v22770_v63  ;;  %v720_v11 = vmul.f32 %v22770_v63, %v22770_v63 }
 0x352   : > { %3799 = vrot.lane.b32.xlu0 %v22742_v34, %s21259_s30  ;;  %v18515_v29 = vpop.f32.mrb[20].mxu0 }
 0x353   : > { %v3581_v57 = vpop.f32.mrb[21].mxu0  ;;  %v22776_v45 = vadd.f32 %v18515_v29, %v22548_v28 }
 0x354   : > { %v22759_v36 = vadd.f32 %v22548_v28, %v3581_v57  ;;  %3801 = vrot.lane.b32.xlu1 %v22747_v15, %s21259_s30  ;;  %v18516_v58 = vpop.f32.mrb[22].mxu0  ;;  %v719_v57 = vmul.f32 %v22753_v14, %v22753_v14 }
 0x355   : > { %v3584_v44 = vpop.f32.mrb[23].mxu0  ;;  %25917 = vst [vmem:[#allocation14_spill] sm:$0xff] %v22776_v45  ;;  %v22781_v53 = vadd.f32 %v18516_v58, %v22548_v28 }
 0x356   : > { %v22764_v3 = vadd.f32 %v22548_v28, %v3584_v44  ;;  %3803 = vrot.lane.b32.xlu0 %v22759_v36, %s21259_s30  ;;  %v22787_v44 = vsub.f32 %v22270_v43, %v22279_v32  ;;  %v778_v29 = vsel %vm588_vm3, %v719_v57, 0.0  ;;  %v22804_v43 = vsub.f32 %v22275_v50, %v22279_v32 }
 0x357   : > { %v779_v13 = vadd.f32 %v778_v29, %v777_v39  ;;  %v780_v57 = vsel %vm588_vm3, %v720_v11, 0.0 }
 0x358   : > { %3805 = vrot.lane.b32.xlu1 %v22764_v3, %s21259_s30  ;;  %25918 = vst [vmem:[#allocation15_spill] sm:$0xff] %v22787_v44  ;;  %25919 = vst [vmem:[#allocation16_spill] sm:$0xff] %v22804_v43  ;;  %v722_v32 = vmul.f32 %v22804_v43, %v22804_v43 }
 0x359   : > { %v781_v39 = vadd.f32 %v780_v57, %v779_v13 }
 0x35a   : > { %3807 = vrot.lane.b32.xlu0 %v22776_v45, %s21259_s30  ;;  %v18519_v16 = vpop.f32.mrb[24].mxu0  ;;  %v784_v43 = vsel %vm588_vm3, %v722_v32, 0.0  ;;  %v22848_v32 = vld [vmem:[%s25818_s10] sm:$0x3] }
 0x35b   : > { %v3597_v14 = vpop.f32.mrb[25].mxu0  ;;  %v22810_v63 = vadd.f32 %v18519_v16, %v22548_v28  ;;  %21164 = vmatprep.subr.msk.bf16.mxu0 %vm4212_vm6, %v22848_v32 }
 0x35c   : > { %v22793_v46 = vadd.f32 %v22548_v28, %v3597_v14  ;;  %3809 = vrot.lane.b32.xlu1 %v22781_v53, %s21259_s30  ;;  %v18520_v58 = vpop.f32.mrb[26].mxu0  ;;  %v721_v14 = vmul.f32 %v22787_v44, %v22787_v44 }
 0x35d   : > { %v3600_v60 = vpop.f32.mrb[27].mxu0  ;;  %v22815_v29 = vadd.f32 %v18520_v58, %v22548_v28 }
 0x35e   : > { %v22798_v45 = vadd.f32 %v22548_v28, %v3600_v60  ;;  %3811 = vrot.lane.b32.xlu0 %v22793_v46, %s21259_s30  ;;  %v782_v60 = vsel %vm588_vm3, %v721_v14, 0.0 }
 0x35f   : > { %25920 = vst [vmem:[#allocation17_spill] sm:$0xff] %v22815_v29  ;;  %v783_v58 = vadd.f32 %v782_v60, %v781_v39 }
 0x360   : > { %3813 = vrot.lane.b32.xlu1 %v22798_v45, %s21259_s30 }
 0x362   : > { %3815 = vrot.lane.b32.xlu0 %v22810_v63, %s21259_s30  ;;  %v18523_v50 = vpop.f32.mrb[28].mxu0 }
 0x363   : > { %v3613_v11 = vpop.f32.mrb[29].mxu0  ;;  %v22834_v14 = vadd.f32 %v18523_v50, %v22548_v28 }
 0x364   : > { %v22823_v16 = vadd.f32 %v22548_v28, %v3613_v11  ;;  %3817 = vrot.lane.b32.xlu1 %v22815_v29, %s21259_s30  ;;  %v18524_v13 = vpop.f32.mrb[30].mxu0  ;;  %v785_v11 = vadd.f32 %v784_v43, %v783_v58 }
 0x365   : > { %v3616_v57 = vpop.f32.mrb[31].mxu0  ;;  %25922 = vst [vmem:[#allocation19_spill] sm:$0xff] %v22834_v14  ;;  %v22839_v29 = vadd.f32 %v18524_v13, %v22548_v28 }
 0x366   : > { %v22828_v44 = vadd.f32 %v22548_v28, %v3616_v57  ;;  %3819 = vrot.lane.b32.xlu0 %v22823_v16, %s21259_s30  ;;  %v786_v39 = vrot.slane %v785_v11, 4 }
 0x367   : > { %25923 = vst [vmem:[#allocation20_spill] sm:$0xff] %v22839_v29 }
 0x368   : > { %25921 = vst [vmem:[#allocation18_spill] sm:$0xff] %v22828_v44  ;;  %3821 = vrot.lane.b32.xlu1 %v22828_v44, %s21259_s30  ;;  %v787_v50 = vadd.f32 %v786_v39, %v785_v11 }
 0x36a   : > { %3823 = vrot.lane.b32.xlu0 %v22834_v14, %s21259_s30  ;;  %v788_v43 = vrot.slane %v787_v50, 2 }
 0x36c   : > { %3825 = vrot.lane.b32.xlu1 %v22839_v29, %s21259_s30  ;;  %v789_v60 = vadd.f32 %v788_v43, %v787_v50 }
 0x36e   : > { %v790_v28 = vrot.slane %v789_v60, 1 }
 0x370   : > { %v791_v13 = vadd.f32 %v790_v28, %v789_v60 }
 0x372   : > { %v792_v57 = vmul.f32 0.00390625, %v791_v13 }
 0x374   : > { %v793_v58 = vadd.f32 1e-05, %v792_v57 }
 0x376   : > { %21246 = vrsqrt.f32 %v793_v58 }
 0x380   : > { %v22852_v14 = vpop.eup %21246 }
 0x381   : > { %v22856_v29 = vmul.f32 %v22852_v14, %v22291_v0  ;;  %v22860_v44 = vmul.f32 %v22852_v14, %v22283_v37  ;;  %v22866_v39 = vmul.f32 %v22852_v14, %v22299_v22  ;;  %v22872_v60 = vmul.f32 %v22852_v14, %v22287_v52 }
 0x383   : > { %25924 = vst [vmem:[#allocation21_spill] sm:$0xff] %v22856_v29  ;;  %25925 = vst [vmem:[#allocation22_spill] sm:$0xff] %v22860_v44  ;;  %v3701_v11 = vmul.f32 %v22573_v8, %v22856_v29  ;;  %v3699_v43 = vmul.f32 %v22576_v21, %v22860_v44  ;;  %v3702_v8 = vmul.f32 %v22590_v26, %v22866_v39 }
 0x384   : > { %25926 = vst [vmem:[#allocation23_spill] sm:$0xff] %v22866_v39  ;;  %25927 = vst [vmem:[#allocation24_spill] sm:$0xff] %v22872_v60  ;;  %v3700_v58 = vmul.f32 %v22596_v23, %v22872_v60  ;;  %v22880_v21 = vmul.f32 %v22852_v14, %v22307_v51  ;;  %v22885_v26 = vmul.f32 %v22852_v14, %v22314_v59 }
 0x386   : > { %25928 = vst [vmem:[#allocation25_spill] sm:$0xff] %v22880_v21  ;;  %25929 = vst [vmem:[#allocation26_spill] sm:$0xff] %v22885_v26  ;;  %v3703_v51 = vmul.f32 %v22618_v49, %v22880_v21  ;;  %v23707_v21 = vld [vmem:[%s25819_s11] ss:$0 sm:$0xff] }
 0x39f   : > { %v3768_v50 = vpop.permute.xlu1 %3767 }
 0x3a0   : > { %v3861_v0 = vadd.f32 %v3768_v50, %v3701_v11  ;;  %v3764_v28 = vpop.permute.xlu0 %3763 }
 0x3a1   : > { %v3859_v13 = vadd.f32 %v3764_v28, %v3699_v43 }
 0x3a2   : > { %vm3893_vm7 = vcmp.gt.f32.partialorder %v3861_v0, 0.0  ;;  %v3925_v37 = vmul.f32 0.2, %v3861_v0 }
 0x3a3   : > { %vm3891_vm8 = vcmp.gt.f32.partialorder %v3859_v13, 0.0  ;;  %v3923_v57 = vmul.f32 0.2, %v3859_v13  ;;  %v3770_v22 = vpop.permute.xlu1 %3769 }
 0x3a4   : > { %v3957_v52 = vsel %vm3893_vm7, %v3861_v0, %v3925_v37  ;;  %v3862_v29 = vadd.f32 %v3770_v22, %v3702_v8  ;;  %v3766_v11 = vpop.permute.xlu0 %3765  ;;  %v22892_v0 = vmul.f32 %v22852_v14, %v22321_v5  ;;  %v22896_v8 = vmul.f32 %v22852_v14, %v22328_v54 }
 0x3a5   : > { %4035 = vst.msk [vmem:[#allocation5 + $0x31] sm:$0xff] %vm588_vm3, %v3957_v52  ;;  %v3955_v50 = vsel %vm3891_vm8, %v3859_v13, %v3923_v57  ;;  %v3860_v43 = vadd.f32 %v3766_v11, %v3700_v58  ;;  %v3704_v22 = vmul.f32 %v22621_v25, %v22885_v26  ;;  %v22904_v5 = vmul.f32 %v22852_v14, %v22335_v33 }
 0x3a6   : > { %4033 = vst.msk [vmem:[#allocation5 + $0x19] sm:$0xff] %vm588_vm3, %v3955_v50  ;;  %vm3894_vm9 = vcmp.gt.f32.partialorder %v3862_v29, 0.0  ;;  %v3926_v28 = vmul.f32 0.2, %v3862_v29  ;;  %25930 = vst [vmem:[#allocation27_spill] sm:$0xff] %v22892_v0  ;;  %v3705_v54 = vmul.f32 %v22633_v7, %v22892_v0  ;;  %v3706_v11 = vmul.f32 %v22638_v19, %v22896_v8 }
 0x3a7   : > { %vm3892_vm10 = vcmp.gt.f32.partialorder %v3860_v43, 0.0  ;;  %v3924_v23 = vmul.f32 0.2, %v3860_v43  ;;  %25931 = vst [vmem:[#allocation28_spill] sm:$0xff] %v22896_v8  ;;  %25932 = vst [vmem:[#allocation29_spill] sm:$0xff] %v22904_v5  ;;  %v22912_v25 = vmul.f32 %v22852_v14, %v22342_v9  ;;  %v22919_v7 = vmul.f32 %v22852_v14, %v22349_v38 }
 0x3a8   : > { %v3958_v37 = vsel %vm3894_vm9, %v3862_v29, %v3926_v28  ;;  %v3772_v13 = vpop.permute.xlu0 %3771  ;;  %v22932_v38 = vmul.f32 %v22852_v14, %v22363_v47 }
 0x3a9   : > { %4036 = vst.msk [vmem:[#allocation5 + $0x39] sm:$0xff] %vm588_vm3, %v3958_v37  ;;  %v3956_v59 = vsel %vm3892_vm10, %v3860_v43, %v3924_v23  ;;  %v3863_v57 = vadd.f32 %v3772_v13, %v3703_v51  ;;  %25933 = vst [vmem:[#allocation30_spill] sm:$0xff] %v22912_v25  ;;  %v3707_v23 = vmul.f32 %v22657_v6, %v22904_v5  ;;  %v5570_v6 = vsel %vm4212_vm6, %v22652_v31, 0 }
 0x3aa   : > { %4034 = vst.msk [vmem:[#allocation5 + $0x21] sm:$0xff] %vm588_vm3, %v3956_v59  ;;  %v3774_v49 = vpop.permute.xlu1 %3773  ;;  %25934 = vst [vmem:[#allocation31_spill] sm:$0xff] %v22919_v7  ;;  %v3708_v13 = vmul.f32 %v22662_v17, %v22912_v25  ;;  %v4426_v31 = vsel %vm4212_vm6, %v22848_v32, 0  ;;  %v22951_v32 = vld [vmem:[%s25818_s10 + $0xc] sm:$0x3] }
 0x3ab   : > { %vm3895_vm11 = vcmp.gt.f32.partialorder %v3863_v57, 0.0  ;;  %v3927_v29 = vmul.f32 0.2, %v3863_v57  ;;  %v3864_v58 = vadd.f32 %v3774_v49, %v3704_v22  ;;  %25936 = vst [vmem:[#allocation33_spill] sm:$0xff] %v22932_v38 }
 0x3ac   : > { %v3776_v52 = vpop.permute.xlu0 %3775 }
 0x3ad   : > { %v3959_v50 = vsel %vm3895_vm11, %v3863_v57, %v3927_v29  ;;  %vm3896_vm12 = vcmp.gt.f32.partialorder %v3864_v58, 0.0  ;;  %v3928_v43 = vmul.f32 0.2, %v3864_v58  ;;  %v3865_v28 = vadd.f32 %v3776_v52, %v3705_v54  ;;  %v4118_v52 = vld [vmem:[#allocation5 + $0x31] sm:$0xff] }
 0x3ae   : > { %4037 = vst.msk [vmem:[#allocation5 + $0x49] sm:$0xff] %vm588_vm3, %v3959_v50  ;;  %v3778_v33 = vpop.permute.xlu1 %3777  ;;  %v22926_v57 = vmul.f32 %v22852_v14, %v22356_v18  ;;  %v3709_v18 = vmul.f32 %v22674_v40, %v22919_v7  ;;  %v22946_v40 = vmul.f32 %v22852_v14, %v22370_v30 }
 0x3af   : > { %v3960_v51 = vsel %vm3896_vm12, %v3864_v58, %v3928_v43  ;;  %vm3897_vm13 = vcmp.gt.f32.partialorder %v3865_v28, 0.0  ;;  %v3929_v19 = vmul.f32 0.2, %v3865_v28  ;;  %v3866_v37 = vadd.f32 %v3778_v33, %v3706_v11  ;;  %v4116_v58 = vld [vmem:[#allocation5 + $0x19] sm:$0xff] }
 0x3b0   : > { %4038 = vst.msk [vmem:[#allocation5 + $0x51] sm:$0xff] %vm588_vm3, %v3960_v51  ;;  %v3780_v9 = vpop.permute.xlu0 %3779  ;;  %v4119_v59 = vld [vmem:[#allocation5 + $0x39] sm:$0xff]  ;;  %25935 = vst [vmem:[#allocation32_spill] sm:$0xff] %v22926_v57  ;;  %v22956_v51 = vld [vmem:[%s25818_s10 + $0x4] sm:$0x3] }
 0x3b1   : > { %v3961_v22 = vsel %vm3897_vm13, %v3865_v28, %v3929_v19  ;;  %vm3898_vm14 = vcmp.gt.f32.partialorder %v3866_v37, 0.0  ;;  %v3930_v49 = vmul.f32 0.2, %v3866_v37  ;;  %v3867_v29 = vadd.f32 %v3780_v9, %v3707_v23  ;;  %v4117_v54 = vld [vmem:[#allocation5 + $0x21] sm:$0xff]  ;;  %25937 = vst [vmem:[#allocation34_spill] sm:$0xff] %v22946_v40 }
 0x3b2   : > { %4039 = vst.msk [vmem:[#allocation5 + $0x61] sm:$0xff] %vm588_vm3, %v3961_v22  ;;  %v3782_v17 = vpop.permute.xlu1 %3781  ;;  %v4147_v11 = vpack.c.bf16 %v4117_v54, %v4116_v58  ;;  %v4148_v50 = vpack.c.bf16 %v4119_v59, %v4118_v52  ;;  %v3710_v23 = vmul.f32 %v22679_v27, %v22926_v57  ;;  %v3711_v27 = vmul.f32 %v22691_v1, %v22932_v38 }
 0x3b3   : > { %v3962_v47 = vsel %vm3898_vm14, %v3866_v37, %v3930_v49  ;;  %vm3899_vm15 = vcmp.gt.f32.partialorder %v3867_v29, 0.0  ;;  %v3931_v43 = vmul.f32 0.2, %v3867_v29  ;;  %v3868_v28 = vadd.f32 %v3782_v17, %v3708_v13 }
 0x3b4   : > { %4040 = vst.msk [vmem:[#allocation5 + $0x69] sm:$0xff] %vm588_vm3, %v3962_v47  ;;  %v3784_v33 = vpop.permute.xlu0 %3783  ;;  %18528 = vmatmul.mubr.msk.bf16.vlgmr.msra.gmra.mrb[32].mxu0 %vm588_vm3, %v4147_v11  ;;  %18663 = vmatprep.mubr.msk.bf16.mxu1 %vm588_vm3, %v4147_v11  ;;  %v22965_v13 = vmul.f32 %v22852_v14, %v22377_v62  ;;  %v3712_v62 = vmul.f32 %v22696_v12, %v22946_v40 }
 0x3b5   : > { %v3963_v19 = vsel %vm3899_vm15, %v3867_v29, %v3931_v43  ;;  %vm3900_vm1 = vcmp.gt.f32.partialorder %v3868_v28, 0.0  ;;  %v3932_v37 = vmul.f32 0.2, %v3868_v28  ;;  %v3869_v9 = vadd.f32 %v3784_v33, %v3709_v18  ;;  %18531 = vmatprep.mubr.msk.bf16.mxu0 %vm588_vm3, %v4148_v50  ;;  %18664 = vmatmul.mubr.msk.bf16.vlgmr.msra.gmra.mrb[0].mxu1 %vm588_vm3, %v4148_v50  ;;  %v5181_v29 = vld [vmem:[#allocation5 + $0x49] sm:$0xff] }
 0x3b6   : > { %4041 = vst.msk [vmem:[#allocation5 + $0x79] sm:$0xff] %vm588_vm3, %v3963_v19  ;;  %v3786_v30 = vpop.permute.xlu1 %3785  ;;  %18696 = vmatpush3.bf16.msra.mxu1 %v5570_v6  ;;  %25938 = vst [vmem:[#allocation35_spill] sm:$0xff] %v22965_v13  ;;  %18560 = vmatpush3.bf16.msra.mxu0 %v4426_v31  ;;  %v22976_v54 = vmul.f32 %v22852_v14, %v22384_v41  ;;  %v3713_v50 = vmul.f32 %v22708_v42, %v22965_v13 }
 0x3b7   : > { %v3964_v59 = vsel %vm3900_vm1, %v3868_v28, %v3932_v37  ;;  %vm3901_vm2 = vcmp.gt.f32.partialorder %v3869_v9, 0.0  ;;  %v3933_v22 = vmul.f32 0.2, %v3869_v9  ;;  %v3870_v49 = vadd.f32 %v3786_v30, %v3710_v23  ;;  %v5182_v58 = vld [vmem:[#allocation5 + $0x51] sm:$0xff]  ;;  %21169 = vmatprep.subr.msk.bf16.mxu1 %vm4212_vm6, %v22951_v32  ;;  %21165 = vmatprep.subr.msk.bf16.mxu0 %vm4212_vm6, %v22956_v51 }
 0x3b8   : > { %4042 = vst.msk [vmem:[#allocation5 + $0x81] sm:$0xff] %vm588_vm3, %v3964_v59  ;;  %v3788_v1 = vpop.permute.xlu0 %3787  ;;  %v5211_v6 = vpack.c.bf16 %v5182_v58, %v5181_v29  ;;  %25939 = vst [vmem:[#allocation36_spill] sm:$0xff] %v22976_v54  ;;  %v22984_v12 = vmul.f32 %v22852_v14, %v22391_v24  ;;  %v3714_v23 = vmul.f32 %v22713_v48, %v22976_v54  ;;  %v17363_v54 = vld [vmem:[%s23370_s28 + $0x10] sm:$0xff]  }
 0x3b9   : > { %v3965_v52 = vsel %vm3901_vm2, %v3869_v9, %v3933_v22  ;;  %vm3902_vm4 = vcmp.gt.f32.partialorder %v3870_v49, 0.0  ;;  %v3934_v17 = vmul.f32 0.2, %v3870_v49  ;;  %v3871_v18 = vadd.f32 %v3788_v1, %v3711_v27  ;;  %v4122_v43 = vld [vmem:[#allocation5 + $0x61] sm:$0xff] }
 0x3ba   : > { %4043 = vst.msk [vmem:[#allocation5 + $0x91] sm:$0xff] %vm588_vm3, %v3965_v52  ;;  %v3790_v11 = vpop.permute.xlu1 %3789  ;;  %18667 = vmatprep.mubr.msk.bf16.mxu1 %vm588_vm3, %v5211_v6  ;;  %25940 = vst [vmem:[#allocation37_spill] sm:$0xff] %v22984_v12  ;;  %v22992_v42 = vmul.f32 %v22852_v14, %v22400_v56  ;;  %v3715_v27 = vmul.f32 %v22725_v55, %v22984_v12  ;;  %v23001_v48 = vmul.f32 %v22852_v14, %v22558_v35 }
 0x3bb   : > { %v3966_v31 = vsel %vm3902_vm4, %v3870_v49, %v3934_v17  ;;  %vm3903_vm5 = vcmp.gt.f32.partialorder %v3871_v18, 0.0  ;;  %v3935_v41 = vmul.f32 0.2, %v3871_v18  ;;  %v3872_v47 = vadd.f32 %v3790_v11, %v3712_v62  ;;  %v4123_v28 = vld [vmem:[#allocation5 + $0x69] sm:$0xff] }
 0x3bc   : > { %4044 = vst.msk [vmem:[#allocation5 + $0x99] sm:$0xff] %vm588_vm3, %v3966_v31  ;;  %v3792_v33 = vpop.permute.xlu0 %3791  ;;  %18532 = vmatmul.mubr.msk.bf16.gmra.mrb[36].mxu0 %vm588_vm3, %v5211_v6  ;;  %v4150_v19 = vpack.c.bf16 %v4123_v28, %v4122_v43  ;;  %25941 = vst [vmem:[#allocation38_spill] sm:$0xff] %v22992_v42  ;;  %v3716_v1 = vmul.f32 %v22730_v4, %v22992_v42  ;;  %v23008_v55 = vmul.f32 %v22852_v14, %v22584_v2 }
 0x3bd   : > { %v3967_v24 = vsel %vm3903_vm5, %v3871_v18, %v3935_v41  ;;  %vm3904_vm7 = vcmp.gt.f32.partialorder %v3872_v47, 0.0  ;;  %v3936_v37 = vmul.f32 0.2, %v3872_v47  ;;  %v3873_v9 = vadd.f32 %v3792_v33, %v3713_v50  ;;  %25942 = vst [vmem:[#allocation39_spill] sm:$0xff] %v23001_v48  ;;  %v5185_v49 = vld [vmem:[#allocation5 + $0x79] sm:$0xff] }
 0x3be   : > { %4045 = vst.msk [vmem:[#allocation5 + $0xa9] sm:$0xff] %vm588_vm3, %v3967_v24  ;;  %v3794_v30 = vpop.permute.xlu1 %3793  ;;  %18535 = vmatprep.mubr.msk.bf16.mxu0 %vm588_vm3, %v4150_v19  ;;  %18668 = vmatmul.mubr.msk.bf16.gmra.mrb[4].mxu1 %vm588_vm3, %v4150_v19  ;;  %25943 = vst [vmem:[#allocation40_spill] sm:$0xff] %v23008_v55  ;;  %v3717_v18 = vmul.f32 %v22742_v34, %v23001_v48  ;;  %v23016_v4 = vmul.f32 %v22852_v14, %v22610_v61 }
 0x3bf   : > { %v3968_v56 = vsel %vm3904_vm7, %v3872_v47, %v3936_v37  ;;  %vm3905_vm8 = vcmp.gt.f32.partialorder %v3873_v9, 0.0  ;;  %v3937_v59 = vmul.f32 0.2, %v3873_v9  ;;  %v3874_v22 = vadd.f32 %v3794_v30, %v3714_v23  ;;  %v5186_v29 = vld [vmem:[#allocation5 + $0x81] sm:$0xff] }
 0x3c0   : > { %4046 = vst.msk [vmem:[#allocation5 + $0xb1] sm:$0xff] %vm588_vm3, %v3968_v56  ;;  %v3796_v58 = vpop.permute.xlu0 %3795  ;;  %v5213_v62 = vpack.c.bf16 %v5186_v29, %v5185_v49  ;;  %25944 = vst [vmem:[#allocation41_spill] sm:$0xff] %v23016_v4  ;;  %v3718_v43 = vmul.f32 %v22747_v15, %v23008_v55  ;;  %v23024_v34 = vmul.f32 %v22852_v14, %v22627_v10  ;;  %v25947_v49 = vld [vmem:[#allocation7_spill] sm:$0xff] }
 0x3c1   : > { %v3969_v6 = vsel %vm3905_vm8, %v3873_v9, %v3937_v59  ;;  %vm3906_vm9 = vcmp.gt.f32.partialorder %v3874_v22, 0.0  ;;  %v3938_v35 = vmul.f32 0.2, %v3874_v22  ;;  %v3875_v52 = vadd.f32 %v3796_v58, %v3715_v27  ;;  %v4126_v31 = vld [vmem:[#allocation5 + $0x91] sm:$0xff] }
 0x3c2   : > { %4047 = vst.msk [vmem:[#allocation5 + $0xc1] sm:$0xff] %vm588_vm3, %v3969_v6  ;;  %v3798_v17 = vpop.permute.xlu1 %3797  ;;  %18671 = vmatprep.mubr.msk.bf16.mxu1 %vm588_vm3, %v5213_v62  ;;  %25945 = vst [vmem:[#allocation42_spill] sm:$0xff] %v23024_v34  ;;  %v3719_v24 = vmul.f32 %v22759_v36, %v23016_v4  ;;  %v23033_v15 = vmul.f32 %v22852_v14, %v22644_v20  ;;  %v3720_v59 = vmul.f32 %v22764_v3, %v23024_v34 }
 0x3c3   : > { %v3970_v11 = vsel %vm3906_vm9, %v3874_v22, %v3938_v35  ;;  %vm3907_vm10 = vcmp.gt.f32.partialorder %v3875_v52, 0.0  ;;  %v3939_v2 = vmul.f32 0.2, %v3875_v52  ;;  %v3876_v50 = vadd.f32 %v3798_v17, %v3716_v1  ;;  %v4127_v41 = vld [vmem:[#allocation5 + $0x99] sm:$0xff]  ;;  %v25950_v35 = vld [vmem:[#allocation8_spill] sm:$0xff] }
 0x3c4   : > { %4048 = vst.msk [vmem:[#allocation5 + $0xc9] sm:$0xff] %vm588_vm3, %v3970_v11  ;;  %v3800_v47 = vpop.permute.xlu0 %3799  ;;  %18536 = vmatmul.mubr.msk.bf16.gmra.mrb[40].mxu0 %vm588_vm3, %v5213_v62  ;;  %v4152_v28 = vpack.c.bf16 %v4127_v41, %v4126_v31  ;;  %25946 = vst [vmem:[#allocation43_spill] sm:$0xff] %v23033_v15  ;;  %v23040_v36 = vmul.f32 %v22852_v14, %v25947_v49  ;;  %v25949_v62 = vld [vmem:[#allocation14_spill] sm:$0xff]  ;;  %v23048_v3 = vmul.f32 %v22852_v14, %v25950_v35  ;;  %v25956_v49 = vld [vmem:[#allocation11_spill] sm:$0xff] }
 0x3c5   : > { %v3971_v61 = vsel %vm3907_vm10, %v3875_v52, %v3939_v2  ;;  %vm3908_vm11 = vcmp.gt.f32.partialorder %v3876_v50, 0.0  ;;  %v3940_v33 = vmul.f32 0.2, %v3876_v50  ;;  %v3877_v23 = vadd.f32 %v3800_v47, %v3717_v18  ;;  %v5189_v30 = vld [vmem:[#allocation5 + $0xa9] sm:$0xff] }
 0x3c6   : > { %4049 = vst.msk [vmem:[#allocation5 + $0xd9] sm:$0xff] %vm588_vm3, %v3971_v61  ;;  %v3802_v19 = vpop.permute.xlu1 %3801  ;;  %18539 = vmatprep.mubr.msk.bf16.mxu0 %vm588_vm3, %v4152_v28  ;;  %18672 = vmatmul.mubr.msk.bf16.gmra.mrb[8].mxu1 %vm588_vm3, %v4152_v28  ;;  %25948 = vst [vmem:[#allocation7_spill] sm:$0xff] %v23040_v36  ;;  %v3721_v6 = vmul.f32 %v25949_v62, %v23033_v15  ;;  %v3722_v31 = vmul.f32 %v22781_v53, %v23040_v36  ;;  %v25952_v47 = vld [vmem:[#allocation9_spill] sm:$0xff]  ;;  %v25954_v53 = vld [vmem:[#allocation10_spill] sm:$0xff] }
 0x3c7   : > { %v3972_v10 = vsel %vm3908_vm11, %v3876_v50, %v3940_v33  ;;  %vm3909_vm12 = vcmp.gt.f32.partialorder %v3877_v23, 0.0  ;;  %v3941_v37 = vmul.f32 0.2, %v3877_v23  ;;  %v3878_v9 = vadd.f32 %v3802_v19, %v3718_v43  ;;  %v5190_v27 = vld [vmem:[#allocation5 + $0xb1] sm:$0xff]  ;;  %25951 = vst [vmem:[#allocation14_spill] sm:$0xff] %v23048_v3 }
 0x3c8   : > { %4050 = vst.msk [vmem:[#allocation5 + $0xe1] sm:$0xff] %vm588_vm3, %v3972_v10  ;;  %v3804_v56 = vpop.permute.xlu0 %3803  ;;  %v5215_v22 = vpack.c.bf16 %v5190_v27, %v5189_v30  ;;  %v23056_v43 = vmul.f32 %v22852_v14, %v25952_v47  ;;  %v3723_v19 = vmul.f32 %v22793_v46, %v23048_v3  ;;  %v23072_v46 = vmul.f32 %v22852_v14, %v25956_v49 }
 0x3c9   : > { %v3973_v29 = vsel %vm3909_vm12, %v3877_v23, %v3941_v37  ;;  %vm3910_vm13 = vcmp.gt.f32.partialorder %v3878_v9, 0.0  ;;  %v3942_v20 = vmul.f32 0.2, %v3878_v9  ;;  %v3879_v58 = vadd.f32 %v3804_v56, %v3719_v24  ;;  %v4130_v11 = vld [vmem:[#allocation5 + $0xc1] sm:$0xff] }
 0x3ca   : > { %4051 = vst.msk [vmem:[#allocation5 + $0xf1] sm:$0xff] %vm588_vm3, %v3973_v29  ;;  %v3806_v1 = vpop.permute.xlu1 %3805  ;;  %18675 = vmatprep.mubr.msk.bf16.mxu1 %vm588_vm3, %v5215_v22  ;;  %25953 = vst [vmem:[#allocation8_spill] sm:$0xff] %v23056_v43  ;;  %v23065_v24 = vmul.f32 %v22852_v14, %v25954_v53  ;;  %v25963_v53 = vld [vmem:[#allocation15_spill] sm:$0xff] }
 0x3cb   : > { %v3974_v52 = vsel %vm3910_vm13, %v3878_v9, %v3942_v20  ;;  %vm3911_vm14 = vcmp.gt.f32.partialorder %v3879_v58, 0.0  ;;  %v3943_v17 = vmul.f32 0.2, %v3879_v58  ;;  %v3880_v18 = vadd.f32 %v3806_v1, %v3720_v59  ;;  %v4131_v2 = vld [vmem:[#allocation5 + $0xc9] sm:$0xff]  ;;  %25957 = vst [vmem:[#allocation10_spill] sm:$0xff] %v23072_v46 }
 0x3cc   : > { %4052 = vst.msk [vmem:[#allocation5 + $0xf9] sm:$0xff] %vm588_vm3, %v3974_v52  ;;  %v3808_v50 = vpop.permute.xlu0 %3807  ;;  %18540 = vmatmul.mubr.msk.bf16.gmra.mrb[44].mxu0 %vm588_vm3, %v5215_v22  ;;  %v4154_v41 = vpack.c.bf16 %v4131_v2, %v4130_v11  ;;  %25955 = vst [vmem:[#allocation9_spill] sm:$0xff] %v23065_v24  ;;  %v3724_v59 = vmul.f32 %v22798_v45, %v23056_v43  ;;  %v3725_v62 = vmul.f32 %v22810_v63, %v23065_v24  ;;  %v25961_v63 = vld [vmem:[#allocation13_spill] sm:$0xff] }
 0x3cd   : > { %v3975_v28 = vsel %vm3911_vm14, %v3879_v58, %v3943_v17  ;;  %vm3912_vm15 = vcmp.gt.f32.partialorder %v3880_v18, 0.0  ;;  %v3944_v61 = vmul.f32 0.2, %v3880_v18  ;;  %v3881_v33 = vadd.f32 %v3808_v50, %v3721_v6  ;;  %v5193_v30 = vld [vmem:[#allocation5 + $0xd9] sm:$0xff]  ;;  %v25958_v6 = vld [vmem:[#allocation12_spill] sm:$0xff]  ;;  %v25960_v50 = vld [vmem:[#allocation17_spill] sm:$0xff] }
 0x3ce   : > { %4053 = vst.msk [vmem:[#allocation5 + $0x109] sm:$0xff] %vm588_vm3, %v3975_v28  ;;  %v3810_v23 = vpop.permute.xlu1 %3809  ;;  %18543 = vmatprep.mubr.msk.bf16.mxu0 %vm588_vm3, %v4154_v41  ;;  %18676 = vmatmul.mubr.msk.bf16.gmra.mrb[12].mxu1 %vm588_vm3, %v4154_v41  ;;  %v23080_v45 = vmul.f32 %v22852_v14, %v25958_v6  ;;  %v23090_v47 = vmul.f32 %v22852_v14, %v25961_v63 }
 0x3cf   : > { %v3976_v10 = vsel %vm3912_vm15, %v3880_v18, %v3944_v61  ;;  %vm3913_vm1 = vcmp.gt.f32.partialorder %v3881_v33, 0.0  ;;  %v3945_v37 = vmul.f32 0.2, %v3881_v33  ;;  %v3882_v9 = vadd.f32 %v3810_v23, %v3722_v31  ;;  %v5194_v27 = vld [vmem:[#allocation5 + $0xe1] sm:$0xff] }
 0x3d0   : > { %4054 = vst.msk [vmem:[#allocation5 + $0x111] sm:$0xff] %vm588_vm3, %v3976_v10  ;;  %v3812_v56 = vpop.permute.xlu0 %3811  ;;  %v5217_v22 = vpack.c.bf16 %v5194_v27, %v5193_v30  ;;  %25959 = vst [vmem:[#allocation11_spill] sm:$0xff] %v23080_v45  ;;  %v3726_v31 = vmul.f32 %v25960_v50, %v23072_v46  ;;  %v23101_v10 = vmul.f32 %v22852_v14, %v25963_v53 }
 0x3d1   : > { %v3977_v29 = vsel %vm3913_vm1, %v3881_v33, %v3945_v37  ;;  %vm3914_vm2 = vcmp.gt.f32.partialorder %v3882_v9, 0.0  ;;  %v3946_v20 = vmul.f32 0.2, %v3882_v9  ;;  %v3883_v58 = vadd.f32 %v3812_v56, %v3723_v19  ;;  %v4134_v18 = vld [vmem:[#allocation5 + $0xf1] sm:$0xff]  ;;  %25962 = vst [vmem:[#allocation12_spill] sm:$0xff] %v23090_v47 }
 0x3d2   : > { %4055 = vst.msk [vmem:[#allocation5 + $0x121] sm:$0xff] %vm588_vm3, %v3977_v29  ;;  %v3814_v1 = vpop.permute.xlu1 %3813  ;;  %18679 = vmatprep.mubr.msk.bf16.mxu1 %vm588_vm3, %v5217_v22  ;;  %v3727_v19 = vmul.f32 %v22823_v16, %v23080_v45  ;;  %25964 = vst [vmem:[#allocation17_spill] sm:$0xff] %v23101_v10 }
 0x3d3   : > { %v3978_v35 = vsel %vm3914_vm2, %v3882_v9, %v3946_v20  ;;  %vm3915_vm4 = vcmp.gt.f32.partialorder %v3883_v58, 0.0  ;;  %v3947_v52 = vmul.f32 0.2, %v3883_v58  ;;  %v3884_v17 = vadd.f32 %v3814_v1, %v3724_v59  ;;  %v4135_v11 = vld [vmem:[#allocation5 + $0xf9] sm:$0xff]  ;;  %v25966_v20 = vld [vmem:[#allocation16_spill] sm:$0xff] }
 0x3d4   : > { %4056 = vst.msk [vmem:[#allocation5 + $0x129] sm:$0xff] %vm588_vm3, %v3978_v35  ;;  %v3816_v2 = vpop.permute.xlu0 %3815  ;;  %18544 = vmatmul.mubr.msk.bf16.gmra.mrb[48].mxu0 %vm588_vm3, %v5217_v22  ;;  %v23086_v41 = vpack.c.bf16 %v4135_v11, %v4134_v18  ;;  %v25965_v22 = vld [vmem:[#allocation18_spill] sm:$0xff]  ;;  %v23110_v16 = vmul.f32 %v22852_v14, %v25966_v20  ;;  %v25968_v35 = vld [vmem:[#allocation19_spill] sm:$0xff] }
 0x3d5   : > { %v3979_v28 = vsel %vm3915_vm4, %v3883_v58, %v3947_v52  ;;  %vm3916_vm5 = vcmp.gt.f32.partialorder %v3884_v17, 0.0  ;;  %v3948_v61 = vmul.f32 0.2, %v3884_v17  ;;  %v3885_v33 = vadd.f32 %v3816_v2, %v3725_v62  ;;  %v5197_v27 = vld [vmem:[#allocation5 + $0x109] sm:$0xff] }
 0x3d6   : > { %4057 = vst.msk [vmem:[#allocation5 + $0x139] sm:$0xff] %vm588_vm3, %v3979_v28  ;;  %v3818_v23 = vpop.permute.xlu1 %3817  ;;  %18547 = vmatprep.mubr.msk.bf16.mxu0 %vm588_vm3, %v23086_v41  ;;  %18680 = vmatmul.mubr.msk.bf16.gmra.mrb[16].mxu1 %vm588_vm3, %v23086_v41  ;;  %v3728_v49 = vmul.f32 %v25965_v22, %v23090_v47  ;;  %25967 = vst [vmem:[#allocation13_spill] sm:$0xff] %v23110_v16  ;;  %v3729_v52 = vmul.f32 %v25968_v35, %v23101_v10  ;;  %v5490_v10 = vld [vmem:[#allocation5 + $0xfa] sm:$0xff] }
 0x3d7   : > { %v3980_v37 = vsel %vm3916_vm5, %v3884_v17, %v3948_v61  ;;  %vm3917_vm7 = vcmp.gt.f32.partialorder %v3885_v33, 0.0  ;;  %v3949_v9 = vmul.f32 0.2, %v3885_v33  ;;  %v3886_v30 = vadd.f32 %v3818_v23, %v3726_v31  ;;  %v5198_v56 = vld [vmem:[#allocation5 + $0x111] sm:$0xff]  ;;  %v25969_v31 = vld [vmem:[#allocation20_spill] sm:$0xff] }
 0x3d8   : > { %4058 = vst.msk [vmem:[#allocation5 + $0x141] sm:$0xff] %vm588_vm3, %v3980_v37  ;;  %v3820_v59 = vpop.permute.xlu0 %3819  ;;  %v23106_v29 = vpack.c.bf16 %v5198_v56, %v5197_v27  ;;  %v3730_v63 = vmul.f32 %v25969_v31, %v23110_v16  ;;  %v5492_v45 = vld [vmem:[#allocation5 + $0x112] sm:$0xff] }
 0x3d9   : > { %v3981_v58 = vsel %vm3917_vm7, %v3885_v33, %v3949_v9  ;;  %vm3918_vm8 = vcmp.gt.f32.partialorder %v3886_v30, 0.0  ;;  %v3950_v1 = vmul.f32 0.2, %v3886_v30  ;;  %v3887_v62 = vadd.f32 %v3820_v59, %v3727_v19  ;;  %v4138_v2 = vld [vmem:[#allocation5 + $0x121] sm:$0xff] }
 0x3da   : > { %4059 = vst.msk [vmem:[#allocation5 + $0x151] sm:$0xff] %vm588_vm3, %v3981_v58  ;;  %v3822_v6 = vpop.permute.xlu1 %3821  ;;  %18683 = vmatprep.mubr.msk.bf16.mxu1 %vm588_vm3, %v23106_v29 }
 0x3db   : > { %v3982_v17 = vsel %vm3918_vm8, %v3886_v30, %v3950_v1  ;;  %vm3919_vm9 = vcmp.gt.f32.partialorder %v3887_v62, 0.0  ;;  %v3951_v18 = vmul.f32 0.2, %v3887_v62  ;;  %v3888_v11 = vadd.f32 %v3822_v6, %v3728_v49  ;;  %v4139_v14 = vld [vmem:[#allocation5 + $0x129] sm:$0xff] }
 0x3dc   : > { %4060 = vst.msk [vmem:[#allocation5 + $0x159] sm:$0xff] %vm588_vm3, %v3982_v17  ;;  %v3824_v50 = vpop.permute.xlu0 %3823  ;;  %18548 = vmatmul.mubr.msk.bf16.gmra.mrb[52].mxu0 %vm588_vm3, %v23106_v29  ;;  %v23122_v28 = vpack.c.bf16 %v4139_v14, %v4138_v2  ;;  %v4066_v6 = vld [vmem:[#allocation5 + $0x8] sm:$0xff] }
 0x3dd   : > { %v3983_v61 = vsel %vm3919_vm9, %v3887_v62, %v3951_v18  ;;  %vm3920_vm10 = vcmp.gt.f32.partialorder %v3888_v11, 0.0  ;;  %v3952_v33 = vmul.f32 0.2, %v3888_v11  ;;  %v3889_v23 = vadd.f32 %v3824_v50, %v3729_v52  ;;  %v5201_v30 = vld [vmem:[#allocation5 + $0x139] sm:$0xff]  ;;  %v5472_v2 = vld [vmem:[#allocation5 + $0x22] sm:$0xff]  ;;  %v5494_v24 = vld [vmem:[#allocation5 + $0x12a] sm:$0xff] }
 0x3de   : > { %4061 = vst.msk [vmem:[#allocation5 + $0x169] sm:$0xff] %vm588_vm3, %v3983_v61  ;;  %v3826_v19 = vpop.permute.xlu1 %3825  ;;  %18551 = vmatprep.mubr.msk.bf16.mxu0 %vm588_vm3, %v23122_v28  ;;  %18684 = vmatmul.mubr.msk.bf16.gmra.mrb[20].mxu1 %vm588_vm3, %v23122_v28  ;;  %v4065_v62 = vld [vmem:[#allocation5] sm:$0xff] }
 0x3df   : > { %v3984_v53 = vsel %vm3920_vm10, %v3888_v11, %v3952_v33  ;;  %vm3921_vm11 = vcmp.gt.f32.partialorder %v3889_v23, 0.0  ;;  %v3953_v37 = vmul.f32 0.2, %v3889_v23  ;;  %v3890_v9 = vadd.f32 %v3826_v19, %v3730_v63  ;;  %v5202_v27 = vld [vmem:[#allocation5 + $0x141] sm:$0xff]  ;;  %v4070_v33 = vld [vmem:[#allocation5 + $0x38] sm:$0xff] }
 0x3e0   : > { %4062 = vst.msk [vmem:[#allocation5 + $0x171] sm:$0xff] %vm588_vm3, %v3984_v53  ;;  %v23130_v56 = vpack.c.bf16 %v5202_v27, %v5201_v30  ;;  %v4097_v18 = vpack.c.bf16 %v4066_v6, %v4065_v62  ;;  %v5471_v11 = vld [vmem:[#allocation5 + $0x1a] sm:$0xff]  ;;  %v5473_v19 = vld [vmem:[#allocation5 + $0x32] sm:$0xff]  ;;  %v5475_v30 = vld [vmem:[#allocation5 + $0x4a] sm:$0xff] }
 0x3e1   : > { %v3985_v59 = vsel %vm3921_vm11, %v3889_v23, %v3953_v37  ;;  %vm3922_vm12 = vcmp.gt.f32.partialorder %v3890_v9, 0.0  ;;  %v3954_v22 = vmul.f32 0.2, %v3890_v9  ;;  %v4142_v20 = vld [vmem:[#allocation5 + $0x151] sm:$0xff]  ;;  %v23152_v63 = vpack.c.bf16 %v5472_v2, %v5471_v11  ;;  %v4068_v61 = vld [vmem:[#allocation5 + $0x20] sm:$0xff]  ;;  %v4074_v6 = vld [vmem:[#allocation5 + $0x68] sm:$0xff] }
 0x3e2   : > { %4063 = vst.msk [vmem:[#allocation5 + $0x181] sm:$0xff] %vm588_vm3, %v3985_v59  ;;  %18687 = vmatprep.mubr.msk.bf16.mxu1 %vm588_vm3, %v23130_v56  ;;  %v4067_v23 = vld [vmem:[#allocation5 + $0x18] sm:$0xff]  ;;  %v4688_v59 = vsel %vm4212_vm6, %v22956_v51, 0  ;;  %v4073_v2 = vld [vmem:[#allocation5 + $0x60] sm:$0xff] }
 0x3e3   : > { %v3986_v49 = vsel %vm3922_vm12, %v3890_v9, %v3954_v22  ;;  %v4143_v58 = vld [vmem:[#allocation5 + $0x159] sm:$0xff]  ;;  %v23159_v37 = vpack.c.bf16 %v4068_v61, %v4067_v23  ;;  %v4069_v9 = vld [vmem:[#allocation5 + $0x30] sm:$0xff]  ;;  %v23195_v61 = vpack.c.bf16 %v4074_v6, %v4073_v2  ;;  %v5496_v3 = vld [vmem:[#allocation5 + $0x142] sm:$0xff] }
 0x3e4   : > { %4064 = vst.msk [vmem:[#allocation5 + $0x189] sm:$0xff] %vm588_vm3, %v3986_v49  ;;  %18552 = vmatmul.mubr.msk.bf16.gmra.mrb[56].mxu0 %vm588_vm3, %v23130_v56  ;;  %v23138_v1 = vpack.c.bf16 %v4143_v58, %v4142_v20  ;;  %v5474_v53 = vld [vmem:[#allocation5 + $0x3a] sm:$0xff]  ;;  %v5476_v27 = vld [vmem:[#allocation5 + $0x52] sm:$0xff]  ;;  %v23163_v22 = vpack.c.bf16 %v4070_v33, %v4069_v9  ;;  %v5865_v58 = vsel %vm4212_vm6, %v22951_v32, 0 }
 0x3e5   : > { %v5205_v35 = vld [vmem:[#allocation5 + $0x169] sm:$0xff]  ;;  %v23168_v49 = vld [vmem:[%s25818_s10 + $0x6] sm:$0x3]  ;;  %v23172_v20 = vpack.c.bf16 %v5474_v53, %v5473_v19  ;;  %v23178_v62 = vpack.c.bf16 %v5476_v27, %v5475_v30  ;;  %v23183_v51 = vld [vmem:[%s25818_s10 + $0xe] sm:$0x3] }
 0x3e6   : > { %18555 = vmatprep.mubr.msk.bf16.mxu0 %vm588_vm3, %v23138_v1  ;;  %18688 = vmatmul.mubr.msk.bf16.gmra.mrb[24].mxu1 %vm588_vm3, %v23138_v1  ;;  %v4072_v32 = vld [vmem:[#allocation5 + $0x50] sm:$0xff]  ;;  %v4076_v19 = vld [vmem:[#allocation5 + $0x80] sm:$0xff]  ;;  %v4078_v53 = vld [vmem:[#allocation5 + $0x98] sm:$0xff] }
 0x3e7   : > { %v5206_v52 = vld [vmem:[#allocation5 + $0x171] sm:$0xff]  ;;  %v5482_v27 = vld [vmem:[#allocation5 + $0x9a] sm:$0xff] }
 0x3e8   : > { %v23144_v17 = vpack.c.bf16 %v5206_v52, %v5205_v35  ;;  %v4071_v35 = vld [vmem:[#allocation5 + $0x48] sm:$0xff]  ;;  %v4075_v9 = vld [vmem:[#allocation5 + $0x78] sm:$0xff]  ;;  %v4080_v2 = vld [vmem:[#allocation5 + $0xb0] sm:$0xff] }
 0x3e9   : > { %v5207_v14 = vld [vmem:[#allocation5 + $0x181] sm:$0xff]  ;;  %v23193_v11 = vpack.c.bf16 %v4072_v32, %v4071_v35  ;;  %v5481_v30 = vld [vmem:[#allocation5 + $0x92] sm:$0xff]  ;;  %v5483_v32 = vld [vmem:[#allocation5 + $0xaa] sm:$0xff] }
 0x3ea   : > { %18691 = vmatprep.mubr.msk.bf16.mxu1 %vm588_vm3, %v23144_v17  ;;  %v5477_v52 = vld [vmem:[#allocation5 + $0x62] sm:$0xff]  ;;  %v5484_v6 = vld [vmem:[#allocation5 + $0xb2] sm:$0xff]  ;;  %v5498_v15 = vld [vmem:[#allocation5 + $0x15a] sm:$0xff] }
 0x3eb   : > { %v5208_v50 = vld [vmem:[#allocation5 + $0x189] sm:$0xff]  ;;  %v5500_v4 = vld [vmem:[#allocation5 + $0x172] sm:$0xff] }
 0x3ec   : > { %18556 = vmatmul.mubr.msk.bf16.gmra.mrb[60].mxu0 %vm588_vm3, %v23144_v17  ;;  %v23150_v31 = vpack.c.bf16 %v5208_v50, %v5207_v14  ;;  %v5479_v14 = vld [vmem:[#allocation5 + $0x7a] sm:$0xff]  ;;  %v5480_v50 = vld [vmem:[#allocation5 + $0x82] sm:$0xff]  ;;  %v5502_v42 = vld [vmem:[#allocation5 + $0x18a] sm:$0xff] }
 0x3ed   : > { %18561 = vmatprep.mubr.msk.bf16.mxu0 %vm588_vm3, %v4097_v18  ;;  %v5478_v18 = vld [vmem:[#allocation5 + $0x6a] sm:$0xff]  ;;  %v23203_v23 = vpack.c.bf16 %v5480_v50, %v5479_v14  ;;  %v5501_v48 = vld [vmem:[#allocation5 + $0x182] sm:$0xff] }
 0x3ee   : > { %18692 = vmatmul.mubr.msk.bf16.gmra.mrb[28].mxu1 %vm588_vm3, %v23150_v31  ;;  %v23199_v33 = vpack.c.bf16 %v5478_v18, %v5477_v52  ;;  %v23215_v52 = vpack.c.bf16 %v5482_v27, %v5481_v30  ;;  %v23219_v18 = vpack.c.bf16 %v5484_v6, %v5483_v32  ;;  %v4082_v14 = vld [vmem:[#allocation5 + $0xc8] sm:$0xff]  ;;  %v4081_v30 = vld [vmem:[#allocation5 + $0xc0] sm:$0xff] }
 0x3ef   : > { %18697 = vmatprep.mubr.msk.bf16.mxu1 %vm588_vm3, %v23152_v63  ;;  %v4079_v50 = vld [vmem:[#allocation5 + $0xa8] sm:$0xff]  ;;  %v5487_v27 = vld [vmem:[#allocation5 + $0xda] sm:$0xff]  ;;  %v23227_v16 = vpack.c.bf16 %v4082_v14, %v4081_v30  ;;  %v5489_v30 = vld [vmem:[#allocation5 + $0xf2] sm:$0xff] }
 0x3f0   : > { %v4083_v14 = vld [vmem:[#allocation5 + $0xd8] sm:$0xff] }
 0x3f4   : > { %18562 = vmatmul.mubr.msk.bf16.vlgmr.msra.gmra.mrb[32].mxu0 %vm588_vm3, %v23159_v37 }
 0x3f5   : > { %18565 = vmatprep.mubr.msk.bf16.mxu0 %vm588_vm3, %v23163_v22  ;;  %18594 = vmatpush3.bf16.msra.mxu0 %v4688_v59  ;;  %v23209_v59 = vpack.c.bf16 %v4076_v19, %v4075_v9  ;;  %v5485_v19 = vld [vmem:[#allocation5 + $0xc2] sm:$0xff]  ;;  %v23225_v9 = vpack.c.bf16 %v4080_v2, %v4079_v50  ;;  %v4086_v50 = vld [vmem:[#allocation5 + $0xf8] sm:$0xff] }
 0x3f6   : > { %18698 = vmatmul.mubr.msk.bf16.vlgmr.msra.gmra.mrb[0].mxu1 %vm588_vm3, %v23172_v20  ;;  %21166 = vmatprep.subr.msk.bf16.mxu0 %vm4212_vm6, %v23168_v49  ;;  %v4084_v2 = vld [vmem:[#allocation5 + $0xe0] sm:$0xff] }
 0x3f7   : > { %18730 = vmatpush3.bf16.msra.mxu1 %v5865_v58  ;;  %18701 = vmatprep.mubr.msk.bf16.mxu1 %vm588_vm3, %v23178_v62  ;;  %v4077_v58 = vld [vmem:[#allocation5 + $0x90] sm:$0xff]  ;;  %v23241_v47 = vpack.c.bf16 %v4084_v2, %v4083_v14  ;;  %v4090_v14 = vld [vmem:[#allocation5 + $0x128] sm:$0xff] }
 0x3f8   : > { %21170 = vmatprep.subr.msk.bf16.mxu1 %vm4212_vm6, %v23183_v51  ;;  %v23211_v35 = vpack.c.bf16 %v4078_v53, %v4077_v58  ;;  %v5486_v53 = vld [vmem:[#allocation5 + $0xca] sm:$0xff]  ;;  %v5488_v58 = vld [vmem:[#allocation5 + $0xe2] sm:$0xff] }
 0x3f9   : > { %v23231_v32 = vpack.c.bf16 %v5486_v53, %v5485_v19  ;;  %v23235_v6 = vpack.c.bf16 %v5488_v58, %v5487_v27  ;;  %v4085_v19 = vld [vmem:[#allocation5 + $0xf0] sm:$0xff]  ;;  %v23247_v27 = vpack.c.bf16 %v5490_v10, %v5489_v30  ;;  %v4089_v10 = vld [vmem:[#allocation5 + $0x120] sm:$0xff] }
 0x3fa   : > { %v5491_v53 = vld [vmem:[#allocation5 + $0x10a] sm:$0xff]  ;;  %v23243_v46 = vpack.c.bf16 %v4086_v50, %v4085_v19  ;;  %v5493_v19 = vld [vmem:[#allocation5 + $0x122] sm:$0xff]  ;;  %v5495_v30 = vld [vmem:[#allocation5 + $0x13a] sm:$0xff]  ;;  %v23259_v36 = vpack.c.bf16 %v4090_v14, %v4089_v10 }
 0x3fb   : > { %v23251_v58 = vpack.c.bf16 %v5492_v45, %v5491_v53  ;;  %v4088_v2 = vld [vmem:[#allocation5 + $0x110] sm:$0xff]  ;;  %v4087_v50 = vld [vmem:[#allocation5 + $0x108] sm:$0xff]  ;;  %v23263_v45 = vpack.c.bf16 %v5494_v24, %v5493_v19  ;;  %v23267_v53 = vpack.c.bf16 %v5496_v3, %v5495_v30  ;;  %v4091_v14 = vld [vmem:[#allocation5 + $0x138] sm:$0xff] }
 0x3fc   : > { %18566 = vmatmul.mubr.msk.bf16.gmra.mrb[36].mxu0 %vm588_vm3, %v23193_v11  ;;  %v23257_v43 = vpack.c.bf16 %v4088_v2, %v4087_v50  ;;  %v4092_v2 = vld [vmem:[#allocation5 + $0x140] sm:$0xff]  ;;  %v4094_v50 = vld [vmem:[#allocation5 + $0x158] sm:$0xff]  ;;  %v4093_v24 = vld [vmem:[#allocation5 + $0x150] sm:$0xff] }
 0x3fd   : > { %18569 = vmatprep.mubr.msk.bf16.mxu0 %vm588_vm3, %v23195_v61  ;;  %v5497_v10 = vld [vmem:[#allocation5 + $0x152] sm:$0xff]  ;;  %v23273_v34 = vpack.c.bf16 %v4092_v2, %v4091_v14  ;;  %v5499_v19 = vld [vmem:[#allocation5 + $0x16a] sm:$0xff]  ;;  %v23275_v55 = vpack.c.bf16 %v4094_v50, %v4093_v24  ;;  %v4589_v2 = vld [vmem:[#allocation5 + $0x2] sm:$0xff] }
 0x3fe   : > { %18702 = vmatmul.mubr.msk.bf16.gmra.mrb[4].mxu1 %vm588_vm3, %v23199_v33  ;;  %v23279_v3 = vpack.c.bf16 %v5498_v15, %v5497_v10  ;;  %v23283_v30 = vpack.c.bf16 %v5500_v4, %v5499_v19  ;;  %v4590_v14 = vld [vmem:[#allocation5 + $0xa] sm:$0xff]  ;;  %v23293_v4 = vpack.c.bf16 %v5502_v42, %v5501_v48  ;;  %v4982_v10 = vsel %vm4212_vm6, %v23168_v49, 0  ;;  %v5794_v48 = vld [vmem:[#allocation5 + $0x180] sm:$0xff]  ;;  %v5796_v49 = vld [vmem:[#allocation5 + $0x198] sm:$0xff] }
 0x3ff   : > { %18705 = vmatprep.mubr.msk.bf16.mxu1 %vm588_vm3, %v23203_v23  ;;  %v4096_v50 = vld [vmem:[#allocation5 + $0x170] sm:$0xff]  ;;  %v4095_v24 = vld [vmem:[#allocation5 + $0x168] sm:$0xff]  ;;  %v4621_v12 = vpack.c.bf16 %v4590_v14, %v4589_v2  ;;  %v6159_v19 = vsel %vm4212_vm6, %v23183_v51, 0  ;;  %v5797_v51 = vld [vmem:[#allocation5 + $0x1a0] sm:$0xff] }
 0x400   : > { %v23289_v15 = vpack.c.bf16 %v4096_v50, %v4095_v24  ;;  %v5795_v42 = vld [vmem:[#allocation5 + $0x188] sm:$0xff]  ;;  %v5813_v2 = vpack.c.bf16 %v5797_v51, %v5796_v49  ;;  %v6061_v14 = vld [vmem:[#allocation5 + $0x39] sm:$0xff]  ;;  %v6060_v50 = vld [vmem:[#allocation5 + $0x31] sm:$0xff] }
 0x401   : > { %v6092_v24 = vpack.c.bf16 %v6061_v14, %v6060_v50  ;;  %v6065_v49 = vld [vmem:[#allocation5 + $0x69] sm:$0xff]  ;;  %v6064_v14 = vld [vmem:[#allocation5 + $0x61] sm:$0xff] }
 0x402   : > { %v6062_v51 = vld [vmem:[#allocation5 + $0x49] sm:$0xff]  ;;  %v23387_v50 = vld [vmem:[%s25814_s6 + $0x10] sm:$0xff]  }
 0x404   : > { %18570 = vmatmul.mubr.msk.bf16.gmra.mrb[40].mxu0 %vm588_vm3, %v23209_v59 }
 0x405   : > { %18573 = vmatprep.mubr.msk.bf16.mxu0 %vm588_vm3, %v23211_v35 }
 0x406   : > { %18706 = vmatmul.mubr.msk.bf16.gmra.mrb[8].mxu1 %vm588_vm3, %v23215_v52 }
 0x407   : > { %18709 = vmatprep.mubr.msk.bf16.mxu1 %vm588_vm3, %v23219_v18 }
 0x40c   : > { %18574 = vmatmul.mubr.msk.bf16.gmra.mrb[44].mxu0 %vm588_vm3, %v23225_v9 }
 0x40d   : > { %18577 = vmatprep.mubr.msk.bf16.mxu0 %vm588_vm3, %v23227_v16 }
 0x40e   : > { %18710 = vmatmul.mubr.msk.bf16.gmra.mrb[12].mxu1 %vm588_vm3, %v23231_v32 }
 0x40f   : > { %18713 = vmatprep.mubr.msk.bf16.mxu1 %vm588_vm3, %v23235_v6 }
 0x414   : > { %18578 = vmatmul.mubr.msk.bf16.gmra.mrb[48].mxu0 %vm588_vm3, %v23241_v47 }
 0x415   : > { %18581 = vmatprep.mubr.msk.bf16.mxu0 %vm588_vm3, %v23243_v46 }
 0x416   : > { %18714 = vmatmul.mubr.msk.bf16.gmra.mrb[16].mxu1 %vm588_vm3, %v23247_v27 }
 0x417   : > { %18717 = vmatprep.mubr.msk.bf16.mxu1 %vm588_vm3, %v23251_v58 }
 0x41c   : > { %18582 = vmatmul.mubr.msk.bf16.gmra.mrb[52].mxu0 %vm588_vm3, %v23257_v43 }
 0x41d   : > { %18585 = vmatprep.mubr.msk.bf16.mxu0 %vm588_vm3, %v23259_v36 }
 0x41e   : > { %18718 = vmatmul.mubr.msk.bf16.gmra.mrb[20].mxu1 %vm588_vm3, %v23263_v45 }
 0x41f   : > { %18721 = vmatprep.mubr.msk.bf16.mxu1 %vm588_vm3, %v23267_v53 }
 0x424   : > { %18586 = vmatmul.mubr.msk.bf16.gmra.mrb[56].mxu0 %vm588_vm3, %v23273_v34 }
 0x425   : > { %18589 = vmatprep.mubr.msk.bf16.mxu0 %vm588_vm3, %v23275_v55 }
 0x426   : > { %18722 = vmatmul.mubr.msk.bf16.gmra.mrb[24].mxu1 %vm588_vm3, %v23279_v3 }
 0x427   : > { %18725 = vmatprep.mubr.msk.bf16.mxu1 %vm588_vm3, %v23283_v30 }
 0x42c   : > { %18590 = vmatmul.mubr.msk.bf16.gmra.mrb[60].mxu0 %vm588_vm3, %v23289_v15 }
 0x42d   : > { %18595 = vmatprep.mubr.msk.bf16.mxu0 %vm588_vm3, %v4621_v12  ;;  %v16571_v12 = vld [vmem:[%s25818_s10 + $0x10] sm:$0x3] }
 0x42e   : > { %18726 = vmatmul.mubr.msk.bf16.gmra.mrb[28].mxu1 %vm588_vm3, %v23293_v4 }
 0x42f   : > { %18731 = vmatprep.mubr.msk.bf16.mxu1 %vm588_vm3, %v23163_v22 }
 0x434   : > { %18596 = vmatmul.mubr.msk.bf16.vlgmr.msra.gmra.mrb[32].mxu0 %vm588_vm3, %v23152_v63  ;;  %v23360_v63 = vpack.c.bf16 %v5795_v42, %v5794_v48  ;;  %v6063_v48 = vld [vmem:[#allocation5 + $0x51] sm:$0xff] }
 0x435   : > { %18599 = vmatprep.mubr.msk.bf16.mxu0 %vm588_vm3, %v23172_v20  ;;  %18628 = vmatpush3.bf16.msra.mxu0 %v4982_v10  ;;  %v17220_v10 = vld [vmem:[%s23370_s28] sm:$0xff]  }
 0x436   : > { %18732 = vmatmul.mubr.msk.bf16.vlgmr.msra.gmra.mrb[0].mxu1 %vm588_vm3, %v23193_v11  ;;  %v17222_v42 = vunpack.c.h.bf16 %v17220_v10 }
 0x437   : > { %18764 = vmatpush3.bf16.msra.mxu1 %v6159_v19  ;;  %18735 = vmatprep.mubr.msk.bf16.mxu1 %vm588_vm3, %v23195_v61  ;;  %v17221_v19 = vunpack.c.l.bf16 %v17220_v10  ;;  %v17362_v10 = vld [vmem:[%s23370_s28 + $0x8] sm:$0xff]  }
 0x438   : > { %21171 = vmatprep.subr.msk.bf16.mxu1 %vm4212_vm6, %v16571_v12  ;;  %6796 = vst.msk [vmem:[#allocation3 + $0x21] sm:$0xff] %vm859_vm0, %v17222_v42  ;;  %v17226_v42 = vunpack.c.h.bf16 %v17362_v10 }
 0x439   : > { %6795 = vst.msk [vmem:[#allocation3 + $0x19] sm:$0xff] %vm859_vm0, %v17221_v19  ;;  %v17225_v19 = vunpack.c.l.bf16 %v17362_v10  ;;  %v17365_v10 = vld [vmem:[%s23370_s28 + $0x20] sm:$0xff]  }
 0x43a   : > { %6798 = vst.msk [vmem:[#allocation3 + $0x39] sm:$0xff] %vm859_vm0, %v17226_v42  ;;  %v17238_v42 = vunpack.c.h.bf16 %v17365_v10 }
 0x43b   : > { %6797 = vst.msk [vmem:[#allocation3 + $0x31] sm:$0xff] %vm859_vm0, %v17225_v19  ;;  %v17237_v19 = vunpack.c.l.bf16 %v17365_v10  ;;  %v17368_v10 = vld [vmem:[%s23370_s28 + $0x38] sm:$0xff]  }
 0x43c   : > { %18600 = vmatmul.mubr.msk.bf16.gmra.mrb[36].mxu0 %vm588_vm3, %v23178_v62  ;;  %6804 = vst.msk [vmem:[#allocation3 + $0x81] sm:$0xff] %vm859_vm0, %v17238_v42  ;;  %v17250_v42 = vunpack.c.h.bf16 %v17368_v10 }
 0x43d   : > { %18603 = vmatprep.mubr.msk.bf16.mxu0 %vm588_vm3, %v23199_v33  ;;  %6803 = vst.msk [vmem:[#allocation3 + $0x79] sm:$0xff] %vm859_vm0, %v17237_v19  ;;  %v17249_v19 = vunpack.c.l.bf16 %v17368_v10 }
 0x43e   : > { %18736 = vmatmul.mubr.msk.bf16.gmra.mrb[4].mxu1 %vm588_vm3, %v23209_v59  ;;  %6810 = vst.msk [vmem:[#allocation3 + $0xc9] sm:$0xff] %vm859_vm0, %v17250_v42 }
 0x43f   : > { %18739 = vmatprep.mubr.msk.bf16.mxu1 %vm588_vm3, %v23211_v35  ;;  %6809 = vst.msk [vmem:[#allocation3 + $0xc1] sm:$0xff] %vm859_vm0, %v17249_v19 }
 0x443   : > { %v6890_v10 = vld [vmem:[#allocation3 + $0x81] sm:$0xff] }
 0x444   : > { %18604 = vmatmul.mubr.msk.bf16.gmra.mrb[40].mxu0 %vm588_vm3, %v23203_v23  ;;  %v7384_v7 = vld [vmem:[#allocation3 + $0x7a] sm:$0xff]  ;;  %v7385_v25 = vld [vmem:[#allocation3 + $0x82] sm:$0xff] }
 0x445   : > { %18607 = vmatprep.mubr.msk.bf16.mxu0 %vm588_vm3, %v23215_v52 }
 0x446   : > { %18740 = vmatmul.mubr.msk.bf16.gmra.mrb[8].mxu1 %vm588_vm3, %v23225_v9 }
 0x447   : > { %18743 = vmatprep.mubr.msk.bf16.mxu1 %vm588_vm3, %v23227_v16 }
 0x44c   : > { %18608 = vmatmul.mubr.msk.bf16.gmra.mrb[44].mxu0 %vm588_vm3, %v23219_v18 }
 0x44d   : > { %18611 = vmatprep.mubr.msk.bf16.mxu0 %vm588_vm3, %v23231_v32 }
 0x44e   : > { %18744 = vmatmul.mubr.msk.bf16.gmra.mrb[12].mxu1 %vm588_vm3, %v23241_v47 }
 0x44f   : > { %18747 = vmatprep.mubr.msk.bf16.mxu1 %vm588_vm3, %v23243_v46 }
 0x454   : > { %18612 = vmatmul.mubr.msk.bf16.gmra.mrb[48].mxu0 %vm588_vm3, %v23235_v6 }
 0x455   : > { %18615 = vmatprep.mubr.msk.bf16.mxu0 %vm588_vm3, %v23247_v27 }
 0x456   : > { %18748 = vmatmul.mubr.msk.bf16.gmra.mrb[16].mxu1 %vm588_vm3, %v23257_v43 }
 0x457   : > { %18751 = vmatprep.mubr.msk.bf16.mxu1 %vm588_vm3, %v23259_v36 }
 0x45c   : > { %18616 = vmatmul.mubr.msk.bf16.gmra.mrb[52].mxu0 %vm588_vm3, %v23251_v58 }
 0x45d   : > { %18619 = vmatprep.mubr.msk.bf16.mxu0 %vm588_vm3, %v23263_v45 }
 0x45e   : > { %18752 = vmatmul.mubr.msk.bf16.gmra.mrb[20].mxu1 %vm588_vm3, %v23273_v34 }
 0x45f   : > { %18755 = vmatprep.mubr.msk.bf16.mxu1 %vm588_vm3, %v23275_v55 }
 0x464   : > { %18620 = vmatmul.mubr.msk.bf16.gmra.mrb[56].mxu0 %vm588_vm3, %v23267_v53 }
 0x465   : > { %18623 = vmatprep.mubr.msk.bf16.mxu0 %vm588_vm3, %v23279_v3 }
 0x466   : > { %18756 = vmatmul.mubr.msk.bf16.gmra.mrb[24].mxu1 %vm588_vm3, %v23289_v15 }
 0x467   : > { %18759 = vmatprep.mubr.msk.bf16.mxu1 %vm588_vm3, %v23360_v63 }
 0x46c   : > { %18624 = vmatmul.mubr.msk.bf16.gmra.mrb[60].mxu0 %vm588_vm3, %v23283_v30 }
 0x46d   : > { %18629 = vmatprep.mubr.msk.bf16.mxu0 %vm588_vm3, %v23159_v37  ;;  %v6093_v37 = vpack.c.bf16 %v6063_v48, %v6062_v51  ;;  %v6069_v48 = vld [vmem:[#allocation5 + $0x99] sm:$0xff] }
 0x46e   : > { %18760 = vmatmul.mubr.msk.bf16.gmra.mrb[28].mxu1 %vm588_vm3, %v5813_v2  ;;  %v6453_v2 = vsel %vm4212_vm6, %v16571_v12, 0  ;;  %v17230_v12 = vunpack.c.h.bf16 %v17363_v54 }
 0x46f   : > { %18765 = vmatprep.mubr.msk.bf16.mxu1 %vm588_vm3, %v6092_v24  ;;  %v6094_v24 = vpack.c.bf16 %v6065_v49, %v6064_v14  ;;  %v6066_v49 = vld [vmem:[#allocation5 + $0x79] sm:$0xff] }
 0x470   : > { %6800 = vst.msk [vmem:[#allocation3 + $0x51] sm:$0xff] %vm859_vm0, %v17230_v12 }
 0x474   : > { %18630 = vmatmul.mubr.msk.bf16.vlgmr.msra.gmra.mrb[32].mxu0 %vm588_vm3, %v23163_v22  ;;  %v17229_v22 = vunpack.c.l.bf16 %v17363_v54 }
 0x475   : > { %18633 = vmatprep.mubr.msk.bf16.mxu0 %vm588_vm3, %v23193_v11  ;;  %v6067_v11 = vld [vmem:[#allocation5 + $0x81] sm:$0xff] }
 0x476   : > { %18766 = vmatmul.mubr.msk.bf16.vlgmr.msra.gmra.mrb[0].mxu1 %vm588_vm3, %v6093_v37  ;;  %6799 = vst.msk [vmem:[#allocation3 + $0x49] sm:$0xff] %vm859_vm0, %v17229_v22  ;;  %v6095_v51 = vpack.c.bf16 %v6067_v11, %v6066_v49  ;;  %v6068_v37 = vld [vmem:[#allocation5 + $0x91] sm:$0xff]  ;;  %v6070_v22 = vld [vmem:[#allocation5 + $0xa9] sm:$0xff]  ;;  %v6072_v11 = vld [vmem:[#allocation5 + $0xc1] sm:$0xff] }
 0x477   : > { %18798 = vmatpush3.bf16.msra.mxu1 %v6453_v2  ;;  %18769 = vmatprep.mubr.msk.bf16.mxu1 %vm588_vm3, %v6094_v24  ;;  %v6096_v54 = vpack.c.bf16 %v6069_v48, %v6068_v37  ;;  %v17364_v2 = vld [vmem:[%s23370_s28 + $0x18] sm:$0xff]   ;;  %v17366_v49 = vld [vmem:[%s23370_s28 + $0x28] sm:$0xff]  }
 0x478   : > { %18831 = vmatprep.subr.bf16.mxu1 %v23387_v50  ;;  %v17233_v14 = vunpack.c.l.bf16 %v17364_v2  ;;  %v17234_v24 = vunpack.c.h.bf16 %v17364_v2  ;;  %v17242_v37 = vunpack.c.h.bf16 %v17366_v49  ;;  %v7381_v38 = vld [vmem:[#allocation3 + $0x52] sm:$0xff] }
 0x47a   : > { %6801 = vst.msk [vmem:[#allocation3 + $0x61] sm:$0xff] %vm859_vm0, %v17233_v14  ;;  %6802 = vst.msk [vmem:[#allocation3 + $0x69] sm:$0xff] %vm859_vm0, %v17234_v24 }
 0x47b   : > { %6806 = vst.msk [vmem:[#allocation3 + $0x99] sm:$0xff] %vm859_vm0, %v17242_v37  ;;  %v6090_v37 = vld [vmem:[#allocation5 + $0x199] sm:$0xff] }
 0x47c   : > { %18634 = vmatmul.mubr.msk.bf16.gmra.mrb[36].mxu0 %vm588_vm3, %v23195_v61  ;;  %v6071_v61 = vld [vmem:[#allocation5 + $0xb1] sm:$0xff] }
 0x47d   : > { %18637 = vmatprep.mubr.msk.bf16.mxu0 %vm588_vm3, %v23209_v59  ;;  %v6073_v59 = vld [vmem:[#allocation5 + $0xc9] sm:$0xff]  ;;  %v6097_v12 = vpack.c.bf16 %v6071_v61, %v6070_v22 }
 0x47e   : > { %18770 = vmatmul.mubr.msk.bf16.gmra.mrb[4].mxu1 %vm588_vm3, %v6095_v51  ;;  %v6098_v48 = vpack.c.bf16 %v6073_v59, %v6072_v11  ;;  %v17241_v51 = vunpack.c.l.bf16 %v17366_v49  ;;  %v17369_v61 = vld [vmem:[%s23370_s28 + $0x40] sm:$0xff]  }
 0x47f   : > { %18773 = vmatprep.mubr.msk.bf16.mxu1 %vm588_vm3, %v6096_v54  ;;  %v17367_v54 = vld [vmem:[%s23370_s28 + $0x30] sm:$0xff]   ;;  %v17253_v59 = vunpack.c.l.bf16 %v17369_v61  ;;  %v17254_v22 = vunpack.c.h.bf16 %v17369_v61  ;;  %v7380_v40 = vld [vmem:[#allocation3 + $0x4a] sm:$0xff] }
 0x480   : > { %v17245_v2 = vunpack.c.l.bf16 %v17367_v54  ;;  %v17246_v14 = vunpack.c.h.bf16 %v17367_v54  ;;  %6805 = vst.msk [vmem:[#allocation3 + $0x91] sm:$0xff] %vm859_vm0, %v17241_v51  ;;  %v6091_v54 = vld [vmem:[#allocation5 + $0x1a1] sm:$0xff] }
 0x481   : > { %6811 = vst.msk [vmem:[#allocation3 + $0xd9] sm:$0xff] %vm859_vm0, %v17253_v59  ;;  %6812 = vst.msk [vmem:[#allocation3 + $0xe1] sm:$0xff] %vm859_vm0, %v17254_v22 }
 0x482   : > { %6807 = vst.msk [vmem:[#allocation3 + $0xa9] sm:$0xff] %vm859_vm0, %v17245_v2  ;;  %6808 = vst.msk [vmem:[#allocation3 + $0xb1] sm:$0xff] %vm859_vm0, %v17246_v14  ;;  %v6892_v42 = vld [vmem:[#allocation3 + $0x99] sm:$0xff] }
 0x483   : > { %v7387_v5 = vld [vmem:[#allocation3 + $0x9a] sm:$0xff] }
 0x484   : > { %18638 = vmatmul.mubr.msk.bf16.gmra.mrb[40].mxu0 %vm588_vm3, %v23211_v35  ;;  %v6075_v35 = vld [vmem:[#allocation5 + $0xe1] sm:$0xff] }
 0x485   : > { %18641 = vmatprep.mubr.msk.bf16.mxu0 %vm588_vm3, %v23225_v9  ;;  %v6074_v9 = vld [vmem:[#allocation5 + $0xd9] sm:$0xff] }
 0x486   : > { %18774 = vmatmul.mubr.msk.bf16.gmra.mrb[8].mxu1 %vm588_vm3, %v6097_v12  ;;  %v6099_v24 = vpack.c.bf16 %v6075_v35, %v6074_v9  ;;  %v17371_v12 = vld [vmem:[%s23370_s28 + $0x50] sm:$0xff]  }
 0x487   : > { %18777 = vmatprep.mubr.msk.bf16.mxu1 %vm588_vm3, %v6098_v48  ;;  %v17261_v11 = vunpack.c.l.bf16 %v17371_v12  ;;  %v17262_v48 = vunpack.c.h.bf16 %v17371_v12  ;;  %v6891_v19 = vld [vmem:[#allocation3 + $0x91] sm:$0xff] }
 0x488   : > { %v6917_v59 = vpack.c.bf16 %v6892_v42, %v6891_v19  ;;  %v6839_v19 = vld [vmem:[#allocation3 + $0x90] sm:$0xff]  ;;  %v6840_v42 = vld [vmem:[#allocation3 + $0x98] sm:$0xff] }
 0x489   : > { %6815 = vst.msk [vmem:[#allocation3 + $0x109] sm:$0xff] %vm859_vm0, %v17261_v11  ;;  %6816 = vst.msk [vmem:[#allocation3 + $0x111] sm:$0xff] %vm859_vm0, %v17262_v48  ;;  %v6893_v22 = vld [vmem:[#allocation3 + $0xa9] sm:$0xff]  ;;  %v6897_v48 = vld [vmem:[#allocation3 + $0xd9] sm:$0xff] }
 0x48c   : > { %18642 = vmatmul.mubr.msk.bf16.gmra.mrb[44].mxu0 %vm588_vm3, %v23227_v16 }
 0x48d   : > { %18645 = vmatprep.mubr.msk.bf16.mxu0 %vm588_vm3, %v23241_v47  ;;  %v17370_v47 = vld [vmem:[%s23370_s28 + $0x48] sm:$0xff]  }
 0x48e   : > { %18778 = vmatmul.mubr.msk.bf16.gmra.mrb[12].mxu1 %vm588_vm3, %v6099_v24  ;;  %v17258_v16 = vunpack.c.h.bf16 %v17370_v47  ;;  %v6889_v24 = vld [vmem:[#allocation3 + $0x79] sm:$0xff] }
 0x48f   : > { %18781 = vmatprep.mubr.msk.bf16.mxu1 %vm588_vm3, %v23086_v41  ;;  %v17257_v41 = vunpack.c.l.bf16 %v17370_v47  ;;  %v6916_v61 = vpack.c.bf16 %v6890_v10, %v6889_v24  ;;  %v6894_v47 = vld [vmem:[#allocation3 + $0xb1] sm:$0xff]  ;;  %v6838_v10 = vld [vmem:[#allocation3 + $0x80] sm:$0xff] }
 0x490   : > { %6814 = vst.msk [vmem:[#allocation3 + $0xf9] sm:$0xff] %vm859_vm0, %v17258_v16  ;;  %v6896_v16 = vld [vmem:[#allocation3 + $0xc9] sm:$0xff]  ;;  %v6918_v12 = vpack.c.bf16 %v6894_v47, %v6893_v22 }
 0x491   : > { %6813 = vst.msk [vmem:[#allocation3 + $0xf1] sm:$0xff] %vm859_vm0, %v17257_v41  ;;  %v6895_v41 = vld [vmem:[#allocation3 + $0xc1] sm:$0xff] }
 0x492   : > { %v6919_v11 = vpack.c.bf16 %v6896_v16, %v6895_v41  ;;  %v6841_v47 = vld [vmem:[#allocation3 + $0xa8] sm:$0xff]  ;;  %v6842_v41 = vld [vmem:[#allocation3 + $0xb0] sm:$0xff] }
 0x494   : > { %18646 = vmatmul.mubr.msk.bf16.gmra.mrb[48].mxu0 %vm588_vm3, %v23243_v46 }
 0x495   : > { %18649 = vmatprep.mubr.msk.bf16.mxu0 %vm588_vm3, %v23257_v43  ;;  %v17372_v43 = vld [vmem:[%s23370_s28 + $0x58] sm:$0xff]  }
 0x496   : > { %18782 = vmatmul.mubr.msk.bf16.gmra.mrb[16].mxu1 %vm588_vm3, %v23106_v29  ;;  %v17265_v46 = vunpack.c.l.bf16 %v17372_v43  ;;  %v17266_v29 = vunpack.c.h.bf16 %v17372_v43  ;;  %v6898_v43 = vld [vmem:[#allocation3 + $0xe1] sm:$0xff] }
 0x497   : > { %18785 = vmatprep.mubr.msk.bf16.mxu1 %vm588_vm3, %v23122_v28  ;;  %v17373_v28 = vld [vmem:[%s23370_s28 + $0x60] sm:$0xff]  }
 0x498   : > { %v17269_v49 = vunpack.c.l.bf16 %v17373_v28  ;;  %v17270_v51 = vunpack.c.h.bf16 %v17373_v28  ;;  %6817 = vst.msk [vmem:[#allocation3 + $0x121] sm:$0xff] %vm859_vm0, %v17265_v46  ;;  %6818 = vst.msk [vmem:[#allocation3 + $0x129] sm:$0xff] %vm859_vm0, %v17266_v29  ;;  %v6899_v46 = vld [vmem:[#allocation3 + $0xf1] sm:$0xff]  ;;  %v6900_v29 = vld [vmem:[#allocation3 + $0xf9] sm:$0xff]  ;;  %v6920_v28 = vpack.c.bf16 %v6898_v43, %v6897_v48 }
 0x49a   : > { %6819 = vst.msk [vmem:[#allocation3 + $0x139] sm:$0xff] %vm859_vm0, %v17269_v49  ;;  %6820 = vst.msk [vmem:[#allocation3 + $0x141] sm:$0xff] %vm859_vm0, %v17270_v51  ;;  %v6921_v49 = vpack.c.bf16 %v6900_v29, %v6899_v46  ;;  %v6901_v51 = vld [vmem:[#allocation3 + $0x109] sm:$0xff]  ;;  %v23588_v46 = vpack.c.bf16 %v6842_v41, %v6841_v47 }
 0x49b   : > { %v7374_v41 = vld [vmem:[#allocation3 + $0x2] sm:$0xff] }
 0x49c   : > { %18650 = vmatmul.mubr.msk.bf16.gmra.mrb[52].mxu0 %vm588_vm3, %v23259_v36 }
 0x49d   : > { %18653 = vmatprep.mubr.msk.bf16.mxu0 %vm588_vm3, %v23273_v34  ;;  %v17374_v34 = vld [vmem:[%s23370_s28 + $0x68] sm:$0xff]  }
 0x49e   : > { %18786 = vmatmul.mubr.msk.bf16.gmra.mrb[20].mxu1 %vm588_vm3, %v23130_v56  ;;  %v17273_v36 = vunpack.c.l.bf16 %v17374_v34  ;;  %v17274_v56 = vunpack.c.h.bf16 %v17374_v34  ;;  %v6902_v34 = vld [vmem:[#allocation3 + $0x111] sm:$0xff] }
 0x49f   : > { %18789 = vmatprep.mubr.msk.bf16.mxu1 %vm588_vm3, %v23138_v1  ;;  %v17375_v1 = vld [vmem:[%s23370_s28 + $0x70] sm:$0xff]  }
 0x4a0   : > { %v17277_v2 = vunpack.c.l.bf16 %v17375_v1  ;;  %v17278_v14 = vunpack.c.h.bf16 %v17375_v1  ;;  %6821 = vst.msk [vmem:[#allocation3 + $0x151] sm:$0xff] %vm859_vm0, %v17273_v36  ;;  %6822 = vst.msk [vmem:[#allocation3 + $0x159] sm:$0xff] %vm859_vm0, %v17274_v56  ;;  %v6903_v36 = vld [vmem:[#allocation3 + $0x121] sm:$0xff]  ;;  %v6904_v56 = vld [vmem:[#allocation3 + $0x129] sm:$0xff]  ;;  %v6922_v1 = vpack.c.bf16 %v6902_v34, %v6901_v51 }
 0x4a1   : > { %v6846_v51 = vld [vmem:[#allocation3 + $0xe0] sm:$0xff] }
 0x4a2   : > { %6823 = vst.msk [vmem:[#allocation3 + $0x169] sm:$0xff] %vm859_vm0, %v17277_v2  ;;  %6824 = vst.msk [vmem:[#allocation3 + $0x171] sm:$0xff] %vm859_vm0, %v17278_v14  ;;  %v6906_v2 = vld [vmem:[#allocation3 + $0x141] sm:$0xff] }
 0x4a4   : > { %18654 = vmatmul.mubr.msk.bf16.gmra.mrb[56].mxu0 %vm588_vm3, %v23275_v55  ;;  %v6107_v55 = vpack.c.bf16 %v6091_v54, %v6090_v37  ;;  %v6923_v37 = vpack.c.bf16 %v6904_v56, %v6903_v36  ;;  %v6905_v54 = vld [vmem:[#allocation3 + $0x139] sm:$0xff]  ;;  %v6847_v36 = vld [vmem:[#allocation3 + $0xf0] sm:$0xff] }
 0x4a5   : > { %18657 = vmatprep.mubr.msk.bf16.mxu0 %vm588_vm3, %v23289_v15  ;;  %v6886_v15 = vld [vmem:[#allocation3 + $0x51] sm:$0xff] }
 0x4a6   : > { %18790 = vmatmul.mubr.msk.bf16.gmra.mrb[24].mxu1 %vm588_vm3, %v23144_v17  ;;  %v21211_v17 = vld [vmem:[%s25814_s6 + $0x18] sm:$0xff]   ;;  %v6848_v56 = vld [vmem:[#allocation3 + $0xf8] sm:$0xff] }
 0x4a7   : > { %18793 = vmatprep.mubr.msk.bf16.mxu1 %vm588_vm3, %v23150_v31  ;;  %v21212_v31 = vld [vmem:[%s25814_s6] sm:$0xff]  }
 0x4a8   : > { %v6907_v14 = vld [vmem:[#allocation3 + $0x151] sm:$0xff] }
 0x4ac   : > { %18658 = vmatmul.mubr.msk.bf16.gmra.mrb[60].mxu0 %vm588_vm3, %v23360_v63  ;;  %v6888_v63 = vld [vmem:[#allocation3 + $0x69] sm:$0xff] }
 0x4ae   : > { %18794 = vmatmul.mubr.msk.bf16.gmra.mrb[28].mxu1 %vm588_vm3, %v6107_v55  ;;  %v6908_v55 = vld [vmem:[#allocation3 + $0x159] sm:$0xff] }
 0x4af   : > { %18799 = vmatprep.mubr.msk.bf16.mxu1 %vm588_vm3, %v23172_v20  ;;  %v6384_v20 = vld [vmem:[#allocation5 + $0x19a] sm:$0xff] }
 0x4b6   : > { %18800 = vmatmul.mubr.msk.bf16.vlgmr.msra.gmra.mrb[0].mxu1 %vm588_vm3, %v23178_v62  ;;  %v6385_v62 = vld [vmem:[#allocation5 + $0x1a2] sm:$0xff] }
 0x4b7   : > { %18832 = vmatpush3.bf16.msra.mxu1 %v23387_v50  ;;  %18803 = vmatprep.mubr.msk.bf16.mxu1 %vm588_vm3, %v23199_v33  ;;  %v6879_v33 = vld [vmem:[#allocation3 + $0x1] sm:$0xff]  ;;  %v23529_v50 = vld [vmem:[%s25814_s6 + $0x20] sm:$0xff]  }
 0x4b8   : > { %18833 = vmatprep.subr.bf16.mxu1 %v21211_v17 }
 0x4bb   : > { %18834 = vmatpush3.bf16.msra.mxu1 %v21211_v17  ;;  %v6924_v17 = vpack.c.bf16 %v6906_v2, %v6905_v54  ;;  %v23606_v2 = vpack.c.bf16 %v6848_v56, %v6847_v36 }
 0x4bc   : > { %18867 = vmatprep.subr.bf16.mxu1 %v21212_v31 }
 0x4be   : > { %18804 = vmatmul.mubr.msk.bf16.gmra.mrb[4].mxu1 %vm588_vm3, %v23203_v23  ;;  %v6880_v23 = vld [vmem:[#allocation3 + $0x9] sm:$0xff] }
 0x4bf   : > { %18807 = vmatprep.mubr.msk.bf16.mxu1 %vm588_vm3, %v23215_v52  ;;  %v6401_v52 = vpack.c.bf16 %v6385_v62, %v6384_v20  ;;  %v6909_v20 = vld [vmem:[#allocation3 + $0x169] sm:$0xff]  ;;  %v6910_v62 = vld [vmem:[#allocation3 + $0x171] sm:$0xff] }
 0x4c6   : > { %18808 = vmatmul.mubr.msk.bf16.gmra.mrb[8].mxu1 %vm588_vm3, %v23219_v18  ;;  %v6911_v18 = vpack.c.bf16 %v6880_v23, %v6879_v33  ;;  %v6827_v33 = vld [vmem:[#allocation3] sm:$0xff]  ;;  %v6828_v23 = vld [vmem:[#allocation3 + $0x8] sm:$0xff] }
 0x4c7   : > { %18811 = vmatprep.mubr.msk.bf16.mxu1 %vm588_vm3, %v23231_v32  ;;  %v6881_v32 = vld [vmem:[#allocation3 + $0x19] sm:$0xff] }
 0x4ce   : > { %18812 = vmatmul.mubr.msk.bf16.gmra.mrb[12].mxu1 %vm588_vm3, %v23235_v6  ;;  %v6882_v6 = vld [vmem:[#allocation3 + $0x21] sm:$0xff] }
 0x4cf   : > { %18815 = vmatprep.mubr.msk.bf16.mxu1 %vm588_vm3, %v23247_v27  ;;  %v6883_v27 = vld [vmem:[#allocation3 + $0x31] sm:$0xff] }
 0x4d6   : > { %18816 = vmatmul.mubr.msk.bf16.gmra.mrb[16].mxu1 %vm588_vm3, %v23251_v58  ;;  %v6884_v58 = vld [vmem:[#allocation3 + $0x39] sm:$0xff] }
 0x4d7   : > { %18819 = vmatprep.mubr.msk.bf16.mxu1 %vm588_vm3, %v23263_v45  ;;  %v6912_v45 = vpack.c.bf16 %v6882_v6, %v6881_v32  ;;  %v6829_v32 = vld [vmem:[#allocation3 + $0x18] sm:$0xff]  ;;  %v6830_v6 = vld [vmem:[#allocation3 + $0x20] sm:$0xff] }
 0x4de   : > { %18820 = vmatmul.mubr.msk.bf16.gmra.mrb[20].mxu1 %vm588_vm3, %v23267_v53  ;;  %v6913_v53 = vpack.c.bf16 %v6884_v58, %v6883_v27  ;;  %v6831_v27 = vld [vmem:[#allocation3 + $0x30] sm:$0xff]  ;;  %v6832_v58 = vld [vmem:[#allocation3 + $0x38] sm:$0xff] }
 0x4df   : > { %18823 = vmatprep.mubr.msk.bf16.mxu1 %vm588_vm3, %v23279_v3  ;;  %v21213_v3 = vld [vmem:[%s25814_s6 + $0x8] sm:$0xff]  }
 0x4e6   : > { %18824 = vmatmul.mubr.msk.bf16.gmra.mrb[24].mxu1 %vm588_vm3, %v23283_v30  ;;  %v6885_v30 = vld [vmem:[#allocation3 + $0x49] sm:$0xff] }
 0x4e7   : > { %18827 = vmatprep.mubr.msk.bf16.mxu1 %vm588_vm3, %v23293_v4  ;;  %v6887_v4 = vld [vmem:[#allocation3 + $0x61] sm:$0xff]  ;;  %v6914_v35 = vpack.c.bf16 %v6886_v15, %v6885_v30  ;;  %v6834_v15 = vld [vmem:[#allocation3 + $0x50] sm:$0xff] }
 0x4e8   : > { %v6915_v9 = vpack.c.bf16 %v6888_v63, %v6887_v4  ;;  %v6833_v30 = vld [vmem:[#allocation3 + $0x48] sm:$0xff]  ;;  %v6835_v4 = vld [vmem:[#allocation3 + $0x60] sm:$0xff] }
 0x4e9   : > { %v6836_v63 = vld [vmem:[#allocation3 + $0x68] sm:$0xff] }
 0x4ea   : > { %v23565_v24 = vpack.c.bf16 %v6836_v63, %v6835_v4 }
 0x4ee   : > { %18828 = vmatmul.mubr.msk.bf16.gmra.mrb[28].mxu1 %vm588_vm3, %v6401_v52  ;;  %v6926_v52 = vpack.c.bf16 %v6910_v62, %v6909_v20  ;;  %v6851_v20 = vld [vmem:[#allocation3 + $0x120] sm:$0xff]  ;;  %v6852_v62 = vld [vmem:[#allocation3 + $0x128] sm:$0xff] }
 0x4ef   : > { %18835 = vmatprep.mubr.msk.bf16.mxu1 %vm859_vm0, %v6911_v18  ;;  %v6859_v18 = vpack.c.bf16 %v6828_v23, %v6827_v33 }
 0x4f6   : > { %18836 = vmatmul.mubr.msk.bf16.vlgmr.msra.gmra.mrb[32].mxu1 %vm859_vm0, %v6912_v45  ;;  %v23546_v45 = vpack.c.bf16 %v6830_v6, %v6829_v32  ;;  %v6853_v6 = vld [vmem:[#allocation3 + $0x138] sm:$0xff] }
 0x4f7   : > { %18868 = vmatpush3.bf16.msra.mxu1 %v21212_v31  ;;  %18839 = vmatprep.mubr.msk.bf16.mxu1 %vm859_vm0, %v6913_v53  ;;  %v6925_v31 = vpack.c.bf16 %v6908_v55, %v6907_v14  ;;  %v23548_v53 = vpack.c.bf16 %v6832_v58, %v6831_v27  ;;  %v6849_v55 = vld [vmem:[#allocation3 + $0x108] sm:$0xff]  ;;  %v6854_v27 = vld [vmem:[#allocation3 + $0x140] sm:$0xff] }
 0x4f8   : > { %18869 = vmatprep.subr.bf16.mxu1 %v21213_v3  ;;  %v23636_v63 = vpack.c.bf16 %v6854_v27, %v6853_v6  ;;  %v7379_v6 = vld [vmem:[#allocation3 + $0x3a] sm:$0xff] }
 0x4fb   : > { %18870 = vmatpush3.bf16.msra.mxu1 %v21213_v3  ;;  %v21215_v3 = vld [vmem:[%s25814_s6 + $0x28] sm:$0xff]  }
 0x4fc   : > { %18903 = vmatprep.subr.bf16.mxu1 %v23529_v50 }
 0x4fe   : > { %18840 = vmatmul.mubr.msk.bf16.gmra.mrb[36].mxu1 %vm859_vm0, %v6914_v35  ;;  %v23561_v35 = vld [vmem:[%s25814_s6 + $0x30] sm:$0xff]  }
 0x4ff   : > { %18843 = vmatprep.mubr.msk.bf16.mxu1 %vm859_vm0, %v6915_v9  ;;  %v23563_v9 = vpack.c.bf16 %v6834_v15, %v6833_v30  ;;  %v6856_v30 = vld [vmem:[#allocation3 + $0x158] sm:$0xff] }
 0x506   : > { %18844 = vmatmul.mubr.msk.bf16.gmra.mrb[40].mxu1 %vm859_vm0, %v6916_v61 }
 0x507   : > { %18847 = vmatprep.mubr.msk.bf16.mxu1 %vm859_vm0, %v6917_v59  ;;  %v23574_v59 = vpack.c.bf16 %v6840_v42, %v6839_v19  ;;  %v6857_v19 = vld [vmem:[#allocation3 + $0x168] sm:$0xff]  ;;  %v6858_v42 = vld [vmem:[#allocation3 + $0x170] sm:$0xff] }
 0x50e   : > { %18848 = vmatmul.mubr.msk.bf16.gmra.mrb[44].mxu1 %vm859_vm0, %v6918_v12  ;;  %v6843_v12 = vld [vmem:[#allocation3 + $0xc0] sm:$0xff] }
 0x50f   : > { %18851 = vmatprep.mubr.msk.bf16.mxu1 %vm859_vm0, %v6919_v11  ;;  %v6844_v11 = vld [vmem:[#allocation3 + $0xc8] sm:$0xff] }
 0x510   : > { %v23590_v29 = vpack.c.bf16 %v6844_v11, %v6843_v12  ;;  %v7375_v12 = vld [vmem:[#allocation3 + $0xa] sm:$0xff] }
 0x511   : > { %v7406_v36 = vpack.c.bf16 %v7375_v12, %v7374_v41  ;;  %v17376_v41 = vld [vmem:[%s23370_s28 + $0x78] sm:$0xff]  }
 0x512   : > { %v17281_v12 = vunpack.c.l.bf16 %v17376_v41 }
 0x514   : > { %6825 = vst.msk [vmem:[#allocation3 + $0x181] sm:$0xff] %vm859_vm0, %v17281_v12 }
 0x516   : > { %18852 = vmatmul.mubr.msk.bf16.gmra.mrb[48].mxu1 %vm859_vm0, %v6920_v28 }
 0x517   : > { %18855 = vmatprep.mubr.msk.bf16.mxu1 %vm859_vm0, %v6921_v49  ;;  %v6845_v49 = vld [vmem:[#allocation3 + $0xd8] sm:$0xff] }
 0x518   : > { %v23604_v54 = vpack.c.bf16 %v6846_v51, %v6845_v49  ;;  %v23652_v51 = vpack.c.bf16 %v6858_v42, %v6857_v19  ;;  %v21217_v42 = vld [vmem:[%s25814_s6 + $0x38] sm:$0xff]  }
 0x51a   : > { %25971 = vst [vmem:[#allocation18_spill] sm:$0xff] %v23652_v51 }
 0x51e   : > { %18856 = vmatmul.mubr.msk.bf16.gmra.mrb[52].mxu1 %vm859_vm0, %v6922_v1 }
 0x51f   : > { %18859 = vmatprep.mubr.msk.bf16.mxu1 %vm859_vm0, %v6923_v37 }
 0x526   : > { %18860 = vmatmul.mubr.msk.bf16.gmra.mrb[56].mxu1 %vm859_vm0, %v6924_v17  ;;  %v6850_v17 = vld [vmem:[#allocation3 + $0x110] sm:$0xff] }
 0x527   : > { %18863 = vmatprep.mubr.msk.bf16.mxu1 %vm859_vm0, %v6925_v31 }
 0x52e   : > { %18864 = vmatmul.mubr.msk.bf16.gmra.mrb[60].mxu1 %vm859_vm0, %v6926_v52  ;;  %v23620_v52 = vpack.c.bf16 %v6850_v17, %v6849_v55  ;;  %v7376_v55 = vld [vmem:[#allocation3 + $0x1a] sm:$0xff]  ;;  %v7377_v17 = vld [vmem:[#allocation3 + $0x22] sm:$0xff] }
 0x52f   : > { %18871 = vmatprep.mubr.msk.bf16.mxu1 %vm859_vm0, %v6859_v18  ;;  %v23622_v18 = vpack.c.bf16 %v6852_v62, %v6851_v20  ;;  %v7378_v62 = vld [vmem:[#allocation3 + $0x32] sm:$0xff] }
 0x530   : > { %v7408_v19 = vpack.c.bf16 %v7379_v6, %v7378_v62  ;;  %v23679_v62 = vld [vmem:[%s25814_s6 + $0x40] sm:$0xff]  }
 0x536   : > { %18872 = vmatmul.mubr.msk.bf16.vlgmr.msra.gmra.mrb[32].mxu1 %vm859_vm0, %v23546_v45 }
 0x537   : > { %18904 = vmatpush3.bf16.msra.mxu1 %v23529_v50  ;;  %18875 = vmatprep.mubr.msk.bf16.mxu1 %vm859_vm0, %v23548_v53  ;;  %v6837_v50 = vld [vmem:[#allocation3 + $0x78] sm:$0xff] }
 0x538   : > { %18905 = vmatprep.subr.bf16.mxu1 %v21215_v3  ;;  %v23572_v61 = vpack.c.bf16 %v6838_v10, %v6837_v50 }
 0x53b   : > { %18906 = vmatpush3.bf16.msra.mxu1 %v21215_v3  ;;  %v6855_v3 = vld [vmem:[#allocation3 + $0x150] sm:$0xff] }
 0x53c   : > { %18939 = vmatprep.subr.bf16.mxu1 %v23561_v35  ;;  %v23638_v50 = vpack.c.bf16 %v6856_v30, %v6855_v3  ;;  %v7407_v30 = vpack.c.bf16 %v7377_v17, %v7376_v55  ;;  %v7382_v55 = vld [vmem:[#allocation3 + $0x62] sm:$0xff]  ;;  %v7383_v17 = vld [vmem:[#allocation3 + $0x6a] sm:$0xff] }
 0x53e   : > { %18876 = vmatmul.mubr.msk.bf16.gmra.mrb[36].mxu1 %vm859_vm0, %v23563_v9  ;;  %25970 = vst [vmem:[#allocation15_spill] sm:$0xff] %v23638_v50 }
 0x53f   : > { %18879 = vmatprep.mubr.msk.bf16.mxu1 %vm859_vm0, %v23565_v24 }
 0x546   : > { %18880 = vmatmul.mubr.msk.bf16.gmra.mrb[40].mxu1 %vm859_vm0, %v23572_v61 }
 0x547   : > { %v23578_v22 = vpop.f32.mrb[32].mxu0  ;;  %18883 = vmatprep.mubr.msk.bf16.mxu1 %vm859_vm0, %v23574_v59 }
 0x548   : > { %v23582_v16 = vpop.f32.mrb[33].mxu0 }
 0x549   : > { %v23584_v48 = vpop.f32.mrb[34].mxu0 }
 0x54a   : > { %v23586_v43 = vpop.f32.mrb[35].mxu0 }
 0x54e   : > { %18884 = vmatmul.mubr.msk.bf16.gmra.mrb[44].mxu1 %vm859_vm0, %v23588_v46 }
 0x54f   : > { %v23594_v28 = vpop.f32.mrb[36].mxu0  ;;  %18887 = vmatprep.mubr.msk.bf16.mxu1 %vm859_vm0, %v23590_v29 }
 0x550   : > { %v23598_v34 = vpop.f32.mrb[37].mxu0 }
 0x551   : > { %v23600_v1 = vpop.f32.mrb[38].mxu0 }
 0x552   : > { %v23602_v37 = vpop.f32.mrb[39].mxu0 }
 0x556   : > { %18888 = vmatmul.mubr.msk.bf16.gmra.mrb[48].mxu1 %vm859_vm0, %v23604_v54 }
 0x557   : > { %v23610_v14 = vpop.f32.mrb[40].mxu0  ;;  %18891 = vmatprep.mubr.msk.bf16.mxu1 %vm859_vm0, %v23606_v2 }
 0x558   : > { %v23614_v31 = vpop.f32.mrb[41].mxu0 }
 0x559   : > { %v23616_v33 = vpop.f32.mrb[42].mxu0 }
 0x55a   : > { %v23618_v23 = vpop.f32.mrb[43].mxu0 }
 0x55e   : > { %18892 = vmatmul.mubr.msk.bf16.gmra.mrb[52].mxu1 %vm859_vm0, %v23620_v52 }
 0x55f   : > { %v23626_v32 = vpop.f32.mrb[44].mxu0  ;;  %18895 = vmatprep.mubr.msk.bf16.mxu1 %vm859_vm0, %v23622_v18 }
 0x560   : > { %v23630_v58 = vpop.f32.mrb[45].mxu0 }
 0x561   : > { %v23632_v15 = vpop.f32.mrb[46].mxu0 }
 0x562   : > { %v23634_v4 = vpop.f32.mrb[47].mxu0 }
 0x566   : > { %18896 = vmatmul.mubr.msk.bf16.gmra.mrb[56].mxu1 %vm859_vm0, %v23636_v63 }
 0x567   : > { %v23642_v10 = vpop.f32.mrb[48].mxu0  ;;  %18899 = vmatprep.mubr.msk.bf16.mxu1 %vm859_vm0, %v23638_v50 }
 0x568   : > { %v23646_v47 = vpop.f32.mrb[49].mxu0 }
 0x569   : > { %v23648_v11 = vpop.f32.mrb[50].mxu0 }
 0x56a   : > { %v23650_v49 = vpop.f32.mrb[51].mxu0 }
 0x56e   : > { %18900 = vmatmul.mubr.msk.bf16.gmra.mrb[60].mxu1 %vm859_vm0, %v23652_v51 }
 0x56f   : > { %v23656_v56 = vpop.f32.mrb[52].mxu0  ;;  %18907 = vmatprep.mubr.msk.bf16.mxu1 %vm859_vm0, %v7406_v36  ;;  %v17282_v36 = vunpack.c.h.bf16 %v17376_v41 }
 0x570   : > { %v23659_v20 = vpop.f32.mrb[53].mxu0 }
 0x571   : > { %v23661_v27 = vpop.f32.mrb[54].mxu0  ;;  %6826 = vst.msk [vmem:[#allocation3 + $0x189] sm:$0xff] %vm859_vm0, %v17282_v36  ;;  %v7386_v36 = vld [vmem:[#allocation3 + $0x92] sm:$0xff] }
 0x572   : > { %v23663_v3 = vpop.f32.mrb[55].mxu0 }
 0x576   : > { %18908 = vmatmul.mubr.msk.bf16.vlgmr.msra.gmra.mrb[32].mxu1 %vm859_vm0, %v7407_v30  ;;  %v7409_v30 = vpack.c.bf16 %v7381_v38, %v7380_v40  ;;  %v7411_v38 = vpack.c.bf16 %v7385_v25, %v7384_v7  ;;  %v23698_v40 = vpack.c.bf16 %v7387_v5, %v7386_v36 }
 0x577   : > { %18940 = vmatpush3.bf16.msra.mxu1 %v23561_v35  ;;  %v23671_v13 = vpop.f32.mrb[56].mxu0  ;;  %18911 = vmatprep.mubr.msk.bf16.mxu1 %vm859_vm0, %v7408_v19  ;;  %v7410_v19 = vpack.c.bf16 %v7383_v17, %v7382_v55  ;;  %v7389_v55 = vld [vmem:[#allocation3 + $0xb2] sm:$0xff]  ;;  %v7390_v17 = vld [vmem:[#allocation3 + $0xc2] sm:$0xff] }
 0x578   : > { %v23674_v57 = vpop.f32.mrb[57].mxu0  ;;  %18941 = vmatprep.subr.bf16.mxu1 %v21217_v42  ;;  %25972 = vst [vmem:[#allocation16_spill] sm:$0xff] %v23698_v40 }
 0x579   : > { %v23683_v35 = vpop.f32.mrb[58].mxu0 }
 0x57a   : > { %v23685_v6 = vpop.f32.mrb[59].mxu0 }
 0x57b   : > { %18942 = vmatpush3.bf16.msra.mxu1 %v21217_v42  ;;  %v7388_v42 = vld [vmem:[#allocation3 + $0xaa] sm:$0xff] }
 0x57c   : > { %18975 = vmatprep.subr.bf16.mxu1 %v23679_v62  ;;  %v23709_v5 = vpack.c.bf16 %v7389_v55, %v7388_v42  ;;  %v7394_v55 = vld [vmem:[#allocation3 + $0xf2] sm:$0xff] }
 0x57e   : > { %18912 = vmatmul.mubr.msk.bf16.gmra.mrb[36].mxu1 %vm859_vm0, %v7409_v30  ;;  %v7391_v30 = vld [vmem:[#allocation3 + $0xca] sm:$0xff]  ;;  %25973 = vst [vmem:[#allocation19_spill] sm:$0xff] %v23709_v5 }
 0x57f   : > { %v23689_v41 = vpop.f32.mrb[60].mxu0  ;;  %18915 = vmatprep.mubr.msk.bf16.mxu1 %vm859_vm0, %v7410_v19 }
 0x580   : > { %v23692_v12 = vpop.f32.mrb[61].mxu0 }
 0x581   : > { %v23694_v8 = vpop.f32.mrb[62].mxu0 }
 0x582   : > { %v23696_v0 = vpop.f32.mrb[63].mxu0 }
 0x586   : > { %18916 = vmatmul.mubr.msk.bf16.gmra.mrb[40].mxu1 %vm859_vm0, %v7411_v38  ;;  %v23712_v38 = vpack.c.bf16 %v7391_v30, %v7390_v17  ;;  %v7395_v17 = vld [vmem:[#allocation3 + $0xfa] sm:$0xff] }
 0x587   : > { %18919 = vmatprep.mubr.msk.bf16.mxu1 %vm859_vm0, %v23698_v40 }
 0x588   : > { %25974 = vst [vmem:[#allocation20_spill] sm:$0xff] %v23712_v38 }
 0x589   : > { %v18801_v19 = vpop.f32.mrb[0].mxu1 }
 0x58a   : > { %v19819_v26 = vadd.f32 %v18801_v19, %v23578_v22  ;;  %v6489_v25 = vpop.f32.mrb[1].mxu1 }
 0x58b   : > { %v19820_v7 = vadd.f32 %v6489_v25, %v23582_v16  ;;  %v18802_v36 = vpop.f32.mrb[2].mxu1  ;;  %v7392_v16 = vld [vmem:[#allocation3 + $0xda] sm:$0xff] }
 0x58c   : > { %v19821_v39 = vadd.f32 %v18802_v36, %v23584_v48  ;;  %v6492_v60 = vpop.f32.mrb[3].mxu1  ;;  %v23722_v19 = vadd.f32 %v19819_v26, %v23707_v21  ;;  %v7393_v48 = vld [vmem:[#allocation3 + $0xe2] sm:$0xff] }
 0x58d   : > { %v23716_v44 = vadd.f32 %v19820_v7, %v23707_v21  ;;  %v19822_v22 = vadd.f32 %v6492_v60, %v23586_v43 }
 0x58e   : > { %18920 = vmatmul.mubr.msk.bf16.gmra.mrb[44].mxu1 %vm859_vm0, %v23709_v5  ;;  %v23732_v60 = vadd.f32 %v19821_v39, %v23707_v21 }
 0x58f   : > { %25975 = vst [vmem:[#allocation44_spill] sm:$0xff] %v23716_v44  ;;  %v23725_v42 = vadd.f32 %v19822_v22, %v23707_v21  ;;  %18923 = vmatprep.mubr.msk.bf16.mxu1 %vm859_vm0, %v23712_v38  ;;  %v9556_v30 = vsel %vm588_vm3, %v23716_v44, 0.0  ;;  %v23737_v22 = vpack.c.bf16 %v7393_v48, %v7392_v16  ;;  %v9559_v38 = vsel %vm588_vm3, %v23722_v19, 0.0 }
 0x590   : > { %25976 = vst [vmem:[#allocation45_spill] sm:$0xff] %v23732_v60  ;;  %v23742_v44 = vpack.c.bf16 %v7395_v17, %v7394_v55 }
 0x591   : > { %v9557_v26 = vsel %vm588_vm3, %v23725_v42, 0.0  ;;  %v18805_v43 = vpop.f32.mrb[4].mxu1 }
 0x592   : > { %v9558_v25 = vadd.f32 %v9557_v26, %v9556_v30  ;;  %v19823_v7 = vadd.f32 %v18805_v43, %v23594_v28  ;;  %v6505_v36 = vpop.f32.mrb[5].mxu1  ;;  %v9561_v30 = vsel %vm588_vm3, %v23732_v60, 0.0 }
 0x593   : > { %v19824_v5 = vadd.f32 %v6505_v36, %v23598_v34  ;;  %v18806_v40 = vpop.f32.mrb[6].mxu1 }
 0x594   : > { %v9560_v39 = vadd.f32 %v9559_v38, %v9558_v25  ;;  %v19825_v51 = vadd.f32 %v18806_v40, %v23600_v1  ;;  %v6508_v50 = vpop.f32.mrb[7].mxu1  ;;  %v23754_v34 = vadd.f32 %v19823_v7, %v23707_v21  ;;  %v7396_v40 = vld [vmem:[#allocation3 + $0x10a] sm:$0xff] }
 0x595   : > { %v23748_v28 = vadd.f32 %v19824_v5, %v23707_v21  ;;  %v19826_v16 = vadd.f32 %v6508_v50, %v23602_v37  ;;  %v7397_v5 = vld [vmem:[#allocation3 + $0x112] sm:$0xff]  ;;  %v7398_v37 = vld [vmem:[#allocation3 + $0x122] sm:$0xff]  ;;  %v7399_v50 = vld [vmem:[#allocation3 + $0x12a] sm:$0xff] }
 0x596   : > { %v9562_v48 = vadd.f32 %v9561_v30, %v9560_v39  ;;  %18924 = vmatmul.mubr.msk.bf16.gmra.mrb[48].mxu1 %vm859_vm0, %v23737_v22  ;;  %v23764_v17 = vadd.f32 %v19825_v51, %v23707_v21  ;;  %v23769_v39 = vpack.c.bf16 %v7397_v5, %v7396_v40  ;;  %v9567_v30 = vsel %vm588_vm3, %v23754_v34, 0.0 }
 0x597   : > { %25977 = vst [vmem:[#allocation46_spill] sm:$0xff] %v23748_v28  ;;  %v9563_v38 = vsel %vm588_vm3, %v23748_v28, 0.0  ;;  %v23759_v1 = vadd.f32 %v19826_v16, %v23707_v21  ;;  %18927 = vmatprep.mubr.msk.bf16.mxu1 %vm859_vm0, %v23742_v44 }
 0x598   : > { %v9564_v55 = vadd.f32 %v9563_v38, %v9562_v48  ;;  %25978 = vst [vmem:[#allocation47_spill] sm:$0xff] %v23764_v17  ;;  %v23774_v38 = vpack.c.bf16 %v7399_v50, %v7398_v37  ;;  %v7400_v50 = vld [vmem:[#allocation3 + $0x13a] sm:$0xff] }
 0x599   : > { %v9565_v26 = vsel %vm588_vm3, %v23759_v1, 0.0  ;;  %v18809_v43 = vpop.f32.mrb[8].mxu1 }
 0x59a   : > { %v9566_v25 = vadd.f32 %v9565_v26, %v9564_v55  ;;  %v19827_v7 = vadd.f32 %v18809_v43, %v23610_v14  ;;  %v6521_v36 = vpop.f32.mrb[9].mxu1  ;;  %v9569_v55 = vsel %vm588_vm3, %v23764_v17, 0.0  ;;  %v7401_v26 = vld [vmem:[#allocation3 + $0x142] sm:$0xff] }
 0x59b   : > { %v19828_v16 = vadd.f32 %v6521_v36, %v23614_v31  ;;  %v18810_v48 = vpop.f32.mrb[10].mxu1 }
 0x59c   : > { %v9568_v51 = vadd.f32 %v9567_v30, %v9566_v25  ;;  %v19829_v28 = vadd.f32 %v18810_v48, %v23616_v33  ;;  %v6524_v60 = vpop.f32.mrb[11].mxu1  ;;  %v23786_v31 = vadd.f32 %v19827_v7, %v23707_v21 }
 0x59d   : > { %v23780_v14 = vadd.f32 %v19828_v16, %v23707_v21  ;;  %v19830_v40 = vadd.f32 %v6524_v60, %v23618_v23  ;;  %v7402_v23 = vld [vmem:[#allocation3 + $0x152] sm:$0xff]  ;;  %v7403_v60 = vld [vmem:[#allocation3 + $0x15a] sm:$0xff] }
 0x59e   : > { %v9570_v5 = vadd.f32 %v9569_v55, %v9568_v51  ;;  %18928 = vmatmul.mubr.msk.bf16.gmra.mrb[52].mxu1 %vm859_vm0, %v23769_v39  ;;  %v23796_v25 = vadd.f32 %v19829_v28, %v23707_v21  ;;  %v23801_v51 = vpack.c.bf16 %v7401_v26, %v7400_v50  ;;  %v9575_v55 = vsel %vm588_vm3, %v23786_v31, 0.0 }
 0x59f   : > { %25979 = vst [vmem:[#allocation48_spill] sm:$0xff] %v23780_v14  ;;  %v9571_v37 = vsel %vm588_vm3, %v23780_v14, 0.0  ;;  %v23791_v33 = vadd.f32 %v19830_v40, %v23707_v21  ;;  %18931 = vmatprep.mubr.msk.bf16.mxu1 %vm859_vm0, %v23774_v38 }
 0x5a0   : > { %v9572_v43 = vadd.f32 %v9571_v37, %v9570_v5  ;;  %v23806_v37 = vpack.c.bf16 %v7403_v60, %v7402_v23  ;;  %v7404_v60 = vld [vmem:[#allocation3 + $0x16a] sm:$0xff] }
 0x5a1   : > { %v9573_v7 = vsel %vm588_vm3, %v23791_v33, 0.0  ;;  %v18813_v36 = vpop.f32.mrb[12].mxu1 }
 0x5a2   : > { %v9574_v30 = vadd.f32 %v9573_v7, %v9572_v43  ;;  %v19831_v16 = vadd.f32 %v18813_v36, %v23626_v32  ;;  %v6537_v48 = vpop.f32.mrb[13].mxu1  ;;  %v9577_v43 = vsel %vm588_vm3, %v23796_v25, 0.0  ;;  %v7405_v7 = vld [vmem:[#allocation3 + $0x172] sm:$0xff] }
 0x5a3   : > { %v19832_v40 = vadd.f32 %v6537_v48, %v23630_v58  ;;  %v18814_v5 = vpop.f32.mrb[14].mxu1 }
 0x5a4   : > { %v9576_v28 = vadd.f32 %v9575_v55, %v9574_v30  ;;  %v19833_v14 = vadd.f32 %v18814_v5, %v23632_v15  ;;  %v6540_v17 = vpop.f32.mrb[15].mxu1  ;;  %v23818_v58 = vadd.f32 %v19831_v16, %v23707_v21 }
 0x5a5   : > { %v23812_v32 = vadd.f32 %v19832_v40, %v23707_v21  ;;  %v19834_v50 = vadd.f32 %v6540_v17, %v23634_v4  ;;  %v23833_v40 = vpack.c.bf16 %v7405_v7, %v7404_v60 }
 0x5a6   : > { %v9578_v26 = vadd.f32 %v9577_v43, %v9576_v28  ;;  %18932 = vmatmul.mubr.msk.bf16.gmra.mrb[56].mxu1 %vm859_vm0, %v23801_v51  ;;  %v23828_v4 = vadd.f32 %v19833_v14, %v23707_v21  ;;  %v9583_v5 = vsel %vm588_vm3, %v23818_v58, 0.0 }
 0x5a7   : > { %v9579_v23 = vsel %vm588_vm3, %v23812_v32, 0.0  ;;  %v23823_v15 = vadd.f32 %v19834_v50, %v23707_v21  ;;  %18935 = vmatprep.mubr.msk.bf16.mxu1 %vm859_vm0, %v23806_v37 }
 0x5a8   : > { %v9580_v36 = vadd.f32 %v9579_v23, %v9578_v26  ;;  %v9585_v23 = vsel %vm588_vm3, %v23828_v4, 0.0 }
 0x5a9   : > { %v9581_v17 = vsel %vm588_vm3, %v23823_v15, 0.0  ;;  %v18817_v30 = vpop.f32.mrb[16].mxu1 }
 0x5aa   : > { %v9582_v16 = vadd.f32 %v9581_v17, %v9580_v36  ;;  %v19835_v48 = vadd.f32 %v18817_v30, %v23642_v10  ;;  %v6553_v55 = vpop.f32.mrb[17].mxu1 }
 0x5ab   : > { %v19836_v28 = vadd.f32 %v6553_v55, %v23646_v47  ;;  %v18818_v43 = vpop.f32.mrb[18].mxu1 }
 0x5ac   : > { %v9584_v50 = vadd.f32 %v9583_v5, %v9582_v16  ;;  %v19837_v14 = vadd.f32 %v18818_v43, %v23648_v11  ;;  %v6556_v26 = vpop.f32.mrb[19].mxu1  ;;  %v23848_v7 = vadd.f32 %v19835_v48, %v23707_v21 }
 0x5ad   : > { %v23842_v36 = vadd.f32 %v19836_v28, %v23707_v21  ;;  %v19838_v10 = vadd.f32 %v6556_v26, %v23650_v49 }
 0x5ae   : > { %v9586_v60 = vadd.f32 %v9585_v23, %v9584_v50  ;;  %18936 = vmatmul.mubr.msk.bf16.gmra.mrb[60].mxu1 %vm859_vm0, %v23833_v40  ;;  %v23858_v30 = vadd.f32 %v19837_v14, %v23707_v21  ;;  %v9591_v28 = vsel %vm588_vm3, %v23848_v7, 0.0  ;;  %v21219_v14 = vld [vmem:[%s25814_s6 + $0x48] sm:$0xff]  }
 0x5af   : > { %v9587_v47 = vsel %vm588_vm3, %v23842_v36, 0.0  ;;  %v23853_v11 = vadd.f32 %v19838_v10, %v23707_v21  ;;  %18943 = vmatprep.mubr.msk.bf16.mxu1 %vm859_vm0, %v23546_v45 }
 0x5b0   : > { %v9588_v17 = vadd.f32 %v9587_v47, %v9586_v60  ;;  %v9593_v10 = vsel %vm588_vm3, %v23858_v30, 0.0 }
 0x5b1   : > { %v9589_v49 = vsel %vm588_vm3, %v23853_v11, 0.0  ;;  %v18821_v16 = vpop.f32.mrb[20].mxu1 }
 0x5b2   : > { %v9590_v55 = vadd.f32 %v9589_v49, %v9588_v17  ;;  %v19839_v48 = vadd.f32 %v18821_v16, %v23656_v56  ;;  %v6569_v5 = vpop.f32.mrb[21].mxu1 }
 0x5b3   : > { %v19840_v43 = vadd.f32 %v6569_v5, %v23659_v20  ;;  %v18822_v50 = vpop.f32.mrb[22].mxu1 }
 0x5b4   : > { %v9592_v26 = vadd.f32 %v9591_v28, %v9590_v55  ;;  %v19841_v45 = vadd.f32 %v18822_v50, %v23661_v27  ;;  %v6572_v23 = vpop.f32.mrb[23].mxu1  ;;  %v23879_v20 = vadd.f32 %v19839_v48, %v23707_v21 }
 0x5b5   : > { %v23873_v56 = vadd.f32 %v19840_v43, %v23707_v21  ;;  %v19842_v60 = vadd.f32 %v6572_v23, %v23663_v3 }
 0x5b6   : > { %v9594_v47 = vadd.f32 %v9593_v10, %v9592_v26  ;;  %18944 = vmatmul.mubr.msk.bf16.vlgmr.msra.gmra.mrb[32].mxu1 %vm859_vm0, %v23548_v53  ;;  %v23890_v3 = vadd.f32 %v19841_v45, %v23707_v21  ;;  %v9599_v28 = vsel %vm588_vm3, %v23879_v20, 0.0  ;;  %v23908_v10 = vld [vmem:[%s25814_s6 + $0x50] sm:$0xff]  }
 0x5b7   : > { %v9595_v27 = vsel %vm588_vm3, %v23873_v56, 0.0  ;;  %v23884_v17 = vadd.f32 %v19842_v60, %v23707_v21  ;;  %18976 = vmatpush3.bf16.msra.mxu1 %v23679_v62  ;;  %18947 = vmatprep.mubr.msk.bf16.mxu1 %vm859_vm0, %v23563_v9 }
 0x5b8   : > { %v9596_v49 = vadd.f32 %v9595_v27, %v9594_v47  ;;  %18977 = vmatprep.subr.bf16.mxu1 %v21219_v14  ;;  %v9601_v45 = vsel %vm588_vm3, %v23890_v3, 0.0 }
 0x5b9   : > { %v9597_v53 = vsel %vm588_vm3, %v23884_v17, 0.0  ;;  %v18825_v16 = vpop.f32.mrb[24].mxu1 }
 0x5ba   : > { %v9598_v55 = vadd.f32 %v9597_v53, %v9596_v49  ;;  %v19843_v48 = vadd.f32 %v18825_v16, %v23671_v13  ;;  %v6585_v5 = vpop.f32.mrb[25].mxu1 }
 0x5bb   : > { %v19844_v62 = vadd.f32 %v6585_v5, %v23674_v57  ;;  %v18826_v43 = vpop.f32.mrb[26].mxu1  ;;  %18978 = vmatpush3.bf16.msra.mxu1 %v21219_v14 }
 0x5bc   : > { %v9600_v9 = vadd.f32 %v9599_v28, %v9598_v55  ;;  %v19845_v50 = vadd.f32 %v18826_v43, %v23683_v35  ;;  %v6588_v26 = vpop.f32.mrb[27].mxu1  ;;  %v23913_v35 = vadd.f32 %v19843_v48, %v23707_v21  ;;  %19011 = vmatprep.subr.bf16.mxu1 %v23908_v10 }
 0x5bd   : > { %v23902_v23 = vadd.f32 %v19844_v62, %v23707_v21  ;;  %v19846_v13 = vadd.f32 %v6588_v26, %v23685_v6 }
 0x5be   : > { %v9602_v57 = vadd.f32 %v9601_v45, %v9600_v9  ;;  %18948 = vmatmul.mubr.msk.bf16.gmra.mrb[36].mxu1 %vm859_vm0, %v23565_v24  ;;  %v6682_v47 = vadd.f32 %v19845_v50, %v23707_v21  ;;  %v9607_v55 = vsel %vm588_vm3, %v23913_v35, 0.0 }
 0x5bf   : > { %v9603_v14 = vsel %vm588_vm3, %v23902_v23, 0.0  ;;  %v6680_v60 = vadd.f32 %v19846_v13, %v23707_v21  ;;  %18951 = vmatprep.mubr.msk.bf16.mxu1 %vm859_vm0, %v23572_v61 }
 0x5c0   : > { %v9604_v6 = vadd.f32 %v9603_v14, %v9602_v57  ;;  %v9609_v43 = vsel %vm588_vm3, %v6682_v47, 0.0 }
 0x5c1   : > { %v9605_v27 = vsel %vm588_vm3, %v6680_v60, 0.0  ;;  %v18829_v49 = vpop.f32.mrb[28].mxu1 }
 0x5c2   : > { %v9606_v24 = vadd.f32 %v9605_v27, %v9604_v6  ;;  %v19847_v53 = vadd.f32 %v18829_v49, %v23689_v41  ;;  %v6601_v16 = vpop.f32.mrb[29].mxu1 }
 0x5c3   : > { %v19848_v48 = vadd.f32 %v6601_v16, %v23692_v12  ;;  %v18830_v5 = vpop.f32.mrb[30].mxu1 }
 0x5c4   : > { %v9608_v28 = vadd.f32 %v9607_v55, %v9606_v24  ;;  %v19849_v61 = vadd.f32 %v18830_v5, %v23694_v8  ;;  %v6604_v62 = vpop.f32.mrb[31].mxu1  ;;  %v6685_v41 = vadd.f32 %v19847_v53, %v23707_v21  ;;  %v7711_v5 = vld [vmem:[#allocation3 + $0x188] sm:$0xff] }
 0x5c5   : > { %v6683_v9 = vadd.f32 %v19848_v48, %v23707_v21  ;;  %v19850_v50 = vadd.f32 %v6604_v62, %v23696_v0 }
 0x5c6   : > { %v9610_v26 = vadd.f32 %v9609_v43, %v9608_v28  ;;  %18952 = vmatmul.mubr.msk.bf16.gmra.mrb[40].mxu1 %vm859_vm0, %v23574_v59  ;;  %v6686_v13 = vadd.f32 %v19849_v61, %v23707_v21  ;;  %v9615_v0 = vsel %vm588_vm3, %v6685_v41, 0.0  ;;  %v7986_v28 = vld [vmem:[#allocation3 + $0x19] sm:$0xff]  ;;  %v7987_v61 = vld [vmem:[#allocation3 + $0x21] sm:$0xff] }
 0x5c7   : > { %v9611_v45 = vsel %vm588_vm3, %v6683_v9, 0.0  ;;  %v6684_v12 = vadd.f32 %v19850_v50, %v23707_v21  ;;  %18955 = vmatprep.mubr.msk.bf16.mxu1 %vm859_vm0, %v23588_v46  ;;  %v8018_v43 = vpack.c.bf16 %v7987_v61, %v7986_v28  ;;  %v7989_v50 = vld [vmem:[#allocation3 + $0x39] sm:$0xff]  ;;  %v8004_v61 = vld [vmem:[#allocation3 + $0xf1] sm:$0xff] }
 0x5c8   : > { %v9612_v8 = vadd.f32 %v9611_v45, %v9610_v26  ;;  %v9617_v59 = vsel %vm588_vm3, %v6686_v13, 0.0  ;;  %v7990_v26 = vld [vmem:[#allocation3 + $0x49] sm:$0xff] }
 0x5c9   : > { %v9613_v57 = vsel %vm588_vm3, %v6684_v12, 0.0 }
 0x5ca   : > { %v9614_v14 = vadd.f32 %v9613_v57, %v9612_v8  ;;  %v21221_v8 = vld [vmem:[%s25814_s6 + $0x58] sm:$0xff]  }
 0x5cb   : > { %v7993_v57 = vld [vmem:[#allocation3 + $0x69] sm:$0xff] }
 0x5cc   : > { %v9616_v6 = vadd.f32 %v9615_v0, %v9614_v14  ;;  %v7994_v14 = vld [vmem:[#allocation3 + $0x79] sm:$0xff]  ;;  %v7995_v0 = vld [vmem:[#allocation3 + $0x81] sm:$0xff] }
 0x5ce   : > { %v9618_v27 = vadd.f32 %v9617_v59, %v9616_v6  ;;  %18956 = vmatmul.mubr.msk.bf16.gmra.mrb[44].mxu1 %vm859_vm0, %v23590_v29  ;;  %v24062_v6 = vld [vmem:[%s25814_s6 + $0x60] sm:$0xff]  }
 0x5cf   : > { %18959 = vmatprep.mubr.msk.bf16.mxu1 %vm859_vm0, %v23604_v54 }
 0x5d0   : > { %v9619_v49 = vrot.slane %v9618_v27, 4 }
 0x5d2   : > { %v9620_v46 = vadd.f32 %v9619_v49, %v9618_v27  ;;  %v24066_v27 = vpack.c.bf16 %v7995_v0, %v7994_v14  ;;  %v7997_v49 = vld [vmem:[#allocation3 + $0x99] sm:$0xff]  ;;  %v8011_v14 = vld [vmem:[#allocation3 + $0x141] sm:$0xff] }
 0x5d4   : > { %v9621_v24 = vrot.slane %v9620_v46, 2 }
 0x5d6   : > { %v9622_v53 = vadd.f32 %v9621_v24, %v9620_v46  ;;  %18960 = vmatmul.mubr.msk.bf16.gmra.mrb[48].mxu1 %vm859_vm0, %v23606_v2  ;;  %v7998_v46 = vld [vmem:[#allocation3 + $0xa9] sm:$0xff]  ;;  %v7999_v24 = vld [vmem:[#allocation3 + $0xb1] sm:$0xff] }
 0x5d7   : > { %18963 = vmatprep.mubr.msk.bf16.mxu1 %vm859_vm0, %v23620_v52 }
 0x5d8   : > { %v9623_v21 = vrot.slane %v9622_v53, 1 }
 0x5da   : > { %v9624_v16 = vadd.f32 %v9623_v21, %v9622_v53  ;;  %v24075_v21 = vpack.c.bf16 %v7999_v24, %v7998_v46  ;;  %v8013_v46 = vld [vmem:[#allocation3 + $0x159] sm:$0xff]  ;;  %v8014_v24 = vld [vmem:[#allocation3 + $0x169] sm:$0xff] }
 0x5dc   : > { %v23950_v55 = vmul.f32 0.00390625, %v9624_v16  ;;  %v8000_v16 = vld [vmem:[#allocation3 + $0xc1] sm:$0xff] }
 0x5de   : > { %18964 = vmatmul.mubr.msk.bf16.gmra.mrb[52].mxu1 %vm859_vm0, %v23622_v18  ;;  %v23958_v29 = vsub.f32 %v23791_v33, %v23950_v55  ;;  %v23962_v54 = vsub.f32 %v23796_v25, %v23950_v55  ;;  %v23966_v2 = vsub.f32 %v23812_v32, %v23950_v55  ;;  %v23970_v52 = vsub.f32 %v23823_v15, %v23950_v55 }
 0x5df   : > { %18967 = vmatprep.mubr.msk.bf16.mxu1 %vm859_vm0, %v23636_v63  ;;  %v23974_v18 = vsub.f32 %v23818_v58, %v23950_v55  ;;  %v23978_v63 = vsub.f32 %v23828_v4, %v23950_v55  ;;  %v23982_v33 = vsub.f32 %v23842_v36, %v23950_v55  ;;  %v23986_v25 = vsub.f32 %v23853_v11, %v23950_v55 }
 0x5e0   : > { %25980 = vst [vmem:[#allocation49_spill] sm:$0xff] %v23958_v29  ;;  %25981 = vst [vmem:[#allocation50_spill] sm:$0xff] %v23962_v54  ;;  %v23990_v32 = vsub.f32 %v23848_v7, %v23950_v55  ;;  %v23994_v58 = vsub.f32 %v23858_v30, %v23950_v55  ;;  %v23998_v15 = vsub.f32 %v23873_v56, %v23950_v55 }
 0x5e1   : > { %25982 = vst [vmem:[#allocation51_spill] sm:$0xff] %v23966_v2  ;;  %25983 = vst [vmem:[#allocation52_spill] sm:$0xff] %v23970_v52  ;;  %v24002_v4 = vsub.f32 %v23884_v17, %v23950_v55  ;;  %v24006_v36 = vsub.f32 %v23879_v20, %v23950_v55  ;;  %v24010_v7 = vsub.f32 %v23890_v3, %v23950_v55 }
 0x5e2   : > { %25984 = vst [vmem:[#allocation53_spill] sm:$0xff] %v23974_v18  ;;  %25985 = vst [vmem:[#allocation54_spill] sm:$0xff] %v23978_v63  ;;  %v24014_v11 = vsub.f32 %v23902_v23, %v23950_v55  ;;  %v24017_v30 = vsub.f32 %v6680_v60, %v23950_v55  ;;  %v24021_v56 = vsub.f32 %v23913_v35, %v23950_v55  ;;  %v25999_v60 = vld [vmem:[#allocation15_spill] sm:$0xff]  ;;  %v26000_v35 = vld [vmem:[#allocation18_spill] sm:$0xff] }
 0x5e3   : > { %25986 = vst [vmem:[#allocation55_spill] sm:$0xff] %v23982_v33  ;;  %25987 = vst [vmem:[#allocation56_spill] sm:$0xff] %v23986_v25  ;;  %v24024_v17 = vsub.f32 %v6682_v47, %v23950_v55  ;;  %v24027_v20 = vsub.f32 %v6683_v9, %v23950_v55  ;;  %v24030_v3 = vsub.f32 %v6684_v12, %v23950_v55  ;;  %v7710_v47 = vld [vmem:[#allocation3 + $0x180] sm:$0xff]  ;;  %v7988_v9 = vld [vmem:[#allocation3 + $0x31] sm:$0xff] }
 0x5e4   : > { %25988 = vst [vmem:[#allocation57_spill] sm:$0xff] %v23990_v32  ;;  %25989 = vst [vmem:[#allocation58_spill] sm:$0xff] %v23994_v58  ;;  %v24033_v48 = vsub.f32 %v6685_v41, %v23950_v55  ;;  %v24036_v23 = vsub.f32 %v6686_v13, %v23950_v55  ;;  %v24042_v62 = vpack.c.bf16 %v7711_v5, %v7710_v47  ;;  %v7991_v41 = vld [vmem:[#allocation3 + $0x51] sm:$0xff]  ;;  %v7992_v13 = vld [vmem:[#allocation3 + $0x61] sm:$0xff] }
 0x5e5   : > { %25990 = vst [vmem:[#allocation59_spill] sm:$0xff] %v23998_v15  ;;  %25991 = vst [vmem:[#allocation60_spill] sm:$0xff] %v24002_v4  ;;  %v24047_v45 = vpack.c.bf16 %v7989_v50, %v7988_v9  ;;  %v24049_v12 = vpack.c.bf16 %v7991_v41, %v7990_v26  ;;  %v24064_v59 = vpack.c.bf16 %v7993_v57, %v7992_v13  ;;  %v8003_v47 = vld [vmem:[#allocation3 + $0xe1] sm:$0xff]  ;;  %v8006_v9 = vld [vmem:[#allocation3 + $0x109] sm:$0xff] }
 0x5e6   : > { %25992 = vst [vmem:[#allocation61_spill] sm:$0xff] %v24006_v36  ;;  %25993 = vst [vmem:[#allocation62_spill] sm:$0xff] %v24010_v7  ;;  %18968 = vmatmul.mubr.msk.bf16.gmra.mrb[56].mxu1 %vm859_vm0, %v25999_v60  ;;  %v8001_v60 = vld [vmem:[#allocation3 + $0xc9] sm:$0xff]  ;;  %v8007_v50 = vld [vmem:[#allocation3 + $0x111] sm:$0xff] }
 0x5e7   : > { %25994 = vst [vmem:[#allocation63_spill] sm:$0xff] %v24014_v11  ;;  %25995 = vst [vmem:[#allocation64_spill] sm:$0xff] %v24017_v30  ;;  %18971 = vmatprep.mubr.msk.bf16.mxu1 %vm859_vm0, %v26000_v35  ;;  %v8002_v35 = vld [vmem:[#allocation3 + $0xd9] sm:$0xff]  ;;  %v24081_v5 = vpack.c.bf16 %v8001_v60, %v8000_v16  ;;  %v24091_v41 = vpack.c.bf16 %v8007_v50, %v8006_v9  ;;  %v8009_v13 = vld [vmem:[#allocation3 + $0x129] sm:$0xff] }
 0x5e8   : > { %25996 = vst [vmem:[#allocation65_spill] sm:$0xff] %v24021_v56  ;;  %25997 = vst [vmem:[#allocation66_spill] sm:$0xff] %v24033_v48  ;;  %v24083_v28 = vpack.c.bf16 %v8003_v47, %v8002_v35  ;;  %v8010_v57 = vld [vmem:[#allocation3 + $0x139] sm:$0xff]  ;;  %v8015_v16 = vld [vmem:[#allocation3 + $0x171] sm:$0xff] }
 0x5e9   : > { %25998 = vst [vmem:[#allocation67_spill] sm:$0xff] %v24036_v23  ;;  %v24107_v35 = vpack.c.bf16 %v8015_v16, %v8014_v24  ;;  %v8016_v47 = vld [vmem:[#allocation3 + $0x181] sm:$0xff]  ;;  %v21223_v16 = vld [vmem:[%s25814_s6 + $0x68] sm:$0xff]  }
 0x5ea   : > { %v8293_v9 = vld [vmem:[#allocation3 + $0x22] sm:$0xff] }
 0x5eb   : > { %v8614_v23 = vld [vmem:[#allocation3 + $0xe0] sm:$0xff]  ;;  %v8620_v48 = vld [vmem:[#allocation3 + $0x128] sm:$0xff] }
 0x5ee   : > { %18972 = vmatmul.mubr.msk.bf16.gmra.mrb[60].mxu1 %vm859_vm0, %v24042_v62 }
 0x5ef   : > { %18979 = vmatprep.mubr.msk.bf16.mxu1 %vm859_vm0, %v8018_v43  ;;  %v8005_v43 = vld [vmem:[#allocation3 + $0xf9] sm:$0xff] }
 0x5f0   : > { %v24089_v26 = vpack.c.bf16 %v8005_v43, %v8004_v61  ;;  %v8017_v61 = vld [vmem:[#allocation3 + $0x189] sm:$0xff]  ;;  %v8292_v43 = vld [vmem:[#allocation3 + $0x1a] sm:$0xff] }
 0x5f1   : > { %v24113_v50 = vpack.c.bf16 %v8017_v61, %v8016_v47  ;;  %v8298_v47 = vld [vmem:[#allocation3 + $0x62] sm:$0xff]  ;;  %v8299_v61 = vld [vmem:[#allocation3 + $0x6a] sm:$0xff] }
 0x5f6   : > { %18980 = vmatmul.mubr.msk.bf16.vlgmr.msra.gmra.mrb[32].mxu1 %vm859_vm0, %v24047_v45 }
 0x5f7   : > { %19012 = vmatpush3.bf16.msra.mxu1 %v23908_v10  ;;  %18983 = vmatprep.mubr.msk.bf16.mxu1 %vm859_vm0, %v24049_v12  ;;  %v7996_v10 = vld [vmem:[#allocation3 + $0x91] sm:$0xff] }
 0x5f8   : > { %19013 = vmatprep.subr.bf16.mxu1 %v21221_v8  ;;  %v24073_v53 = vpack.c.bf16 %v7997_v49, %v7996_v10  ;;  %v24099_v10 = vpack.c.bf16 %v8011_v14, %v8010_v57  ;;  %v8012_v49 = vld [vmem:[#allocation3 + $0x151] sm:$0xff]  ;;  %v8295_v57 = vld [vmem:[#allocation3 + $0x3a] sm:$0xff] }
 0x5f9   : > { %v24105_v60 = vpack.c.bf16 %v8013_v46, %v8012_v49  ;;  %v8296_v14 = vld [vmem:[#allocation3 + $0x4a] sm:$0xff]  ;;  %v8297_v49 = vld [vmem:[#allocation3 + $0x52] sm:$0xff] }
 0x5fa   : > { %v24120_v24 = vpack.c.bf16 %v8297_v49, %v8296_v14  ;;  %v26002_v14 = vld [vmem:[#allocation19_spill] sm:$0xff]  ;;  %v26003_v49 = vld [vmem:[#allocation20_spill] sm:$0xff] }
 0x5fb   : > { %19014 = vmatpush3.bf16.msra.mxu1 %v21221_v8  ;;  %v8008_v8 = vld [vmem:[#allocation3 + $0x121] sm:$0xff] }
 0x5fc   : > { %19047 = vmatprep.subr.bf16.mxu1 %v24062_v6  ;;  %v24097_v0 = vpack.c.bf16 %v8009_v13, %v8008_v8  ;;  %v8324_v8 = vpack.c.bf16 %v8293_v9, %v8292_v43  ;;  %v8294_v13 = vld [vmem:[#allocation3 + $0x32] sm:$0xff]  ;;  %v8300_v43 = vld [vmem:[#allocation3 + $0x7a] sm:$0xff]  ;;  %v8301_v9 = vld [vmem:[#allocation3 + $0x82] sm:$0xff] }
 0x5fd   : > { %v24118_v46 = vpack.c.bf16 %v8295_v57, %v8294_v13  ;;  %v24133_v13 = vpack.c.bf16 %v8299_v61, %v8298_v47  ;;  %v24135_v57 = vpack.c.bf16 %v8301_v9, %v8300_v43  ;;  %v8599_v47 = vld [vmem:[#allocation3 + $0x30] sm:$0xff]  ;;  %v8600_v61 = vld [vmem:[#allocation3 + $0x38] sm:$0xff]  ;;  %v8604_v9 = vld [vmem:[#allocation3 + $0x68] sm:$0xff] }
 0x5fe   : > { %18984 = vmatmul.mubr.msk.bf16.gmra.mrb[36].mxu1 %vm859_vm0, %v24064_v59  ;;  %v8631_v43 = vpack.c.bf16 %v8600_v61, %v8599_v47  ;;  %v21226_v47 = vld [vmem:[%s25814_s6 + $0x80] sm:$0xff]  }
 0x5ff   : > { %18987 = vmatprep.mubr.msk.bf16.mxu1 %vm859_vm0, %v24066_v27 }
 0x606   : > { %18988 = vmatmul.mubr.msk.bf16.gmra.mrb[40].mxu1 %vm859_vm0, %v24073_v53 }
 0x607   : > { %18991 = vmatprep.mubr.msk.bf16.mxu1 %vm859_vm0, %v24075_v21 }
 0x60e   : > { %18992 = vmatmul.mubr.msk.bf16.gmra.mrb[44].mxu1 %vm859_vm0, %v24081_v5 }
 0x60f   : > { %18995 = vmatprep.mubr.msk.bf16.mxu1 %vm859_vm0, %v24083_v28 }
 0x616   : > { %18996 = vmatmul.mubr.msk.bf16.gmra.mrb[48].mxu1 %vm859_vm0, %v24089_v26 }
 0x617   : > { %18999 = vmatprep.mubr.msk.bf16.mxu1 %vm859_vm0, %v24091_v41 }
 0x61e   : > { %19000 = vmatmul.mubr.msk.bf16.gmra.mrb[52].mxu1 %vm859_vm0, %v24097_v0 }
 0x61f   : > { %19003 = vmatprep.mubr.msk.bf16.mxu1 %vm859_vm0, %v24099_v10 }
 0x626   : > { %19004 = vmatmul.mubr.msk.bf16.gmra.mrb[56].mxu1 %vm859_vm0, %v24105_v60 }
 0x627   : > { %19007 = vmatprep.mubr.msk.bf16.mxu1 %vm859_vm0, %v24107_v35 }
 0x62e   : > { %19008 = vmatmul.mubr.msk.bf16.gmra.mrb[60].mxu1 %vm859_vm0, %v24113_v50 }
 0x62f   : > { %19015 = vmatprep.mubr.msk.bf16.mxu1 %vm859_vm0, %v8324_v8  ;;  %v21224_v8 = vld [vmem:[%s25814_s6 + $0x70] sm:$0xff]  }
 0x636   : > { %19016 = vmatmul.mubr.msk.bf16.vlgmr.msra.gmra.mrb[32].mxu1 %vm859_vm0, %v24118_v46 }
 0x637   : > { %19048 = vmatpush3.bf16.msra.mxu1 %v24062_v6  ;;  %19019 = vmatprep.mubr.msk.bf16.mxu1 %vm859_vm0, %v24120_v24  ;;  %v26001_v6 = vld [vmem:[#allocation16_spill] sm:$0xff] }
 0x638   : > { %19049 = vmatprep.subr.bf16.mxu1 %v21223_v16 }
 0x63b   : > { %19050 = vmatpush3.bf16.msra.mxu1 %v21223_v16  ;;  %v8322_v16 = vld [vmem:[#allocation3 + $0x182] sm:$0xff] }
 0x63c   : > { %19083 = vmatprep.subr.bf16.mxu1 %v21224_v8 }
 0x63e   : > { %19020 = vmatmul.mubr.msk.bf16.gmra.mrb[36].mxu1 %vm859_vm0, %v24133_v13 }
 0x63f   : > { %19023 = vmatprep.mubr.msk.bf16.mxu1 %vm859_vm0, %v24135_v57 }
 0x646   : > { %19024 = vmatmul.mubr.msk.bf16.gmra.mrb[40].mxu1 %vm859_vm0, %v26001_v6 }
 0x647   : > { %19027 = vmatprep.mubr.msk.bf16.mxu1 %vm859_vm0, %v26002_v14  ;;  %v8605_v14 = vld [vmem:[#allocation3 + $0x78] sm:$0xff] }
 0x64e   : > { %19028 = vmatmul.mubr.msk.bf16.gmra.mrb[44].mxu1 %vm859_vm0, %v26003_v49  ;;  %v8606_v49 = vld [vmem:[#allocation3 + $0x80] sm:$0xff] }
 0x64f   : > { %19031 = vmatprep.mubr.msk.bf16.mxu1 %vm859_vm0, %v23737_v22  ;;  %v8323_v22 = vld [vmem:[#allocation3 + $0x18a] sm:$0xff]  ;;  %v8634_v61 = vpack.c.bf16 %v8606_v49, %v8605_v14  ;;  %v8616_v49 = vld [vmem:[#allocation3 + $0xf8] sm:$0xff] }
 0x650   : > { %v8615_v14 = vld [vmem:[#allocation3 + $0xf0] sm:$0xff] }
 0x656   : > { %19032 = vmatmul.mubr.msk.bf16.gmra.mrb[48].mxu1 %vm859_vm0, %v23742_v44  ;;  %v24161_v44 = vpack.c.bf16 %v8323_v22, %v8322_v16  ;;  %v8607_v16 = vld [vmem:[#allocation3 + $0x90] sm:$0xff]  ;;  %v8608_v22 = vld [vmem:[#allocation3 + $0x98] sm:$0xff] }
 0x657   : > { %19035 = vmatprep.mubr.msk.bf16.mxu1 %vm859_vm0, %v23769_v39  ;;  %v8601_v39 = vld [vmem:[#allocation3 + $0x48] sm:$0xff] }
 0x65e   : > { %19036 = vmatmul.mubr.msk.bf16.gmra.mrb[52].mxu1 %vm859_vm0, %v23774_v38  ;;  %v8602_v38 = vld [vmem:[#allocation3 + $0x50] sm:$0xff] }
 0x65f   : > { %19039 = vmatprep.mubr.msk.bf16.mxu1 %vm859_vm0, %v23801_v51  ;;  %v8603_v51 = vld [vmem:[#allocation3 + $0x60] sm:$0xff] }
 0x660   : > { %v8633_v6 = vpack.c.bf16 %v8604_v9, %v8603_v51  ;;  %v8612_v51 = vld [vmem:[#allocation3 + $0xc8] sm:$0xff] }
 0x666   : > { %19040 = vmatmul.mubr.msk.bf16.gmra.mrb[56].mxu1 %vm859_vm0, %v23806_v37  ;;  %v8632_v37 = vpack.c.bf16 %v8602_v38, %v8601_v39  ;;  %v8610_v39 = vld [vmem:[#allocation3 + $0xb0] sm:$0xff]  ;;  %v8611_v38 = vld [vmem:[#allocation3 + $0xc0] sm:$0xff] }
 0x667   : > { %19043 = vmatprep.mubr.msk.bf16.mxu1 %vm859_vm0, %v23833_v40  ;;  %v21225_v40 = vld [vmem:[%s25814_s6 + $0x78] sm:$0xff]  }
 0x66e   : > { %19044 = vmatmul.mubr.msk.bf16.gmra.mrb[60].mxu1 %vm859_vm0, %v24161_v44 }
 0x66f   : > { %19051 = vmatprep.mubr.msk.bf16.mxu1 %vm859_vm0, %v8631_v43  ;;  %v8635_v43 = vpack.c.bf16 %v8608_v22, %v8607_v16  ;;  %v8639_v16 = vpack.c.bf16 %v8616_v49, %v8615_v14  ;;  %v8617_v22 = vld [vmem:[#allocation3 + $0x108] sm:$0xff]  ;;  %v8626_v49 = vld [vmem:[#allocation3 + $0x170] sm:$0xff] }
 0x670   : > { %v8625_v14 = vld [vmem:[#allocation3 + $0x168] sm:$0xff] }
 0x676   : > { %19052 = vmatmul.mubr.msk.bf16.vlgmr.msra.gmra.mrb[32].mxu1 %vm859_vm0, %v8632_v37  ;;  %v8637_v37 = vpack.c.bf16 %v8612_v51, %v8611_v38  ;;  %v8621_v38 = vld [vmem:[#allocation3 + $0x138] sm:$0xff]  ;;  %v8622_v51 = vld [vmem:[#allocation3 + $0x140] sm:$0xff] }
 0x677   : > { %19084 = vmatpush3.bf16.msra.mxu1 %v21224_v8  ;;  %19055 = vmatprep.mubr.msk.bf16.mxu1 %vm859_vm0, %v8633_v6  ;;  %v8609_v8 = vld [vmem:[#allocation3 + $0xa8] sm:$0xff]  ;;  %v8613_v6 = vld [vmem:[#allocation3 + $0xd8] sm:$0xff] }
 0x678   : > { %19085 = vmatprep.subr.bf16.mxu1 %v21225_v40  ;;  %v8636_v9 = vpack.c.bf16 %v8610_v39, %v8609_v8 }
 0x67b   : > { %19086 = vmatpush3.bf16.msra.mxu1 %v21225_v40  ;;  %v8638_v40 = vpack.c.bf16 %v8614_v23, %v8613_v6  ;;  %v8624_v23 = vld [vmem:[#allocation3 + $0x158] sm:$0xff] }
 0x67c   : > { %19119 = vmatprep.subr.bf16.mxu1 %v21226_v47 }
 0x67e   : > { %19056 = vmatmul.mubr.msk.bf16.gmra.mrb[36].mxu1 %vm859_vm0, %v8634_v61  ;;  %v8618_v61 = vld [vmem:[#allocation3 + $0x110] sm:$0xff] }
 0x67f   : > { %19059 = vmatprep.mubr.msk.bf16.mxu1 %vm859_vm0, %v8635_v43  ;;  %v8619_v43 = vld [vmem:[#allocation3 + $0x120] sm:$0xff]  ;;  %v8640_v8 = vpack.c.bf16 %v8618_v61, %v8617_v22  ;;  %v17284_v61 = vld [vmem:[%s24191_s23] sm:$0xff]  }
 0x680   : > { %v8641_v39 = vpack.c.bf16 %v8620_v48, %v8619_v43  ;;  %v8629_v48 = vld [vmem:[#allocation3 + $0x198] sm:$0xff]  ;;  %v17285_v43 = vunpack.c.l.bf16 %v17284_v61 }
 0x682   : > { %12887 = vst.msk [vmem:[#allocation4 + $0x19] sm:$0xff] %vm859_vm0, %v17285_v43  ;;  %v17384_v43 = vld [vmem:[%s24191_s23 + $0x40] sm:$0xff]  }
 0x686   : > { %19060 = vmatmul.mubr.msk.bf16.gmra.mrb[40].mxu1 %vm859_vm0, %v8636_v9  ;;  %v8623_v9 = vld [vmem:[#allocation3 + $0x150] sm:$0xff] }
 0x687   : > { %19063 = vmatprep.mubr.msk.bf16.mxu1 %vm859_vm0, %v8637_v37  ;;  %v8642_v37 = vpack.c.bf16 %v8622_v51, %v8621_v38  ;;  %v8643_v6 = vpack.c.bf16 %v8624_v23, %v8623_v9  ;;  %v17378_v51 = vld [vmem:[%s24191_s23 + $0x10] sm:$0xff]  }
 0x688   : > { %v24211_v9 = vld [vmem:[%s25816_s8 + $0x10] sm:$0xff]   ;;  %v17293_v23 = vunpack.c.l.bf16 %v17378_v51 }
 0x68a   : > { %12891 = vst.msk [vmem:[#allocation4 + $0x49] sm:$0xff] %vm859_vm0, %v17293_v23 }
 0x68e   : > { %19064 = vmatmul.mubr.msk.bf16.gmra.mrb[44].mxu1 %vm859_vm0, %v8638_v40  ;;  %v8644_v40 = vpack.c.bf16 %v8626_v49, %v8625_v14 }
 0x68f   : > { %19067 = vmatprep.mubr.msk.bf16.mxu1 %vm859_vm0, %v8639_v16  ;;  %v8630_v16 = vld [vmem:[#allocation3 + $0x1a0] sm:$0xff] }
 0x690   : > { %v8646_v22 = vpack.c.bf16 %v8630_v16, %v8629_v48  ;;  %v17382_v48 = vld [vmem:[%s24191_s23 + $0x30] sm:$0xff]  }
 0x691   : > { %v17309_v16 = vunpack.c.l.bf16 %v17382_v48 }
 0x693   : > { %12899 = vst.msk [vmem:[#allocation4 + $0xa9] sm:$0xff] %vm859_vm0, %v17309_v16  ;;  %v21230_v16 = vld [vmem:[%s25816_s8] sm:$0xff]  }
 0x696   : > { %19068 = vmatmul.mubr.msk.bf16.gmra.mrb[48].mxu1 %vm859_vm0, %v8640_v8  ;;  %v17286_v8 = vunpack.c.h.bf16 %v17284_v61 }
 0x697   : > { %19071 = vmatprep.mubr.msk.bf16.mxu1 %vm859_vm0, %v8641_v39  ;;  %v17377_v39 = vld [vmem:[%s24191_s23 + $0x8] sm:$0xff]  }
 0x698   : > { %12888 = vst.msk [vmem:[#allocation4 + $0x21] sm:$0xff] %vm859_vm0, %v17286_v8  ;;  %v17290_v38 = vunpack.c.h.bf16 %v17377_v39  ;;  %v17317_v8 = vunpack.c.l.bf16 %v17384_v43 }
 0x69a   : > { %12890 = vst.msk [vmem:[#allocation4 + $0x39] sm:$0xff] %vm859_vm0, %v17290_v38  ;;  %12903 = vst.msk [vmem:[#allocation4 + $0xd9] sm:$0xff] %vm859_vm0, %v17317_v8  ;;  %v9227_v8 = vld [vmem:[#allocation3 + $0xf2] sm:$0xff] }
 0x69e   : > { %19072 = vmatmul.mubr.msk.bf16.gmra.mrb[52].mxu1 %vm859_vm0, %v8642_v37  ;;  %v17294_v37 = vunpack.c.h.bf16 %v17378_v51 }
 0x69f   : > { %19075 = vmatprep.mubr.msk.bf16.mxu1 %vm859_vm0, %v8643_v6  ;;  %v17380_v6 = vld [vmem:[%s24191_s23 + $0x20] sm:$0xff]  }
 0x6a0   : > { %12892 = vst.msk [vmem:[#allocation4 + $0x51] sm:$0xff] %vm859_vm0, %v17294_v37  ;;  %v17301_v14 = vunpack.c.l.bf16 %v17380_v6  ;;  %v17302_v49 = vunpack.c.h.bf16 %v17380_v6  ;;  %v17388_v37 = vld [vmem:[%s24191_s23 + $0x60] sm:$0xff]  }
 0x6a2   : > { %12895 = vst.msk [vmem:[#allocation4 + $0x79] sm:$0xff] %vm859_vm0, %v17301_v14  ;;  %12896 = vst.msk [vmem:[#allocation4 + $0x81] sm:$0xff] %vm859_vm0, %v17302_v49  ;;  %v17390_v49 = vld [vmem:[%s24191_s23 + $0x70] sm:$0xff]  }
 0x6a6   : > { %19076 = vmatmul.mubr.msk.bf16.gmra.mrb[56].mxu1 %vm859_vm0, %v8644_v40 }
 0x6a7   : > { %19079 = vmatprep.mubr.msk.bf16.mxu1 %vm859_vm0, %v24042_v62  ;;  %v21227_v62 = vld [vmem:[%s25814_s6 + $0x88] sm:$0xff]  }
 0x6ae   : > { %19080 = vmatmul.mubr.msk.bf16.gmra.mrb[60].mxu1 %vm859_vm0, %v8646_v22  ;;  %v17310_v22 = vunpack.c.h.bf16 %v17382_v48  ;;  %v9220_v48 = vld [vmem:[#allocation3 + $0x9a] sm:$0xff] }
 0x6af   : > { %19087 = vmatprep.mubr.msk.bf16.mxu1 %vm859_vm0, %v24047_v45  ;;  %v17289_v45 = vunpack.c.l.bf16 %v17377_v39 }
 0x6b0   : > { %12900 = vst.msk [vmem:[#allocation4 + $0xb1] sm:$0xff] %vm859_vm0, %v17310_v22  ;;  %v9222_v22 = vld [vmem:[#allocation3 + $0xb2] sm:$0xff] }
 0x6b1   : > { %12889 = vst.msk [vmem:[#allocation4 + $0x31] sm:$0xff] %vm859_vm0, %v17289_v45  ;;  %v17386_v45 = vld [vmem:[%s24191_s23 + $0x50] sm:$0xff]  }
 0x6b2   : > { %v17325_v38 = vunpack.c.l.bf16 %v17386_v45  ;;  %v17326_v51 = vunpack.c.h.bf16 %v17386_v45  ;;  %v9231_v45 = vld [vmem:[#allocation3 + $0x122] sm:$0xff] }
 0x6b4   : > { %12907 = vst.msk [vmem:[#allocation4 + $0x109] sm:$0xff] %vm859_vm0, %v17325_v38  ;;  %12908 = vst.msk [vmem:[#allocation4 + $0x111] sm:$0xff] %vm859_vm0, %v17326_v51  ;;  %v9232_v38 = vld [vmem:[#allocation3 + $0x12a] sm:$0xff] }
 0x6b6   : > { %19088 = vmatmul.mubr.msk.bf16.vlgmr.msra.gmra.mrb[32].mxu1 %vm859_vm0, %v24049_v12  ;;  %v17379_v12 = vld [vmem:[%s24191_s23 + $0x18] sm:$0xff]  }
 0x6b7   : > { %19120 = vmatpush3.bf16.msra.mxu1 %v21226_v47  ;;  %19091 = vmatprep.mubr.msk.bf16.mxu1 %vm859_vm0, %v24064_v59  ;;  %v17297_v59 = vunpack.c.l.bf16 %v17379_v12  ;;  %v17298_v47 = vunpack.c.h.bf16 %v17379_v12  ;;  %v17333_v12 = vunpack.c.l.bf16 %v17388_v37 }
 0x6b8   : > { %19121 = vmatprep.subr.bf16.mxu1 %v21227_v62 }
 0x6b9   : > { %12893 = vst.msk [vmem:[#allocation4 + $0x61] sm:$0xff] %vm859_vm0, %v17297_v59  ;;  %12894 = vst.msk [vmem:[#allocation4 + $0x69] sm:$0xff] %vm859_vm0, %v17298_v47  ;;  %v17334_v59 = vunpack.c.h.bf16 %v17388_v37  ;;  %v8936_v47 = vld [vmem:[#allocation3 + $0x1a1] sm:$0xff]  ;;  %v9235_v37 = vld [vmem:[#allocation3 + $0x152] sm:$0xff] }
 0x6ba   : > { %12911 = vst.msk [vmem:[#allocation4 + $0x139] sm:$0xff] %vm859_vm0, %v17333_v12  ;;  %v9236_v12 = vld [vmem:[#allocation3 + $0x15a] sm:$0xff] }
 0x6bb   : > { %19122 = vmatpush3.bf16.msra.mxu1 %v21227_v62  ;;  %v17318_v62 = vunpack.c.h.bf16 %v17384_v43  ;;  %12912 = vst.msk [vmem:[#allocation4 + $0x141] sm:$0xff] %vm859_vm0, %v17334_v59  ;;  %v9226_v43 = vld [vmem:[#allocation3 + $0xe2] sm:$0xff] }
 0x6bc   : > { %19461 = vmatprep.subr.bf16.mxu1 %v24211_v9 }
 0x6bd   : > { %12904 = vst.msk [vmem:[#allocation4 + $0xe1] sm:$0xff] %vm859_vm0, %v17318_v62  ;;  %v9228_v62 = vld [vmem:[#allocation3 + $0xfa] sm:$0xff] }
 0x6be   : > { %19092 = vmatmul.mubr.msk.bf16.gmra.mrb[36].mxu1 %vm859_vm0, %v24066_v27  ;;  %v17381_v27 = vld [vmem:[%s24191_s23 + $0x28] sm:$0xff]  }
 0x6bf   : > { %19095 = vmatprep.mubr.msk.bf16.mxu1 %vm859_vm0, %v24073_v53  ;;  %v17305_v53 = vunpack.c.l.bf16 %v17381_v27  ;;  %v17306_v40 = vunpack.c.h.bf16 %v17381_v27  ;;  %v17341_v27 = vunpack.c.l.bf16 %v17390_v49 }
 0x6c1   : > { %12897 = vst.msk [vmem:[#allocation4 + $0x91] sm:$0xff] %vm859_vm0, %v17305_v53  ;;  %12898 = vst.msk [vmem:[#allocation4 + $0x99] sm:$0xff] %vm859_vm0, %v17306_v40  ;;  %v17342_v53 = vunpack.c.h.bf16 %v17390_v49  ;;  %v9242_v49 = vld [vmem:[#allocation3 + $0x1a2] sm:$0xff] }
 0x6c2   : > { %12915 = vst.msk [vmem:[#allocation4 + $0x169] sm:$0xff] %vm859_vm0, %v17341_v27  ;;  %v12971_v27 = vld [vmem:[#allocation4 + $0x1] sm:$0xff] }
 0x6c3   : > { %12916 = vst.msk [vmem:[#allocation4 + $0x171] sm:$0xff] %vm859_vm0, %v17342_v53  ;;  %v12972_v53 = vld [vmem:[#allocation4 + $0x9] sm:$0xff] }
 0x6c6   : > { %19096 = vmatmul.mubr.msk.bf16.gmra.mrb[40].mxu1 %vm859_vm0, %v24075_v21  ;;  %v17383_v21 = vld [vmem:[%s24191_s23 + $0x38] sm:$0xff]  }
 0x6c7   : > { %19099 = vmatprep.mubr.msk.bf16.mxu1 %vm859_vm0, %v24081_v5  ;;  %v17313_v5 = vunpack.c.l.bf16 %v17383_v21  ;;  %v17314_v61 = vunpack.c.h.bf16 %v17383_v21  ;;  %v9224_v21 = vld [vmem:[#allocation3 + $0xca] sm:$0xff] }
 0x6c9   : > { %12901 = vst.msk [vmem:[#allocation4 + $0xc1] sm:$0xff] %vm859_vm0, %v17313_v5  ;;  %12902 = vst.msk [vmem:[#allocation4 + $0xc9] sm:$0xff] %vm859_vm0, %v17314_v61  ;;  %v9225_v61 = vld [vmem:[#allocation3 + $0xda] sm:$0xff] }
 0x6ce   : > { %19100 = vmatmul.mubr.msk.bf16.gmra.mrb[44].mxu1 %vm859_vm0, %v24083_v28  ;;  %v17385_v28 = vld [vmem:[%s24191_s23 + $0x48] sm:$0xff]  }
 0x6cf   : > { %19103 = vmatprep.mubr.msk.bf16.mxu1 %vm859_vm0, %v24089_v26  ;;  %v17321_v26 = vunpack.c.l.bf16 %v17385_v28  ;;  %v17322_v39 = vunpack.c.h.bf16 %v17385_v28  ;;  %v9250_v28 = vpack.c.bf16 %v9226_v43, %v9225_v61  ;;  %v12980_v61 = vld [vmem:[#allocation4 + $0x69] sm:$0xff]  ;;  %v24322_v43 = vld [vmem:[%s25816_s8 + $0x20] sm:$0xff]  }
 0x6d1   : > { %12905 = vst.msk [vmem:[#allocation4 + $0xf1] sm:$0xff] %vm859_vm0, %v17321_v26  ;;  %12906 = vst.msk [vmem:[#allocation4 + $0xf9] sm:$0xff] %vm859_vm0, %v17322_v39  ;;  %v9251_v26 = vpack.c.bf16 %v9228_v62, %v9227_v8  ;;  %v9230_v39 = vld [vmem:[#allocation3 + $0x112] sm:$0xff] }
 0x6d6   : > { %19104 = vmatmul.mubr.msk.bf16.gmra.mrb[48].mxu1 %vm859_vm0, %v24091_v41  ;;  %v17387_v41 = vld [vmem:[%s24191_s23 + $0x58] sm:$0xff]  }
 0x6d7   : > { %19107 = vmatprep.mubr.msk.bf16.mxu1 %vm859_vm0, %v24097_v0  ;;  %v17329_v0 = vunpack.c.l.bf16 %v17387_v41  ;;  %v17330_v23 = vunpack.c.h.bf16 %v17387_v41  ;;  %v9253_v41 = vpack.c.bf16 %v9232_v38, %v9231_v45  ;;  %v12985_v38 = vld [vmem:[#allocation4 + $0xa9] sm:$0xff] }
 0x6d9   : > { %12909 = vst.msk [vmem:[#allocation4 + $0x121] sm:$0xff] %vm859_vm0, %v17329_v0  ;;  %12910 = vst.msk [vmem:[#allocation4 + $0x129] sm:$0xff] %vm859_vm0, %v17330_v23  ;;  %v9233_v0 = vld [vmem:[#allocation3 + $0x13a] sm:$0xff]  ;;  %v9234_v23 = vld [vmem:[#allocation3 + $0x142] sm:$0xff] }
 0x6da   : > { %v9254_v59 = vpack.c.bf16 %v9234_v23, %v9233_v0  ;;  %v24347_v23 = vsub.f32 %v23725_v42, %v23950_v55  ;;  %v12989_v42 = vld [vmem:[#allocation4 + $0xd9] sm:$0xff] }
 0x6de   : > { %19108 = vmatmul.mubr.msk.bf16.gmra.mrb[52].mxu1 %vm859_vm0, %v24099_v10  ;;  %v17389_v10 = vld [vmem:[%s24191_s23 + $0x68] sm:$0xff]  }
 0x6df   : > { %19111 = vmatprep.mubr.msk.bf16.mxu1 %vm859_vm0, %v24105_v60  ;;  %v8935_v60 = vld [vmem:[#allocation3 + $0x199] sm:$0xff]  ;;  %v17337_v6 = vunpack.c.l.bf16 %v17389_v10  ;;  %v17338_v14 = vunpack.c.h.bf16 %v17389_v10  ;;  %v9255_v10 = vpack.c.bf16 %v9236_v12, %v9235_v37  ;;  %v12987_v37 = vld [vmem:[#allocation4 + $0xc1] sm:$0xff] }
 0x6e0   : > { %v8952_v40 = vpack.c.bf16 %v8936_v47, %v8935_v60  ;;  %v9237_v60 = vld [vmem:[#allocation3 + $0x16a] sm:$0xff]  ;;  %v9238_v47 = vld [vmem:[#allocation3 + $0x172] sm:$0xff] }
 0x6e1   : > { %12913 = vst.msk [vmem:[#allocation4 + $0x151] sm:$0xff] %vm859_vm0, %v17337_v6  ;;  %12914 = vst.msk [vmem:[#allocation4 + $0x159] sm:$0xff] %vm859_vm0, %v17338_v14  ;;  %v9256_v6 = vpack.c.bf16 %v9238_v47, %v9237_v60  ;;  %v9241_v14 = vld [vmem:[#allocation3 + $0x19a] sm:$0xff]  ;;  %v9659_v47 = vmul.f32 %v24347_v23, %v24347_v23 }
 0x6e2   : > { %v12988_v12 = vld [vmem:[#allocation4 + $0xc9] sm:$0xff] }
 0x6e6   : > { %19112 = vmatmul.mubr.msk.bf16.gmra.mrb[56].mxu1 %vm859_vm0, %v24107_v35  ;;  %v21229_v35 = vld [vmem:[%s25816_s8 + $0x18] sm:$0xff]  }
 0x6e7   : > { %19115 = vmatprep.mubr.msk.bf16.mxu1 %vm859_vm0, %v24113_v50  ;;  %v9219_v50 = vld [vmem:[#allocation3 + $0x92] sm:$0xff] }
 0x6ee   : > { %19116 = vmatmul.mubr.msk.bf16.gmra.mrb[60].mxu1 %vm859_vm0, %v8952_v40  ;;  %v9258_v40 = vpack.c.bf16 %v9242_v49, %v9241_v14  ;;  %v12990_v14 = vld [vmem:[#allocation4 + $0xe1] sm:$0xff] }
 0x6ef   : > { %19123 = vmatprep.mubr.msk.bf16.mxu1 %vm859_vm0, %v24118_v46  ;;  %v9247_v46 = vpack.c.bf16 %v9220_v48, %v9219_v50  ;;  %v12973_v50 = vld [vmem:[#allocation4 + $0x19] sm:$0xff]  ;;  %v12974_v48 = vld [vmem:[#allocation4 + $0x21] sm:$0xff] }
 0x6f6   : > { %19124 = vmatmul.mubr.msk.bf16.vlgmr.msra.gmra.mrb[32].mxu1 %vm859_vm0, %v24120_v24  ;;  %v9221_v24 = vld [vmem:[#allocation3 + $0xaa] sm:$0xff] }
 0x6f7   : > { %19127 = vmatprep.mubr.msk.bf16.mxu1 %vm859_vm0, %v24133_v13  ;;  %19462 = vmatpush3.bf16.msra.mxu1 %v24211_v9  ;;  %v9223_v13 = vld [vmem:[#allocation3 + $0xc2] sm:$0xff]  ;;  %v9248_v9 = vpack.c.bf16 %v9222_v22, %v9221_v24  ;;  %v24308_v22 = vpack.c.bf16 %v12974_v48, %v12973_v50  ;;  %v13012_v48 = vpack.c.bf16 %v12990_v14, %v12989_v42 }
 0x6f8   : > { %19463 = vmatprep.subr.bf16.mxu1 %v21229_v35  ;;  %v9249_v5 = vpack.c.bf16 %v9224_v21, %v9223_v13  ;;  %v12976_v24 = vld [vmem:[#allocation4 + $0x39] sm:$0xff]  ;;  %v12977_v21 = vld [vmem:[#allocation4 + $0x49] sm:$0xff] }
 0x6fb   : > { %19464 = vmatpush3.bf16.msra.mxu1 %v21229_v35  ;;  %v13003_v35 = vpack.c.bf16 %v12972_v53, %v12971_v27  ;;  %v9691_v27 = vsel %vm588_vm3, %v9659_v47, 0.0  ;;  %v12991_v53 = vld [vmem:[#allocation4 + $0xf1] sm:$0xff]  ;;  %v24391_v47 = vsub.f32 %v23754_v34, %v23950_v55 }
 0x6fc   : > { %19497 = vmatprep.subr.bf16.mxu1 %v21230_v16 }
 0x6fd   : > { %v9664_v34 = vmul.f32 %v24391_v47, %v24391_v47 }
 0x6fe   : > { %19128 = vmatmul.mubr.msk.bf16.gmra.mrb[36].mxu1 %vm859_vm0, %v24135_v57  ;;  %v9229_v57 = vld [vmem:[#allocation3 + $0x10a] sm:$0xff] }
 0x6ff   : > { %19131 = vmatprep.mubr.msk.bf16.mxu1 %vm859_vm0, %v9247_v46  ;;  %v9252_v51 = vpack.c.bf16 %v9230_v39, %v9229_v57  ;;  %v12975_v46 = vld [vmem:[#allocation4 + $0x31] sm:$0xff]  ;;  %v12984_v57 = vld [vmem:[#allocation4 + $0x99] sm:$0xff] }
 0x700   : > { %v24310_v13 = vpack.c.bf16 %v12976_v24, %v12975_v46 }
 0x706   : > { %19132 = vmatmul.mubr.msk.bf16.gmra.mrb[40].mxu1 %vm859_vm0, %v9248_v9  ;;  %v12978_v9 = vld [vmem:[#allocation4 + $0x51] sm:$0xff] }
 0x707   : > { %19135 = vmatprep.mubr.msk.bf16.mxu1 %vm859_vm0, %v9249_v5  ;;  %v12979_v5 = vld [vmem:[#allocation4 + $0x61] sm:$0xff]  ;;  %v24324_v8 = vpack.c.bf16 %v12978_v9, %v12977_v21 }
 0x708   : > { %v24326_v62 = vpack.c.bf16 %v12980_v61, %v12979_v5 }
 0x70e   : > { %19136 = vmatmul.mubr.msk.bf16.gmra.mrb[44].mxu1 %vm859_vm0, %v9250_v28  ;;  %v12982_v28 = vld [vmem:[#allocation4 + $0x81] sm:$0xff] }
 0x70f   : > { %19139 = vmatprep.mubr.msk.bf16.mxu1 %vm859_vm0, %v9251_v26  ;;  %v12983_v26 = vld [vmem:[#allocation4 + $0x91] sm:$0xff] }
 0x710   : > { %v24335_v45 = vpack.c.bf16 %v12984_v57, %v12983_v26  ;;  %v12995_v26 = vld [vmem:[#allocation4 + $0x121] sm:$0xff]  ;;  %v12996_v57 = vld [vmem:[#allocation4 + $0x129] sm:$0xff] }
 0x716   : > { %19140 = vmatmul.mubr.msk.bf16.gmra.mrb[48].mxu1 %vm859_vm0, %v9252_v51  ;;  %v12986_v51 = vld [vmem:[#allocation4 + $0xb1] sm:$0xff] }
 0x717   : > { %19143 = vmatprep.mubr.msk.bf16.mxu1 %vm859_vm0, %v9253_v41  ;;  %v26004_v41 = vld [vmem:[#allocation44_spill] sm:$0xff] }
 0x718   : > { %v24343_v0 = vsub.f32 %v26004_v41, %v23950_v55 }
 0x71a   : > { %v9658_v60 = vmul.f32 %v24343_v0, %v24343_v0 }
 0x71c   : > { %v9690_v49 = vsel %vm588_vm3, %v9658_v60, 0.0  ;;  %v13015_v60 = vpack.c.bf16 %v12996_v57, %v12995_v26  ;;  %v13001_v26 = vld [vmem:[#allocation4 + $0x169] sm:$0xff]  ;;  %v13002_v57 = vld [vmem:[#allocation4 + $0x171] sm:$0xff] }
 0x71d   : > { %v9692_v46 = vadd.f32 %v9691_v27, %v9690_v49  ;;  %v12997_v49 = vld [vmem:[#allocation4 + $0x139] sm:$0xff]  ;;  %v12998_v27 = vld [vmem:[#allocation4 + $0x141] sm:$0xff] }
 0x71e   : > { %19144 = vmatmul.mubr.msk.bf16.gmra.mrb[52].mxu1 %vm859_vm0, %v9254_v59  ;;  %v24349_v59 = vpack.c.bf16 %v12986_v51, %v12985_v38  ;;  %v24384_v38 = vsub.f32 %v23759_v1, %v23950_v55 }
 0x71f   : > { %19147 = vmatprep.mubr.msk.bf16.mxu1 %vm859_vm0, %v9255_v10  ;;  %v24351_v10 = vpack.c.bf16 %v12988_v12, %v12987_v37 }
 0x720   : > { %v9663_v42 = vmul.f32 %v24384_v38, %v24384_v38 }
 0x721   : > { %26005 = vst [vmem:[#allocation15_spill] sm:$0xff] %v24351_v10 }
 0x726   : > { %19148 = vmatmul.mubr.msk.bf16.gmra.mrb[56].mxu1 %vm859_vm0, %v9256_v6  ;;  %v24359_v6 = vsub.f32 %v23722_v19, %v23950_v55 }
 0x727   : > { %19151 = vmatprep.mubr.msk.bf16.mxu1 %vm859_vm0, %v24161_v44  ;;  %v21231_v44 = vld [vmem:[%s25816_s8 + $0x8] sm:$0xff]  }
 0x728   : > { %v9660_v19 = vmul.f32 %v24359_v6, %v24359_v6 }
 0x72a   : > { %v9693_v5 = vsel %vm588_vm3, %v9660_v19, 0.0 }
 0x72b   : > { %v9694_v61 = vadd.f32 %v9693_v5, %v9692_v46  ;;  %v13016_v46 = vpack.c.bf16 %v12998_v27, %v12997_v49  ;;  %v9667_v49 = vmul.f32 %v23958_v29, %v23958_v29 }
 0x72e   : > { %19152 = vmatmul.mubr.msk.bf16.gmra.mrb[60].mxu1 %vm859_vm0, %v9258_v40  ;;  %v12992_v40 = vld [vmem:[#allocation4 + $0xf9] sm:$0xff] }
 0x72f   : > { %19465 = vmatprep.mubr.msk.bf16.mxu1 %vm859_vm0, %v13003_v35  ;;  %v26006_v35 = vld [vmem:[#allocation45_spill] sm:$0xff]  ;;  %v13013_v24 = vpack.c.bf16 %v12992_v40, %v12991_v53  ;;  %v12999_v53 = vld [vmem:[#allocation4 + $0x151] sm:$0xff] }
 0x730   : > { %v24369_v50 = vsub.f32 %v26006_v35, %v23950_v55  ;;  %v13000_v40 = vld [vmem:[#allocation4 + $0x159] sm:$0xff]  ;;  %v26008_v35 = vld [vmem:[#allocation47_spill] sm:$0xff] }
 0x731   : > { %v24400_v19 = vsub.f32 %v26008_v35, %v23950_v55  ;;  %v12922_v35 = vld [vmem:[#allocation4 + $0x20] sm:$0xff] }
 0x732   : > { %v9661_v9 = vmul.f32 %v24369_v50, %v24369_v50 }
 0x734   : > { %v9695_v41 = vsel %vm588_vm3, %v9661_v9, 0.0  ;;  %v26009_v9 = vld [vmem:[#allocation48_spill] sm:$0xff] }
 0x735   : > { %v9696_v12 = vadd.f32 %v9695_v41, %v9694_v61  ;;  %v24407_v5 = vsub.f32 %v26009_v9, %v23950_v55  ;;  %v9665_v61 = vmul.f32 %v24400_v19, %v24400_v19  ;;  %v12920_v41 = vld [vmem:[#allocation4 + $0x8] sm:$0xff] }
 0x736   : > { %19466 = vmatmul.mubr.msk.bf16.vlgmr.msra.gmra.mrb[64].mxu1 %vm859_vm0, %v24308_v22  ;;  %v21233_v9 = vld [vmem:[%s25816_s8 + $0x28] sm:$0xff]  }
 0x737   : > { %19469 = vmatprep.mubr.msk.bf16.mxu1 %vm859_vm0, %v24310_v13  ;;  %19498 = vmatpush3.bf16.msra.mxu1 %v21230_v16  ;;  %v12981_v16 = vld [vmem:[#allocation4 + $0x79] sm:$0xff] }
 0x738   : > { %19499 = vmatprep.subr.bf16.mxu1 %v21231_v44  ;;  %v24333_v39 = vpack.c.bf16 %v12982_v28, %v12981_v16  ;;  %v12993_v16 = vld [vmem:[#allocation4 + $0x109] sm:$0xff]  ;;  %v12994_v28 = vld [vmem:[#allocation4 + $0x111] sm:$0xff] }
 0x739   : > { %v13014_v37 = vpack.c.bf16 %v12994_v28, %v12993_v16  ;;  %v9701_v16 = vsel %vm588_vm3, %v9664_v34, 0.0  ;;  %v12923_v34 = vld [vmem:[#allocation4 + $0x30] sm:$0xff] }
 0x73b   : > { %19500 = vmatpush3.bf16.msra.mxu1 %v21231_v44  ;;  %v26007_v44 = vld [vmem:[#allocation46_spill] sm:$0xff] }
 0x73c   : > { %19533 = vmatprep.subr.bf16.mxu1 %v24322_v43  ;;  %v24375_v21 = vsub.f32 %v26007_v44, %v23950_v55  ;;  %v13017_v44 = vpack.c.bf16 %v13000_v40, %v12999_v53  ;;  %v12921_v40 = vld [vmem:[#allocation4 + $0x18] sm:$0xff] }
 0x73e   : > { %19470 = vmatmul.mubr.msk.bf16.gmra.mrb[68].mxu1 %vm859_vm0, %v24324_v8  ;;  %v9662_v51 = vmul.f32 %v24375_v21, %v24375_v21 }
 0x73f   : > { %19473 = vmatprep.mubr.msk.bf16.mxu1 %vm859_vm0, %v24326_v62 }
 0x740   : > { %v9697_v14 = vsel %vm588_vm3, %v9662_v51, 0.0  ;;  %v12919_v51 = vld [vmem:[#allocation4] sm:$0xff] }
 0x741   : > { %v9698_v1 = vadd.f32 %v9697_v14, %v9696_v12  ;;  %v9703_v12 = vsel %vm588_vm3, %v9665_v61, 0.0  ;;  %v12951_v14 = vpack.c.bf16 %v12920_v41, %v12919_v51  ;;  %v9669_v61 = vmul.f32 %v23962_v54, %v23962_v54  ;;  %v12927_v51 = vld [vmem:[#allocation4 + $0x60] sm:$0xff]  ;;  %v12928_v41 = vld [vmem:[#allocation4 + $0x68] sm:$0xff] }
 0x746   : > { %19474 = vmatmul.mubr.msk.bf16.gmra.mrb[72].mxu1 %vm859_vm0, %v24333_v39 }
 0x747   : > { %19477 = vmatprep.mubr.msk.bf16.mxu1 %vm859_vm0, %v24335_v45 }
 0x74e   : > { %19478 = vmatmul.mubr.msk.bf16.gmra.mrb[76].mxu1 %vm859_vm0, %v24349_v59 }
 0x74f   : > { %19481 = vmatprep.mubr.msk.bf16.mxu1 %vm859_vm0, %v24351_v10 }
 0x756   : > { %19482 = vmatmul.mubr.msk.bf16.gmra.mrb[80].mxu1 %vm859_vm0, %v13012_v48  ;;  %v9699_v48 = vsel %vm588_vm3, %v9663_v42, 0.0 }
 0x757   : > { %19485 = vmatprep.mubr.msk.bf16.mxu1 %vm859_vm0, %v13013_v24  ;;  %v9700_v24 = vadd.f32 %v9699_v48, %v9698_v1  ;;  %v24419_v1 = vsub.f32 %v23786_v31, %v23950_v55  ;;  %v12924_v48 = vld [vmem:[#allocation4 + $0x38] sm:$0xff]  ;;  %v9707_v31 = vsel %vm588_vm3, %v9667_v49, 0.0  ;;  %v24429_v55 = vpack.c.bf16 %v12922_v35, %v12921_v40  ;;  %v12930_v35 = vld [vmem:[#allocation4 + $0x80] sm:$0xff] }
 0x758   : > { %v24454_v49 = vpack.c.bf16 %v12928_v41, %v12927_v51  ;;  %v12929_v40 = vld [vmem:[#allocation4 + $0x78] sm:$0xff]  ;;  %v12934_v51 = vld [vmem:[#allocation4 + $0xb0] sm:$0xff]  ;;  %v12935_v41 = vld [vmem:[#allocation4 + $0xc0] sm:$0xff] }
 0x759   : > { %v9702_v28 = vadd.f32 %v9701_v16, %v9700_v24  ;;  %26010 = vst [vmem:[#allocation18_spill] sm:$0xff] %v24419_v1 }
 0x75b   : > { %v9704_v42 = vadd.f32 %v9703_v12, %v9702_v28  ;;  %v9670_v12 = vmul.f32 %v23966_v2, %v23966_v2 }
 0x75e   : > { %19486 = vmatmul.mubr.msk.bf16.gmra.mrb[84].mxu1 %vm859_vm0, %v13014_v37  ;;  %v9666_v37 = vmul.f32 %v24407_v5, %v24407_v5 }
 0x75f   : > { %19489 = vmatprep.mubr.msk.bf16.mxu1 %vm859_vm0, %v13015_v60  ;;  %v13018_v60 = vpack.c.bf16 %v13002_v57, %v13001_v26  ;;  %v12925_v26 = vld [vmem:[#allocation4 + $0x48] sm:$0xff]  ;;  %v12926_v57 = vld [vmem:[#allocation4 + $0x50] sm:$0xff] }
 0x760   : > { %v9705_v27 = vsel %vm588_vm3, %v9666_v37, 0.0  ;;  %v24447_v37 = vld [vmem:[%s25816_s8 + $0x30] sm:$0xff]  }
 0x761   : > { %v9706_v53 = vadd.f32 %v9705_v27, %v9704_v42  ;;  %v24452_v42 = vpack.c.bf16 %v12926_v57, %v12925_v26  ;;  %v9713_v27 = vsel %vm588_vm3, %v9670_v12, 0.0  ;;  %v12933_v57 = vld [vmem:[#allocation4 + $0xa8] sm:$0xff] }
 0x762   : > { %v12936_v12 = vld [vmem:[#allocation4 + $0xc8] sm:$0xff] }
 0x763   : > { %v9708_v24 = vadd.f32 %v9707_v31, %v9706_v53 }
 0x766   : > { %19490 = vmatmul.mubr.msk.bf16.gmra.mrb[88].mxu1 %vm859_vm0, %v13016_v46  ;;  %v9668_v46 = vmul.f32 %v24419_v1, %v24419_v1 }
 0x767   : > { %19493 = vmatprep.mubr.msk.bf16.mxu1 %vm859_vm0, %v13017_v44  ;;  %v24431_v44 = vpack.c.bf16 %v12924_v48, %v12923_v34  ;;  %v12931_v34 = vld [vmem:[#allocation4 + $0x90] sm:$0xff]  ;;  %v12932_v48 = vld [vmem:[#allocation4 + $0x98] sm:$0xff] }
 0x768   : > { %v9709_v16 = vsel %vm588_vm3, %v9668_v46, 0.0  ;;  %v9672_v46 = vmul.f32 %v23974_v18, %v23974_v18 }
 0x769   : > { %v9710_v28 = vadd.f32 %v9709_v16, %v9708_v24  ;;  %v24467_v24 = vpack.c.bf16 %v12930_v35, %v12929_v40  ;;  %v9673_v16 = vmul.f32 %v23978_v63, %v23978_v63  ;;  %v9675_v40 = vmul.f32 %v23986_v25, %v23986_v25 }
 0x76e   : > { %19494 = vmatmul.mubr.msk.bf16.gmra.mrb[92].mxu1 %vm859_vm0, %v13018_v60  ;;  %v9711_v60 = vsel %vm588_vm3, %v9669_v61, 0.0  ;;  %v24469_v61 = vpack.c.bf16 %v12932_v48, %v12931_v34  ;;  %v16784_v34 = vld [vmem:[%s25820_s12 + $0x2] sm:$0x3] }
 0x76f   : > { %19501 = vmatprep.mubr.msk.bf16.mxu1 %vm859_vm0, %v12951_v14  ;;  %v9712_v14 = vadd.f32 %v9711_v60, %v9710_v28  ;;  %v9717_v28 = vsel %vm588_vm3, %v9672_v46, 0.0  ;;  %v9674_v60 = vmul.f32 %v23982_v33, %v23982_v33  ;;  %v12937_v46 = vld [vmem:[#allocation4 + $0xd8] sm:$0xff]  ;;  %21172 = vmatprep.subr.msk.bf16.mxu0 %vm4212_vm6, %v16784_v34 }
 0x771   : > { %v9714_v53 = vadd.f32 %v9713_v27, %v9712_v14  ;;  %v9719_v14 = vsel %vm588_vm3, %v9673_v16, 0.0  ;;  %v9721_v35 = vsel %vm588_vm3, %v9674_v60, 0.0  ;;  %v12939_v16 = vld [vmem:[#allocation4 + $0xf0] sm:$0xff]  ;;  %v9677_v60 = vmul.f32 %v23994_v58, %v23994_v58 }
 0x776   : > { %19502 = vmatmul.mubr.msk.bf16.vlgmr.msra.gmra.mrb[64].mxu1 %vm859_vm0, %v24429_v55 }
 0x777   : > { %19505 = vmatprep.mubr.msk.bf16.mxu1 %vm859_vm0, %v24431_v44  ;;  %19534 = vmatpush3.bf16.msra.mxu1 %v24322_v43  ;;  %v9671_v43 = vmul.f32 %v23970_v52, %v23970_v52  ;;  %v10208_v52 = vld [vmem:[#allocation6 + $0x9] sm:$0xff] }
 0x778   : > { %19535 = vmatprep.subr.bf16.mxu1 %v21233_v9 }
 0x779   : > { %v9715_v31 = vsel %vm588_vm3, %v9671_v43, 0.0  ;;  %v24481_v43 = vpack.c.bf16 %v12934_v51, %v12933_v57  ;;  %v9723_v57 = vsel %vm588_vm3, %v9675_v40, 0.0  ;;  %v12943_v40 = vld [vmem:[#allocation4 + $0x120] sm:$0xff] }
 0x77b   : > { %19536 = vmatpush3.bf16.msra.mxu1 %v21233_v9  ;;  %v9716_v9 = vadd.f32 %v9715_v31, %v9714_v53  ;;  %v24483_v53 = vpack.c.bf16 %v12936_v12, %v12935_v41  ;;  %v12938_v31 = vld [vmem:[#allocation4 + $0xe0] sm:$0xff] }
 0x77c   : > { %19569 = vmatprep.subr.bf16.mxu1 %v24447_v37  ;;  %v24500_v51 = vpack.c.bf16 %v12938_v31, %v12937_v46  ;;  %v12944_v46 = vld [vmem:[#allocation4 + $0x128] sm:$0xff]  ;;  %v9727_v31 = vsel %vm588_vm3, %v9677_v60, 0.0  ;;  %v12946_v60 = vld [vmem:[#allocation4 + $0x140] sm:$0xff] }
 0x77d   : > { %v9718_v26 = vadd.f32 %v9717_v28, %v9716_v9  ;;  %v10306_v9 = vsel %vm4212_vm6, %v16784_v34, 0  ;;  %v12940_v28 = vld [vmem:[#allocation4 + $0xf8] sm:$0xff]  ;;  %v12942_v34 = vld [vmem:[#allocation4 + $0x110] sm:$0xff] }
 0x77e   : > { %19506 = vmatmul.mubr.msk.bf16.gmra.mrb[68].mxu1 %vm859_vm0, %v24452_v42  ;;  %19156 = vmatpush3.bf16.msra.mxu0 %v10306_v9  ;;  %v24502_v12 = vpack.c.bf16 %v12940_v28, %v12939_v16  ;;  %v24516_v28 = vpack.c.bf16 %v12944_v46, %v12943_v40 }
 0x77f   : > { %19509 = vmatprep.mubr.msk.bf16.mxu1 %vm859_vm0, %v24454_v49  ;;  %v9720_v27 = vadd.f32 %v9719_v14, %v9718_v26  ;;  %v9676_v26 = vmul.f32 %v23990_v32, %v23990_v32  ;;  %v24590_v32 = vld [vmem:[%s25815_s7] ss:$0 sm:$0xff] }
 0x781   : > { %v9722_v48 = vadd.f32 %v9721_v35, %v9720_v27  ;;  %v9725_v14 = vsel %vm588_vm3, %v9676_v26, 0.0  ;;  %v12941_v35 = vld [vmem:[#allocation4 + $0x108] sm:$0xff]  ;;  %v9679_v26 = vmul.f32 %v24002_v4, %v24002_v4 }
 0x782   : > { %v24514_v9 = vpack.c.bf16 %v12942_v34, %v12941_v35  ;;  %v12947_v35 = vld [vmem:[#allocation4 + $0x150] sm:$0xff]  ;;  %v12948_v34 = vld [vmem:[#allocation4 + $0x158] sm:$0xff] }
 0x783   : > { %v9724_v41 = vadd.f32 %v9723_v57, %v9722_v48  ;;  %v9678_v48 = vmul.f32 %v23998_v15, %v23998_v15  ;;  %v9731_v40 = vsel %vm588_vm3, %v9679_v26, 0.0  ;;  %v12950_v15 = vld [vmem:[#allocation4 + $0x170] sm:$0xff]  ;;  %v17391_v26 = vld [vmem:[%s24191_s23 + $0x78] sm:$0xff]   ;;  %s554_s23 = scalar_lea.vmem %s25823_s15, %s17154_s27 }
 0x785   : > { %v9726_v27 = vadd.f32 %v9725_v14, %v9724_v41  ;;  %v9729_v57 = vsel %vm588_vm3, %v9678_v48, 0.0  ;;  %v12945_v14 = vld [vmem:[#allocation4 + $0x138] sm:$0xff] }
 0x786   : > { %19510 = vmatmul.mubr.msk.bf16.gmra.mrb[72].mxu1 %vm859_vm0, %v24467_v24  ;;  %v24528_v46 = vpack.c.bf16 %v12946_v60, %v12945_v14  ;;  %v13466_v14 = vld [vmem:[#allocation4 + $0x2] sm:$0xff]  ;;  %v13467_v60 = vld [vmem:[#allocation4 + $0xa] sm:$0xff] }
 0x787   : > { %19513 = vmatprep.mubr.msk.bf16.mxu1 %vm859_vm0, %v24469_v61  ;;  %v9728_v16 = vadd.f32 %v9727_v31, %v9726_v27  ;;  %v9680_v27 = vmul.f32 %v24006_v36, %v24006_v36  ;;  %v24530_v31 = vpack.c.bf16 %v12948_v34, %v12947_v35  ;;  %v12949_v36 = vld [vmem:[#allocation4 + $0x168] sm:$0xff]  ;;  %v17346_v35 = vunpack.c.h.bf16 %v17391_v26 }
 0x788   : > { %v9682_v34 = vmul.f32 %v24014_v11, %v24014_v11  ;;  %v13471_v11 = vld [vmem:[#allocation4 + $0x3a] sm:$0xff] }
 0x789   : > { %v9730_v41 = vadd.f32 %v9729_v57, %v9728_v16  ;;  %v9681_v16 = vmul.f32 %v24010_v7, %v24010_v7  ;;  %v9733_v57 = vsel %vm588_vm3, %v9680_v27, 0.0  ;;  %v24543_v27 = vpack.c.bf16 %v12950_v15, %v12949_v36  ;;  %12918 = vst.msk [vmem:[#allocation4 + $0x189] sm:$0xff] %vm859_vm0, %v17346_v35  ;;  %v13469_v15 = vld [vmem:[#allocation4 + $0x22] sm:$0xff]  ;;  %v13470_v36 = vld [vmem:[#allocation4 + $0x32] sm:$0xff] }
 0x78a   : > { %v9683_v7 = vmul.f32 %v24017_v30, %v24017_v30  ;;  %v9737_v58 = vsel %vm588_vm3, %v9682_v34, 0.0  ;;  %v13500_v35 = vpack.c.bf16 %v13471_v11, %v13470_v36  ;;  %v21235_v34 = vld [vmem:[%s25816_s8 + $0x38] sm:$0xff]   ;;  %v13475_v11 = vld [vmem:[#allocation4 + $0x6a] sm:$0xff] }
 0x78b   : > { %v9732_v48 = vadd.f32 %v9731_v40, %v9730_v41  ;;  %v17345_v41 = vunpack.c.l.bf16 %v17391_v26  ;;  %v9735_v40 = vsel %vm588_vm3, %v9681_v16, 0.0  ;;  %v13468_v16 = vld [vmem:[#allocation4 + $0x1a] sm:$0xff]  ;;  %v13478_v30 = vld [vmem:[#allocation4 + $0x92] sm:$0xff] }
 0x78d   : > { %v9734_v4 = vadd.f32 %v9733_v57, %v9732_v48  ;;  %12917 = vst.msk [vmem:[#allocation4 + $0x181] sm:$0xff] %vm859_vm0, %v17345_v41  ;;  %v13498_v57 = vpack.c.bf16 %v13467_v60, %v13466_v14  ;;  %v9684_v41 = vmul.f32 %v24021_v56, %v24021_v56  ;;  %v13499_v14 = vpack.c.bf16 %v13469_v15, %v13468_v16  ;;  %v24568_v16 = vld [vmem:[%s25816_s8 + $0x40] sm:$0xff]  }
 0x78e   : > { %19514 = vmatmul.mubr.msk.bf16.gmra.mrb[76].mxu1 %vm859_vm0, %v24481_v43  ;;  %v9686_v15 = vmul.f32 %v24027_v20, %v24027_v20  ;;  %v13477_v56 = vld [vmem:[#allocation4 + $0x82] sm:$0xff] }
 0x78f   : > { %19517 = vmatprep.mubr.msk.bf16.mxu1 %vm859_vm0, %v24483_v53  ;;  %v9736_v48 = vadd.f32 %v9735_v40, %v9734_v4  ;;  %v9739_v4 = vsel %vm588_vm3, %v9683_v7, 0.0  ;;  %v9741_v40 = vsel %vm588_vm3, %v9684_v41, 0.0  ;;  %v13472_v7 = vld [vmem:[#allocation4 + $0x4a] sm:$0xff] }
 0x791   : > { %v9738_v26 = vadd.f32 %v9737_v58, %v9736_v48  ;;  %v9685_v58 = vmul.f32 %v24024_v17, %v24024_v17 }
 0x793   : > { %v9740_v60 = vadd.f32 %v9739_v4, %v9738_v26  ;;  %v13474_v26 = vld [vmem:[#allocation4 + $0x62] sm:$0xff]  ;;  %v9743_v36 = vsel %vm588_vm3, %v9685_v58, 0.0  ;;  %v13479_v58 = vld [vmem:[#allocation4 + $0x9a] sm:$0xff] }
 0x795   : > { %v9742_v48 = vadd.f32 %v9741_v40, %v9740_v60  ;;  %v9745_v60 = vsel %vm588_vm3, %v9686_v15, 0.0  ;;  %v13476_v40 = vld [vmem:[#allocation4 + $0x7a] sm:$0xff] }
 0x796   : > { %19518 = vmatmul.mubr.msk.bf16.gmra.mrb[80].mxu1 %vm859_vm0, %v24500_v51 }
 0x797   : > { %19521 = vmatprep.mubr.msk.bf16.mxu1 %vm859_vm0, %v24502_v12  ;;  %v9744_v4 = vadd.f32 %v9743_v36, %v9742_v48  ;;  %v26012_v36 = vld [vmem:[#allocation67_spill] sm:$0xff] }
 0x798   : > { %v9689_v15 = vmul.f32 %v26012_v36, %v26012_v36 }
 0x79e   : > { %19522 = vmatmul.mubr.msk.bf16.gmra.mrb[84].mxu1 %vm859_vm0, %v24514_v9 }
 0x79f   : > { %19525 = vmatprep.mubr.msk.bf16.mxu1 %vm859_vm0, %v24516_v28 }
 0x7a6   : > { %19526 = vmatmul.mubr.msk.bf16.gmra.mrb[88].mxu1 %vm859_vm0, %v24528_v46 }
 0x7a7   : > { %19529 = vmatprep.mubr.msk.bf16.mxu1 %vm859_vm0, %v24530_v31 }
 0x7ae   : > { %19530 = vmatmul.mubr.msk.bf16.gmra.mrb[92].mxu1 %vm859_vm0, %v24543_v27 }
 0x7af   : > { %19537 = vmatprep.mubr.msk.bf16.mxu1 %vm859_vm0, %v13498_v57  ;;  %v13473_v57 = vld [vmem:[#allocation4 + $0x52] sm:$0xff] }
 0x7b0   : > { %v13501_v41 = vpack.c.bf16 %v13473_v57, %v13472_v7  ;;  %v26011_v7 = vld [vmem:[#allocation66_spill] sm:$0xff]  ;;  %v13503_v57 = vpack.c.bf16 %v13477_v56, %v13476_v40 }
 0x7b1   : > { %v9688_v48 = vmul.f32 %v26011_v7, %v26011_v7  ;;  %v13482_v56 = vld [vmem:[#allocation4 + $0xc2] sm:$0xff] }
 0x7b6   : > { %19538 = vmatmul.mubr.msk.bf16.vlgmr.msra.gmra.mrb[64].mxu1 %vm859_vm0, %v13499_v14  ;;  %v13502_v14 = vpack.c.bf16 %v13475_v11, %v13474_v26  ;;  %v13504_v11 = vpack.c.bf16 %v13479_v58, %v13478_v30 }
 0x7b7   : > { %19541 = vmatprep.mubr.msk.bf16.mxu1 %vm859_vm0, %v13500_v35  ;;  %19570 = vmatpush3.bf16.msra.mxu1 %v24447_v37  ;;  %v9687_v37 = vmul.f32 %v24030_v3, %v24030_v3  ;;  %v9746_v35 = vadd.f32 %v9745_v60, %v9744_v4  ;;  %v13481_v60 = vld [vmem:[#allocation4 + $0xb2] sm:$0xff] }
 0x7b8   : > { %19571 = vmatprep.subr.bf16.mxu1 %v21235_v34 }
 0x7bb   : > { %19572 = vmatpush3.bf16.msra.mxu1 %v21235_v34  ;;  %v9747_v34 = vsel %vm588_vm3, %v9687_v37, 0.0  ;;  %v13483_v37 = vld [vmem:[#allocation4 + $0xca] sm:$0xff] }
 0x7bc   : > { %19605 = vmatprep.subr.bf16.mxu1 %v24568_v16  ;;  %v9748_v26 = vadd.f32 %v9747_v34, %v9746_v35  ;;  %v9751_v35 = vsel %vm588_vm3, %v9689_v15, 0.0 }
 0x7be   : > { %19542 = vmatmul.mubr.msk.bf16.gmra.mrb[68].mxu1 %vm859_vm0, %v13501_v41  ;;  %v9749_v41 = vsel %vm588_vm3, %v9688_v48, 0.0 }
 0x7bf   : > { %19545 = vmatprep.mubr.msk.bf16.mxu1 %vm859_vm0, %v13502_v14  ;;  %v9750_v4 = vadd.f32 %v9749_v41, %v9748_v26  ;;  %v13480_v14 = vld [vmem:[#allocation4 + $0xaa] sm:$0xff]  ;;  %v13506_v26 = vpack.c.bf16 %v13483_v37, %v13482_v56  ;;  %v13487_v56 = vld [vmem:[#allocation4 + $0xfa] sm:$0xff] }
 0x7c0   : > { %v13505_v58 = vpack.c.bf16 %v13481_v60, %v13480_v14  ;;  %v13485_v14 = vld [vmem:[#allocation4 + $0xe2] sm:$0xff]  ;;  %v13486_v60 = vld [vmem:[#allocation4 + $0xf2] sm:$0xff] }
 0x7c1   : > { %v9752_v48 = vadd.f32 %v9751_v35, %v9750_v4  ;;  %v13484_v4 = vld [vmem:[#allocation4 + $0xda] sm:$0xff]  ;;  %v13508_v33 = vpack.c.bf16 %v13487_v56, %v13486_v60  ;;  %v13489_v60 = vld [vmem:[#allocation4 + $0x112] sm:$0xff]  ;;  %v13490_v56 = vld [vmem:[#allocation4 + $0x122] sm:$0xff] }
 0x7c3   : > { %v9753_v25 = vrot.slane %v9752_v48, 4 }
 0x7c6   : > { %19546 = vmatmul.mubr.msk.bf16.gmra.mrb[72].mxu1 %vm859_vm0, %v13503_v57 }
 0x7c7   : > { %19549 = vmatprep.mubr.msk.bf16.mxu1 %vm859_vm0, %v13504_v11 }
 0x7c9   : > { %v19125_v30 = vpop.f32.mrb[32].mxu1 }
 0x7ca   : > { %v9358_v40 = vpop.f32.mrb[33].mxu1  ;;  %v24603_v15 = vadd.f32 %v19125_v30, %v24590_v32  ;;  %v9754_v30 = vadd.f32 %v9753_v25, %v9752_v48  ;;  %v24626_v25 = vld [vmem:[%s25820_s12] sm:$0x3] }
 0x7cb   : > { %v24594_v34 = vadd.f32 %v24590_v32, %v9358_v40  ;;  %v19126_v57 = vpop.f32.mrb[34].mxu1  ;;  %26013 = vst [vmem:[#allocation16_spill] sm:$0xff] %v24626_v25  ;;  %21173 = vmatprep.subr.msk.bf16.mxu0 %vm4212_vm6, %v24626_v25 }
 0x7cc   : > { %v9361_v11 = vpop.f32.mrb[35].mxu1  ;;  %v24609_v37 = vadd.f32 %v19126_v57, %v24590_v32  ;;  %v10207_v57 = vld [vmem:[#allocation6 + $0x1] sm:$0xff] }
 0x7cd   : > { %v24597_v41 = vadd.f32 %v24590_v32, %v9361_v11  ;;  %9858 = vrot.lane.b32.xlu0 %v24594_v34, %s21259_s30  ;;  %v10239_v48 = vpack.c.bf16 %v10208_v52, %v10207_v57 }
 0x7ce   : > { %19550 = vmatmul.mubr.msk.bf16.gmra.mrb[76].mxu1 %vm859_vm0, %v13505_v58  ;;  %v13507_v58 = vpack.c.bf16 %v13485_v14, %v13484_v4  ;;  %v9755_v4 = vrot.slane %v9754_v30, 2  ;;  %v13488_v14 = vld [vmem:[#allocation4 + $0x10a] sm:$0xff] }
 0x7cf   : > { %9860 = vrot.lane.b32.xlu1 %v24597_v41, %s21259_s30  ;;  %19553 = vmatprep.mubr.msk.bf16.mxu1 %vm859_vm0, %v13506_v26  ;;  %v13509_v57 = vpack.c.bf16 %v13489_v60, %v13488_v14  ;;  %v13493_v14 = vld [vmem:[#allocation4 + $0x142] sm:$0xff]  ;;  %v13494_v60 = vld [vmem:[#allocation4 + $0x152] sm:$0xff] }
 0x7d0   : > { %19157 = vmatprep.mubr.msk.bf16.mxu0 %vm588_vm3, %v10239_v48  ;;  %v9756_v2 = vadd.f32 %v9755_v4, %v9754_v30  ;;  %v13492_v4 = vld [vmem:[#allocation4 + $0x13a] sm:$0xff] }
 0x7d1   : > { %9862 = vrot.lane.b32.xlu0 %v24603_v15, %s21259_s30  ;;  %v19129_v35 = vpop.f32.mrb[36].mxu1 }
 0x7d2   : > { %v9374_v40 = vpop.f32.mrb[37].mxu1 }
 0x7d3   : > { %v24614_v11 = vadd.f32 %v24590_v32, %v9374_v40  ;;  %9864 = vrot.lane.b32.xlu1 %v24609_v37, %s21259_s30  ;;  %v19130_v26 = vpop.f32.mrb[38].mxu1  ;;  %v13491_v40 = vld [vmem:[#allocation4 + $0x12a] sm:$0xff] }
 0x7d4   : > { %v9377_v63 = vpop.f32.mrb[39].mxu1  ;;  %v24639_v52 = vadd.f32 %v19130_v26, %v24590_v32  ;;  %v13510_v1 = vpack.c.bf16 %v13491_v40, %v13490_v56  ;;  %v9757_v26 = vrot.slane %v9756_v2, 1  ;;  %v13495_v56 = vld [vmem:[#allocation4 + $0x15a] sm:$0xff] }
 0x7d5   : > { %v24619_v18 = vadd.f32 %v24590_v32, %v9377_v63  ;;  %9866 = vrot.lane.b32.xlu0 %v24614_v11, %s21259_s30  ;;  %v24632_v63 = vadd.f32 %v19129_v35, %v24590_v32 }
 0x7d6   : > { %19554 = vmatmul.mubr.msk.bf16.gmra.mrb[80].mxu1 %vm859_vm0, %v13507_v58 }
 0x7d7   : > { %9868 = vrot.lane.b32.xlu1 %v24619_v18, %s21259_s30  ;;  %19557 = vmatprep.mubr.msk.bf16.mxu1 %vm859_vm0, %v13508_v33 }
 0x7d9   : > { %9870 = vrot.lane.b32.xlu0 %v24632_v63, %s21259_s30  ;;  %v19133_v58 = vpop.f32.mrb[40].mxu1 }
 0x7da   : > { %v9390_v35 = vpop.f32.mrb[41].mxu1  ;;  %v24655_v30 = vadd.f32 %v19133_v58, %v24590_v32  ;;  %v9758_v58 = vadd.f32 %v9757_v26, %v9756_v2  ;;  %v13496_v26 = vld [vmem:[#allocation4 + $0x16a] sm:$0xff] }
 0x7db   : > { %v24644_v54 = vadd.f32 %v24590_v32, %v9390_v35  ;;  %9872 = vrot.lane.b32.xlu1 %v24639_v52, %s21259_s30  ;;  %v19134_v33 = vpop.f32.mrb[42].mxu1 }
 0x7dc   : > { %v9393_v25 = vpop.f32.mrb[43].mxu1 }
 0x7dd   : > { %26014 = vst [vmem:[#allocation19_spill] sm:$0xff] %v24644_v54  ;;  %v24649_v48 = vadd.f32 %v24590_v32, %v9393_v25  ;;  %9874 = vrot.lane.b32.xlu0 %v24644_v54, %s21259_s30  ;;  %v24661_v25 = vadd.f32 %v19134_v33, %v24590_v32  ;;  %v9759_v33 = vmul.f32 0.00390625, %v9758_v58 }
 0x7de   : > { %19558 = vmatmul.mubr.msk.bf16.gmra.mrb[84].mxu1 %vm859_vm0, %v13509_v57  ;;  %v13511_v57 = vpack.c.bf16 %v13493_v14, %v13492_v4  ;;  %v13497_v4 = vld [vmem:[#allocation4 + $0x172] sm:$0xff] }
 0x7df   : > { %26015 = vst [vmem:[#allocation20_spill] sm:$0xff] %v24649_v48  ;;  %9876 = vrot.lane.b32.xlu1 %v24649_v48, %s21259_s30  ;;  %19561 = vmatprep.mubr.msk.bf16.mxu1 %vm859_vm0, %v13510_v1  ;;  %v13512_v48 = vpack.c.bf16 %v13495_v56, %v13494_v60  ;;  %v13513_v56 = vpack.c.bf16 %v13497_v4, %v13496_v26 }
 0x7e1   : > { %9878 = vrot.lane.b32.xlu0 %v24655_v30, %s21259_s30  ;;  %v19137_v40 = vpop.f32.mrb[44].mxu1 }
 0x7e2   : > { %v9406_v35 = vpop.f32.mrb[45].mxu1  ;;  %v24677_v2 = vadd.f32 %v19137_v40, %v24590_v32 }
 0x7e3   : > { %v24666_v10 = vadd.f32 %v24590_v32, %v9406_v35  ;;  %9880 = vrot.lane.b32.xlu1 %v24661_v25, %s21259_s30  ;;  %v19138_v1 = vpop.f32.mrb[46].mxu1  ;;  %v9760_v35 = vadd.f32 1e-05, %v9759_v33 }
 0x7e4   : > { %v9409_v29 = vpop.f32.mrb[47].mxu1  ;;  %v24683_v14 = vadd.f32 %v19138_v1, %v24590_v32 }
 0x7e5   : > { %v24671_v54 = vadd.f32 %v24590_v32, %v9409_v29  ;;  %9882 = vrot.lane.b32.xlu0 %v24666_v10, %s21259_s30  ;;  %21248 = vrsqrt.f32 %v9760_v35 }
 0x7e6   : > { %19562 = vmatmul.mubr.msk.bf16.gmra.mrb[88].mxu1 %vm859_vm0, %v13511_v57 }
 0x7e7   : > { %9884 = vrot.lane.b32.xlu1 %v24671_v54, %s21259_s30  ;;  %19565 = vmatprep.mubr.msk.bf16.mxu1 %vm859_vm0, %v13512_v48 }
 0x7e9   : > { %9886 = vrot.lane.b32.xlu0 %v24677_v2, %s21259_s30  ;;  %v19141_v29 = vpop.f32.mrb[48].mxu1 }
 0x7ea   : > { %v9422_v60 = vpop.f32.mrb[49].mxu1  ;;  %v24699_v1 = vadd.f32 %v19141_v29, %v24590_v32 }
 0x7eb   : > { %v24688_v40 = vadd.f32 %v24590_v32, %v9422_v60  ;;  %9888 = vrot.lane.b32.xlu1 %v24683_v14, %s21259_s30  ;;  %v19142_v57 = vpop.f32.mrb[50].mxu1 }
 0x7ec   : > { %v9425_v48 = vpop.f32.mrb[51].mxu1  ;;  %v24706_v33 = vadd.f32 %v19142_v57, %v24590_v32 }
 0x7ed   : > { %v24693_v58 = vadd.f32 %v24590_v32, %v9425_v48  ;;  %9890 = vrot.lane.b32.xlu0 %v24688_v40, %s21259_s30 }
 0x7ee   : > { %19566 = vmatmul.mubr.msk.bf16.gmra.mrb[92].mxu1 %vm859_vm0, %v13513_v56 }
 0x7ef   : > { %9892 = vrot.lane.b32.xlu1 %v24693_v58, %s21259_s30  ;;  %19573 = vmatprep.mubr.msk.bf16.mxu1 %vm859_vm0, %v24429_v55  ;;  %v21237_v55 = vld [vmem:[%s25816_s8 + $0x48] sm:$0xff]   ;;  %v24733_v48 = vpop.eup %21248 }
 0x7f1   : > { %9894 = vrot.lane.b32.xlu0 %v24699_v1, %s21259_s30  ;;  %v19145_v26 = vpop.f32.mrb[52].mxu1 }
 0x7f2   : > { %v9438_v4 = vpop.f32.mrb[53].mxu1  ;;  %v24726_v57 = vadd.f32 %v19145_v26, %v24590_v32  ;;  %v21238_v26 = vld [vmem:[%s25816_s8 + $0x50] sm:$0xff]  }
 0x7f3   : > { %v24711_v60 = vadd.f32 %v24590_v32, %v9438_v4  ;;  %9896 = vrot.lane.b32.xlu1 %v24706_v33, %s21259_s30  ;;  %v19146_v29 = vpop.f32.mrb[54].mxu1 }
 0x7f4   : > { %v9441_v56 = vpop.f32.mrb[55].mxu1  ;;  %26018 = vst [vmem:[#allocation46_spill] sm:$0xff] %v24726_v57  ;;  %v24736_v4 = vadd.f32 %v19146_v29, %v24590_v32 }
 0x7f5   : > { %26016 = vst [vmem:[#allocation44_spill] sm:$0xff] %v24711_v60  ;;  %v24716_v35 = vadd.f32 %v24590_v32, %v9441_v56  ;;  %9898 = vrot.lane.b32.xlu0 %v24711_v60, %s21259_s30 }
 0x7f6   : > { %19574 = vmatmul.mubr.msk.bf16.vlgmr.msra.gmra.mrb[64].mxu1 %vm859_vm0, %v24431_v44  ;;  %26019 = vst [vmem:[#allocation47_spill] sm:$0xff] %v24736_v4 }
 0x7f7   : > { %26017 = vst [vmem:[#allocation45_spill] sm:$0xff] %v24716_v35  ;;  %9900 = vrot.lane.b32.xlu1 %v24716_v35, %s21259_s30  ;;  %19577 = vmatprep.mubr.msk.bf16.mxu1 %vm859_vm0, %v24452_v42 }
 0x7f8   : > { %19606 = vmatpush3.bf16.msra.mxu1 %v24568_v16 }
 0x7f9   : > { %9902 = vrot.lane.b32.xlu0 %v24726_v57, %s21259_s30  ;;  %v19149_v44 = vpop.f32.mrb[56].mxu1  ;;  %19607 = vmatprep.subr.bf16.mxu1 %v21237_v55  ;;  %v9789_v57 = vmul.f32 %v24733_v48, %v24024_v17 }
 0x7fa   : > { %v9454_v56 = vpop.f32.mrb[57].mxu1 }
 0x7fb   : > { %v24744_v35 = vadd.f32 %v24590_v32, %v9454_v56  ;;  %9904 = vrot.lane.b32.xlu1 %v24736_v4, %s21259_s30  ;;  %v19150_v42 = vpop.f32.mrb[58].mxu1  ;;  %v24761_v4 = vadd.f32 %v19149_v44, %v24590_v32 }
 0x7fc   : > { %v9551_v16 = vadd.f32 %v19150_v42, %v24590_v32  ;;  %v9457_v29 = vpop.f32.mrb[59].mxu1  ;;  %19608 = vmatpush3.bf16.msra.mxu1 %v21237_v55 }
 0x7fd   : > { %v24752_v60 = vadd.f32 %v24590_v32, %v9457_v29  ;;  %9906 = vrot.lane.b32.xlu0 %v24744_v35, %s21259_s30  ;;  %19641 = vmatprep.subr.bf16.mxu1 %v21238_v26  ;;  %26022 = vst [vmem:[#allocation67_spill] sm:$0xff] %v24761_v4  ;;  %v9790_v29 = vmul.f32 %v24733_v48, %v24027_v20 }
 0x7fe   : > { %19578 = vmatmul.mubr.msk.bf16.gmra.mrb[68].mxu1 %vm859_vm0, %v24454_v49  ;;  %v24758_v56 = vmul.f32 %v9789_v57, %v9551_v16  ;;  %v9792_v49 = vmul.f32 %v24733_v48, %v26011_v7 }
 0x7ff   : > { %26020 = vst [vmem:[#allocation48_spill] sm:$0xff] %v24752_v60  ;;  %9908 = vrot.lane.b32.xlu1 %v24752_v60, %s21259_s30  ;;  %19581 = vmatprep.mubr.msk.bf16.mxu1 %vm859_vm0, %v24467_v24 }
 0x800   : > { %26021 = vst [vmem:[#allocation66_spill] sm:$0xff] %v24758_v56 }
 0x801   : > { %9910 = vrot.lane.b32.xlu0 %v24761_v4, %s21259_s30  ;;  %v19153_v17 = vpop.f32.mrb[60].mxu1 }
 0x802   : > { %v9554_v55 = vadd.f32 %v19153_v17, %v24590_v32  ;;  %v9470_v42 = vpop.f32.mrb[61].mxu1  ;;  %v9793_v17 = vmul.f32 %v24733_v48, %v26012_v36 }
 0x803   : > { %v9552_v57 = vadd.f32 %v24590_v32, %v9470_v42  ;;  %9912 = vrot.lane.b32.xlu1 %v9551_v16, %s21259_s30  ;;  %v19154_v44 = vpop.f32.mrb[62].mxu1  ;;  %v9791_v16 = vmul.f32 %v24733_v48, %v24030_v3  ;;  %v13803_v3 = vld [vmem:[#allocation4 + $0x188] sm:$0xff] }
 0x804   : > { %v9555_v24 = vadd.f32 %v19154_v44, %v24590_v32  ;;  %v9473_v56 = vpop.f32.mrb[63].mxu1  ;;  %v24777_v60 = vmul.f32 %v9792_v49, %v9554_v55  ;;  %v9768_v49 = vmul.f32 %v24733_v48, %v24391_v47  ;;  %v14094_v44 = vld [vmem:[#allocation4 + $0xd9] sm:$0xff] }
 0x805   : > { %v9553_v4 = vadd.f32 %v24590_v32, %v9473_v56  ;;  %9914 = vrot.lane.b32.xlu0 %v9552_v57, %s21259_s30  ;;  %v24783_v7 = vmul.f32 %v9790_v29, %v9552_v57  ;;  %v13802_v32 = vld [vmem:[#allocation4 + $0x180] sm:$0xff]  ;;  %v9767_v56 = vmul.f32 %v24733_v48, %v24384_v38 }
 0x806   : > { %19582 = vmatmul.mubr.msk.bf16.gmra.mrb[72].mxu1 %vm859_vm0, %v24469_v61  ;;  %v24789_v20 = vmul.f32 %v9793_v17, %v9555_v24  ;;  %v13819_v61 = vpack.c.bf16 %v13803_v3, %v13802_v32  ;;  %v14095_v29 = vld [vmem:[#allocation4 + $0xe1] sm:$0xff]  ;;  %v9770_v3 = vmul.f32 %v24733_v48, %v24407_v5 }
 0x807   : > { %9916 = vrot.lane.b32.xlu1 %v9553_v4, %s21259_s30  ;;  %19585 = vmatprep.mubr.msk.bf16.mxu1 %vm859_vm0, %v24481_v43  ;;  %v24794_v36 = vmul.f32 %v9791_v16, %v9553_v4  ;;  %v21239_v43 = vld [vmem:[%s25816_s8 + $0x58] sm:$0xff]  }
 0x809   : > { %9918 = vrot.lane.b32.xlu0 %v9554_v55, %s21259_s30 }
 0x80b   : > { %9920 = vrot.lane.b32.xlu1 %v9555_v24, %s21259_s30  ;;  %v9800_v24 = vmul.f32 %v9768_v49, %v24632_v63 }
 0x80e   : > { %19586 = vmatmul.mubr.msk.bf16.gmra.mrb[76].mxu1 %vm859_vm0, %v24483_v53  ;;  %v24827_v53 = vld [vmem:[%s25816_s8 + $0x60] sm:$0xff]  }
 0x80f   : > { %19589 = vmatprep.mubr.msk.bf16.mxu1 %vm859_vm0, %v24500_v51 }
 0x816   : > { %19590 = vmatmul.mubr.msk.bf16.gmra.mrb[80].mxu1 %vm859_vm0, %v24502_v12 }
 0x817   : > { %19593 = vmatprep.mubr.msk.bf16.mxu1 %vm859_vm0, %v24514_v9 }
 0x81e   : > { %19594 = vmatmul.mubr.msk.bf16.gmra.mrb[84].mxu1 %vm859_vm0, %v24516_v28 }
 0x81f   : > { %19597 = vmatprep.mubr.msk.bf16.mxu1 %vm859_vm0, %v24528_v46  ;;  %v9765_v46 = vmul.f32 %v24733_v48, %v24369_v50 }
 0x826   : > { %19598 = vmatmul.mubr.msk.bf16.gmra.mrb[88].mxu1 %vm859_vm0, %v24530_v31 }
 0x827   : > { %19601 = vmatprep.mubr.msk.bf16.mxu1 %vm859_vm0, %v24543_v27 }
 0x82e   : > { %19602 = vmatmul.mubr.msk.bf16.gmra.mrb[92].mxu1 %vm859_vm0, %v13819_v61  ;;  %v14118_v61 = vpack.c.bf16 %v14095_v29, %v14094_v44 }
 0x82f   : > { %19609 = vmatprep.mubr.msk.bf16.mxu1 %vm859_vm0, %v24308_v22  ;;  %v9762_v22 = vmul.f32 %v24733_v48, %v24343_v0  ;;  %v9764_v0 = vmul.f32 %v24733_v48, %v24359_v6 }
 0x831   : > { %v9796_v27 = vmul.f32 %v9764_v0, %v24603_v15 }
 0x836   : > { %19610 = vmatmul.mubr.msk.bf16.vlgmr.msra.gmra.mrb[64].mxu1 %vm859_vm0, %v24310_v13  ;;  %v9794_v13 = vmul.f32 %v9762_v22, %v24594_v34  ;;  %v9797_v34 = vmul.f32 %v9765_v46, %v24609_v37  ;;  %v9799_v37 = vmul.f32 %v9767_v56, %v24619_v18  ;;  %v9769_v18 = vmul.f32 %v24733_v48, %v24400_v19  ;;  %v26025_v46 = vld [vmem:[#allocation15_spill] sm:$0xff] }
 0x837   : > { %19613 = vmatprep.mubr.msk.bf16.mxu1 %vm859_vm0, %v24324_v8  ;;  %19642 = vmatpush3.bf16.msra.mxu1 %v21238_v26  ;;  %v9763_v8 = vmul.f32 %v24733_v48, %v24347_v23 }
 0x838   : > { %19643 = vmatprep.subr.bf16.mxu1 %v21239_v43  ;;  %v9801_v32 = vmul.f32 %v9769_v18, %v24639_v52 }
 0x839   : > { %v9795_v9 = vmul.f32 %v9763_v8, %v24597_v41 }
 0x83b   : > { %19644 = vmatpush3.bf16.msra.mxu1 %v21239_v43 }
 0x83c   : > { %19677 = vmatprep.subr.bf16.mxu1 %v24827_v53 }
 0x83e   : > { %19614 = vmatmul.mubr.msk.bf16.gmra.mrb[68].mxu1 %vm859_vm0, %v24326_v62 }
 0x83f   : > { %v9859_v51 = vpop.permute.xlu0 %9858  ;;  %19617 = vmatprep.mubr.msk.bf16.mxu1 %vm859_vm0, %v24333_v39  ;;  %v9766_v39 = vmul.f32 %v24733_v48, %v24375_v21 }
 0x840   : > { %v9954_v12 = vadd.f32 %v9859_v51, %v9794_v13  ;;  %v26023_v13 = vld [vmem:[#allocation19_spill] sm:$0xff]  ;;  %v26024_v51 = vld [vmem:[#allocation49_spill] sm:$0xff] }
 0x841   : > { %v9861_v28 = vpop.permute.xlu1 %9860  ;;  %v9798_v50 = vmul.f32 %v9766_v39, %v24614_v11  ;;  %v9802_v8 = vmul.f32 %v9770_v3, %v26023_v13  ;;  %v14100_v13 = vld [vmem:[#allocation4 + $0x121] sm:$0xff] }
 0x842   : > { %vm9986_vm13 = vcmp.gt.f32.partialorder %v9954_v12, 0.0  ;;  %v10018_v62 = vmul.f32 0.2, %v9954_v12  ;;  %v9955_v31 = vadd.f32 %v9861_v28, %v9795_v9  ;;  %v14096_v9 = vld [vmem:[#allocation4 + $0xf1] sm:$0xff] }
 0x843   : > { %v9863_v23 = vpop.permute.xlu0 %9862 }
 0x844   : > { %v10050_v4 = vsel %vm9986_vm13, %v9954_v12, %v10018_v62  ;;  %vm9987_vm14 = vcmp.gt.f32.partialorder %v9955_v31, 0.0  ;;  %v10019_v41 = vmul.f32 0.2, %v9955_v31  ;;  %v9956_v26 = vadd.f32 %v9863_v23, %v9796_v27  ;;  %v26026_v23 = vld [vmem:[#allocation20_spill] sm:$0xff] }
 0x845   : > { %10126 = vst.msk [vmem:[#allocation6 + $0x19] sm:$0xff] %vm588_vm3, %v10050_v4  ;;  %v9865_v6 = vpop.permute.xlu1 %9864  ;;  %v9771_v12 = vmul.f32 %v24733_v48, %v26024_v51  ;;  %v26027_v4 = vld [vmem:[#allocation16_spill] sm:$0xff] }
 0x846   : > { %v10051_v55 = vsel %vm9987_vm14, %v9955_v31, %v10019_v41  ;;  %vm9988_vm15 = vcmp.gt.f32.partialorder %v9956_v26, 0.0  ;;  %v10020_v15 = vmul.f32 0.2, %v9956_v26  ;;  %v9957_v42 = vadd.f32 %v9865_v6, %v9797_v34  ;;  %19618 = vmatmul.mubr.msk.bf16.gmra.mrb[72].mxu1 %vm859_vm0, %v24335_v45  ;;  %v14097_v31 = vld [vmem:[#allocation4 + $0xf9] sm:$0xff] }
 0x847   : > { %10127 = vst.msk [vmem:[#allocation6 + $0x21] sm:$0xff] %vm588_vm3, %v10051_v55  ;;  %v9867_v21 = vpop.permute.xlu0 %9866  ;;  %19621 = vmatprep.mubr.msk.bf16.mxu1 %vm859_vm0, %v24349_v59  ;;  %v9803_v34 = vmul.f32 %v9771_v12, %v26026_v23  ;;  %v10518_v41 = vsel %vm4212_vm6, %v26027_v4, 0 }
 0x848   : > { %v10052_v11 = vsel %vm9988_vm15, %v9956_v26, %v10020_v15  ;;  %vm9989_vm1 = vcmp.gt.f32.partialorder %v9957_v42, 0.0  ;;  %v10021_v38 = vmul.f32 0.2, %v9957_v42  ;;  %v9958_v57 = vadd.f32 %v9867_v21, %v9798_v50  ;;  %v26028_v26 = vld [vmem:[#allocation18_spill] sm:$0xff]  ;;  %v24884_v21 = vld [vmem:[%s25820_s12 + $0x4] sm:$0x3] }
 0x849   : > { %10128 = vst.msk [vmem:[#allocation6 + $0x31] sm:$0xff] %vm588_vm3, %v10052_v11  ;;  %v9869_v45 = vpop.permute.xlu1 %9868  ;;  %v9772_v6 = vmul.f32 %v24733_v48, %v26028_v26  ;;  %v14098_v50 = vld [vmem:[#allocation4 + $0x109] sm:$0xff] }
 0x84a   : > { %v10053_v17 = vsel %vm9989_vm1, %v9957_v42, %v10021_v38  ;;  %vm9990_vm2 = vcmp.gt.f32.partialorder %v9958_v57, 0.0  ;;  %v10022_v47 = vmul.f32 0.2, %v9958_v57  ;;  %v9959_v16 = vadd.f32 %v9869_v45, %v9799_v37  ;;  %v14099_v42 = vld [vmem:[#allocation4 + $0x111] sm:$0xff]  ;;  %v26029_v11 = vld [vmem:[#allocation50_spill] sm:$0xff] }
 0x84b   : > { %10129 = vst.msk [vmem:[#allocation6 + $0x39] sm:$0xff] %vm588_vm3, %v10053_v17  ;;  %v9871_v59 = vpop.permute.xlu0 %9870  ;;  %v9804_v49 = vmul.f32 %v9772_v6, %v24655_v30  ;;  %v9773_v38 = vmul.f32 %v24733_v48, %v26029_v11 }
 0x84c   : > { %v10054_v43 = vsel %vm9990_vm2, %v9958_v57, %v10022_v47  ;;  %vm9991_vm4 = vcmp.gt.f32.partialorder %v9959_v16, 0.0  ;;  %v10023_v22 = vmul.f32 0.2, %v9959_v16  ;;  %v9960_v63 = vadd.f32 %v9871_v59, %v9800_v24  ;;  %v10209_v5 = vld [vmem:[#allocation6 + $0x19] sm:$0xff]  ;;  %v26030_v59 = vld [vmem:[#allocation51_spill] sm:$0xff] }
 0x84d   : > { %10130 = vst.msk [vmem:[#allocation6 + $0x49] sm:$0xff] %vm588_vm3, %v10054_v43  ;;  %v9873_v19 = vpop.permute.xlu1 %9872  ;;  %v14119_v57 = vpack.c.bf16 %v14097_v31, %v14096_v9  ;;  %v9805_v47 = vmul.f32 %v9773_v38, %v24661_v25  ;;  %v9774_v30 = vmul.f32 %v24733_v48, %v26030_v59  ;;  %v26031_v25 = vld [vmem:[#allocation52_spill] sm:$0xff]  ;;  %v26034_v38 = vld [vmem:[#allocation55_spill] sm:$0xff] }
 0x84e   : > { %v10055_v0 = vsel %vm9991_vm4, %v9959_v16, %v10023_v22  ;;  %vm9992_vm5 = vcmp.gt.f32.partialorder %v9960_v63, 0.0  ;;  %v10024_v52 = vmul.f32 0.2, %v9960_v63  ;;  %v9961_v28 = vadd.f32 %v9873_v19, %v9801_v32  ;;  %19622 = vmatmul.mubr.msk.bf16.gmra.mrb[76].mxu1 %vm859_vm0, %v26025_v46  ;;  %v10210_v62 = vld [vmem:[#allocation6 + $0x21] sm:$0xff] }
 0x84f   : > { %10131 = vst.msk [vmem:[#allocation6 + $0x51] sm:$0xff] %vm588_vm3, %v10055_v0  ;;  %v9875_v27 = vpop.permute.xlu0 %9874  ;;  %v10240_v39 = vpack.c.bf16 %v10210_v62, %v10209_v5  ;;  %19625 = vmatprep.mubr.msk.bf16.mxu1 %vm859_vm0, %v14118_v61  ;;  %v14120_v32 = vpack.c.bf16 %v14099_v42, %v14098_v50  ;;  %v9775_v19 = vmul.f32 %v24733_v48, %v26031_v25 }
 0x850   : > { %v10056_v56 = vsel %vm9992_vm5, %v9960_v63, %v10024_v52  ;;  %vm9993_vm7 = vcmp.gt.f32.partialorder %v9961_v28, 0.0  ;;  %v10025_v55 = vmul.f32 0.2, %v9961_v28  ;;  %v9962_v15 = vadd.f32 %v9875_v27, %v9802_v8  ;;  %v10211_v24 = vld [vmem:[#allocation6 + $0x31] sm:$0xff]  ;;  %v14101_v52 = vld [vmem:[#allocation4 + $0x129] sm:$0xff] }
 0x851   : > { %10132 = vst.msk [vmem:[#allocation6 + $0x61] sm:$0xff] %vm588_vm3, %v10056_v56  ;;  %v9877_v37 = vpop.permute.xlu1 %9876  ;;  %19158 = vmatmul.mubr.msk.bf16.vlgmr.msra.gmra.mrb[64].mxu0 %vm588_vm3, %v10240_v39  ;;  %v9806_v63 = vmul.f32 %v9774_v30, %v24666_v10  ;;  %v9807_v46 = vmul.f32 %v9775_v19, %v24671_v54  ;;  %v26032_v10 = vld [vmem:[#allocation53_spill] sm:$0xff]  ;;  %v26033_v54 = vld [vmem:[#allocation54_spill] sm:$0xff]  ;;  %v14121_v6 = vpack.c.bf16 %v14101_v52, %v14100_v13 }
 0x852   : > { %v10057_v44 = vsel %vm9993_vm7, %v9961_v28, %v10025_v55  ;;  %vm9994_vm8 = vcmp.gt.f32.partialorder %v9962_v15, 0.0  ;;  %v10026_v29 = vmul.f32 0.2, %v9962_v15  ;;  %v9963_v45 = vadd.f32 %v9877_v37, %v9803_v34  ;;  %19190 = vmatpush3.bf16.msra.mxu0 %v10518_v41  ;;  %v10212_v18 = vld [vmem:[#allocation6 + $0x39] sm:$0xff]  ;;  %v14103_v39 = vld [vmem:[#allocation4 + $0x141] sm:$0xff] }
 0x853   : > { %10133 = vst.msk [vmem:[#allocation6 + $0x69] sm:$0xff] %vm588_vm3, %v10057_v44  ;;  %v9879_v17 = vpop.permute.xlu0 %9878  ;;  %v10241_v16 = vpack.c.bf16 %v10212_v18, %v10211_v24  ;;  %21174 = vmatprep.subr.msk.bf16.mxu0 %vm4212_vm6, %v24884_v21  ;;  %v9776_v62 = vmul.f32 %v24733_v48, %v26032_v10  ;;  %v14102_v34 = vld [vmem:[#allocation4 + $0x139] sm:$0xff]  ;;  %v9777_v26 = vmul.f32 %v24733_v48, %v26033_v54 }
 0x854   : > { %v10058_v3 = vsel %vm9994_vm8, %v9962_v15, %v10026_v29  ;;  %vm9995_vm9 = vcmp.gt.f32.partialorder %v9963_v45, 0.0  ;;  %v10027_v61 = vmul.f32 0.2, %v9963_v45  ;;  %v9964_v43 = vadd.f32 %v9879_v17, %v9804_v49  ;;  %v10213_v9 = vld [vmem:[#allocation6 + $0x49] sm:$0xff]  ;;  %v26035_v17 = vld [vmem:[#allocation56_spill] sm:$0xff] }
 0x855   : > { %10134 = vst.msk [vmem:[#allocation6 + $0x79] sm:$0xff] %vm588_vm3, %v10058_v3  ;;  %v9881_v22 = vpop.permute.xlu1 %9880  ;;  %19161 = vmatprep.mubr.msk.bf16.mxu0 %vm588_vm3, %v10241_v16  ;;  %v9808_v41 = vmul.f32 %v9776_v62, %v24677_v2  ;;  %v9809_v49 = vmul.f32 %v9777_v26, %v24683_v14  ;;  %v14122_v2 = vpack.c.bf16 %v14103_v39, %v14102_v34  ;;  %v14104_v14 = vld [vmem:[#allocation4 + $0x151] sm:$0xff] }
 0x856   : > { %v10059_v8 = vsel %vm9995_vm9, %v9963_v45, %v10027_v61  ;;  %vm9996_vm10 = vcmp.gt.f32.partialorder %v9964_v43, 0.0  ;;  %v10028_v51 = vmul.f32 0.2, %v9964_v43  ;;  %v9965_v12 = vadd.f32 %v9881_v22, %v9805_v47  ;;  %19626 = vmatmul.mubr.msk.bf16.gmra.mrb[80].mxu1 %vm859_vm0, %v14119_v57  ;;  %v10214_v0 = vld [vmem:[#allocation6 + $0x51] sm:$0xff]  ;;  %v14105_v61 = vld [vmem:[#allocation4 + $0x159] sm:$0xff] }
 0x857   : > { %10135 = vst.msk [vmem:[#allocation6 + $0x81] sm:$0xff] %vm588_vm3, %v10059_v8  ;;  %v9883_v28 = vpop.permute.xlu0 %9882  ;;  %v10242_v5 = vpack.c.bf16 %v10214_v0, %v10213_v9  ;;  %19629 = vmatprep.mubr.msk.bf16.mxu1 %vm859_vm0, %v14120_v32  ;;  %v9778_v57 = vmul.f32 %v24733_v48, %v26034_v38  ;;  %v9779_v47 = vmul.f32 %v24733_v48, %v26035_v17  ;;  %v26038_v39 = vld [vmem:[#allocation59_spill] sm:$0xff] }
 0x858   : > { %v10060_v31 = vsel %vm9996_vm10, %v9964_v43, %v10028_v51  ;;  %vm9997_vm11 = vcmp.gt.f32.partialorder %v9965_v12, 0.0  ;;  %v10029_v27 = vmul.f32 0.2, %v9965_v12  ;;  %v9966_v23 = vadd.f32 %v9883_v28, %v9806_v63  ;;  %v10215_v15 = vld [vmem:[#allocation6 + $0x61] sm:$0xff]  ;;  %v14106_v51 = vld [vmem:[#allocation4 + $0x169] sm:$0xff] }
 0x859   : > { %10136 = vst.msk [vmem:[#allocation6 + $0x91] sm:$0xff] %vm588_vm3, %v10060_v31  ;;  %v9885_v4 = vpop.permute.xlu1 %9884  ;;  %19162 = vmatmul.mubr.msk.bf16.gmra.mrb[68].mxu0 %vm588_vm3, %v10242_v5  ;;  %v9810_v18 = vmul.f32 %v9778_v57, %v24688_v40  ;;  %v9811_v22 = vmul.f32 %v9779_v47, %v24693_v58  ;;  %v26036_v40 = vld [vmem:[#allocation57_spill] sm:$0xff]  ;;  %v26037_v58 = vld [vmem:[#allocation58_spill] sm:$0xff]  ;;  %v14123_v28 = vpack.c.bf16 %v14105_v61, %v14104_v14 }
 0x85a   : > { %v10061_v50 = vsel %vm9997_vm11, %v9965_v12, %v10029_v27  ;;  %vm9998_vm12 = vcmp.gt.f32.partialorder %v9966_v23, 0.0  ;;  %v10030_v56 = vmul.f32 0.2, %v9966_v23  ;;  %v9967_v55 = vadd.f32 %v9885_v4, %v9807_v46  ;;  %v10216_v42 = vld [vmem:[#allocation6 + $0x69] sm:$0xff]  ;;  %v14107_v12 = vld [vmem:[#allocation4 + $0x171] sm:$0xff] }
 0x85b   : > { %10137 = vst.msk [vmem:[#allocation6 + $0x99] sm:$0xff] %vm588_vm3, %v10061_v50  ;;  %v9887_v37 = vpop.permute.xlu0 %9886  ;;  %v10243_v11 = vpack.c.bf16 %v10216_v42, %v10215_v15  ;;  %v9780_v25 = vmul.f32 %v24733_v48, %v26036_v40  ;;  %v9781_v52 = vmul.f32 %v24733_v48, %v26037_v58  ;;  %v9782_v4 = vmul.f32 %v24733_v48, %v26038_v39  ;;  %v26039_v50 = vld [vmem:[#allocation44_spill] sm:$0xff]  ;;  %v14108_v15 = vld [vmem:[#allocation4 + $0x181] sm:$0xff]  ;;  %v14109_v57 = vld [vmem:[#allocation4 + $0x189] sm:$0xff] }
 0x85c   : > { %v10062_v44 = vsel %vm9998_vm12, %v9966_v23, %v10030_v56  ;;  %vm9999_vm13 = vcmp.gt.f32.partialorder %v9967_v55, 0.0  ;;  %v10031_v29 = vmul.f32 0.2, %v9967_v55  ;;  %v9968_v45 = vadd.f32 %v9887_v37, %v9808_v41  ;;  %v10217_v32 = vld [vmem:[#allocation6 + $0x79] sm:$0xff]  ;;  %v26044_v61 = vld [vmem:[#allocation62_spill] sm:$0xff] }
 0x85d   : > { %10138 = vst.msk [vmem:[#allocation6 + $0xa9] sm:$0xff] %vm588_vm3, %v10062_v44  ;;  %v9889_v24 = vpop.permute.xlu1 %9888  ;;  %19165 = vmatprep.mubr.msk.bf16.mxu0 %vm588_vm3, %v10243_v11  ;;  %v9812_v0 = vmul.f32 %v9780_v25, %v24699_v1  ;;  %v9813_v23 = vmul.f32 %v9781_v52, %v24706_v33  ;;  %v24937_v1 = vpack.c.bf16 %v14107_v12, %v14106_v51  ;;  %v26041_v44 = vld [vmem:[#allocation45_spill] sm:$0xff]  ;;  %v26045_v51 = vld [vmem:[#allocation47_spill] sm:$0xff] }
 0x85e   : > { %v10063_v16 = vsel %vm9999_vm13, %v9967_v55, %v10031_v29  ;;  %vm10000_vm14 = vcmp.gt.f32.partialorder %v9968_v45, 0.0  ;;  %v10032_v59 = vmul.f32 0.2, %v9968_v45  ;;  %v9969_v30 = vadd.f32 %v9889_v24, %v9809_v49  ;;  %19630 = vmatmul.mubr.msk.bf16.gmra.mrb[84].mxu1 %vm859_vm0, %v14121_v6  ;;  %v10218_v3 = vld [vmem:[#allocation6 + $0x81] sm:$0xff]  ;;  %v26040_v55 = vld [vmem:[#allocation60_spill] sm:$0xff] }
 0x85f   : > { %10139 = vst.msk [vmem:[#allocation6 + $0xb1] sm:$0xff] %vm588_vm3, %v10063_v16  ;;  %v9891_v43 = vpop.permute.xlu0 %9890  ;;  %v10244_v63 = vpack.c.bf16 %v10218_v3, %v10217_v32  ;;  %19633 = vmatprep.mubr.msk.bf16.mxu1 %vm859_vm0, %v14122_v2  ;;  %v9814_v56 = vmul.f32 %v9782_v4, %v26039_v50  ;;  %v9783_v33 = vmul.f32 %v24733_v48, %v26040_v55  ;;  %v26042_v24 = vld [vmem:[#allocation61_spill] sm:$0xff]  ;;  %v26043_v32 = vld [vmem:[#allocation46_spill] sm:$0xff]  ;;  %v26048_v50 = vld [vmem:[#allocation48_spill] sm:$0xff] }
 0x860   : > { %v10064_v19 = vsel %vm10000_vm14, %v9968_v45, %v10032_v59  ;;  %vm10001_vm15 = vcmp.gt.f32.partialorder %v9969_v30, 0.0  ;;  %v10033_v13 = vmul.f32 0.2, %v9969_v30  ;;  %v9970_v8 = vadd.f32 %v9891_v43, %v9810_v18  ;;  %v10219_v62 = vld [vmem:[#allocation6 + $0x91] sm:$0xff]  ;;  %v14384_v16 = vld [vmem:[#allocation4 + $0x1a] sm:$0xff]  ;;  %v14385_v59 = vld [vmem:[#allocation4 + $0x22] sm:$0xff] }
 0x861   : > { %10140 = vst.msk [vmem:[#allocation6 + $0xc1] sm:$0xff] %vm588_vm3, %v10064_v19  ;;  %v9893_v9 = vpop.permute.xlu1 %9892  ;;  %19166 = vmatmul.mubr.msk.bf16.gmra.mrb[72].mxu0 %vm588_vm3, %v10244_v63  ;;  %v9815_v29 = vmul.f32 %v9783_v33, %v26041_v44  ;;  %v9784_v18 = vmul.f32 %v24733_v48, %v26042_v24  ;;  %v9785_v43 = vmul.f32 %v24733_v48, %v26044_v61  ;;  %v26049_v55 = vld [vmem:[#allocation65_spill] sm:$0xff] }
 0x862   : > { %v10065_v46 = vsel %vm10001_vm15, %v9969_v30, %v10033_v13  ;;  %vm10002_vm1 = vcmp.gt.f32.partialorder %v9970_v8, 0.0  ;;  %v10034_v5 = vmul.f32 0.2, %v9970_v8  ;;  %v9971_v10 = vadd.f32 %v9893_v9, %v9811_v22  ;;  %v10220_v31 = vld [vmem:[#allocation6 + $0x99] sm:$0xff]  ;;  %v14390_v61 = vld [vmem:[#allocation4 + $0x62] sm:$0xff] }
 0x863   : > { %10141 = vst.msk [vmem:[#allocation6 + $0xc9] sm:$0xff] %vm588_vm3, %v10065_v46  ;;  %v9895_v27 = vpop.permute.xlu0 %9894  ;;  %v10245_v34 = vpack.c.bf16 %v10220_v31, %v10219_v62  ;;  %v9816_v3 = vmul.f32 %v9784_v18, %v26043_v32  ;;  %v24956_v22 = vpack.c.bf16 %v14109_v57, %v14108_v15  ;;  %v9817_v12 = vmul.f32 %v9785_v43, %v26045_v51  ;;  %v26047_v31 = vld [vmem:[#allocation64_spill] sm:$0xff]  ;;  %v26050_v57 = vld [vmem:[#allocation67_spill] sm:$0xff]  ;;  %v21241_v32 = vld [vmem:[%s25816_s8 + $0x68] sm:$0xff]  }
 0x864   : > { %v10066_v41 = vsel %vm10002_vm1, %v9970_v8, %v10034_v5  ;;  %vm10003_vm2 = vcmp.gt.f32.partialorder %v9971_v10, 0.0  ;;  %v10035_v54 = vmul.f32 0.2, %v9971_v10  ;;  %v9972_v26 = vadd.f32 %v9895_v27, %v9812_v0  ;;  %v10221_v11 = vld [vmem:[#allocation6 + $0xa9] sm:$0xff] }
 0x865   : > { %10142 = vst.msk [vmem:[#allocation6 + $0xd9] sm:$0xff] %vm588_vm3, %v10066_v41  ;;  %v9897_v6 = vpop.permute.xlu1 %9896  ;;  %19169 = vmatprep.mubr.msk.bf16.mxu0 %vm588_vm3, %v10245_v34  ;;  %v26046_v0 = vld [vmem:[#allocation63_spill] sm:$0xff]  ;;  %v14416_v52 = vpack.c.bf16 %v14385_v59, %v14384_v16  ;;  %v9787_v27 = vmul.f32 %v24733_v48, %v26047_v31  ;;  %v9788_v33 = vmul.f32 %v24733_v48, %v26049_v55 }
 0x866   : > { %v10067_v42 = vsel %vm10003_vm2, %v9971_v10, %v10035_v54  ;;  %vm10004_vm4 = vcmp.gt.f32.partialorder %v9972_v26, 0.0  ;;  %v10036_v37 = vmul.f32 0.2, %v9972_v26  ;;  %v9973_v49 = vadd.f32 %v9897_v6, %v9813_v23  ;;  %19634 = vmatmul.mubr.msk.bf16.gmra.mrb[88].mxu1 %vm859_vm0, %v14123_v28  ;;  %v10222_v38 = vld [vmem:[#allocation6 + $0xb1] sm:$0xff] }
 0x867   : > { %10143 = vst.msk [vmem:[#allocation6 + $0xe1] sm:$0xff] %vm588_vm3, %v10067_v42  ;;  %v9899_v2 = vpop.permute.xlu0 %9898  ;;  %v10246_v45 = vpack.c.bf16 %v10222_v38, %v10221_v11  ;;  %19637 = vmatprep.mubr.msk.bf16.mxu1 %vm859_vm0, %v24937_v1  ;;  %v9786_v58 = vmul.f32 %v24733_v48, %v26046_v0  ;;  %v14386_v23 = vld [vmem:[#allocation4 + $0x32] sm:$0xff] }
 0x868   : > { %v10068_v17 = vsel %vm10004_vm4, %v9972_v26, %v10036_v37  ;;  %vm10005_vm5 = vcmp.gt.f32.partialorder %v9973_v49, 0.0  ;;  %v10037_v47 = vmul.f32 0.2, %v9973_v49  ;;  %v9974_v14 = vadd.f32 %v9899_v2, %v9814_v56  ;;  %v10223_v19 = vld [vmem:[#allocation6 + $0xc1] sm:$0xff]  ;;  %v14389_v11 = vld [vmem:[#allocation4 + $0x52] sm:$0xff] }
 0x869   : > { %10144 = vst.msk [vmem:[#allocation6 + $0xf1] sm:$0xff] %vm588_vm3, %v10068_v17  ;;  %v9901_v30 = vpop.permute.xlu1 %9900  ;;  %19170 = vmatmul.mubr.msk.bf16.gmra.mrb[76].mxu0 %vm588_vm3, %v10246_v45  ;;  %v9818_v62 = vmul.f32 %v9786_v58, %v24744_v35  ;;  %v14387_v26 = vld [vmem:[#allocation4 + $0x3a] sm:$0xff]  ;;  %v9819_v56 = vmul.f32 %v9787_v27, %v26048_v50  ;;  %v9820_v2 = vmul.f32 %v9788_v33, %v26050_v57  ;;  %v14394_v55 = vld [vmem:[#allocation4 + $0x92] sm:$0xff] }
 0x86a   : > { %v10069_v63 = vsel %vm10005_vm5, %v9973_v49, %v10037_v47  ;;  %vm10006_vm7 = vcmp.gt.f32.partialorder %v9974_v14, 0.0  ;;  %v10038_v40 = vmul.f32 0.2, %v9974_v14  ;;  %v9975_v25 = vadd.f32 %v9901_v30, %v9815_v29  ;;  %v10224_v13 = vld [vmem:[#allocation6 + $0xc9] sm:$0xff]  ;;  %v14395_v33 = vld [vmem:[#allocation4 + $0x9a] sm:$0xff] }
 0x86b   : > { %10145 = vst.msk [vmem:[#allocation6 + $0xf9] sm:$0xff] %vm588_vm3, %v10069_v63  ;;  %v9903_v8 = vpop.permute.xlu0 %9902  ;;  %v10247_v9 = vpack.c.bf16 %v10224_v13, %v10223_v19  ;;  %v14388_v49 = vld [vmem:[#allocation4 + $0x4a] sm:$0xff]  ;;  %v24977_v44 = vpack.c.bf16 %v14387_v26, %v14386_v23  ;;  %v25020_v57 = vpack.c.bf16 %v14395_v33, %v14394_v55 }
 0x86c   : > { %v10070_v28 = vsel %vm10006_vm7, %v9974_v14, %v10038_v40  ;;  %vm10007_vm8 = vcmp.gt.f32.partialorder %v9975_v25, 0.0  ;;  %v10039_v46 = vmul.f32 0.2, %v9975_v25  ;;  %v9976_v5 = vadd.f32 %v9903_v8, %v9816_v3  ;;  %v10225_v41 = vld [vmem:[#allocation6 + $0xd9] sm:$0xff]  ;;  %v26051_v40 = vld [vmem:[#allocation66_spill] sm:$0xff] }
 0x86d   : > { %10146 = vst.msk [vmem:[#allocation6 + $0x109] sm:$0xff] %vm588_vm3, %v10070_v28  ;;  %v9905_v10 = vpop.permute.xlu1 %9904  ;;  %19173 = vmatprep.mubr.msk.bf16.mxu0 %vm588_vm3, %v10247_v9  ;;  %v24980_v14 = vpack.c.bf16 %v14389_v11, %v14388_v49  ;;  %v14391_v8 = vld [vmem:[#allocation4 + $0x6a] sm:$0xff]  ;;  %v14393_v28 = vld [vmem:[#allocation4 + $0x82] sm:$0xff]  ;;  %v14397_v49 = vld [vmem:[#allocation4 + $0xb2] sm:$0xff] }
 0x86e   : > { %v10071_v34 = vsel %vm10007_vm8, %v9975_v25, %v10039_v46  ;;  %vm10008_vm9 = vcmp.gt.f32.partialorder %v9976_v5, 0.0  ;;  %v10040_v39 = vmul.f32 0.2, %v9976_v5  ;;  %v9977_v4 = vadd.f32 %v9905_v10, %v9817_v12  ;;  %19638 = vmatmul.mubr.msk.bf16.gmra.mrb[92].mxu1 %vm859_vm0, %v24956_v22  ;;  %v10226_v54 = vld [vmem:[#allocation6 + $0xe1] sm:$0xff]  ;;  %v24998_v46 = vld [vmem:[%s25816_s8 + $0x70] sm:$0xff]  }
 0x86f   : > { %10147 = vst.msk [vmem:[#allocation6 + $0x111] sm:$0xff] %vm588_vm3, %v10071_v34  ;;  %v9907_v6 = vpop.permute.xlu0 %9906  ;;  %v10248_v35 = vpack.c.bf16 %v10226_v54, %v10225_v41  ;;  %19645 = vmatprep.mubr.msk.bf16.mxu1 %vm859_vm0, %v14416_v52  ;;  %v14392_v52 = vld [vmem:[#allocation4 + $0x7a] sm:$0xff]  ;;  %v25002_v10 = vpack.c.bf16 %v14391_v8, %v14390_v61  ;;  %v14402_v8 = vld [vmem:[#allocation4 + $0xf2] sm:$0xff]  ;;  %v14412_v33 = vld [vmem:[#allocation4 + $0x16a] sm:$0xff] }
 0x870   : > { %v10072_v15 = vsel %vm10008_vm9, %v9976_v5, %v10040_v39  ;;  %vm10009_vm10 = vcmp.gt.f32.partialorder %v9977_v4, 0.0  ;;  %v10041_v42 = vmul.f32 0.2, %v9977_v4  ;;  %v9978_v37 = vadd.f32 %v9907_v6, %v9818_v62  ;;  %v10227_v24 = vld [vmem:[#allocation6 + $0xf1] sm:$0xff] }
 0x871   : > { %10148 = vst.msk [vmem:[#allocation6 + $0x121] sm:$0xff] %vm588_vm3, %v10072_v15  ;;  %v9909_v38 = vpop.permute.xlu1 %9908  ;;  %19174 = vmatmul.mubr.msk.bf16.gmra.mrb[80].mxu0 %vm588_vm3, %v10248_v35  ;;  %v25006_v39 = vpack.c.bf16 %v14393_v28, %v14392_v52  ;;  %v10165_v28 = vld [vmem:[#allocation6 + $0x50] sm:$0xff] }
 0x872   : > { %v10073_v29 = vsel %vm10009_vm10, %v9977_v4, %v10041_v42  ;;  %vm10010_vm11 = vcmp.gt.f32.partialorder %v9978_v37, 0.0  ;;  %v10042_v48 = vmul.f32 0.2, %v9978_v37  ;;  %v9979_v45 = vadd.f32 %v9909_v38, %v9819_v56  ;;  %v10228_v18 = vld [vmem:[#allocation6 + $0xf9] sm:$0xff] }
 0x873   : > { %10149 = vst.msk [vmem:[#allocation6 + $0x129] sm:$0xff] %vm588_vm3, %v10073_v29  ;;  %v9911_v17 = vpop.permute.xlu0 %9910  ;;  %v10249_v47 = vpack.c.bf16 %v10228_v18, %v10227_v24 }
 0x874   : > { %v10074_v16 = vsel %vm10010_vm11, %v9978_v37, %v10042_v48  ;;  %vm10011_vm12 = vcmp.gt.f32.partialorder %v9979_v45, 0.0  ;;  %v10043_v59 = vmul.f32 0.2, %v9979_v45  ;;  %v9980_v30 = vadd.f32 %v9911_v17, %v9820_v2  ;;  %v10229_v19 = vld [vmem:[#allocation6 + $0x109] sm:$0xff]  ;;  %v10158_v48 = vld [vmem:[#allocation6] sm:$0xff] }
 0x875   : > { %10150 = vst.msk [vmem:[#allocation6 + $0x139] sm:$0xff] %vm588_vm3, %v10074_v16  ;;  %v9913_v3 = vpop.permute.xlu1 %9912  ;;  %19177 = vmatprep.mubr.msk.bf16.mxu0 %vm588_vm3, %v10249_v47  ;;  %v14396_v37 = vld [vmem:[#allocation4 + $0xaa] sm:$0xff]  ;;  %v14398_v16 = vld [vmem:[#allocation4 + $0xc2] sm:$0xff] }
 0x876   : > { %v10075_v43 = vsel %vm10011_vm12, %v9979_v45, %v10043_v59  ;;  %vm10012_vm13 = vcmp.gt.f32.partialorder %v9980_v30, 0.0  ;;  %v10044_v63 = vmul.f32 0.2, %v9980_v30  ;;  %v9981_v25 = vadd.f32 %v9913_v3, %v26051_v40  ;;  %19646 = vmatmul.mubr.msk.bf16.vlgmr.msra.gmra.mrb[64].mxu1 %vm859_vm0, %v24977_v44  ;;  %v10230_v13 = vld [vmem:[#allocation6 + $0x111] sm:$0xff]  ;;  %v10159_v45 = vld [vmem:[#allocation6 + $0x8] sm:$0xff] }
 0x877   : > { %10151 = vst.msk [vmem:[#allocation6 + $0x141] sm:$0xff] %vm588_vm3, %v10075_v43  ;;  %v9915_v51 = vpop.permute.xlu0 %9914  ;;  %v10250_v12 = vpack.c.bf16 %v10230_v13, %v10229_v19  ;;  %19649 = vmatprep.mubr.msk.bf16.mxu1 %vm859_vm0, %v24980_v14  ;;  %19678 = vmatpush3.bf16.msra.mxu1 %v24827_v53  ;;  %v25023_v29 = vpack.c.bf16 %v14397_v49, %v14396_v37  ;;  %v14399_v59 = vld [vmem:[#allocation4 + $0xca] sm:$0xff]  ;;  %v10161_v43 = vld [vmem:[#allocation6 + $0x20] sm:$0xff]  ;;  %v10160_v40 = vld [vmem:[#allocation6 + $0x18] sm:$0xff]  ;;  %v10780_v19 = vsel %vm4212_vm6, %v24884_v21, 0 }
 0x878   : > { %v10076_v9 = vsel %vm10012_vm13, %v9980_v30, %v10044_v63  ;;  %vm10013_vm14 = vcmp.gt.f32.partialorder %v9981_v25, 0.0  ;;  %v10045_v0 = vmul.f32 0.2, %v9981_v25  ;;  %v9982_v58 = vadd.f32 %v9915_v51, %v24783_v7  ;;  %19679 = vmatprep.subr.bf16.mxu1 %v21241_v32  ;;  %v10231_v31 = vld [vmem:[#allocation6 + $0x121] sm:$0xff]  ;;  %v10163_v63 = vld [vmem:[#allocation6 + $0x38] sm:$0xff]  ;;  %v10162_v13 = vld [vmem:[#allocation6 + $0x30] sm:$0xff] }
 0x879   : > { %10152 = vst.msk [vmem:[#allocation6 + $0x151] sm:$0xff] %vm588_vm3, %v10076_v9  ;;  %v9917_v5 = vpop.permute.xlu1 %9916  ;;  %19178 = vmatmul.mubr.msk.bf16.gmra.mrb[84].mxu0 %vm588_vm3, %v10250_v12  ;;  %v10190_v17 = vpack.c.bf16 %v10159_v45, %v10158_v48  ;;  %v14400_v30 = vld [vmem:[#allocation4 + $0xda] sm:$0xff]  ;;  %v25031_v3 = vpack.c.bf16 %v14399_v59, %v14398_v16  ;;  %v25044_v12 = vpack.c.bf16 %v10163_v63, %v10162_v13  ;;  %v14404_v9 = vld [vmem:[#allocation4 + $0x10a] sm:$0xff]  ;;  %v14414_v48 = vld [vmem:[#allocation4 + $0x182] sm:$0xff] }
 0x87a   : > { %v10077_v53 = vsel %vm10013_vm14, %v9981_v25, %v10045_v0  ;;  %vm10014_vm15 = vcmp.gt.f32.partialorder %v9982_v58, 0.0  ;;  %v10046_v62 = vmul.f32 0.2, %v9982_v58  ;;  %v9983_v7 = vadd.f32 %v9917_v5, %v24794_v36  ;;  %v10232_v27 = vld [vmem:[#allocation6 + $0x129] sm:$0xff]  ;;  %v14403_v51 = vld [vmem:[#allocation4 + $0xfa] sm:$0xff]  ;;  %v14405_v0 = vld [vmem:[#allocation4 + $0x112] sm:$0xff] }
 0x87b   : > { %10153 = vst.msk [vmem:[#allocation6 + $0x159] sm:$0xff] %vm588_vm3, %v10077_v53  ;;  %v9919_v23 = vpop.permute.xlu0 %9918  ;;  %v10251_v34 = vpack.c.bf16 %v10232_v27, %v10231_v31  ;;  %19680 = vmatpush3.bf16.msra.mxu1 %v21241_v32  ;;  %v14401_v32 = vld [vmem:[#allocation4 + $0xe2] sm:$0xff]  ;;  %v25038_v25 = vpack.c.bf16 %v10161_v43, %v10160_v40  ;;  %v25055_v21 = vpack.c.bf16 %v14403_v51, %v14402_v8  ;;  %v14407_v27 = vld [vmem:[#allocation4 + $0x12a] sm:$0xff] }
 0x87c   : > { %v10078_v4 = vsel %vm10014_vm15, %v9982_v58, %v10046_v62  ;;  %vm10015_vm1 = vcmp.gt.f32.partialorder %v9983_v7, 0.0  ;;  %v10047_v41 = vmul.f32 0.2, %v9983_v7  ;;  %v9984_v54 = vadd.f32 %v9919_v23, %v24777_v60  ;;  %19713 = vmatprep.subr.bf16.mxu1 %v24998_v46  ;;  %v10233_v56 = vld [vmem:[#allocation6 + $0x139] sm:$0xff]  ;;  %v25049_v58 = vld [vmem:[%s25820_s12 + $0x6] sm:$0x3] }
 0x87d   : > { %10154 = vst.msk [vmem:[#allocation6 + $0x169] sm:$0xff] %vm588_vm3, %v10078_v4  ;;  %v9921_v26 = vpop.permute.xlu1 %9920  ;;  %19181 = vmatprep.mubr.msk.bf16.mxu0 %vm588_vm3, %v10251_v34  ;;  %v25034_v61 = vpack.c.bf16 %v14401_v32, %v14400_v30  ;;  %v25057_v52 = vpack.c.bf16 %v14405_v0, %v14404_v9  ;;  %v10167_v5 = vld [vmem:[#allocation6 + $0x68] sm:$0xff]  ;;  %v14408_v34 = vld [vmem:[#allocation4 + $0x13a] sm:$0xff]  ;;  %v10173_v49 = vld [vmem:[#allocation6 + $0xb0] sm:$0xff] }
 0x87e   : > { %v10079_v36 = vsel %vm10015_vm1, %v9983_v7, %v10047_v41  ;;  %vm10016_vm2 = vcmp.gt.f32.partialorder %v9984_v54, 0.0  ;;  %v10048_v6 = vmul.f32 0.2, %v9984_v54  ;;  %v9985_v50 = vadd.f32 %v9921_v26, %v24789_v20  ;;  %19650 = vmatmul.mubr.msk.bf16.gmra.mrb[68].mxu1 %vm859_vm0, %v25002_v10  ;;  %v10234_v35 = vld [vmem:[#allocation6 + $0x141] sm:$0xff]  ;;  %v14415_v45 = vld [vmem:[#allocation4 + $0x18a] sm:$0xff]  ;;  %v10179_v30 = vld [vmem:[#allocation6 + $0xf8] sm:$0xff] }
 0x87f   : > { %10155 = vst.msk [vmem:[#allocation6 + $0x171] sm:$0xff] %vm588_vm3, %v10079_v36  ;;  %v10252_v60 = vpack.c.bf16 %v10234_v35, %v10233_v56  ;;  %19653 = vmatprep.mubr.msk.bf16.mxu1 %vm859_vm0, %v25006_v39  ;;  %v10164_v53 = vld [vmem:[#allocation6 + $0x48] sm:$0xff]  ;;  %v10166_v7 = vld [vmem:[#allocation6 + $0x60] sm:$0xff]  ;;  %v10171_v36 = vld [vmem:[#allocation6 + $0x98] sm:$0xff] }
 0x880   : > { %v10080_v15 = vsel %vm10016_vm2, %v9984_v54, %v10048_v6  ;;  %vm10017_vm4 = vcmp.gt.f32.partialorder %v9985_v50, 0.0  ;;  %v10049_v42 = vmul.f32 0.2, %v9985_v50  ;;  %v10235_v11 = vld [vmem:[#allocation6 + $0x151] sm:$0xff]  ;;  %v25063_v62 = vpack.c.bf16 %v10165_v28, %v10164_v53  ;;  %v14406_v31 = vld [vmem:[#allocation4 + $0x122] sm:$0xff] }
 0x881   : > { %10156 = vst.msk [vmem:[#allocation6 + $0x181] sm:$0xff] %vm588_vm3, %v10080_v15  ;;  %19182 = vmatmul.mubr.msk.bf16.gmra.mrb[88].mxu0 %vm588_vm3, %v10252_v60  ;;  %v25067_v23 = vpack.c.bf16 %v10167_v5, %v10166_v7  ;;  %v14409_v4 = vld [vmem:[#allocation4 + $0x142] sm:$0xff]  ;;  %v25073_v41 = vpack.c.bf16 %v14407_v27, %v14406_v31  ;;  %v10168_v6 = vld [vmem:[#allocation6 + $0x78] sm:$0xff]  ;;  %v10170_v56 = vld [vmem:[#allocation6 + $0x90] sm:$0xff] }
 0x882   : > { %v10081_v20 = vsel %vm10017_vm4, %v9985_v50, %v10049_v42  ;;  %v10236_v38 = vld [vmem:[#allocation6 + $0x159] sm:$0xff]  ;;  %v25075_v54 = vpack.c.bf16 %v14409_v4, %v14408_v34  ;;  %v25083_v55 = vpack.c.bf16 %v10171_v36, %v10170_v56  ;;  %v10178_v63 = vld [vmem:[#allocation6 + $0xf0] sm:$0xff]  ;;  %v14693_v40 = vld [vmem:[#allocation4 + $0x48] sm:$0xff] }
 0x883   : > { %10157 = vst.msk [vmem:[#allocation6 + $0x189] sm:$0xff] %vm588_vm3, %v10081_v20  ;;  %v10253_v2 = vpack.c.bf16 %v10236_v38, %v10235_v11  ;;  %v10169_v26 = vld [vmem:[#allocation6 + $0x80] sm:$0xff]  ;;  %v14410_v35 = vld [vmem:[#allocation4 + $0x152] sm:$0xff]  ;;  %v10175_v20 = vld [vmem:[#allocation6 + $0xc8] sm:$0xff]  ;;  %v25112_v13 = vpack.c.bf16 %v10179_v30, %v10178_v63 }
 0x884   : > { %v10237_v24 = vld [vmem:[#allocation6 + $0x169] sm:$0xff]  ;;  %v25079_v50 = vpack.c.bf16 %v10169_v26, %v10168_v6  ;;  %v14411_v60 = vld [vmem:[#allocation4 + $0x15a] sm:$0xff]  ;;  %v14413_v15 = vld [vmem:[#allocation4 + $0x172] sm:$0xff] }
 0x885   : > { %19185 = vmatprep.mubr.msk.bf16.mxu0 %vm588_vm3, %v10253_v2  ;;  %v25089_v42 = vpack.c.bf16 %v14411_v60, %v14410_v35  ;;  %v25091_v37 = vpack.c.bf16 %v14413_v15, %v14412_v33  ;;  %v10172_v11 = vld [vmem:[#allocation6 + $0xa8] sm:$0xff]  ;;  %v10174_v2 = vld [vmem:[#allocation6 + $0xc0] sm:$0xff]  ;;  %v10176_v32 = vld [vmem:[#allocation6 + $0xd8] sm:$0xff] }
 0x886   : > { %19654 = vmatmul.mubr.msk.bf16.gmra.mrb[72].mxu1 %vm859_vm0, %v25020_v57  ;;  %v10238_v18 = vld [vmem:[#allocation6 + $0x171] sm:$0xff]  ;;  %v25095_v38 = vpack.c.bf16 %v10173_v49, %v10172_v11  ;;  %v10177_v59 = vld [vmem:[#allocation6 + $0xe0] sm:$0xff]  ;;  %v14696_v51 = vld [vmem:[#allocation4 + $0x68] sm:$0xff] }
 0x887   : > { %v10254_v47 = vpack.c.bf16 %v10238_v18, %v10237_v24  ;;  %19657 = vmatprep.mubr.msk.bf16.mxu1 %vm859_vm0, %v25023_v29  ;;  %v25099_v24 = vpack.c.bf16 %v10175_v20, %v10174_v2  ;;  %v14691_v18 = vld [vmem:[#allocation4 + $0x30] sm:$0xff]  ;;  %v25109_v43 = vpack.c.bf16 %v10177_v59, %v10176_v32  ;;  %v14695_v8 = vld [vmem:[#allocation4 + $0x60] sm:$0xff]  ;;  %v21243_v5 = vld [vmem:[%s25816_s8 + $0x78] sm:$0xff]  }
 0x888   : > { %v14725_v0 = vpack.c.bf16 %v14696_v51, %v14695_v8  ;;  %v10181_v28 = vld [vmem:[#allocation6 + $0x110] sm:$0xff]  ;;  %v10183_v53 = vld [vmem:[#allocation6 + $0x128] sm:$0xff]  ;;  %v10182_v27 = vld [vmem:[#allocation6 + $0x120] sm:$0xff] }
 0x889   : > { %19186 = vmatmul.mubr.msk.bf16.gmra.mrb[92].mxu0 %vm588_vm3, %v10254_v47  ;;  %v25105_v47 = vpack.c.bf16 %v14415_v45, %v14414_v48  ;;  %v10180_v7 = vld [vmem:[#allocation6 + $0x108] sm:$0xff]  ;;  %v14697_v34 = vld [vmem:[#allocation4 + $0x78] sm:$0xff]  ;;  %v14698_v4 = vld [vmem:[#allocation4 + $0x80] sm:$0xff]  ;;  %v25126_v26 = vpack.c.bf16 %v10183_v53, %v10182_v27 }
 0x88a   : > { %19191 = vmatprep.mubr.msk.bf16.mxu0 %vm588_vm3, %v10190_v17  ;;  %v14692_v17 = vld [vmem:[#allocation4 + $0x38] sm:$0xff]  ;;  %v25122_v31 = vpack.c.bf16 %v10181_v28, %v10180_v7  ;;  %v14699_v36 = vld [vmem:[#allocation4 + $0x90] sm:$0xff]  ;;  %v25131_v56 = vld [vmem:[%s25816_s8 + $0x80] sm:$0xff]   ;;  %v14726_v35 = vpack.c.bf16 %v14698_v4, %v14697_v34 }
 0x88b   : > { %v14723_v16 = vpack.c.bf16 %v14692_v17, %v14691_v18  ;;  %v14700_v6 = vld [vmem:[#allocation4 + $0x98] sm:$0xff]  ;;  %v10185_v60 = vld [vmem:[#allocation6 + $0x140] sm:$0xff]  ;;  %v10186_v20 = vld [vmem:[#allocation6 + $0x150] sm:$0xff] }
 0x88c   : > { %v10187_v33 = vld [vmem:[#allocation6 + $0x158] sm:$0xff]  ;;  %v14701_v11 = vld [vmem:[#allocation4 + $0xa8] sm:$0xff]  ;;  %v14702_v2 = vld [vmem:[#allocation4 + $0xb0] sm:$0xff] }
 0x88d   : > { %v10184_v15 = vld [vmem:[#allocation6 + $0x138] sm:$0xff]  ;;  %v25142_v48 = vpack.c.bf16 %v10187_v33, %v10186_v20  ;;  %v14703_v45 = vld [vmem:[#allocation4 + $0xc0] sm:$0xff]  ;;  %v14704_v18 = vld [vmem:[#allocation4 + $0xc8] sm:$0xff]  ;;  %v14728_v17 = vpack.c.bf16 %v14702_v2, %v14701_v11 }
 0x88e   : > { %19658 = vmatmul.mubr.msk.bf16.gmra.mrb[76].mxu1 %vm859_vm0, %v25031_v3  ;;  %v25139_v49 = vpack.c.bf16 %v10185_v60, %v10184_v15  ;;  %v10681_v59 = vld [vmem:[#allocation6 + $0x2] sm:$0xff]  ;;  %v10682_v30 = vld [vmem:[#allocation6 + $0xa] sm:$0xff]  ;;  %v14705_v8 = vld [vmem:[#allocation4 + $0xd8] sm:$0xff] }
 0x88f   : > { %19661 = vmatprep.mubr.msk.bf16.mxu1 %vm859_vm0, %v25034_v61  ;;  %v10189_v32 = vld [vmem:[#allocation6 + $0x170] sm:$0xff]  ;;  %v10188_v63 = vld [vmem:[#allocation6 + $0x168] sm:$0xff]  ;;  %v14706_v51 = vld [vmem:[#allocation4 + $0xe0] sm:$0xff] }
 0x890   : > { %v14730_v28 = vpack.c.bf16 %v14706_v51, %v14705_v8  ;;  %v10683_v53 = vld [vmem:[#allocation6 + $0x1a] sm:$0xff]  ;;  %v10684_v7 = vld [vmem:[#allocation6 + $0x22] sm:$0xff]  ;;  %v10685_v27 = vld [vmem:[#allocation6 + $0x32] sm:$0xff] }
 0x891   : > { %19192 = vmatmul.mubr.msk.bf16.vlgmr.msra.gmra.mrb[64].mxu0 %vm588_vm3, %v25038_v25  ;;  %v10686_v34 = vld [vmem:[#allocation6 + $0x3a] sm:$0xff]  ;;  %v25156_v4 = vpack.c.bf16 %v10684_v7, %v10683_v53  ;;  %v14712_v33 = vld [vmem:[#allocation4 + $0x128] sm:$0xff]  ;;  %v10688_v2 = vld [vmem:[#allocation6 + $0x52] sm:$0xff] }
 0x892   : > { %19224 = vmatpush3.bf16.msra.mxu0 %v10780_v19  ;;  %19195 = vmatprep.mubr.msk.bf16.mxu0 %vm588_vm3, %v25044_v12  ;;  %v14694_v19 = vld [vmem:[#allocation4 + $0x50] sm:$0xff]  ;;  %v14711_v60 = vld [vmem:[#allocation4 + $0x120] sm:$0xff]  ;;  %v25166_v15 = vld [vmem:[%s25820_s12 + $0x8] sm:$0x3] }
 0x893   : > { %21175 = vmatprep.subr.msk.bf16.mxu0 %vm4212_vm6, %v25049_v58  ;;  %v14724_v9 = vpack.c.bf16 %v14694_v19, %v14693_v40  ;;  %v10713_v40 = vpack.c.bf16 %v10682_v30, %v10681_v59  ;;  %v25149_v19 = vpack.c.bf16 %v10189_v32, %v10188_v63  ;;  %v14733_v20 = vpack.c.bf16 %v14712_v33, %v14711_v60  ;;  %v10687_v11 = vld [vmem:[#allocation6 + $0x4a] sm:$0xff]  ;;  %v14714_v59 = vld [vmem:[#allocation4 + $0x140] sm:$0xff]  ;;  %v14716_v63 = vld [vmem:[#allocation4 + $0x158] sm:$0xff] }
 0x894   : > { %v14715_v32 = vld [vmem:[#allocation4 + $0x150] sm:$0xff]  ;;  %v10691_v51 = vld [vmem:[#allocation6 + $0x7a] sm:$0xff]  ;;  %v14717_v53 = vld [vmem:[#allocation4 + $0x168] sm:$0xff] }
 0x895   : > { %v14735_v8 = vpack.c.bf16 %v14716_v63, %v14715_v32  ;;  %v14718_v7 = vld [vmem:[#allocation4 + $0x170] sm:$0xff] }
 0x896   : > { %19662 = vmatmul.mubr.msk.bf16.gmra.mrb[80].mxu1 %vm859_vm0, %v25055_v21  ;;  %v10695_v60 = vld [vmem:[#allocation6 + $0xaa] sm:$0xff]  ;;  %v10696_v33 = vld [vmem:[#allocation6 + $0xb2] sm:$0xff] }
 0x897   : > { %19665 = vmatprep.mubr.msk.bf16.mxu1 %vm859_vm0, %v25057_v52 }
 0x899   : > { %19196 = vmatmul.mubr.msk.bf16.gmra.mrb[68].mxu0 %vm588_vm3, %v25063_v62 }
 0x89a   : > { %19199 = vmatprep.mubr.msk.bf16.mxu0 %vm588_vm3, %v25067_v23 }
 0x89e   : > { %19666 = vmatmul.mubr.msk.bf16.gmra.mrb[84].mxu1 %vm859_vm0, %v25073_v41 }
 0x89f   : > { %19669 = vmatprep.mubr.msk.bf16.mxu1 %vm859_vm0, %v25075_v54 }
 0x8a1   : > { %19200 = vmatmul.mubr.msk.bf16.gmra.mrb[72].mxu0 %vm588_vm3, %v25079_v50 }
 0x8a2   : > { %19203 = vmatprep.mubr.msk.bf16.mxu0 %vm588_vm3, %v25083_v55 }
 0x8a6   : > { %19670 = vmatmul.mubr.msk.bf16.gmra.mrb[88].mxu1 %vm859_vm0, %v25089_v42 }
 0x8a7   : > { %19673 = vmatprep.mubr.msk.bf16.mxu1 %vm859_vm0, %v25091_v37 }
 0x8a9   : > { %19204 = vmatmul.mubr.msk.bf16.gmra.mrb[76].mxu0 %vm588_vm3, %v25095_v38 }
 0x8aa   : > { %19207 = vmatprep.mubr.msk.bf16.mxu0 %vm588_vm3, %v25099_v24 }
 0x8ae   : > { %19674 = vmatmul.mubr.msk.bf16.gmra.mrb[92].mxu1 %vm859_vm0, %v25105_v47 }
 0x8af   : > { %19681 = vmatprep.mubr.msk.bf16.mxu1 %vm859_vm0, %v14723_v16  ;;  %v14729_v16 = vpack.c.bf16 %v14704_v18, %v14703_v45  ;;  %v10689_v45 = vld [vmem:[#allocation6 + $0x62] sm:$0xff]  ;;  %v10690_v18 = vld [vmem:[#allocation6 + $0x6a] sm:$0xff] }
 0x8b0   : > { %v25178_v30 = vpack.c.bf16 %v10690_v18, %v10689_v45  ;;  %v14722_v45 = vld [vmem:[#allocation4 + $0x1a0] sm:$0xff] }
 0x8b1   : > { %19208 = vmatmul.mubr.msk.bf16.gmra.mrb[80].mxu0 %vm588_vm3, %v25109_v43 }
 0x8b2   : > { %19211 = vmatprep.mubr.msk.bf16.mxu0 %vm588_vm3, %v25112_v13 }
 0x8b6   : > { %19682 = vmatmul.mubr.msk.bf16.vlgmr.msra.gmra.mrb[64].mxu1 %vm859_vm0, %v14724_v9  ;;  %v14707_v9 = vld [vmem:[#allocation4 + $0xf0] sm:$0xff] }
 0x8b7   : > { %19685 = vmatprep.mubr.msk.bf16.mxu1 %vm859_vm0, %v14725_v0  ;;  %19714 = vmatpush3.bf16.msra.mxu1 %v24998_v46  ;;  %v14727_v46 = vpack.c.bf16 %v14700_v6, %v14699_v36  ;;  %v14708_v0 = vld [vmem:[#allocation4 + $0xf8] sm:$0xff]  ;;  %v11074_v36 = vsel %vm4212_vm6, %v25049_v58, 0  ;;  %v14709_v6 = vld [vmem:[#allocation4 + $0x108] sm:$0xff] }
 0x8b8   : > { %19715 = vmatprep.subr.bf16.mxu1 %v21243_v5 }
 0x8b9   : > { %19212 = vmatmul.mubr.msk.bf16.gmra.mrb[84].mxu0 %vm588_vm3, %v25122_v31 }
 0x8ba   : > { %19215 = vmatprep.mubr.msk.bf16.mxu0 %vm588_vm3, %v25126_v26 }
 0x8bb   : > { %19716 = vmatpush3.bf16.msra.mxu1 %v21243_v5  ;;  %v14731_v5 = vpack.c.bf16 %v14708_v0, %v14707_v9  ;;  %v10692_v9 = vld [vmem:[#allocation6 + $0x82] sm:$0xff]  ;;  %v10693_v0 = vld [vmem:[#allocation6 + $0x92] sm:$0xff] }
 0x8bc   : > { %19749 = vmatprep.subr.bf16.mxu1 %v25131_v56 }
 0x8be   : > { %19686 = vmatmul.mubr.msk.bf16.gmra.mrb[68].mxu1 %vm859_vm0, %v14726_v35  ;;  %v14710_v35 = vld [vmem:[#allocation4 + $0x110] sm:$0xff] }
 0x8bf   : > { %19689 = vmatprep.mubr.msk.bf16.mxu1 %vm859_vm0, %v14727_v46  ;;  %v25161_v46 = vpack.c.bf16 %v10686_v34, %v10685_v27  ;;  %v14732_v58 = vpack.c.bf16 %v14710_v35, %v14709_v6  ;;  %v14719_v34 = vld [vmem:[#allocation4 + $0x180] sm:$0xff]  ;;  %v14736_v6 = vpack.c.bf16 %v14718_v7, %v14717_v53  ;;  %v15000_v53 = vld [vmem:[#allocation4 + $0x51] sm:$0xff] }
 0x8c1   : > { %19216 = vmatmul.mubr.msk.bf16.gmra.mrb[88].mxu0 %vm588_vm3, %v25139_v49 }
 0x8c2   : > { %19219 = vmatprep.mubr.msk.bf16.mxu0 %vm588_vm3, %v25142_v48 }
 0x8c6   : > { %19690 = vmatmul.mubr.msk.bf16.gmra.mrb[72].mxu1 %vm859_vm0, %v14728_v17  ;;  %v25175_v17 = vpack.c.bf16 %v10688_v2, %v10687_v11  ;;  %v25195_v11 = vpack.c.bf16 %v10696_v33, %v10695_v60  ;;  %v14721_v2 = vld [vmem:[#allocation4 + $0x198] sm:$0xff]  ;;  %v10703_v60 = vld [vmem:[#allocation6 + $0x10a] sm:$0xff] }
 0x8c7   : > { %19693 = vmatprep.mubr.msk.bf16.mxu1 %vm859_vm0, %v14729_v16  ;;  %v14713_v16 = vld [vmem:[#allocation4 + $0x138] sm:$0xff]  ;;  %v14738_v32 = vpack.c.bf16 %v14722_v45, %v14721_v2  ;;  %v10706_v2 = vld [vmem:[#allocation6 + $0x12a] sm:$0xff] }
 0x8c8   : > { %v10704_v33 = vld [vmem:[#allocation6 + $0x112] sm:$0xff] }
 0x8c9   : > { %19220 = vmatmul.mubr.msk.bf16.gmra.mrb[92].mxu0 %vm588_vm3, %v25149_v19  ;;  %v25218_v45 = vpack.c.bf16 %v10704_v33, %v10703_v60  ;;  %v15009_v60 = vld [vmem:[#allocation4 + $0xc1] sm:$0xff]  ;;  %v15010_v33 = vld [vmem:[#allocation4 + $0xc9] sm:$0xff] }
 0x8ca   : > { %19225 = vmatprep.mubr.msk.bf16.mxu0 %vm588_vm3, %v10713_v40  ;;  %v14734_v40 = vpack.c.bf16 %v14714_v59, %v14713_v16  ;;  %v14997_v16 = vld [vmem:[#allocation4 + $0x31] sm:$0xff]  ;;  %v14998_v59 = vld [vmem:[#allocation4 + $0x39] sm:$0xff] }
 0x8cb   : > { %v15029_v63 = vpack.c.bf16 %v14998_v59, %v14997_v16  ;;  %v15003_v16 = vld [vmem:[#allocation4 + $0x79] sm:$0xff]  ;;  %v15004_v59 = vld [vmem:[#allocation4 + $0x81] sm:$0xff] }
 0x8ce   : > { %19694 = vmatmul.mubr.msk.bf16.gmra.mrb[76].mxu1 %vm859_vm0, %v14730_v28  ;;  %v10694_v28 = vld [vmem:[#allocation6 + $0x9a] sm:$0xff] }
 0x8cf   : > { %19697 = vmatprep.mubr.msk.bf16.mxu1 %vm859_vm0, %v14731_v5  ;;  %v25185_v5 = vpack.c.bf16 %v10692_v9, %v10691_v51  ;;  %v25188_v27 = vpack.c.bf16 %v10694_v28, %v10693_v0  ;;  %v10701_v51 = vld [vmem:[#allocation6 + $0xf2] sm:$0xff]  ;;  %v10702_v9 = vld [vmem:[#allocation6 + $0xfa] sm:$0xff]  ;;  %v14999_v28 = vld [vmem:[#allocation4 + $0x49] sm:$0xff] }
 0x8d0   : > { %v25208_v7 = vpack.c.bf16 %v10702_v9, %v10701_v51  ;;  %v10707_v9 = vld [vmem:[#allocation6 + $0x13a] sm:$0xff] }
 0x8d1   : > { %19226 = vmatmul.mubr.msk.bf16.vlgmr.msra.gmra.mrb[64].mxu0 %vm588_vm3, %v25156_v4 }
 0x8d2   : > { %19258 = vmatpush3.bf16.msra.mxu0 %v11074_v36  ;;  %19229 = vmatprep.mubr.msk.bf16.mxu0 %vm588_vm3, %v25161_v46  ;;  %v14720_v36 = vld [vmem:[#allocation4 + $0x188] sm:$0xff] }
 0x8d3   : > { %21176 = vmatprep.subr.msk.bf16.mxu0 %vm4212_vm6, %v25166_v15  ;;  %v14737_v35 = vpack.c.bf16 %v14720_v36, %v14719_v34  ;;  %v15001_v34 = vld [vmem:[#allocation4 + $0x61] sm:$0xff]  ;;  %v15002_v36 = vld [vmem:[#allocation4 + $0x69] sm:$0xff] }
 0x8d6   : > { %19698 = vmatmul.mubr.msk.bf16.gmra.mrb[80].mxu1 %vm859_vm0, %v14732_v58  ;;  %v10697_v58 = vld [vmem:[#allocation6 + $0xc2] sm:$0xff] }
 0x8d7   : > { %19701 = vmatprep.mubr.msk.bf16.mxu1 %vm859_vm0, %v14733_v20  ;;  %v10698_v20 = vld [vmem:[#allocation6 + $0xca] sm:$0xff] }
 0x8d8   : > { %v25198_v18 = vpack.c.bf16 %v10698_v20, %v10697_v58  ;;  %v21245_v58 = vld [vmem:[%s25816_s8 + $0x88] sm:$0xff]  }
 0x8d9   : > { %19230 = vmatmul.mubr.msk.bf16.gmra.mrb[68].mxu0 %vm588_vm3, %v25175_v17  ;;  %v10705_v20 = vld [vmem:[#allocation6 + $0x122] sm:$0xff] }
 0x8da   : > { %19233 = vmatprep.mubr.msk.bf16.mxu0 %vm588_vm3, %v25178_v30 }
 0x8de   : > { %19702 = vmatmul.mubr.msk.bf16.gmra.mrb[84].mxu1 %vm859_vm0, %v14734_v40  ;;  %v10699_v40 = vld [vmem:[#allocation6 + $0xda] sm:$0xff] }
 0x8df   : > { %19705 = vmatprep.mubr.msk.bf16.mxu1 %vm859_vm0, %v14735_v8  ;;  %v10700_v8 = vld [vmem:[#allocation6 + $0xe2] sm:$0xff] }
 0x8e0   : > { %v25205_v0 = vpack.c.bf16 %v10700_v8, %v10699_v40  ;;  %v15006_v40 = vld [vmem:[#allocation4 + $0x99] sm:$0xff]  ;;  %v15032_v8 = vpack.c.bf16 %v15004_v59, %v15003_v16 }
 0x8e1   : > { %19234 = vmatmul.mubr.msk.bf16.gmra.mrb[72].mxu0 %vm588_vm3, %v25185_v5  ;;  %v10712_v16 = vld [vmem:[#allocation6 + $0x172] sm:$0xff] }
 0x8e2   : > { %19237 = vmatprep.mubr.msk.bf16.mxu0 %vm588_vm3, %v25188_v27 }
 0x8e6   : > { %19706 = vmatmul.mubr.msk.bf16.gmra.mrb[88].mxu1 %vm859_vm0, %v14736_v6  ;;  %v15030_v6 = vpack.c.bf16 %v15000_v53, %v14999_v28  ;;  %v10708_v28 = vld [vmem:[#allocation6 + $0x142] sm:$0xff]  ;;  %v10709_v53 = vld [vmem:[#allocation6 + $0x152] sm:$0xff] }
 0x8e7   : > { %19709 = vmatprep.mubr.msk.bf16.mxu1 %vm859_vm0, %v14737_v35  ;;  %v15031_v35 = vpack.c.bf16 %v15002_v36, %v15001_v34  ;;  %v25229_v34 = vpack.c.bf16 %v10708_v28, %v10707_v9  ;;  %v15007_v36 = vld [vmem:[#allocation4 + $0xa9] sm:$0xff] }
 0x8e9   : > { %19238 = vmatmul.mubr.msk.bf16.gmra.mrb[76].mxu0 %vm588_vm3, %v25195_v11 }
 0x8ea   : > { %19241 = vmatprep.mubr.msk.bf16.mxu0 %vm588_vm3, %v25198_v18 }
 0x8ee   : > { %19710 = vmatmul.mubr.msk.bf16.gmra.mrb[92].mxu1 %vm859_vm0, %v14738_v32  ;;  %v25222_v32 = vpack.c.bf16 %v10706_v2, %v10705_v20  ;;  %v15035_v20 = vpack.c.bf16 %v15010_v33, %v15009_v60  ;;  %v10711_v2 = vld [vmem:[#allocation6 + $0x16a] sm:$0xff] }
 0x8ef   : > { %19717 = vmatprep.mubr.msk.bf16.mxu1 %vm859_vm0, %v15029_v63  ;;  %v15005_v63 = vld [vmem:[#allocation4 + $0x91] sm:$0xff]  ;;  %v25239_v59 = vpack.c.bf16 %v10712_v16, %v10711_v2  ;;  %v15018_v60 = vld [vmem:[#allocation4 + $0x129] sm:$0xff]  ;;  %v15022_v16 = vld [vmem:[#allocation4 + $0x159] sm:$0xff] }
 0x8f0   : > { %v15033_v51 = vpack.c.bf16 %v15006_v40, %v15005_v63  ;;  %v15011_v63 = vld [vmem:[#allocation4 + $0xd9] sm:$0xff]  ;;  %v15012_v40 = vld [vmem:[#allocation4 + $0xe1] sm:$0xff]  ;;  %v16868_v33 = vld [vmem:[%s25820_s12 + $0xa] sm:$0x3] }
 0x8f1   : > { %19242 = vmatmul.mubr.msk.bf16.gmra.mrb[80].mxu0 %vm588_vm3, %v25205_v0  ;;  %v15036_v9 = vpack.c.bf16 %v15012_v40, %v15011_v63  ;;  %v15021_v2 = vld [vmem:[#allocation4 + $0x151] sm:$0xff] }
 0x8f2   : > { %19245 = vmatprep.mubr.msk.bf16.mxu0 %vm588_vm3, %v25208_v7  ;;  %v11282_v40 = vld [vmem:[#allocation6 + $0xb1] sm:$0xff] }
 0x8f6   : > { %19718 = vmatmul.mubr.msk.bf16.vlgmr.msra.gmra.mrb[64].mxu1 %vm859_vm0, %v15030_v6  ;;  %v15008_v6 = vld [vmem:[#allocation4 + $0xb1] sm:$0xff] }
 0x8f7   : > { %19721 = vmatprep.mubr.msk.bf16.mxu1 %vm859_vm0, %v15031_v35  ;;  %19750 = vmatpush3.bf16.msra.mxu1 %v25131_v56  ;;  %v10710_v56 = vld [vmem:[#allocation6 + $0x15a] sm:$0xff] }
 0x8f8   : > { %19751 = vmatprep.subr.bf16.mxu1 %v21245_v58  ;;  %v25232_v35 = vpack.c.bf16 %v10710_v56, %v10709_v53  ;;  %v11368_v53 = vsel %vm4212_vm6, %v25166_v15, 0  ;;  %v15015_v56 = vld [vmem:[#allocation4 + $0x109] sm:$0xff]  ;;  %v15019_v15 = vld [vmem:[#allocation4 + $0x139] sm:$0xff] }
 0x8f9   : > { %19246 = vmatmul.mubr.msk.bf16.gmra.mrb[84].mxu0 %vm588_vm3, %v25218_v45 }
 0x8fa   : > { %19249 = vmatprep.mubr.msk.bf16.mxu0 %vm588_vm3, %v25222_v32 }
 0x8fb   : > { %19752 = vmatpush3.bf16.msra.mxu1 %v21245_v58  ;;  %v15034_v58 = vpack.c.bf16 %v15008_v6, %v15007_v36  ;;  %v15016_v36 = vld [vmem:[#allocation4 + $0x111] sm:$0xff]  ;;  %v15017_v6 = vld [vmem:[#allocation4 + $0x121] sm:$0xff] }
 0x8fe   : > { %19722 = vmatmul.mubr.msk.bf16.gmra.mrb[68].mxu1 %vm859_vm0, %v15032_v8  ;;  %v15013_v8 = vld [vmem:[#allocation4 + $0xf1] sm:$0xff] }
 0x8ff   : > { %19725 = vmatprep.mubr.msk.bf16.mxu1 %vm859_vm0, %v15033_v51  ;;  %v15014_v51 = vld [vmem:[#allocation4 + $0xf9] sm:$0xff] }
 0x900   : > { %v15037_v28 = vpack.c.bf16 %v15014_v51, %v15013_v8  ;;  %v11281_v51 = vld [vmem:[#allocation6 + $0xa9] sm:$0xff] }
 0x901   : > { %19250 = vmatmul.mubr.msk.bf16.gmra.mrb[88].mxu0 %vm588_vm3, %v25229_v34 }
 0x902   : > { %19253 = vmatprep.mubr.msk.bf16.mxu0 %vm588_vm3, %v25232_v35 }
 0x906   : > { %19726 = vmatmul.mubr.msk.bf16.gmra.mrb[72].mxu1 %vm859_vm0, %v15034_v58  ;;  %v15039_v58 = vpack.c.bf16 %v15018_v60, %v15017_v6 }
 0x907   : > { %19729 = vmatprep.mubr.msk.bf16.mxu1 %vm859_vm0, %v15035_v20  ;;  %v15020_v20 = vld [vmem:[#allocation4 + $0x141] sm:$0xff] }
 0x909   : > { %19254 = vmatmul.mubr.msk.bf16.gmra.mrb[92].mxu0 %vm588_vm3, %v25239_v59 }
 0x90a   : > { %19259 = vmatprep.mubr.msk.bf16.mxu0 %vm588_vm3, %v25038_v25  ;;  %v15038_v25 = vpack.c.bf16 %v15016_v36, %v15015_v56  ;;  %v11285_v56 = vld [vmem:[#allocation6 + $0xd9] sm:$0xff]  ;;  %v15334_v36 = vld [vmem:[#allocation4 + $0x1a2] sm:$0xff] }
 0x90e   : > { %19730 = vmatmul.mubr.msk.bf16.gmra.mrb[76].mxu1 %vm859_vm0, %v15036_v9  ;;  %v11284_v9 = vld [vmem:[#allocation6 + $0xc9] sm:$0xff] }
 0x90f   : > { %19733 = vmatprep.mubr.msk.bf16.mxu1 %vm859_vm0, %v15037_v28  ;;  %v11286_v28 = vld [vmem:[#allocation6 + $0xe1] sm:$0xff] }
 0x910   : > { %v25360_v6 = vpack.c.bf16 %v11286_v28, %v11285_v56  ;;  %v11873_v28 = vld [vmem:[#allocation6 + $0xe0] sm:$0xff]  ;;  %v11872_v56 = vld [vmem:[#allocation6 + $0xd8] sm:$0xff] }
 0x911   : > { %19260 = vmatmul.mubr.msk.bf16.vlgmr.msra.gmra.mrb[64].mxu0 %vm588_vm3, %v25044_v12  ;;  %v15040_v12 = vpack.c.bf16 %v15020_v20, %v15019_v15  ;;  %v11289_v15 = vld [vmem:[#allocation6 + $0x109] sm:$0xff] }
 0x912   : > { %19292 = vmatpush3.bf16.msra.mxu0 %v11368_v53  ;;  %19263 = vmatprep.mubr.msk.bf16.mxu0 %vm588_vm3, %v25063_v62  ;;  %v15041_v62 = vpack.c.bf16 %v15022_v16, %v15021_v2  ;;  %v11292_v20 = vld [vmem:[#allocation6 + $0x129] sm:$0xff]  ;;  %v11294_v2 = vld [vmem:[#allocation6 + $0x141] sm:$0xff] }
 0x913   : > { %21177 = vmatprep.subr.msk.bf16.mxu0 %vm4212_vm6, %v16868_v33  ;;  %v11291_v16 = vld [vmem:[#allocation6 + $0x121] sm:$0xff] }
 0x916   : > { %19734 = vmatmul.mubr.msk.bf16.gmra.mrb[80].mxu1 %vm859_vm0, %v15038_v25  ;;  %v11287_v25 = vld [vmem:[#allocation6 + $0xf1] sm:$0xff] }
 0x917   : > { %19737 = vmatprep.mubr.msk.bf16.mxu1 %vm859_vm0, %v15039_v58 }
 0x919   : > { %19264 = vmatmul.mubr.msk.bf16.gmra.mrb[68].mxu0 %vm588_vm3, %v25067_v23  ;;  %v15027_v23 = vld [vmem:[#allocation4 + $0x199] sm:$0xff] }
 0x91a   : > { %19267 = vmatprep.mubr.msk.bf16.mxu0 %vm588_vm3, %v25079_v50  ;;  %v15028_v50 = vld [vmem:[#allocation4 + $0x1a1] sm:$0xff] }
 0x91b   : > { %v15044_v63 = vpack.c.bf16 %v15028_v50, %v15027_v23  ;;  %v11296_v50 = vld [vmem:[#allocation6 + $0x159] sm:$0xff] }
 0x91e   : > { %19738 = vmatmul.mubr.msk.bf16.gmra.mrb[84].mxu1 %vm859_vm0, %v15040_v12  ;;  %v25375_v12 = vpack.c.bf16 %v11292_v20, %v11291_v16  ;;  %v11878_v20 = vld [vmem:[#allocation6 + $0x120] sm:$0xff] }
 0x91f   : > { %19741 = vmatprep.mubr.msk.bf16.mxu1 %vm859_vm0, %v15041_v62  ;;  %v11293_v62 = vld [vmem:[#allocation6 + $0x139] sm:$0xff] }
 0x920   : > { %v25377_v23 = vpack.c.bf16 %v11294_v2, %v11293_v62  ;;  %v11881_v16 = vld [vmem:[#allocation6 + $0x140] sm:$0xff]  ;;  %v11883_v62 = vld [vmem:[#allocation6 + $0x158] sm:$0xff] }
 0x921   : > { %19268 = vmatmul.mubr.msk.bf16.gmra.mrb[72].mxu0 %vm588_vm3, %v25083_v55  ;;  %v11274_v55 = vld [vmem:[#allocation6 + $0x51] sm:$0xff] }
 0x922   : > { %19271 = vmatprep.mubr.msk.bf16.mxu0 %vm588_vm3, %v25095_v38  ;;  %v11271_v38 = vld [vmem:[#allocation6 + $0x31] sm:$0xff] }
 0x926   : > { %19742 = vmatmul.mubr.msk.bf16.gmra.mrb[88].mxu1 %vm859_vm0, %v24937_v1  ;;  %v11006_v1 = vld [vmem:[#allocation6 + $0x188] sm:$0xff] }
 0x927   : > { %19745 = vmatprep.mubr.msk.bf16.mxu1 %vm859_vm0, %v24956_v22  ;;  %v11270_v22 = vld [vmem:[#allocation6 + $0x21] sm:$0xff] }
 0x929   : > { %19272 = vmatmul.mubr.msk.bf16.gmra.mrb[76].mxu0 %vm588_vm3, %v25099_v24  ;;  %v11662_v24 = vsel %vm4212_vm6, %v16868_v33, 0  ;;  %v11288_v33 = vld [vmem:[#allocation6 + $0xf9] sm:$0xff] }
 0x92a   : > { %19275 = vmatprep.mubr.msk.bf16.mxu0 %vm588_vm3, %v25109_v43  ;;  %v11273_v43 = vld [vmem:[#allocation6 + $0x49] sm:$0xff]  ;;  %v25367_v58 = vpack.c.bf16 %v11288_v33, %v11287_v25 }
 0x92b   : > { %v11877_v33 = vld [vmem:[#allocation6 + $0x110] sm:$0xff]  ;;  %v11876_v25 = vld [vmem:[#allocation6 + $0x108] sm:$0xff] }
 0x92e   : > { %19746 = vmatmul.mubr.msk.bf16.gmra.mrb[92].mxu1 %vm859_vm0, %v15044_v63  ;;  %v11298_v63 = vld [vmem:[#allocation6 + $0x171] sm:$0xff] }
 0x92f   : > { %19753 = vmatprep.mubr.msk.bf16.mxu1 %vm859_vm0, %v24977_v44  ;;  %v11005_v44 = vld [vmem:[#allocation6 + $0x180] sm:$0xff] }
 0x931   : > { %19276 = vmatmul.mubr.msk.bf16.gmra.mrb[80].mxu0 %vm588_vm3, %v25112_v13  ;;  %v25322_v13 = vld [vmem:[%s25820_s12 + $0xc] sm:$0x3] }
 0x932   : > { %19279 = vmatprep.mubr.msk.bf16.mxu0 %vm588_vm3, %v25122_v31  ;;  %v11278_v31 = vld [vmem:[#allocation6 + $0x81] sm:$0xff] }
 0x936   : > { %19754 = vmatmul.mubr.msk.bf16.vlgmr.msra.gmra.mrb[64].mxu1 %vm859_vm0, %v24980_v14  ;;  %v25303_v14 = vpack.c.bf16 %v11006_v1, %v11005_v44  ;;  %v11295_v1 = vld [vmem:[#allocation6 + $0x151] sm:$0xff]  ;;  %v11297_v44 = vld [vmem:[#allocation6 + $0x169] sm:$0xff] }
 0x937   : > { %19757 = vmatprep.mubr.msk.bf16.mxu1 %vm859_vm0, %v25002_v10  ;;  %v11269_v10 = vld [vmem:[#allocation6 + $0x19] sm:$0xff] }
 0x939   : > { %19280 = vmatmul.mubr.msk.bf16.gmra.mrb[84].mxu0 %vm588_vm3, %v25126_v26 }
 0x93a   : > { %19283 = vmatprep.mubr.msk.bf16.mxu0 %vm588_vm3, %v25139_v49  ;;  %v11277_v49 = vld [vmem:[#allocation6 + $0x79] sm:$0xff] }
 0x93e   : > { %19758 = vmatmul.mubr.msk.bf16.gmra.mrb[68].mxu1 %vm859_vm0, %v25006_v39  ;;  %v11301_v39 = vpack.c.bf16 %v11270_v22, %v11269_v10  ;;  %v25383_v22 = vpack.c.bf16 %v11296_v50, %v11295_v1  ;;  %v25385_v10 = vpack.c.bf16 %v11298_v63, %v11297_v44  ;;  %v11880_v50 = vld [vmem:[#allocation6 + $0x138] sm:$0xff]  ;;  %v11882_v1 = vld [vmem:[#allocation6 + $0x150] sm:$0xff] }
 0x93f   : > { %19761 = vmatprep.mubr.msk.bf16.mxu1 %vm859_vm0, %v25020_v57  ;;  %v11272_v57 = vld [vmem:[#allocation6 + $0x39] sm:$0xff]  ;;  %v11901_v63 = vpack.c.bf16 %v11881_v16, %v11880_v50  ;;  %v11902_v44 = vpack.c.bf16 %v11883_v62, %v11882_v1 }
 0x941   : > { %19284 = vmatmul.mubr.msk.bf16.gmra.mrb[88].mxu0 %vm588_vm3, %v25142_v48  ;;  %v25336_v48 = vpack.c.bf16 %v11278_v31, %v11277_v49  ;;  %v11866_v31 = vld [vmem:[#allocation6 + $0x90] sm:$0xff] }
 0x942   : > { %19287 = vmatprep.mubr.msk.bf16.mxu0 %vm588_vm3, %v25149_v19  ;;  %v11280_v19 = vld [vmem:[#allocation6 + $0x99] sm:$0xff]  ;;  %v11869_v49 = vld [vmem:[#allocation6 + $0xb0] sm:$0xff] }
 0x946   : > { %19762 = vmatmul.mubr.msk.bf16.gmra.mrb[72].mxu1 %vm859_vm0, %v25023_v29  ;;  %v25312_v29 = vpack.c.bf16 %v11272_v57, %v11271_v38  ;;  %v11299_v57 = vld [vmem:[#allocation6 + $0x181] sm:$0xff]  ;;  %v11957_v38 = vsel %vm4212_vm6, %v25322_v13, 0 }
 0x947   : > { %19765 = vmatprep.mubr.msk.bf16.mxu1 %vm859_vm0, %v25031_v3  ;;  %v25317_v3 = vpack.c.bf16 %v11274_v55, %v11273_v43  ;;  %v11867_v43 = vld [vmem:[#allocation6 + $0x98] sm:$0xff] }
 0x949   : > { %19288 = vmatmul.mubr.msk.bf16.gmra.mrb[92].mxu0 %vm588_vm3, %v25303_v14 }
 0x94a   : > { %19293 = vmatprep.mubr.msk.bf16.mxu0 %vm588_vm3, %v11301_v39  ;;  %v11300_v39 = vld [vmem:[#allocation6 + $0x189] sm:$0xff] }
 0x94b   : > { %v25391_v55 = vpack.c.bf16 %v11300_v39, %v11299_v57  ;;  %v11885_v39 = vld [vmem:[#allocation6 + $0x170] sm:$0xff]  ;;  %v11884_v57 = vld [vmem:[#allocation6 + $0x168] sm:$0xff] }
 0x94e   : > { %19766 = vmatmul.mubr.msk.bf16.gmra.mrb[76].mxu1 %vm859_vm0, %v25034_v61  ;;  %v11276_v61 = vld [vmem:[#allocation6 + $0x69] sm:$0xff] }
 0x94f   : > { %19769 = vmatprep.mubr.msk.bf16.mxu1 %vm859_vm0, %v25055_v21  ;;  %v11275_v21 = vld [vmem:[#allocation6 + $0x61] sm:$0xff] }
 0x950   : > { %v25332_v26 = vpack.c.bf16 %v11276_v61, %v11275_v21  ;;  %v11894_v21 = vpack.c.bf16 %v11867_v43, %v11866_v31 }
 0x951   : > { %19294 = vmatmul.mubr.msk.bf16.vlgmr.msra.gmra.mrb[64].mxu0 %vm588_vm3, %v25312_v29 }
 0x952   : > { %19326 = vmatpush3.bf16.msra.mxu0 %v11662_v24  ;;  %19297 = vmatprep.mubr.msk.bf16.mxu0 %vm588_vm3, %v25317_v3  ;;  %v16902_v24 = vld [vmem:[%s25820_s12 + $0xe] sm:$0x3] }
 0x953   : > { %21178 = vmatprep.subr.msk.bf16.mxu0 %vm4212_vm6, %v25322_v13  ;;  %v11864_v13 = vld [vmem:[#allocation6 + $0x78] sm:$0xff] }
 0x956   : > { %19770 = vmatmul.mubr.msk.bf16.gmra.mrb[80].mxu1 %vm859_vm0, %v25057_v52  ;;  %v11279_v52 = vld [vmem:[#allocation6 + $0x91] sm:$0xff] }
 0x957   : > { %19773 = vmatprep.mubr.msk.bf16.mxu1 %vm859_vm0, %v25073_v41  ;;  %v25344_v8 = vpack.c.bf16 %v11280_v19, %v11279_v52  ;;  %v25348_v41 = vpack.c.bf16 %v11282_v40, %v11281_v51  ;;  %v11871_v19 = vld [vmem:[#allocation6 + $0xc8] sm:$0xff]  ;;  %v11870_v51 = vld [vmem:[#allocation6 + $0xc0] sm:$0xff] }
 0x958   : > { %v11868_v40 = vld [vmem:[#allocation6 + $0xa8] sm:$0xff] }
 0x959   : > { %19298 = vmatmul.mubr.msk.bf16.gmra.mrb[68].mxu0 %vm588_vm3, %v25332_v26  ;;  %v11895_v52 = vpack.c.bf16 %v11869_v49, %v11868_v40 }
 0x95a   : > { %19301 = vmatprep.mubr.msk.bf16.mxu0 %vm588_vm3, %v25336_v48 }
 0x95e   : > { %19774 = vmatmul.mubr.msk.bf16.gmra.mrb[84].mxu1 %vm859_vm0, %v25075_v54  ;;  %v11283_v54 = vld [vmem:[#allocation6 + $0xc1] sm:$0xff] }
 0x95f   : > { %19777 = vmatprep.mubr.msk.bf16.mxu1 %vm859_vm0, %v25089_v42  ;;  %v25356_v53 = vpack.c.bf16 %v11284_v9, %v11283_v54  ;;  %v15333_v42 = vld [vmem:[#allocation4 + $0x19a] sm:$0xff]  ;;  %v11896_v9 = vpack.c.bf16 %v11871_v19, %v11870_v51 }
 0x960   : > { %v15350_v60 = vpack.c.bf16 %v15334_v36, %v15333_v42  ;;  %v11875_v54 = vld [vmem:[#allocation6 + $0xf8] sm:$0xff]  ;;  %v11897_v42 = vpack.c.bf16 %v11873_v28, %v11872_v56  ;;  %v11874_v36 = vld [vmem:[#allocation6 + $0xf0] sm:$0xff] }
 0x961   : > { %19302 = vmatmul.mubr.msk.bf16.gmra.mrb[72].mxu0 %vm588_vm3, %v25344_v8 }
 0x962   : > { %19305 = vmatprep.mubr.msk.bf16.mxu0 %vm588_vm3, %v25348_v41 }
 0x966   : > { %19778 = vmatmul.mubr.msk.bf16.gmra.mrb[88].mxu1 %vm859_vm0, %v25091_v37  ;;  %v11290_v37 = vld [vmem:[#allocation6 + $0x111] sm:$0xff] }
 0x967   : > { %19781 = vmatprep.mubr.msk.bf16.mxu1 %vm859_vm0, %v25105_v47  ;;  %v25369_v47 = vpack.c.bf16 %v11290_v37, %v11289_v15  ;;  %v11879_v37 = vld [vmem:[#allocation6 + $0x128] sm:$0xff]  ;;  %v11899_v15 = vpack.c.bf16 %v11877_v33, %v11876_v25 }
 0x968   : > { %v11900_v2 = vpack.c.bf16 %v11879_v37, %v11878_v20 }
 0x969   : > { %19306 = vmatmul.mubr.msk.bf16.gmra.mrb[76].mxu0 %vm588_vm3, %v25356_v53 }
 0x96a   : > { %19309 = vmatprep.mubr.msk.bf16.mxu0 %vm588_vm3, %v25360_v6 }
 0x96e   : > { %19782 = vmatmul.mubr.msk.bf16.gmra.mrb[92].mxu1 %vm859_vm0, %v15350_v60  ;;  %v11898_v60 = vpack.c.bf16 %v11875_v54, %v11874_v36 }
 0x971   : > { %19310 = vmatmul.mubr.msk.bf16.gmra.mrb[80].mxu0 %vm588_vm3, %v25367_v58 }
 0x972   : > { %19313 = vmatprep.mubr.msk.bf16.mxu0 %vm588_vm3, %v25369_v47 }
 0x979   : > { %19314 = vmatmul.mubr.msk.bf16.gmra.mrb[84].mxu0 %vm588_vm3, %v25375_v12 }
 0x97a   : > { %19317 = vmatprep.mubr.msk.bf16.mxu0 %vm588_vm3, %v25377_v23 }
 0x981   : > { %19318 = vmatmul.mubr.msk.bf16.gmra.mrb[88].mxu0 %vm588_vm3, %v25383_v22 }
 0x982   : > { %19321 = vmatprep.mubr.msk.bf16.mxu0 %vm588_vm3, %v25385_v10 }
 0x989   : > { %19322 = vmatmul.mubr.msk.bf16.gmra.mrb[92].mxu0 %vm588_vm3, %v25391_v55 }
 0x98a   : > { %19327 = vmatprep.mubr.msk.bf16.mxu0 %vm588_vm3, %v25156_v4  ;;  %v11593_v4 = vld [vmem:[#allocation6 + $0x182] sm:$0xff] }
 0x991   : > { %19328 = vmatmul.mubr.msk.bf16.vlgmr.msra.gmra.mrb[64].mxu0 %vm588_vm3, %v25161_v46  ;;  %v11594_v46 = vld [vmem:[#allocation6 + $0x18a] sm:$0xff] }
 0x992   : > { %19360 = vmatpush3.bf16.msra.mxu0 %v11957_v38  ;;  %19331 = vmatprep.mubr.msk.bf16.mxu0 %vm588_vm3, %v25175_v17  ;;  %v11859_v17 = vld [vmem:[#allocation6 + $0x38] sm:$0xff]  ;;  %v11903_v38 = vpack.c.bf16 %v11885_v39, %v11884_v57 }
 0x993   : > { %21179 = vmatprep.subr.msk.bf16.mxu0 %vm4212_vm6, %v16902_v24 }
 0x999   : > { %19332 = vmatmul.mubr.msk.bf16.gmra.mrb[68].mxu0 %vm588_vm3, %v25178_v30  ;;  %v25431_v30 = vpack.c.bf16 %v11594_v46, %v11593_v4  ;;  %v11889_v4 = vld [vmem:[#allocation6 + $0x1a0] sm:$0xff] }
 0x99a   : > { %19335 = vmatprep.mubr.msk.bf16.mxu0 %vm588_vm3, %v25185_v5  ;;  %v11858_v5 = vld [vmem:[#allocation6 + $0x30] sm:$0xff] }
 0x9a1   : > { %19336 = vmatmul.mubr.msk.bf16.gmra.mrb[72].mxu0 %vm588_vm3, %v25188_v27  ;;  %v11890_v27 = vpack.c.bf16 %v11859_v17, %v11858_v5  ;;  %v25462_v17 = vld [vmem:[%s25817_s9] ss:$0 sm:$0xff] }
 0x9a2   : > { %19339 = vmatprep.mubr.msk.bf16.mxu0 %vm588_vm3, %v25195_v11  ;;  %v11861_v11 = vld [vmem:[#allocation6 + $0x50] sm:$0xff] }
 0x9a9   : > { %19340 = vmatmul.mubr.msk.bf16.gmra.mrb[76].mxu0 %vm588_vm3, %v25198_v18  ;;  %v11863_v18 = vld [vmem:[#allocation6 + $0x68] sm:$0xff] }
 0x9aa   : > { %19343 = vmatprep.mubr.msk.bf16.mxu0 %vm588_vm3, %v25205_v0  ;;  %v11860_v0 = vld [vmem:[#allocation6 + $0x48] sm:$0xff] }
 0x9b1   : > { %19344 = vmatmul.mubr.msk.bf16.gmra.mrb[80].mxu0 %vm588_vm3, %v25208_v7  ;;  %v11891_v7 = vpack.c.bf16 %v11861_v11, %v11860_v0 }
 0x9b2   : > { %19347 = vmatprep.mubr.msk.bf16.mxu0 %vm588_vm3, %v25218_v45  ;;  %v12251_v45 = vsel %vm4212_vm6, %v16902_v24, 0  ;;  %v11888_v24 = vld [vmem:[#allocation6 + $0x198] sm:$0xff] }
 0x9b3   : > { %v11905_v46 = vpack.c.bf16 %v11889_v4, %v11888_v24 }
 0x9b9   : > { %19348 = vmatmul.mubr.msk.bf16.gmra.mrb[84].mxu0 %vm588_vm3, %v25222_v32  ;;  %v11862_v32 = vld [vmem:[#allocation6 + $0x60] sm:$0xff] }
 0x9ba   : > { %19351 = vmatprep.mubr.msk.bf16.mxu0 %vm588_vm3, %v25229_v34  ;;  %v11892_v34 = vpack.c.bf16 %v11863_v18, %v11862_v32 }
 0x9c1   : > { %19352 = vmatmul.mubr.msk.bf16.gmra.mrb[88].mxu0 %vm588_vm3, %v25232_v35  ;;  %v25440_v35 = vld [vmem:[%s25820_s12 + $0x10] sm:$0x3] }
 0x9c2   : > { %19355 = vmatprep.mubr.msk.bf16.mxu0 %vm588_vm3, %v25239_v59  ;;  %v11865_v59 = vld [vmem:[#allocation6 + $0x80] sm:$0xff] }
 0x9c3   : > { %v11893_v61 = vpack.c.bf16 %v11865_v59, %v11864_v13 }
 0x9c9   : > { %19356 = vmatmul.mubr.msk.bf16.gmra.mrb[92].mxu0 %vm588_vm3, %v25431_v30 }
 0x9ca   : > { %19361 = vmatprep.mubr.msk.bf16.mxu0 %vm588_vm3, %v11890_v27 }
 0x9d1   : > { %19362 = vmatmul.mubr.msk.bf16.vlgmr.msra.gmra.mrb[64].mxu0 %vm588_vm3, %v11891_v7 }
 0x9d2   : > { %19394 = vmatpush3.bf16.msra.mxu0 %v12251_v45  ;;  %19365 = vmatprep.mubr.msk.bf16.mxu0 %vm588_vm3, %v11892_v34  ;;  %v25485_v45 = vld [vmem:[%s25822_s14] sm:$0x3] }
 0x9d3   : > { %21180 = vmatprep.subr.msk.bf16.mxu0 %vm4212_vm6, %v25440_v35 }
 0x9d9   : > { %19366 = vmatmul.mubr.msk.bf16.gmra.mrb[68].mxu0 %vm588_vm3, %v11893_v61 }
 0x9da   : > { %19369 = vmatprep.mubr.msk.bf16.mxu0 %vm588_vm3, %v11894_v21 }
 0x9e1   : > { %19370 = vmatmul.mubr.msk.bf16.gmra.mrb[72].mxu0 %vm588_vm3, %v11895_v52 }
 0x9e2   : > { %19373 = vmatprep.mubr.msk.bf16.mxu0 %vm588_vm3, %v11896_v9 }
 0x9e9   : > { %19374 = vmatmul.mubr.msk.bf16.gmra.mrb[76].mxu0 %vm588_vm3, %v11897_v42 }
 0x9ea   : > { %19377 = vmatprep.mubr.msk.bf16.mxu0 %vm588_vm3, %v11898_v60 }
 0x9f1   : > { %19378 = vmatmul.mubr.msk.bf16.gmra.mrb[80].mxu0 %vm588_vm3, %v11899_v15 }
 0x9f2   : > { %19381 = vmatprep.mubr.msk.bf16.mxu0 %vm588_vm3, %v11900_v2 }
 0x9f9   : > { %19382 = vmatmul.mubr.msk.bf16.gmra.mrb[84].mxu0 %vm588_vm3, %v11901_v63 }
 0x9fa   : > { %19385 = vmatprep.mubr.msk.bf16.mxu0 %vm588_vm3, %v11902_v44 }
 0xa01   : > { %19386 = vmatmul.mubr.msk.bf16.gmra.mrb[88].mxu0 %vm588_vm3, %v11903_v38 }
 0xa02   : > { %19389 = vmatprep.mubr.msk.bf16.mxu0 %vm588_vm3, %v25303_v14 }
 0xa09   : > { %19390 = vmatmul.mubr.msk.bf16.gmra.mrb[92].mxu0 %vm588_vm3, %v11905_v46  ;;  %v19755_v5 = vpop.f32.mrb[64].mxu1 }
 0xa0a   : > { %19395 = vmatprep.mubr.msk.bf16.mxu0 %vm588_vm3, %v25312_v29  ;;  %v15450_v27 = vpop.f32.mrb[65].mxu1  ;;  %v25476_v7 = vadd.f32 %v19755_v5, %v25462_v17  ;;  %v12545_v29 = vsel %vm4212_vm6, %v25440_v35, 0  ;;  %v12182_v5 = vld [vmem:[#allocation6 + $0x199] sm:$0xff] }
 0xa0b   : > { %v25468_v11 = vadd.f32 %v25462_v17, %v15450_v27  ;;  %v19756_v18 = vpop.f32.mrb[66].mxu1  ;;  %v12183_v27 = vld [vmem:[#allocation6 + $0x1a1] sm:$0xff] }
 0xa0c   : > { %v15453_v14 = vpop.f32.mrb[67].mxu1  ;;  %v25488_v32 = vadd.f32 %v19756_v18, %v25462_v17 }
 0xa0d   : > { %v25471_v0 = vadd.f32 %v25462_v17, %v15453_v14  ;;  %15712 = vrot.lane.b32.xlu0 %v25468_v11, %s21259_s30 }
 0xa0f   : > { %15714 = vrot.lane.b32.xlu1 %v25471_v0, %s21259_s30 }
 0xa11   : > { %15716 = vrot.lane.b32.xlu0 %v25476_v7, %s21259_s30  ;;  %19396 = vmatmul.mubr.msk.bf16.vlgmr.msra.gmra.mrb[64].mxu0 %vm588_vm3, %v25317_v3  ;;  %v19759_v34 = vpop.f32.mrb[68].mxu1 }
 0xa12   : > { %19428 = vmatpush3.bf16.msra.mxu0 %v12545_v29  ;;  %19399 = vmatprep.mubr.msk.bf16.mxu0 %vm588_vm3, %v25332_v26  ;;  %v15466_v35 = vpop.f32.mrb[69].mxu1  ;;  %v25509_v3 = vadd.f32 %v19759_v34, %v25462_v17 }
 0xa13   : > { %v25497_v59 = vadd.f32 %v25462_v17, %v15466_v35  ;;  %v19760_v43 = vpop.f32.mrb[70].mxu1  ;;  %15718 = vrot.lane.b32.xlu1 %v25488_v32, %s21259_s30  ;;  %21181 = vmatprep.subr.msk.bf16.mxu0 %vm4212_vm6, %v25485_v45  ;;  %v12446_v35 = vld [vmem:[#allocation6 + $0x32] sm:$0xff] }
 0xa14   : > { %v15469_v13 = vpop.f32.mrb[71].mxu1  ;;  %v25514_v26 = vadd.f32 %v19760_v43, %v25462_v17 }
 0xa15   : > { %v25504_v61 = vadd.f32 %v25462_v17, %v15469_v13  ;;  %15720 = vrot.lane.b32.xlu0 %v25497_v59, %s21259_s30 }
 0xa17   : > { %15722 = vrot.lane.b32.xlu1 %v25504_v61, %s21259_s30 }
 0xa19   : > { %15724 = vrot.lane.b32.xlu0 %v25509_v3, %s21259_s30  ;;  %19400 = vmatmul.mubr.msk.bf16.gmra.mrb[68].mxu0 %vm588_vm3, %v25336_v48  ;;  %v19763_v31 = vpop.f32.mrb[72].mxu1 }
 0xa1a   : > { %19403 = vmatprep.mubr.msk.bf16.mxu0 %vm588_vm3, %v25344_v8  ;;  %v15482_v21 = vpop.f32.mrb[73].mxu1  ;;  %v25533_v48 = vadd.f32 %v19763_v31, %v25462_v17 }
 0xa1b   : > { %v25523_v49 = vadd.f32 %v25462_v17, %v15482_v21  ;;  %v19764_v19 = vpop.f32.mrb[74].mxu1  ;;  %15726 = vrot.lane.b32.xlu1 %v25514_v26, %s21259_s30  ;;  %v12448_v21 = vld [vmem:[#allocation6 + $0x4a] sm:$0xff] }
 0xa1c   : > { %v15485_v40 = vpop.f32.mrb[75].mxu1  ;;  %v25538_v8 = vadd.f32 %v19764_v19, %v25462_v17  ;;  %v12449_v19 = vld [vmem:[#allocation6 + $0x52] sm:$0xff] }
 0xa1d   : > { %v25528_v52 = vadd.f32 %v25462_v17, %v15485_v40  ;;  %15728 = vrot.lane.b32.xlu0 %v25523_v49, %s21259_s30  ;;  %v12450_v40 = vld [vmem:[#allocation6 + $0x62] sm:$0xff] }
 0xa1f   : > { %15730 = vrot.lane.b32.xlu1 %v25528_v52, %s21259_s30 }
 0xa21   : > { %15732 = vrot.lane.b32.xlu0 %v25533_v48, %s21259_s30  ;;  %19404 = vmatmul.mubr.msk.bf16.gmra.mrb[72].mxu0 %vm588_vm3, %v25348_v41  ;;  %v19767_v51 = vpop.f32.mrb[76].mxu1 }
 0xa22   : > { %19407 = vmatprep.mubr.msk.bf16.mxu0 %vm588_vm3, %v25356_v53  ;;  %v15498_v9 = vpop.f32.mrb[77].mxu1  ;;  %v25557_v41 = vadd.f32 %v19767_v51, %v25462_v17  ;;  %v12451_v51 = vld [vmem:[#allocation6 + $0x6a] sm:$0xff] }
 0xa23   : > { %v25547_v28 = vadd.f32 %v25462_v17, %v15498_v9  ;;  %v19768_v54 = vpop.f32.mrb[78].mxu1  ;;  %15734 = vrot.lane.b32.xlu1 %v25538_v8, %s21259_s30  ;;  %v12479_v9 = vpack.c.bf16 %v12449_v19, %v12448_v21  ;;  %v12468_v21 = vld [vmem:[#allocation6 + $0x13a] sm:$0xff]  ;;  %v12469_v19 = vld [vmem:[#allocation6 + $0x142] sm:$0xff] }
 0xa24   : > { %v15501_v56 = vpop.f32.mrb[79].mxu1  ;;  %v25562_v53 = vadd.f32 %v19768_v54, %v25462_v17  ;;  %v15906_v54 = vsel %vm4212_vm6, %v25485_v45, 0  ;;  %v12459_v45 = vld [vmem:[#allocation6 + $0xca] sm:$0xff] }
 0xa25   : > { %v25552_v42 = vadd.f32 %v25462_v17, %v15501_v56  ;;  %15736 = vrot.lane.b32.xlu0 %v25547_v28, %s21259_s30  ;;  %v12452_v56 = vld [vmem:[#allocation6 + $0x7a] sm:$0xff] }
 0xa27   : > { %15738 = vrot.lane.b32.xlu1 %v25552_v42, %s21259_s30 }
 0xa29   : > { %15740 = vrot.lane.b32.xlu0 %v25557_v41, %s21259_s30  ;;  %19408 = vmatmul.mubr.msk.bf16.gmra.mrb[76].mxu0 %vm588_vm3, %v25360_v6  ;;  %v19771_v36 = vpop.f32.mrb[80].mxu1 }
 0xa2a   : > { %19411 = vmatprep.mubr.msk.bf16.mxu0 %vm588_vm3, %v25367_v58  ;;  %v15514_v60 = vpop.f32.mrb[81].mxu1  ;;  %v25581_v6 = vadd.f32 %v19771_v36, %v25462_v17  ;;  %v12453_v36 = vld [vmem:[#allocation6 + $0x82] sm:$0xff] }
 0xa2b   : > { %v25571_v33 = vadd.f32 %v25462_v17, %v15514_v60  ;;  %v19772_v37 = vpop.f32.mrb[82].mxu1  ;;  %15742 = vrot.lane.b32.xlu1 %v25562_v53, %s21259_s30  ;;  %v12454_v60 = vld [vmem:[#allocation6 + $0x92] sm:$0xff] }
 0xa2c   : > { %v15517_v25 = vpop.f32.mrb[83].mxu1  ;;  %v25586_v58 = vadd.f32 %v19772_v37, %v25462_v17  ;;  %v12455_v37 = vld [vmem:[#allocation6 + $0x9a] sm:$0xff] }
 0xa2d   : > { %v25576_v15 = vadd.f32 %v25462_v17, %v15517_v25  ;;  %15744 = vrot.lane.b32.xlu0 %v25571_v33, %s21259_s30  ;;  %v12481_v25 = vpack.c.bf16 %v12453_v36, %v12452_v56  ;;  %v12473_v56 = vld [vmem:[#allocation6 + $0x172] sm:$0xff] }
 0xa2f   : > { %15746 = vrot.lane.b32.xlu1 %v25576_v15, %s21259_s30 }
 0xa31   : > { %15748 = vrot.lane.b32.xlu0 %v25581_v6, %s21259_s30  ;;  %19412 = vmatmul.mubr.msk.bf16.gmra.mrb[80].mxu0 %vm588_vm3, %v25369_v47  ;;  %v19775_v20 = vpop.f32.mrb[84].mxu1 }
 0xa32   : > { %19415 = vmatprep.mubr.msk.bf16.mxu0 %vm588_vm3, %v25375_v12  ;;  %v15530_v2 = vpop.f32.mrb[85].mxu1  ;;  %v25605_v47 = vadd.f32 %v19775_v20, %v25462_v17  ;;  %v12482_v20 = vpack.c.bf16 %v12455_v37, %v12454_v60  ;;  %v26052_v37 = vld [vmem:[#allocation22_spill] sm:$0xff] }
 0xa33   : > { %v25595_v16 = vadd.f32 %v25462_v17, %v15530_v2  ;;  %v19776_v62 = vpop.f32.mrb[86].mxu1  ;;  %15750 = vrot.lane.b32.xlu1 %v25586_v58, %s21259_s30  ;;  %v12456_v2 = vld [vmem:[#allocation6 + $0xaa] sm:$0xff] }
 0xa34   : > { %v15533_v50 = vpop.f32.mrb[87].mxu1  ;;  %v25610_v12 = vadd.f32 %v19776_v62, %v25462_v17  ;;  %v12457_v62 = vld [vmem:[#allocation6 + $0xb2] sm:$0xff] }
 0xa35   : > { %v25600_v63 = vadd.f32 %v25462_v17, %v15533_v50  ;;  %15752 = vrot.lane.b32.xlu0 %v25595_v16, %s21259_s30  ;;  %v12458_v50 = vld [vmem:[#allocation6 + $0xc2] sm:$0xff] }
 0xa37   : > { %15754 = vrot.lane.b32.xlu1 %v25600_v63, %s21259_s30 }
 0xa39   : > { %15756 = vrot.lane.b32.xlu0 %v25605_v47, %s21259_s30  ;;  %19416 = vmatmul.mubr.msk.bf16.gmra.mrb[84].mxu0 %vm588_vm3, %v25377_v23  ;;  %v19779_v1 = vpop.f32.mrb[88].mxu1 }
 0xa3a   : > { %19419 = vmatprep.mubr.msk.bf16.mxu0 %vm588_vm3, %v25383_v22  ;;  %v15546_v44 = vpop.f32.mrb[89].mxu1  ;;  %v25629_v23 = vadd.f32 %v19779_v1, %v25462_v17  ;;  %v12483_v1 = vpack.c.bf16 %v12457_v62, %v12456_v2 }
 0xa3b   : > { %v25619_v39 = vadd.f32 %v25462_v17, %v15546_v44  ;;  %v19780_v57 = vpop.f32.mrb[90].mxu1  ;;  %15758 = vrot.lane.b32.xlu1 %v25610_v12, %s21259_s30  ;;  %v12484_v44 = vpack.c.bf16 %v12459_v45, %v12458_v50 }
 0xa3c   : > { %v15549_v38 = vpop.f32.mrb[91].mxu1  ;;  %v25634_v22 = vadd.f32 %v19780_v57, %v25462_v17  ;;  %v12460_v57 = vld [vmem:[#allocation6 + $0xda] sm:$0xff] }
 0xa3d   : > { %v25624_v24 = vadd.f32 %v25462_v17, %v15549_v38  ;;  %15760 = vrot.lane.b32.xlu0 %v25619_v39, %s21259_s30  ;;  %v12461_v38 = vld [vmem:[#allocation6 + $0xe2] sm:$0xff] }
 0xa3f   : > { %15762 = vrot.lane.b32.xlu1 %v25624_v24, %s21259_s30 }
 0xa41   : > { %15764 = vrot.lane.b32.xlu0 %v25629_v23, %s21259_s30  ;;  %19420 = vmatmul.mubr.msk.bf16.gmra.mrb[88].mxu0 %vm588_vm3, %v25385_v10  ;;  %v19783_v4 = vpop.f32.mrb[92].mxu1  ;;  %v12199_v10 = vpack.c.bf16 %v12183_v27, %v12182_v5  ;;  %v12485_v5 = vpack.c.bf16 %v12461_v38, %v12460_v57 }
 0xa42   : > { %19423 = vmatprep.mubr.msk.bf16.mxu0 %vm588_vm3, %v25391_v55  ;;  %v15562_v46 = vpop.f32.mrb[93].mxu1  ;;  %v12447_v55 = vld [vmem:[#allocation6 + $0x3a] sm:$0xff]  ;;  %v25653_v43 = vadd.f32 %v19783_v4, %v25462_v17  ;;  %v12462_v4 = vld [vmem:[#allocation6 + $0xf2] sm:$0xff] }
 0xa43   : > { %v25643_v18 = vadd.f32 %v25462_v17, %v15562_v46  ;;  %v19784_v14 = vpop.f32.mrb[94].mxu1  ;;  %15766 = vrot.lane.b32.xlu1 %v25634_v22, %s21259_s30  ;;  %v12478_v13 = vpack.c.bf16 %v12447_v55, %v12446_v35  ;;  %v12463_v46 = vld [vmem:[#allocation6 + $0xfa] sm:$0xff]  ;;  %v12467_v35 = vld [vmem:[#allocation6 + $0x12a] sm:$0xff] }
 0xa44   : > { %v15565_v29 = vpop.f32.mrb[95].mxu1  ;;  %v25658_v31 = vadd.f32 %v19784_v14, %v25462_v17  ;;  %v12486_v27 = vpack.c.bf16 %v12463_v46, %v12462_v4  ;;  %v12464_v14 = vld [vmem:[#allocation6 + $0x10a] sm:$0xff]  ;;  %v26054_v4 = vld [vmem:[#allocation21_spill] sm:$0xff] }
 0xa45   : > { %v25648_v34 = vadd.f32 %v25462_v17, %v15565_v29  ;;  %15768 = vrot.lane.b32.xlu0 %v25643_v18, %s21259_s30  ;;  %v12480_v17 = vpack.c.bf16 %v12451_v51, %v12450_v40  ;;  %v12465_v29 = vld [vmem:[#allocation6 + $0x112] sm:$0xff]  ;;  %v12471_v51 = vld [vmem:[#allocation6 + $0x15a] sm:$0xff]  ;;  %v15650_v46 = vmul.f32 %v25476_v7, %v26054_v4 }
 0xa46   : > { %v12487_v55 = vpack.c.bf16 %v12465_v29, %v12464_v14  ;;  %v12470_v40 = vld [vmem:[#allocation6 + $0x152] sm:$0xff] }
 0xa47   : > { %15770 = vrot.lane.b32.xlu1 %v25648_v34, %s21259_s30 }
 0xa49   : > { %15772 = vrot.lane.b32.xlu0 %v25653_v43, %s21259_s30  ;;  %19424 = vmatmul.mubr.msk.bf16.gmra.mrb[92].mxu0 %vm588_vm3, %v12199_v10  ;;  %v12466_v10 = vld [vmem:[#allocation6 + $0x122] sm:$0xff] }
 0xa4a   : > { %19429 = vmatprep.mubr.msk.bf16.mxu0 %vm588_vm3, %v12478_v13  ;;  %v12488_v13 = vpack.c.bf16 %v12467_v35, %v12466_v10 }
 0xa4b   : > { %15774 = vrot.lane.b32.xlu1 %v25658_v31, %s21259_s30 }
 0xa51   : > { %19430 = vmatmul.mubr.msk.bf16.vlgmr.msra.gmra.mrb[64].mxu0 %vm588_vm3, %v12479_v9  ;;  %v12489_v9 = vpack.c.bf16 %v12469_v19, %v12468_v21 }
 0xa52   : > { %19786 = vmatpush3.bf16.msra.mxu0 %v15906_v54  ;;  %19433 = vmatprep.mubr.msk.bf16.mxu0 %vm588_vm3, %v12480_v17  ;;  %v12490_v54 = vpack.c.bf16 %v12471_v51, %v12470_v40  ;;  %v12472_v17 = vld [vmem:[#allocation6 + $0x16a] sm:$0xff] }
 0xa53   : > { %v12491_v60 = vpack.c.bf16 %v12473_v56, %v12472_v17  ;;  %v26059_v17 = vld [vmem:[#allocation28_spill] sm:$0xff] }
 0xa54   : > { %v15655_v56 = vmul.f32 %v25514_v26, %v26059_v17 }
 0xa59   : > { %19434 = vmatmul.mubr.msk.bf16.gmra.mrb[68].mxu0 %vm588_vm3, %v12481_v25  ;;  %v15648_v25 = vmul.f32 %v25468_v11, %v26052_v37 }
 0xa5a   : > { %19437 = vmatprep.mubr.msk.bf16.mxu0 %vm588_vm3, %v12482_v20  ;;  %v26053_v20 = vld [vmem:[#allocation24_spill] sm:$0xff] }
 0xa5b   : > { %v15649_v2 = vmul.f32 %v25471_v0, %v26053_v20 }
 0xa61   : > { %19438 = vmatmul.mubr.msk.bf16.gmra.mrb[72].mxu0 %vm588_vm3, %v12483_v1  ;;  %v12476_v1 = vld [vmem:[#allocation6 + $0x19a] sm:$0xff] }
 0xa62   : > { %19441 = vmatprep.mubr.msk.bf16.mxu0 %vm588_vm3, %v12484_v44  ;;  %v12477_v44 = vld [vmem:[#allocation6 + $0x1a2] sm:$0xff] }
 0xa63   : > { %v12493_v0 = vpack.c.bf16 %v12477_v44, %v12476_v1  ;;  %v26062_v44 = vld [vmem:[#allocation31_spill] sm:$0xff] }
 0xa69   : > { %19442 = vmatmul.mubr.msk.bf16.gmra.mrb[76].mxu0 %vm588_vm3, %v12485_v5  ;;  %v26055_v5 = vld [vmem:[#allocation23_spill] sm:$0xff] }
 0xa6a   : > { %19445 = vmatprep.mubr.msk.bf16.mxu0 %vm588_vm3, %v12486_v27  ;;  %v15651_v11 = vmul.f32 %v25488_v32, %v26055_v5 }
 0xa71   : > { %19446 = vmatmul.mubr.msk.bf16.gmra.mrb[80].mxu0 %vm588_vm3, %v12487_v55  ;;  %v26056_v55 = vld [vmem:[#allocation25_spill] sm:$0xff] }
 0xa72   : > { %19449 = vmatprep.mubr.msk.bf16.mxu0 %vm588_vm3, %v12488_v13  ;;  %v15652_v13 = vmul.f32 %v25497_v59, %v26056_v55 }
 0xa79   : > { %19450 = vmatmul.mubr.msk.bf16.gmra.mrb[84].mxu0 %vm588_vm3, %v12489_v9  ;;  %v26058_v9 = vld [vmem:[#allocation27_spill] sm:$0xff] }
 0xa7a   : > { %19453 = vmatprep.mubr.msk.bf16.mxu0 %vm588_vm3, %v12490_v54  ;;  %v15654_v54 = vmul.f32 %v25509_v3, %v26058_v9 }
 0xa7f   : > { %v15713_v36 = vpop.permute.xlu0 %15712 }
 0xa80   : > { %v15808_v50 = vadd.f32 %v15713_v36, %v15648_v25  ;;  %v26060_v25 = vld [vmem:[#allocation29_spill] sm:$0xff] }
 0xa81   : > { %v15715_v62 = vpop.permute.xlu1 %15714  ;;  %19454 = vmatmul.mubr.msk.bf16.gmra.mrb[88].mxu0 %vm588_vm3, %v12491_v60  ;;  %v15656_v20 = vmul.f32 %v25523_v49, %v26060_v25 }
 0xa82   : > { %v15809_v45 = vadd.f32 %v15715_v62, %v15649_v2  ;;  %19457 = vmatprep.mubr.msk.bf16.mxu0 %vm588_vm3, %v25431_v30  ;;  %v26057_v30 = vld [vmem:[#allocation26_spill] sm:$0xff] }
 0xa83   : > { %v15717_v57 = vpop.permute.xlu0 %15716  ;;  %v15653_v21 = vmul.f32 %v25504_v61, %v26057_v30  ;;  %v26061_v2 = vld [vmem:[#allocation30_spill] sm:$0xff] }
 0xa84   : > { %v15840_v38 = vpack.c.bf16 %v15809_v45, %v15808_v50  ;;  %v15810_v14 = vadd.f32 %v15717_v57, %v15650_v46  ;;  %v15657_v62 = vmul.f32 %v25528_v52, %v26061_v2  ;;  %v15658_v57 = vmul.f32 %v25533_v48, %v26062_v44 }
 0xa85   : > { %v15719_v27 = vpop.permute.xlu1 %15718 }
 0xa86   : > { %v15811_v29 = vadd.f32 %v15719_v27, %v15651_v11  ;;  %v26064_v27 = vld [vmem:[#allocation33_spill] sm:$0xff] }
 0xa87   : > { %v15721_v10 = vpop.permute.xlu0 %15720 }
 0xa88   : > { %v15841_v35 = vpack.c.bf16 %v15811_v29, %v15810_v14  ;;  %v15812_v40 = vadd.f32 %v15721_v10, %v15652_v13  ;;  %v26065_v14 = vld [vmem:[#allocation34_spill] sm:$0xff]  ;;  %v26066_v13 = vld [vmem:[#allocation35_spill] sm:$0xff] }
 0xa89   : > { %v15723_v19 = vpop.permute.xlu1 %15722  ;;  %19458 = vmatmul.mubr.msk.bf16.gmra.mrb[92].mxu0 %vm588_vm3, %v12493_v0  ;;  %v15660_v0 = vmul.f32 %v25547_v28, %v26064_v27  ;;  %v15661_v29 = vmul.f32 %v25552_v42, %v26065_v14  ;;  %v15662_v30 = vmul.f32 %v25557_v41, %v26066_v13  ;;  %v26076_v27 = vld [vmem:[#allocation14_spill] sm:$0xff]  ;;  %v26077_v14 = vld [vmem:[#allocation8_spill] sm:$0xff] }
 0xa8a   : > { %v15813_v7 = vadd.f32 %v15723_v19, %v15653_v21  ;;  %19787 = vmatprep.mubr.msk.bf16.mxu0 %vm588_vm3, %v15840_v38  ;;  %v26063_v38 = vld [vmem:[#allocation32_spill] sm:$0xff]  ;;  %v26079_v13 = vld [vmem:[#allocation10_spill] sm:$0xff] }
 0xa8b   : > { %v15725_v32 = vpop.permute.xlu0 %15724  ;;  %v15659_v4 = vmul.f32 %v25538_v8, %v26063_v38  ;;  %v26067_v21 = vld [vmem:[#allocation36_spill] sm:$0xff]  ;;  %v26074_v38 = vld [vmem:[#allocation43_spill] sm:$0xff] }
 0xa8c   : > { %v15842_v51 = vpack.c.bf16 %v15813_v7, %v15812_v40  ;;  %v15814_v59 = vadd.f32 %v15725_v32, %v15654_v54  ;;  %v15663_v19 = vmul.f32 %v25562_v53, %v26067_v21  ;;  %v26069_v54 = vld [vmem:[#allocation38_spill] sm:$0xff] }
 0xa8d   : > { %v15727_v36 = vpop.permute.xlu1 %15726  ;;  %v15665_v17 = vmul.f32 %v25576_v15, %v26069_v54 }
 0xa8e   : > { %v15815_v60 = vadd.f32 %v15727_v36, %v15655_v56 }
 0xa8f   : > { %v15729_v37 = vpop.permute.xlu0 %15728 }
 0xa90   : > { %v15843_v61 = vpack.c.bf16 %v15815_v60, %v15814_v59  ;;  %v15816_v45 = vadd.f32 %v15729_v37, %v15656_v20  ;;  %v26070_v60 = vld [vmem:[#allocation39_spill] sm:$0xff] }
 0xa91   : > { %v15731_v50 = vpop.permute.xlu1 %15730  ;;  %19788 = vmatmul.mubr.msk.bf16.vlgmr.msra.gmra.mrb[64].mxu0 %vm588_vm3, %v15841_v35  ;;  %v15666_v37 = vmul.f32 %v25581_v6, %v26070_v60 }
 0xa92   : > { %v15817_v1 = vadd.f32 %v15731_v50, %v15657_v62  ;;  %19791 = vmatprep.mubr.msk.bf16.mxu0 %vm588_vm3, %v15842_v51  ;;  %v26068_v51 = vld [vmem:[#allocation37_spill] sm:$0xff] }
 0xa93   : > { %v15733_v3 = vpop.permute.xlu0 %15732  ;;  %v15664_v9 = vmul.f32 %v25571_v33, %v26068_v51  ;;  %v26072_v50 = vld [vmem:[#allocation41_spill] sm:$0xff] }
 0xa94   : > { %v15844_v26 = vpack.c.bf16 %v15817_v1, %v15816_v45  ;;  %v15818_v49 = vadd.f32 %v15733_v3, %v15658_v57  ;;  %v15668_v45 = vmul.f32 %v25595_v16, %v26072_v50  ;;  %v26073_v1 = vld [vmem:[#allocation42_spill] sm:$0xff] }
 0xa95   : > { %v15735_v46 = vpop.permute.xlu1 %15734  ;;  %v15669_v3 = vmul.f32 %v25600_v63, %v26073_v1 }
 0xa96   : > { %v15819_v5 = vadd.f32 %v15735_v46, %v15659_v4  ;;  %v15670_v4 = vmul.f32 %v25605_v47, %v26074_v38  ;;  %v26075_v46 = vld [vmem:[#allocation7_spill] sm:$0xff] }
 0xa97   : > { %v15737_v11 = vpop.permute.xlu0 %15736 }
 0xa98   : > { %v15845_v52 = vpack.c.bf16 %v15819_v5, %v15818_v49  ;;  %v15820_v35 = vadd.f32 %v15737_v11, %v15660_v0  ;;  %v15671_v49 = vmul.f32 %v25610_v12, %v26075_v46  ;;  %v15672_v0 = vmul.f32 %v25619_v39, %v26076_v27 }
 0xa99   : > { %v15739_v10 = vpop.permute.xlu1 %15738  ;;  %19792 = vmatmul.mubr.msk.bf16.gmra.mrb[68].mxu0 %vm588_vm3, %v15843_v61  ;;  %v26071_v61 = vld [vmem:[#allocation40_spill] sm:$0xff] }
 0xa9a   : > { %v15821_v55 = vadd.f32 %v15739_v10, %v15661_v29  ;;  %19795 = vmatprep.mubr.msk.bf16.mxu0 %vm588_vm3, %v15844_v26  ;;  %v15667_v25 = vmul.f32 %v25586_v58, %v26071_v61  ;;  %v15673_v29 = vmul.f32 %v25624_v24, %v26077_v14 }
 0xa9b   : > { %v15741_v48 = vpop.permute.xlu0 %15740 }
 0xa9c   : > { %v15846_v8 = vpack.c.bf16 %v15821_v55, %v15820_v35  ;;  %v15822_v28 = vadd.f32 %v15741_v48, %v15662_v30  ;;  %v26078_v48 = vld [vmem:[#allocation9_spill] sm:$0xff]  ;;  %v15675_v30 = vmul.f32 %v25634_v22, %v26079_v13 }
 0xa9d   : > { %v15743_v40 = vpop.permute.xlu1 %15742 }
 0xa9e   : > { %v15823_v7 = vadd.f32 %v15743_v40, %v15663_v19 }
 0xa9f   : > { %v15745_v32 = vpop.permute.xlu0 %15744 }
 0xaa0   : > { %v15847_v42 = vpack.c.bf16 %v15823_v7, %v15822_v28  ;;  %v15824_v36 = vadd.f32 %v15745_v32, %v15664_v9  ;;  %v26080_v28 = vld [vmem:[#allocation11_spill] sm:$0xff]  ;;  %v26081_v32 = vld [vmem:[#allocation12_spill] sm:$0xff] }
 0xaa1   : > { %v15747_v56 = vpop.permute.xlu1 %15746  ;;  %19796 = vmatmul.mubr.msk.bf16.gmra.mrb[72].mxu0 %vm588_vm3, %v15845_v52  ;;  %v15676_v7 = vmul.f32 %v25643_v18, %v26080_v28 }
 0xaa2   : > { %v15825_v59 = vadd.f32 %v15747_v56, %v15665_v17  ;;  %19799 = vmatprep.mubr.msk.bf16.mxu0 %vm588_vm3, %v15846_v8  ;;  %v15674_v8 = vmul.f32 %v25629_v23, %v26078_v48  ;;  %v26082_v17 = vld [vmem:[#allocation17_spill] sm:$0xff] }
 0xaa3   : > { %v15749_v41 = vpop.permute.xlu0 %15748  ;;  %v15678_v56 = vmul.f32 %v25653_v43, %v26082_v17 }
 0xaa4   : > { %v15848_v53 = vpack.c.bf16 %v15825_v59, %v15824_v36  ;;  %v15826_v33 = vadd.f32 %v15749_v41, %v15666_v37  ;;  %v26083_v36 = vld [vmem:[#allocation13_spill] sm:$0xff] }
 0xaa5   : > { %v15751_v20 = vpop.permute.xlu1 %15750  ;;  %v15679_v59 = vmul.f32 %v25658_v31, %v26083_v36 }
 0xaa6   : > { %v15827_v2 = vadd.f32 %v15751_v20, %v15667_v25 }
 0xaa7   : > { %v15753_v62 = vpop.permute.xlu0 %15752 }
 0xaa8   : > { %v15849_v15 = vpack.c.bf16 %v15827_v2, %v15826_v33  ;;  %v15828_v44 = vadd.f32 %v15753_v62, %v15668_v45 }
 0xaa9   : > { %v15755_v26 = vpop.permute.xlu1 %15754  ;;  %19800 = vmatmul.mubr.msk.bf16.gmra.mrb[76].mxu0 %vm588_vm3, %v15847_v42  ;;  %v15677_v42 = vmul.f32 %v25648_v34, %v26081_v32  ;;  %v25767_v34 = vld [vmem:[%s25821_s13] ss:$0 sm:$0xff] }
 0xaaa   : > { %v15829_v57 = vadd.f32 %v15755_v26, %v15669_v3  ;;  %19803 = vmatprep.mubr.msk.bf16.mxu0 %vm588_vm3, %v15848_v53 }
 0xaab   : > { %v15757_v6 = vpop.permute.xlu0 %15756 }
 0xaac   : > { %v15850_v58 = vpack.c.bf16 %v15829_v57, %v15828_v44  ;;  %v15830_v16 = vadd.f32 %v15757_v6, %v15670_v4 }
 0xaad   : > { %v15759_v5 = vpop.permute.xlu1 %15758 }
 0xaae   : > { %v15831_v11 = vadd.f32 %v15759_v5, %v15671_v49 }
 0xaaf   : > { %v15761_v52 = vpop.permute.xlu0 %15760 }
 0xab0   : > { %v15851_v63 = vpack.c.bf16 %v15831_v11, %v15830_v16  ;;  %v15832_v35 = vadd.f32 %v15761_v52, %v15672_v0 }
 0xab1   : > { %v15763_v10 = vpop.permute.xlu1 %15762  ;;  %19804 = vmatmul.mubr.msk.bf16.gmra.mrb[80].mxu0 %vm588_vm3, %v15849_v15 }
 0xab2   : > { %v15833_v55 = vadd.f32 %v15763_v10, %v15673_v29  ;;  %19807 = vmatprep.mubr.msk.bf16.mxu0 %vm588_vm3, %v15850_v58 }
 0xab3   : > { %v15765_v47 = vpop.permute.xlu0 %15764 }
 0xab4   : > { %v15852_v12 = vpack.c.bf16 %v15833_v55, %v15832_v35  ;;  %v15834_v39 = vadd.f32 %v15765_v47, %v15674_v8 }
 0xab5   : > { %v15767_v21 = vpop.permute.xlu1 %15766 }
 0xab6   : > { %v15835_v19 = vadd.f32 %v15767_v21, %v15675_v30 }
 0xab7   : > { %v15769_v40 = vpop.permute.xlu0 %15768 }
 0xab8   : > { %v15853_v24 = vpack.c.bf16 %v15835_v19, %v15834_v39  ;;  %v15836_v9 = vadd.f32 %v15769_v40, %v15676_v7 }
 0xab9   : > { %v15771_v51 = vpop.permute.xlu1 %15770  ;;  %19808 = vmatmul.mubr.msk.bf16.gmra.mrb[84].mxu0 %vm588_vm3, %v15851_v63 }
 0xaba   : > { %v15837_v54 = vadd.f32 %v15771_v51, %v15677_v42  ;;  %19811 = vmatprep.mubr.msk.bf16.mxu0 %vm588_vm3, %v15852_v12 }
 0xabb   : > { %v15773_v23 = vpop.permute.xlu0 %15772 }
 0xabc   : > { %v15854_v22 = vpack.c.bf16 %v15837_v54, %v15836_v9  ;;  %v15838_v18 = vadd.f32 %v15773_v23, %v15678_v56 }
 0xabd   : > { %v15775_v41 = vpop.permute.xlu1 %15774 }
 0xabe   : > { %v15839_v53 = vadd.f32 %v15775_v41, %v15679_v59 }
 0xac0   : > { %v15855_v60 = vpack.c.bf16 %v15839_v53, %v15838_v18 }
 0xac1   : > { %19812 = vmatmul.mubr.msk.bf16.gmra.mrb[88].mxu0 %vm588_vm3, %v15853_v24 }
 0xac2   : > { %19815 = vmatprep.mubr.msk.bf16.mxu0 %vm588_vm3, %v15854_v22 }
 0xac9   : > { %19816 = vmatmul.mubr.msk.bf16.gmra.mrb[92].mxu0 %vm588_vm3, %v15855_v60 }
 0xb64   : > { %v19789_v37 = vpop.f32.mrb[64].mxu0 }
 0xb65   : > { %v15942_v43 = vpop.f32.mrb[65].mxu0  ;;  %v19851_v62 = vadd.f32 %v19789_v37, %v25767_v34 }
 0xb66   : > { %v19852_v61 = vadd.f32 %v25767_v34, %v15942_v43  ;;  %v19790_v31 = vpop.f32.mrb[66].mxu0 }
 0xb67   : > { %v15945_v25 = vpop.f32.mrb[67].mxu0  ;;  %v19853_v45 = vadd.f32 %v19790_v31, %v25767_v34 }
 0xb68   : > { %16069 = vxpose.xlu0.b32.start [1/16] (narrow) %v19852_v61, 8  ;;  %v19854_v20 = vadd.f32 %v25767_v34, %v15945_v25 }
 0xb6c   : > { %v19793_v33 = vpop.f32.mrb[68].mxu0  ;;  %16070 = vxpose.xlu0.b32.cont [2/16] (narrow) %v19854_v20, 8 }
 0xb6d   : > { %v15958_v2 = vpop.f32.mrb[69].mxu0  ;;  %v19855_v4 = vadd.f32 %v19793_v33, %v25767_v34 }
 0xb6e   : > { %v19794_v15 = vpop.f32.mrb[70].mxu0  ;;  %v19856_v26 = vadd.f32 %v25767_v34, %v15958_v2 }
 0xb6f   : > { %v15961_v50 = vpop.f32.mrb[71].mxu0  ;;  %v19857_v5 = vadd.f32 %v19794_v15, %v25767_v34 }
 0xb70   : > { %16071 = vxpose.xlu0.b32.cont [3/16] (narrow) %v19851_v62, 8  ;;  %v19858_v6 = vadd.f32 %v25767_v34, %v15961_v50 }
 0xb74   : > { %v19797_v1 = vpop.f32.mrb[72].mxu0  ;;  %16072 = vxpose.xlu0.b32.cont [4/16] (narrow) %v19853_v45, 8 }
 0xb75   : > { %v15974_v3 = vpop.f32.mrb[73].mxu0  ;;  %v19859_v55 = vadd.f32 %v19797_v1, %v25767_v34 }
 0xb76   : > { %v19798_v44 = vpop.f32.mrb[74].mxu0  ;;  %v19860_v52 = vadd.f32 %v25767_v34, %v15974_v3 }
 0xb77   : > { %v15977_v57 = vpop.f32.mrb[75].mxu0  ;;  %v19861_v8 = vadd.f32 %v19798_v44, %v25767_v34 }
 0xb78   : > { %16073 = vxpose.xlu0.b32.cont [5/16] (narrow) %v19856_v26, 8  ;;  %v19862_v14 = vadd.f32 %v25767_v34, %v15977_v57 }
 0xb7c   : > { %v19801_v58 = vpop.f32.mrb[76].mxu0  ;;  %16074 = vxpose.xlu0.b32.cont [6/16] (narrow) %v19858_v6, 8 }
 0xb7d   : > { %v15990_v38 = vpop.f32.mrb[77].mxu0  ;;  %v19863_v17 = vadd.f32 %v19801_v58, %v25767_v34 }
 0xb7e   : > { %v19802_v46 = vpop.f32.mrb[78].mxu0  ;;  %v19864_v19 = vadd.f32 %v25767_v34, %v15990_v38 }
 0xb7f   : > { %v15993_v49 = vpop.f32.mrb[79].mxu0  ;;  %v19865_v60 = vadd.f32 %v19802_v46, %v25767_v34 }
 0xb80   : > { %16075 = vxpose.xlu0.b32.cont [7/16] (narrow) %v19855_v4, 8  ;;  %v19866_v51 = vadd.f32 %v25767_v34, %v15993_v49 }
 0xb84   : > { %v19805_v16 = vpop.f32.mrb[80].mxu0  ;;  %16076 = vxpose.xlu0.b32.cont [8/16] (narrow) %v19857_v5, 8 }
 0xb85   : > { %v16006_v11 = vpop.f32.mrb[81].mxu0  ;;  %v19867_v47 = vadd.f32 %v19805_v16, %v25767_v34 }
 0xb86   : > { %v19868_v63 = vadd.f32 %v25767_v34, %v16006_v11  ;;  %v19806_v27 = vpop.f32.mrb[82].mxu0 }
 0xb87   : > { %v16009_v0 = vpop.f32.mrb[83].mxu0  ;;  %v19869_v13 = vadd.f32 %v19806_v27, %v25767_v34 }
 0xb88   : > { %16101 = vxpose.xlu1.b32.start [1/16] (narrow) %v19868_v63, 8  ;;  %16077 = vxpose.xlu0.b32.cont [9/16] (narrow) %v19860_v52, 8  ;;  %v19870_v29 = vadd.f32 %v25767_v34, %v16009_v0 }
 0xb8c   : > { %v19809_v10 = vpop.f32.mrb[84].mxu0  ;;  %16102 = vxpose.xlu1.b32.cont [2/16] (narrow) %v19870_v29, 8  ;;  %16078 = vxpose.xlu0.b32.cont [10/16] (narrow) %v19862_v14, 8 }
 0xb8d   : > { %v16022_v35 = vpop.f32.mrb[85].mxu0  ;;  %v19871_v56 = vadd.f32 %v19809_v10, %v25767_v34 }
 0xb8e   : > { %v19810_v12 = vpop.f32.mrb[86].mxu0  ;;  %v19872_v40 = vadd.f32 %v25767_v34, %v16022_v35 }
 0xb8f   : > { %v16025_v48 = vpop.f32.mrb[87].mxu0  ;;  %v19873_v37 = vadd.f32 %v19810_v12, %v25767_v34 }
 0xb90   : > { %16103 = vxpose.xlu1.b32.cont [3/16] (narrow) %v19867_v47, 8  ;;  %16079 = vxpose.xlu0.b32.cont [11/16] (narrow) %v19859_v55, 8  ;;  %v19874_v9 = vadd.f32 %v25767_v34, %v16025_v48 }
 0xb94   : > { %v19813_v30 = vpop.f32.mrb[88].mxu0  ;;  %16104 = vxpose.xlu1.b32.cont [4/16] (narrow) %v19869_v13, 8  ;;  %16080 = vxpose.xlu0.b32.cont [12/16] (narrow) %v19861_v8, 8 }
 0xb95   : > { %v19875_v21 = vadd.f32 %v19813_v30, %v25767_v34  ;;  %v16038_v39 = vpop.f32.mrb[89].mxu0 }
 0xb96   : > { %v19876_v24 = vadd.f32 %v25767_v34, %v16038_v39  ;;  %v19814_v28 = vpop.f32.mrb[90].mxu0 }
 0xb97   : > { %v19877_v7 = vadd.f32 %v19814_v28, %v25767_v34  ;;  %v16041_v32 = vpop.f32.mrb[91].mxu0 }
 0xb98   : > { %v19878_v42 = vadd.f32 %v25767_v34, %v16041_v32  ;;  %16105 = vxpose.xlu1.b32.cont [5/16] (narrow) %v19872_v40, 8  ;;  %16081 = vxpose.xlu0.b32.cont [13/16] (narrow) %v19864_v19, 8 }
 0xb9c   : > { %v19817_v54 = vpop.f32.mrb[92].mxu0  ;;  %16106 = vxpose.xlu1.b32.cont [6/16] (narrow) %v19874_v9, 8  ;;  %16082 = vxpose.xlu0.b32.cont [14/16] (narrow) %v19866_v51, 8 }
 0xb9d   : > { %v19879_v23 = vadd.f32 %v19817_v54, %v25767_v34  ;;  %v16054_v22 = vpop.f32.mrb[93].mxu0 }
 0xb9e   : > { %v19880_v36 = vadd.f32 %v25767_v34, %v16054_v22  ;;  %v19818_v59 = vpop.f32.mrb[94].mxu0 }
 0xb9f   : > { %v19881_v41 = vadd.f32 %v19818_v59, %v25767_v34  ;;  %v16057_v18 = vpop.f32.mrb[95].mxu0 }
 0xba0   : > { %v19882_v53 = vadd.f32 %v25767_v34, %v16057_v18  ;;  %16107 = vxpose.xlu1.b32.cont [7/16] (narrow) %v19871_v56, 8  ;;  %16083 = vxpose.xlu0.b32.cont [15/16] (narrow) %v19863_v17, 8 }
 0xba4   : > { %16108 = vxpose.xlu1.b32.cont [8/16] (narrow) %v19873_v37, 8  ;;  %16084 = vxpose.xlu0.b32.end [16/16] (narrow) %v19865_v60, 8 }
 0xba8   : > { %16109 = vxpose.xlu1.b32.cont [9/16] (narrow) %v19876_v24, 8 }
 0xbac   : > { %16110 = vxpose.xlu1.b32.cont [10/16] (narrow) %v19878_v42, 8 }
 0xbb0   : > { %16111 = vxpose.xlu1.b32.cont [11/16] (narrow) %v19875_v21, 8 }
 0xbb4   : > { %16112 = vxpose.xlu1.b32.cont [12/16] (narrow) %v19877_v7, 8 }
 0xbb8   : > { %16113 = vxpose.xlu1.b32.cont [13/16] (narrow) %v19880_v36, 8 }
 0xbbc   : > { %16114 = vxpose.xlu1.b32.cont [14/16] (narrow) %v19882_v53, 8 }
 0xbc0   : > { %16115 = vxpose.xlu1.b32.cont [15/16] (narrow) %v19879_v23, 8 }
 0xbc4   : > { %16116 = vxpose.xlu1.b32.end [16/16] (narrow) %v19881_v41, 8 }
 0xbe8   : > { %v16085_v43 = vpop.trf.xlu0 }
 0xbe9   : > { %16133 = vst [vmem:[%s554_s23] sm:$0xff] %v16085_v43 }
 0xc08   : > { %v16117_v61 = vpop.trf.xlu1 }
 0xc09   : > { %16134 = vst [vmem:[%s554_s23 + $0x8] sm:$0xff] %v16117_v61 }
 0xc0a PF: > { %s25_s18 = sadd.s32 1, %s21256_s18  }
 0xc0b   : > { %p22_p4 = scmp.ge.s32.totalorder %s25_s18, 4  }
 0xc0d   :  { %24 = sbr.rel (!%p22_p4) target bundleno = 1 (0x1), region = 174 }

</bundles_post_ra>
